<compile_context>
chip_gen: v6e
topology: v6e:2x2x1
jax: 0.10.0
libtpu: 0.0.40
codegen_flags: <defaults>
</compile_context>

<pallas_src>
import functools

import jax
import jax.numpy as jnp
from jax import lax
from jax.experimental import pallas as pl
from jax.experimental.pallas import tpu as pltpu


# ----------------------------------------------------------------------------
# Pallas kernel: grouped-tap strided conv along H as ceil(K/S) MXU matmuls
# + one sliced add per extra group + fused bias (+ SiLU), bf16 out.
#
# Refs per grid step (c = Co-tile index, i = row-block index):
#   x_ref   : (tbw*G, S*Ci) bf16   row g of bw packs padded rows [g*S, g*S+S)
#   w_ref_g : (n_r*Ci, tco) bf16   stacked taps of group g (resident across i)
#   b_ref   : (1, tco)      f32
#   o_ref   : (tbw*G, tco)  bf16   rows >= prefix are junk (sliced off outside)
# ----------------------------------------------------------------------------
def _gconv_kernel(*refs, widths, apply_silu):
    n_groups = len(widths)
    x_ref = refs[0]
    w_refs = refs[1:1 + n_groups]
    b_ref = refs[1 + n_groups]
    o_ref = refs[2 + n_groups]

    lhs = x_ref[...]                              # (m, S*Ci) bf16, loaded once
    m = lhs.shape[0]
    prefix = m - (n_groups - 1)                   # every valid output row lies here

    # Group 0: contraction over S taps at once -> the MXU accumulates the taps.
    acc = jnp.dot(lhs[0:prefix, :widths[0]], w_refs[0][...],
                  preferred_element_type=jnp.float32)
    # Extra groups: same block shifted by g0 rows (one sliced add each).
    for g0 in range(1, n_groups):
        acc = acc + jnp.dot(lhs[g0:g0 + prefix, :widths[g0]], w_refs[g0][...],
                            preferred_element_type=jnp.float32)

    acc = acc + b_ref[...]
    if apply_silu:
        acc = acc * jax.nn.sigmoid(acc)           # SiLU = x * sigmoid(x)
    o_ref[pl.ds(0, prefix), :] = acc.astype(o_ref.dtype)


def _vmem_budget_bytes():
    cap = 64 * 1024 * 1024
    try:
        info = pltpu.get_tpu_info()
        cap = int(getattr(info, "vmem_capacity_bytes", cap))
    except Exception:
        pass
    return (3 * cap) // 4          # ~96 MiB on v5e/v6e, ~48 MiB on v7x


def _footprint_bytes(m, in_w, widths, tco):
    """Conservative pipelined-VMEM footprint for one grid step."""
    inp = 2 * m * in_w * 2                         # double-buffered bf16 input block
    out = 2 * m * tco * 2                          # double-buffered bf16 output block
    wgt = 2 * sum(widths) * tco * 2                # weights (counted double-buffered)
    bias = 2 * tco * 4
    scr = m * in_w * 2 + 3 * m * tco * 4           # loaded lhs + f32 acc/temporaries
    return inp + out + wgt + bias + scr


def _plan_tiles(BW, G, in_w, Co, widths):
    """Pick (row-block tbw, Co tile tco, vmem_limit) or None if nothing fits."""
    budget = _vmem_budget_bytes()
    target_rows = 512                              # MXU M target (>=256 v6e/v7x, >=128 v5e)

    divs = [d for d in range(1, BW + 1) if BW % d == 0]
    feas = [d for d in divs if (d * G) % 8 == 0] or [BW]   # (8,128) block rule (or full)
    fit = [d for d in feas if d * G <= target_rows]
    tbw = max(fit) if fit else min(feas)

    co_tiles = [Co] + [c for c in (512, 256, 128) if c < Co and Co % c == 0]
    tco = next((c for c in co_tiles
                if _footprint_bytes(tbw * G, in_w, widths, c) <= budget), None)
    if tco is None:
        for d in sorted(feas):
            if _footprint_bytes(d * G, in_w, widths, co_tiles[-1]) <= budget:
                tbw, tco = d, co_tiles[-1]
                break
    if tco is None:
        return None

    # v7x megacore: prefer >= 4 total grid steps (2 per TensorCore) for DMA overlap,
    # as long as the matmul M dim stays >= 256 rows.
    if (Co // tco) * (BW // tbw) < 4:
        smaller = [d for d in feas if d < tbw and d * G >= 256]
        if smaller:
            tbw = max(smaller)
    return tbw, tco, int(budget)


def _xla_conv(a, w_kio, bias, *, stride, apply_silu):
    """Plain XLA conv along axis 1 of (BW, H, Ci); used for degenerate channel counts."""
    K = w_kio.shape[0]
    P = K // 2
    y = lax.conv_general_dilated(
        a.astype(jnp.bfloat16), w_kio.astype(jnp.bfloat16), (stride,), [(P, P)],
        dimension_numbers=("NHC", "HIO", "NHC"),
        preferred_element_type=jnp.float32)
    y = y + bias.reshape(1, 1, -1)
    if apply_silu:
        y = y * jax.nn.sigmoid(y)
    return y


def _pallas_group_conv(a, group_w, bias, *, kernel_size, stride, apply_silu):
    """(BW, H, Ci) -> (BW, Ho, Co) bf16: conv along H, kernel K / stride S / pad K//2,
    fused bias (+ SiLU).  One padded copy, one DMA of the activation, ceil(K/S) matmuls."""
    BW, H, Ci = a.shape
    Co = bias.shape[-1]
    K, S = kernel_size, stride
    P = K // 2
    Ho = (H + 2 * P - K) // S + 1
    n_groups = len(group_w)
    widths = tuple(int(w.shape[0]) for w in group_w)
    G = max(Ho + n_groups - 1, -(-(H + 2 * P) // S))   # group-rows incl. shift headroom
    Hp = G * S

    plan = _plan_tiles(BW, G, S * Ci, Co, widths)
    if plan is None:
        # TODO(synk): halo-tiled H path for inputs too long for a full-H VMEM slab.
        w_full = jnp.concatenate([w.reshape(-1, Ci, Co) for w in group_w], axis=0)
        return _xla_conv(a, w_full, bias, stride=S, apply_silu=apply_silu)
    tbw, tco, vmem_limit = plan
    n_co, n_bw = Co // tco, BW // tbw

    # Single padded bf16 copy; row g of bw packs padded rows [g*S, g*S+S) channel-major.
    x2d = jnp.pad(a.astype(jnp.bfloat16),
                  ((0, 0), (P, Hp - H - P), (0, 0))).reshape(BW * G, S * Ci)

    kernel = functools.partial(_gconv_kernel, widths=widths, apply_silu=apply_silu)
    in_specs = [pl.BlockSpec((tbw * G, S * Ci), lambda c, i: (i, 0))]
    in_specs += [pl.BlockSpec((w, tco), lambda c, i: (0, c)) for w in widths]
    in_specs += [pl.BlockSpec((1, tco), lambda c, i: (0, c))]

    out2d = pl.pallas_call(
        kernel,
        out_shape=jax.ShapeDtypeStruct((BW * G, Co), jnp.bfloat16),
        grid=(n_co, n_bw),
        in_specs=in_specs,
        out_specs=pl.BlockSpec((tbw * G, tco), lambda c, i: (i, c)),
        compiler_params=pltpu.CompilerParams(
            dimension_semantics=("parallel", "parallel"),
            vmem_limit_bytes=vmem_limit,
        ),
    )(x2d, *group_w, bias)

    # Drop the (G - Ho) junk rows per bw; this slice fuses into the consumer
    # (next layer's pad / the fmap transpose), so it is not an extra HBM pass.
    return out2d.reshape(BW, G, Co)[:, :Ho, :]


def _rows_to_nchw(a, b, period):
    """(B*W, Ho, Co) rows (bf16 or f32) -> NCHW (B, Co, Ho, W) f32 for fmap parity."""
    bw, ho, co = a.shape
    return jnp.transpose(a.reshape(b, period, ho, co), (0, 3, 2, 1)).astype(jnp.float32)


# ----------------------------------------------------------------------------
# Parameters: deterministic init in PyTorch layout + one-time kernel-layout prep.
# ----------------------------------------------------------------------------
def init_params(key, channels, kernel_size):
    params = []
    keys = jax.random.split(key, len(channels))
    for i, (ci, co) in enumerate(zip(channels[:-1], channels[1:])):
        wk, bk = jax.random.split(keys[i])
        w = jax.random.normal(wk, (co, ci, kernel_size), jnp.float32) / jnp.sqrt(ci * kernel_size)
        b = 0.01 * jax.random.normal(bk, (co,), jnp.float32)
        params.append((w, b))
    # conv_post: Conv2d(channels[-1], 1, (3, 1), 1, padding=(1, 0))
    wk, bk = jax.random.split(keys[-1])
    w = jax.random.normal(wk, (1, channels[-1], 3), jnp.float32) / jnp.sqrt(channels[-1] * 3)
    b = 0.01 * jax.random.normal(bk, (1,), jnp.float32)
    params.append((w, b))
    return params


def prepare_params(params, *, stride):
    """(Co,Ci,K) f32 weights -> per-layer kernel layout.

    Returns (arrays, meta): `arrays` is a pytree of jnp arrays (jit operand), `meta`
    is static python per-layer info.  Pallas-eligible layers get per-group stacked
    bf16 weight matrices (n_r*Ci, Co); degenerate layers keep (K, Ci, Co) bf16.
    """
    arrays, meta = [], []
    n = len(params)
    for li, (w, bias) in enumerate(params):
        co, ci, k = w.shape
        s = 1 if li == n - 1 else stride
        w_kio = jnp.transpose(w, (2, 1, 0))                  # (K, Ci, Co)
        bias2d = bias.reshape(1, co).astype(jnp.float32)
        use_pallas = (co % 128 == 0) and (ci % 8 == 0)
        if use_pallas:
            n_groups = -(-k // s)
            gw = tuple(
                w_kio[g0 * s: g0 * s + min(s, k - g0 * s)]
                .reshape(min(s, k - g0 * s) * ci, co).astype(jnp.bfloat16)
                for g0 in range(n_groups))
            arrays.append((gw, bias2d))
        else:
            arrays.append((w_kio.astype(jnp.bfloat16), bias2d))
        meta.append({"kind": "pallas" if use_pallas else "xla", "k": k, "s": s})
    return arrays, meta


# ----------------------------------------------------------------------------
# Forward pass (matches DiscriminatorP.forward).
# ----------------------------------------------------------------------------
def discriminator_p_forward(x, layer_arrays, *, meta, period):
    b, c, t = x.shape
    if t % period != 0:
        x = jnp.pad(x, ((0, 0), (0, 0), (0, period - t % period)))
        t = x.shape[-1]
    h = t // period
    # NCT -> (B, C, H, W) -> channels-last rows (B*W, H, C); the convs only touch H.
    a = jnp.transpose(x.reshape(b, c, h, period), (0, 3, 2, 1)).reshape(b * period, h, c)

    fmap = []
    n = len(meta)
    for li, (m, arrs) in enumerate(zip(meta, layer_arrays)):
        silu = li < n - 1                                    # conv_post has no activation
        if m["kind"] == "pallas":
            gw, bias = arrs
            a = _pallas_group_conv(a, gw, bias, kernel_size=m["k"], stride=m["s"],
                                   apply_silu=silu)
        else:
            w_kio, bias = arrs
            a = _xla_conv(a, w_kio, bias, stride=m["s"], apply_silu=silu)
        fmap.append(_rows_to_nchw(a, b, period))             # NCHW f32 for fmap parity
    # TODO(synk): fuse the Ci>=256 small-Ho layers + conv_post into one pallas_call with
    # VMEM-resident weights/activations to remove the remaining tiny-layer launches.
    return fmap[-1].reshape(b, -1), fmap                     # torch.flatten(x, 1, -1)


# ----------------------------------------------------------------------------
# Pure-XLA reference (direct NCHW port of the PyTorch module, same bf16 casts).
# ----------------------------------------------------------------------------
def _ref_forward(x, params, *, period, kernel_size=5, stride=3):
    b, c, t = x.shape
    if t % period != 0:
        x = jnp.pad(x, ((0, 0), (0, 0), (0, period - t % period)))
        t = x.shape[-1]
    x = x.reshape(b, c, t // period, period)
    fmap = []
    for w, bias in params[:-1]:
        x = lax.conv_general_dilated(
            x.astype(jnp.bfloat16), w[..., None].astype(jnp.bfloat16), (stride, 1),
            [(kernel_size // 2, kernel_size // 2), (0, 0)],
            dimension_numbers=("NCHW", "OIHW", "NCHW"),
            preferred_element_type=jnp.float32)
        x = x + bias[None, :, None, None]
        x = x * jax.nn.sigmoid(x)
        fmap.append(x)
    w, bias = params[-1]
    x = lax.conv_general_dilated(
        x.astype(jnp.bfloat16), w[..., None].astype(jnp.bfloat16), (1, 1),
        [(1, 1), (0, 0)],
        dimension_numbers=("NCHW", "OIHW", "NCHW"),
        preferred_element_type=jnp.float32)
    x = x + bias[None, :, None, None]
    fmap.append(x)
    return x.reshape(b, -1), fmap


if __name__ == "__main__":
    key = jax.random.PRNGKey(0)
    k_x, k_p = jax.random.split(key)

    period = 3
    kernel_size, stride = 5, 3
    channels = [1, 64, 128, 256, 512, 1024]            # module defaults

    B, C, T = 2, 1, 190                                # T % period != 0 -> padding branch
    x = jax.random.normal(k_x, (B, C, T), jnp.float32)
    params = init_params(k_p, channels, kernel_size)
    arrays, meta = prepare_params(params, stride=stride)   # one-time kernel-layout prep

    run = jax.jit(functools.partial(discriminator_p_forward, meta=meta, period=period))
    flat, fmap = run(x, arrays)
    flat = jax.block_until_ready(flat)
    fmap = [jax.block_until_ready(f) for f in fmap]

    ref_flat, ref_fmap = _ref_forward(
        x, params, period=period, kernel_size=kernel_size, stride=stride)

    assert flat.shape == ref_flat.shape
    assert all(f.shape == rf.shape for f, rf in zip(fmap, ref_fmap))
    # Both paths feed bf16 inputs to every conv and accumulate in f32; the Pallas path
    # additionally stores activations/fmaps in bf16, so allow ~1% tolerance (a bf16
    # rounding is <=0.2% relative, plus occasional 1-ulp re-rounding differences).
    assert jnp.allclose(flat, ref_flat, rtol=1e-2, atol=1e-2)
    for f, rf in zip(fmap, ref_fmap):
        assert jnp.allclose(f, rf, rtol=1e-2, atol=1e-2)

    print("KERNEL_OK")
</pallas_src>

<mosaic_0001>
module attributes {stable_mosaic.version = 11 : i64} {
  func.func @_gconv_kernel(%arg0: i32, %arg1: i32, %arg2: memref<54x192xbf16, #tpu.memory_space<vmem>>, %arg3: memref<192x128xbf16, #tpu.memory_space<vmem>>, %arg4: memref<128x128xbf16, #tpu.memory_space<vmem>>, %arg5: memref<1x128xf32, #tpu.memory_space<vmem>>, %arg6: memref<54x128xbf16, #tpu.memory_space<vmem>>) attributes {dimension_semantics = [#tpu.dimension_semantics<parallel>, #tpu.dimension_semantics<parallel>], iteration_bounds = array<i64: 1, 1>, scalar_prefetch = 0 : i64, scratch_operands = 0 : i64, tpu.core_type = #tpu.core_type<tc>, window_params = [{transform_indices = @transform_0, window_bounds = array<i64: 54, 192>}, {transform_indices = @transform_1, window_bounds = array<i64: 192, 128>}, {transform_indices = @transform_2, window_bounds = array<i64: 128, 128>}, {transform_indices = @transform_3, window_bounds = array<i64: 1, 128>}, {transform_indices = @transform_4, window_bounds = array<i64: 54, 128>}]} {
    %c0 = arith.constant 0 : index
    %c0_0 = arith.constant 0 : index
    %0 = vector.load %arg2[%c0, %c0_0] : memref<54x192xbf16, #tpu.memory_space<vmem>>, vector<54x192xbf16>
    %1 = vector.extract_strided_slice %0 {offsets = [0, 0], sizes = [53, 192], strides = [1, 1]} : vector<54x192xbf16> to vector<53x192xbf16>
    %c0_1 = arith.constant 0 : index
    %c0_2 = arith.constant 0 : index
    %2 = vector.load %arg3[%c0_1, %c0_2] : memref<192x128xbf16, #tpu.memory_space<vmem>>, vector<192x128xbf16>
    %cst = arith.constant dense<0.000000e+00> : vector<53x128xf32>
    %3 = tpu.matmul %1, %2, %cst {dimension_numbers = #tpu.dot_dimension_numbers<[1], [0], [0], [1], [0, 0, 1, 1], [], []>} : vector<53x192xbf16>, vector<192x128xbf16>, vector<53x128xf32> -> vector<53x128xf32>
    %4 = vector.extract_strided_slice %0 {offsets = [1, 0], sizes = [53, 128], strides = [1, 1]} : vector<54x192xbf16> to vector<53x128xbf16>
    %c0_3 = arith.constant 0 : index
    %c0_4 = arith.constant 0 : index
    %5 = vector.load %arg4[%c0_3, %c0_4] : memref<128x128xbf16, #tpu.memory_space<vmem>>, vector<128x128xbf16>
    %cst_5 = arith.constant dense<0.000000e+00> : vector<53x128xf32>
    %6 = tpu.matmul %4, %5, %cst_5 {dimension_numbers = #tpu.dot_dimension_numbers<[1], [0], [0], [1], [0, 0, 1, 1], [], []>} : vector<53x128xbf16>, vector<128x128xbf16>, vector<53x128xf32> -> vector<53x128xf32>
    %7 = arith.addf %3, %6 : vector<53x128xf32>
    %c0_6 = arith.constant 0 : index
    %c0_7 = arith.constant 0 : index
    %8 = vector.load %arg5[%c0_6, %c0_7] : memref<1x128xf32, #tpu.memory_space<vmem>>, vector<1x128xf32>
    %9 = vector.broadcast %8 : vector<1x128xf32> to vector<53x128xf32>
    %10 = arith.addf %7, %9 : vector<53x128xf32>
    %11 = arith.negf %10 : vector<53x128xf32>
    %12 = math.exp %11 : vector<53x128xf32>
    %cst_8 = arith.constant 1.000000e+00 : f32
    %13 = vector.broadcast %cst_8 : f32 to vector<53x128xf32>
    %14 = arith.addf %13, %12 : vector<53x128xf32>
    %15 = arith.divf %13, %14 : vector<53x128xf32>
    %16 = arith.mulf %10, %15 : vector<53x128xf32>
    %17 = arith.truncf %16 : vector<53x128xf32> to vector<53x128xbf16>
    %c0_9 = arith.constant 0 : index
    %c0_10 = arith.constant 0 : index
    %18 = vector.load %arg6[%c0_9, %c0_10] : memref<54x128xbf16, #tpu.memory_space<vmem>>, vector<53x128xbf16>
    tpu.vector_store %arg6[%c0_9, %c0_10], %17 {strides = array<i32>} : memref<54x128xbf16, #tpu.memory_space<vmem>>, vector<53x128xbf16>,
    return
  }
  func.func @transform_0(%arg0: i32, %arg1: i32) -> (i32, i32) {
    %c0_i32 = arith.constant 0 : i32
    %c0_i32_0 = arith.constant 0 : i32
    return %arg1, %c0_i32 : i32, i32
  }
  func.func @transform_1(%arg0: i32, %arg1: i32) -> (i32, i32) {
    %c0_i32 = arith.constant 0 : i32
    %c0_i32_0 = arith.constant 0 : i32
    return %c0_i32, %arg0 : i32, i32
  }
  func.func @transform_2(%arg0: i32, %arg1: i32) -> (i32, i32) {
    %c0_i32 = arith.constant 0 : i32
    %c0_i32_0 = arith.constant 0 : i32
    return %c0_i32, %arg0 : i32, i32
  }
  func.func @transform_3(%arg0: i32, %arg1: i32) -> (i32, i32) {
    %c0_i32 = arith.constant 0 : i32
    %c0_i32_0 = arith.constant 0 : i32
    return %c0_i32, %arg0 : i32, i32
  }
  func.func @transform_4(%arg0: i32, %arg1: i32) -> (i32, i32) {
    %c0_i32 = arith.constant 0 : i32
    return %arg1, %arg0 : i32, i32
  }
}

module attributes {stable_mosaic.version = 11 : i64} {
  func.func @_gconv_kernel(%arg0: i32, %arg1: i32, %arg2: memref<24x384xbf16, #tpu.memory_space<vmem>>, %arg3: memref<384x256xbf16, #tpu.memory_space<vmem>>, %arg4: memref<256x256xbf16, #tpu.memory_space<vmem>>, %arg5: memref<1x256xf32, #tpu.memory_space<vmem>>, %arg6: memref<24x256xbf16, #tpu.memory_space<vmem>>) attributes {dimension_semantics = [#tpu.dimension_semantics<parallel>, #tpu.dimension_semantics<parallel>], iteration_bounds = array<i64: 1, 1>, scalar_prefetch = 0 : i64, scratch_operands = 0 : i64, tpu.core_type = #tpu.core_type<tc>, window_params = [{transform_indices = @transform_0, window_bounds = array<i64: 24, 384>}, {transform_indices = @transform_1, window_bounds = array<i64: 384, 256>}, {transform_indices = @transform_2, window_bounds = array<i64: 256, 256>}, {transform_indices = @transform_3, window_bounds = array<i64: 1, 256>}, {transform_indices = @transform_4, window_bounds = array<i64: 24, 256>}]} {
    %c0 = arith.constant 0 : index
    %c0_0 = arith.constant 0 : index
    %0 = vector.load %arg2[%c0, %c0_0] : memref<24x384xbf16, #tpu.memory_space<vmem>>, vector<24x384xbf16>
    %1 = vector.extract_strided_slice %0 {offsets = [0, 0], sizes = [23, 384], strides = [1, 1]} : vector<24x384xbf16> to vector<23x384xbf16>
    %c0_1 = arith.constant 0 : index
    %c0_2 = arith.constant 0 : index
    %2 = vector.load %arg3[%c0_1, %c0_2] : memref<384x256xbf16, #tpu.memory_space<vmem>>, vector<384x256xbf16>
    %cst = arith.constant dense<0.000000e+00> : vector<23x256xf32>
    %3 = tpu.matmul %1, %2, %cst {dimension_numbers = #tpu.dot_dimension_numbers<[1], [0], [0], [1], [0, 0, 1, 1], [], []>} : vector<23x384xbf16>, vector<384x256xbf16>, vector<23x256xf32> -> vector<23x256xf32>
    %4 = vector.extract_strided_slice %0 {offsets = [1, 0], sizes = [23, 256], strides = [1, 1]} : vector<24x384xbf16> to vector<23x256xbf16>
    %c0_3 = arith.constant 0 : index
    %c0_4 = arith.constant 0 : index
    %5 = vector.load %arg4[%c0_3, %c0_4] : memref<256x256xbf16, #tpu.memory_space<vmem>>, vector<256x256xbf16>
    %cst_5 = arith.constant dense<0.000000e+00> : vector<23x256xf32>
    %6 = tpu.matmul %4, %5, %cst_5 {dimension_numbers = #tpu.dot_dimension_numbers<[1], [0], [0], [1], [0, 0, 1, 1], [], []>} : vector<23x256xbf16>, vector<256x256xbf16>, vector<23x256xf32> -> vector<23x256xf32>
    %7 = arith.addf %3, %6 : vector<23x256xf32>
    %c0_6 = arith.constant 0 : index
    %c0_7 = arith.constant 0 : index
    %8 = vector.load %arg5[%c0_6, %c0_7] : memref<1x256xf32, #tpu.memory_space<vmem>>, vector<1x256xf32>
    %9 = vector.broadcast %8 : vector<1x256xf32> to vector<23x256xf32>
    %10 = arith.addf %7, %9 : vector<23x256xf32>
    %11 = arith.negf %10 : vector<23x256xf32>
    %12 = math.exp %11 : vector<23x256xf32>
    %cst_8 = arith.constant 1.000000e+00 : f32
    %13 = vector.broadcast %cst_8 : f32 to vector<23x256xf32>
    %14 = arith.addf %13, %12 : vector<23x256xf32>
    %15 = arith.divf %13, %14 : vector<23x256xf32>
    %16 = arith.mulf %10, %15 : vector<23x256xf32>
    %17 = arith.truncf %16 : vector<23x256xf32> to vector<23x256xbf16>
    %c0_9 = arith.constant 0 : index
    %c0_10 = arith.constant 0 : index
    %18 = vector.load %arg6[%c0_9, %c0_10] : memref<24x256xbf16, #tpu.memory_space<vmem>>, vector<23x256xbf16>
    tpu.vector_store %arg6[%c0_9, %c0_10], %17 {strides = array<i32>} : memref<24x256xbf16, #tpu.memory_space<vmem>>, vector<23x256xbf16>,
    return
  }
  func.func @transform_0(%arg0: i32, %arg1: i32) -> (i32, i32) {
    %c0_i32 = arith.constant 0 : i32
    %c0_i32_0 = arith.constant 0 : i32
    return %arg1, %c0_i32 : i32, i32
  }
  func.func @transform_1(%arg0: i32, %arg1: i32) -> (i32, i32) {
    %c0_i32 = arith.constant 0 : i32
    %c0_i32_0 = arith.constant 0 : i32
    return %c0_i32, %arg0 : i32, i32
  }
  func.func @transform_2(%arg0: i32, %arg1: i32) -> (i32, i32) {
    %c0_i32 = arith.constant 0 : i32
    %c0_i32_0 = arith.constant 0 : i32
    return %c0_i32, %arg0 : i32, i32
  }
  func.func @transform_3(%arg0: i32, %arg1: i32) -> (i32, i32) {
    %c0_i32 = arith.constant 0 : i32
    %c0_i32_0 = arith.constant 0 : i32
    return %c0_i32, %arg0 : i32, i32
  }
  func.func @transform_4(%arg0: i32, %arg1: i32) -> (i32, i32) {
    %c0_i32 = arith.constant 0 : i32
    return %arg1, %arg0 : i32, i32
  }
}

module attributes {stable_mosaic.version = 11 : i64} {
  func.func @_gconv_kernel(%arg0: i32, %arg1: i32, %arg2: memref<18x768xbf16, #tpu.memory_space<vmem>>, %arg3: memref<768x512xbf16, #tpu.memory_space<vmem>>, %arg4: memref<512x512xbf16, #tpu.memory_space<vmem>>, %arg5: memref<1x512xf32, #tpu.memory_space<vmem>>, %arg6: memref<18x512xbf16, #tpu.memory_space<vmem>>) attributes {dimension_semantics = [#tpu.dimension_semantics<parallel>, #tpu.dimension_semantics<parallel>], iteration_bounds = array<i64: 1, 1>, scalar_prefetch = 0 : i64, scratch_operands = 0 : i64, tpu.core_type = #tpu.core_type<tc>, window_params = [{transform_indices = @transform_0, window_bounds = array<i64: 18, 768>}, {transform_indices = @transform_1, window_bounds = array<i64: 768, 512>}, {transform_indices = @transform_2, window_bounds = array<i64: 512, 512>}, {transform_indices = @transform_3, window_bounds = array<i64: 1, 512>}, {transform_indices = @transform_4, window_bounds = array<i64: 18, 512>}]} {
    %c0 = arith.constant 0 : index
    %c0_0 = arith.constant 0 : index
    %0 = vector.load %arg2[%c0, %c0_0] : memref<18x768xbf16, #tpu.memory_space<vmem>>, vector<18x768xbf16>
    %1 = vector.extract_strided_slice %0 {offsets = [0, 0], sizes = [17, 768], strides = [1, 1]} : vector<18x768xbf16> to vector<17x768xbf16>
    %c0_1 = arith.constant 0 : index
    %c0_2 = arith.constant 0 : index
    %2 = vector.load %arg3[%c0_1, %c0_2] : memref<768x512xbf16, #tpu.memory_space<vmem>>, vector<768x512xbf16>
    %cst = arith.constant dense<0.000000e+00> : vector<17x512xf32>
    %3 = tpu.matmul %1, %2, %cst {dimension_numbers = #tpu.dot_dimension_numbers<[1], [0], [0], [1], [0, 0, 1, 1], [], []>} : vector<17x768xbf16>, vector<768x512xbf16>, vector<17x512xf32> -> vector<17x512xf32>
    %4 = vector.extract_strided_slice %0 {offsets = [1, 0], sizes = [17, 512], strides = [1, 1]} : vector<18x768xbf16> to vector<17x512xbf16>
    %c0_3 = arith.constant 0 : index
    %c0_4 = arith.constant 0 : index
    %5 = vector.load %arg4[%c0_3, %c0_4] : memref<512x512xbf16, #tpu.memory_space<vmem>>, vector<512x512xbf16>
    %cst_5 = arith.constant dense<0.000000e+00> : vector<17x512xf32>
    %6 = tpu.matmul %4, %5, %cst_5 {dimension_numbers = #tpu.dot_dimension_numbers<[1], [0], [0], [1], [0, 0, 1, 1], [], []>} : vector<17x512xbf16>, vector<512x512xbf16>, vector<17x512xf32> -> vector<17x512xf32>
    %7 = arith.addf %3, %6 : vector<17x512xf32>
    %c0_6 = arith.constant 0 : index
    %c0_7 = arith.constant 0 : index
    %8 = vector.load %arg5[%c0_6, %c0_7] : memref<1x512xf32, #tpu.memory_space<vmem>>, vector<1x512xf32>
    %9 = vector.broadcast %8 : vector<1x512xf32> to vector<17x512xf32>
    %10 = arith.addf %7, %9 : vector<17x512xf32>
    %11 = arith.negf %10 : vector<17x512xf32>
    %12 = math.exp %11 : vector<17x512xf32>
    %cst_8 = arith.constant 1.000000e+00 : f32
    %13 = vector.broadcast %cst_8 : f32 to vector<17x512xf32>
    %14 = arith.addf %13, %12 : vector<17x512xf32>
    %15 = arith.divf %13, %14 : vector<17x512xf32>
    %16 = arith.mulf %10, %15 : vector<17x512xf32>
    %17 = arith.truncf %16 : vector<17x512xf32> to vector<17x512xbf16>
    %c0_9 = arith.constant 0 : index
    %c0_10 = arith.constant 0 : index
    %18 = vector.load %arg6[%c0_9, %c0_10] : memref<18x512xbf16, #tpu.memory_space<vmem>>, vector<17x512xbf16>
    tpu.vector_store %arg6[%c0_9, %c0_10], %17 {strides = array<i32>} : memref<18x512xbf16, #tpu.memory_space<vmem>>, vector<17x512xbf16>,
    return
  }
  func.func @transform_0(%arg0: i32, %arg1: i32) -> (i32, i32) {
    %c0_i32 = arith.constant 0 : i32
    %c0_i32_0 = arith.constant 0 : i32
    return %arg1, %c0_i32 : i32, i32
  }
  func.func @transform_1(%arg0: i32, %arg1: i32) -> (i32, i32) {
    %c0_i32 = arith.constant 0 : i32
    %c0_i32_0 = arith.constant 0 : i32
    return %c0_i32, %arg0 : i32, i32
  }
  func.func @transform_2(%arg0: i32, %arg1: i32) -> (i32, i32) {
    %c0_i32 = arith.constant 0 : i32
    %c0_i32_0 = arith.constant 0 : i32
    return %c0_i32, %arg0 : i32, i32
  }
  func.func @transform_3(%arg0: i32, %arg1: i32) -> (i32, i32) {
    %c0_i32 = arith.constant 0 : i32
    %c0_i32_0 = arith.constant 0 : i32
    return %c0_i32, %arg0 : i32, i32
  }
  func.func @transform_4(%arg0: i32, %arg1: i32) -> (i32, i32) {
    %c0_i32 = arith.constant 0 : i32
    return %arg1, %arg0 : i32, i32
  }
}

module attributes {stable_mosaic.version = 11 : i64} {
  func.func @_gconv_kernel(%arg0: i32, %arg1: i32, %arg2: memref<12x1536xbf16, #tpu.memory_space<vmem>>, %arg3: memref<1536x1024xbf16, #tpu.memory_space<vmem>>, %arg4: memref<1024x1024xbf16, #tpu.memory_space<vmem>>, %arg5: memref<1x1024xf32, #tpu.memory_space<vmem>>, %arg6: memref<12x1024xbf16, #tpu.memory_space<vmem>>) attributes {dimension_semantics = [#tpu.dimension_semantics<parallel>, #tpu.dimension_semantics<parallel>], iteration_bounds = array<i64: 1, 1>, scalar_prefetch = 0 : i64, scratch_operands = 0 : i64, tpu.core_type = #tpu.core_type<tc>, window_params = [{transform_indices = @transform_0, window_bounds = array<i64: 12, 1536>}, {transform_indices = @transform_1, window_bounds = array<i64: 1536, 1024>}, {transform_indices = @transform_2, window_bounds = array<i64: 1024, 1024>}, {transform_indices = @transform_3, window_bounds = array<i64: 1, 1024>}, {transform_indices = @transform_4, window_bounds = array<i64: 12, 1024>}]} {
    %c0 = arith.constant 0 : index
    %c0_0 = arith.constant 0 : index
    %0 = vector.load %arg2[%c0, %c0_0] : memref<12x1536xbf16, #tpu.memory_space<vmem>>, vector<12x1536xbf16>
    %1 = vector.extract_strided_slice %0 {offsets = [0, 0], sizes = [11, 1536], strides = [1, 1]} : vector<12x1536xbf16> to vector<11x1536xbf16>
    %c0_1 = arith.constant 0 : index
    %c0_2 = arith.constant 0 : index
    %2 = vector.load %arg3[%c0_1, %c0_2] : memref<1536x1024xbf16, #tpu.memory_space<vmem>>, vector<1536x1024xbf16>
    %cst = arith.constant dense<0.000000e+00> : vector<11x1024xf32>
    %3 = tpu.matmul %1, %2, %cst {dimension_numbers = #tpu.dot_dimension_numbers<[1], [0], [0], [1], [0, 0, 1, 1], [], []>} : vector<11x1536xbf16>, vector<1536x1024xbf16>, vector<11x1024xf32> -> vector<11x1024xf32>
    %4 = vector.extract_strided_slice %0 {offsets = [1, 0], sizes = [11, 1024], strides = [1, 1]} : vector<12x1536xbf16> to vector<11x1024xbf16>
    %c0_3 = arith.constant 0 : index
    %c0_4 = arith.constant 0 : index
    %5 = vector.load %arg4[%c0_3, %c0_4] : memref<1024x1024xbf16, #tpu.memory_space<vmem>>, vector<1024x1024xbf16>
    %cst_5 = arith.constant dense<0.000000e+00> : vector<11x1024xf32>
    %6 = tpu.matmul %4, %5, %cst_5 {dimension_numbers = #tpu.dot_dimension_numbers<[1], [0], [0], [1], [0, 0, 1, 1], [], []>} : vector<11x1024xbf16>, vector<1024x1024xbf16>, vector<11x1024xf32> -> vector<11x1024xf32>
    %7 = arith.addf %3, %6 : vector<11x1024xf32>
    %c0_6 = arith.constant 0 : index
    %c0_7 = arith.constant 0 : index
    %8 = vector.load %arg5[%c0_6, %c0_7] : memref<1x1024xf32, #tpu.memory_space<vmem>>, vector<1x1024xf32>
    %9 = vector.broadcast %8 : vector<1x1024xf32> to vector<11x1024xf32>
    %10 = arith.addf %7, %9 : vector<11x1024xf32>
    %11 = arith.negf %10 : vector<11x1024xf32>
    %12 = math.exp %11 : vector<11x1024xf32>
    %cst_8 = arith.constant 1.000000e+00 : f32
    %13 = vector.broadcast %cst_8 : f32 to vector<11x1024xf32>
    %14 = arith.addf %13, %12 : vector<11x1024xf32>
    %15 = arith.divf %13, %14 : vector<11x1024xf32>
    %16 = arith.mulf %10, %15 : vector<11x1024xf32>
    %17 = arith.truncf %16 : vector<11x1024xf32> to vector<11x1024xbf16>
    %c0_9 = arith.constant 0 : index
    %c0_10 = arith.constant 0 : index
    %18 = vector.load %arg6[%c0_9, %c0_10] : memref<12x1024xbf16, #tpu.memory_space<vmem>>, vector<11x1024xbf16>
    tpu.vector_store %arg6[%c0_9, %c0_10], %17 {strides = array<i32>} : memref<12x1024xbf16, #tpu.memory_space<vmem>>, vector<11x1024xbf16>,
    return
  }
  func.func @transform_0(%arg0: i32, %arg1: i32) -> (i32, i32) {
    %c0_i32 = arith.constant 0 : i32
    %c0_i32_0 = arith.constant 0 : i32
    return %arg1, %c0_i32 : i32, i32
  }
  func.func @transform_1(%arg0: i32, %arg1: i32) -> (i32, i32) {
    %c0_i32 = arith.constant 0 : i32
    %c0_i32_0 = arith.constant 0 : i32
    return %c0_i32, %arg0 : i32, i32
  }
  func.func @transform_2(%arg0: i32, %arg1: i32) -> (i32, i32) {
    %c0_i32 = arith.constant 0 : i32
    %c0_i32_0 = arith.constant 0 : i32
    return %c0_i32, %arg0 : i32, i32
  }
  func.func @transform_3(%arg0: i32, %arg1: i32) -> (i32, i32) {
    %c0_i32 = arith.constant 0 : i32
    %c0_i32_0 = arith.constant 0 : i32
    return %c0_i32, %arg0 : i32, i32
  }
  func.func @transform_4(%arg0: i32, %arg1: i32) -> (i32, i32) {
    %c0_i32 = arith.constant 0 : i32
    return %arg1, %arg0 : i32, i32
  }
}

</mosaic_0001>

<bundles_post_ra>
// kernel: discriminator_p_forward.4
= control target key start
LH: loop header
LB: loop body
LE: loop exit
PB: predicated region body
PF: predicated region fallthrough
CT: control target
= control target key end

     0   :  { %9 = vsyncpa [#allocation3], 0  ;;  %s875_s0 = inlined_call_operand.vmem [shape: bf16[54,192], index: 0, kind: input, shape index: {}]   ;;  %s876_s1 = inlined_call_operand.hbm [shape: bf16[192,128], index: 1, kind: input, shape index: {}]   ;;  %s877_s2 = inlined_call_operand.hbm [shape: bf16[128,128], index: 2, kind: input, shape index: {}]   ;;  %s878_s3 = inlined_call_operand.hbm [shape: f32[1,128], index: 3, kind: input, shape index: {}]   ;;  %s879_s4 = inlined_call_operand.vmem [shape: bf16[54,128], index: 4, kind: output, shape index: {}]  }
   0x1   :  { %10 = vsyncpa [#allocation5], 0  ;;  %s780_s15 = smov [#allocation4]   ;;  %s781_s17 = smov [#allocation2]  }
   0x2   :  { %s30_s16 = sshll.u32 %s780_s15, 4  ;;  %s18_s18 = sshll.u32 %s781_s17, 4  ;;  %s31_s16 = int_to_ptr.vmem [resolvable:$true] %s30_s16  ;;  %s19_s18 = int_to_ptr.vmem [resolvable:$true] %s18_s18 }
   0x3   :  { %s724_s19 = scalar_lea.vmem %s31_s16, 1024  ;;  %p729_p1 = scmp.lt.s32.totalorder %s31_s16, %s31_s16 }
   0x4   :  { %p725_p0 = scmp.ne.s32.totalorder %s31_s16, %s724_s19  ;;  %p730_p2 = scmp.lt.s32.totalorder %s724_s19, %s724_s19 }
   0x6   :  { %p731_p3 = por %p730_p2, %p729_p1 }
   0x8   :  { %p732_p4 = pnand %p731_p3, %p725_p0 }
   0xa   :  { %735 = shalt.err (!%p732_p4)
}
   0xb   :  { %s782_s20 = smov 64   ;;  %s783_s21 = smov 4  }
   0xc   :  { %36 = dma.hbm_to_vmem [thread:$0]  %s877_s2, 1024, %s31_s16, [#allocation5], %s782_s20, %s782_s20, %s783_s21  }
   0xd   :  { %s744_s24 = scalar_lea.vmem %s19_s18, 1536  ;;  %p749_p6 = scmp.lt.s32.totalorder %s19_s18, %s19_s18 }
   0xe   :  { %p745_p5 = scmp.ne.s32.totalorder %s19_s18, %s744_s24  ;;  %p750_p7 = scmp.lt.s32.totalorder %s744_s24, %s744_s24 }
  0x10   :  { %p751_p8 = por %p750_p7, %p749_p6 }
  0x12   :  { %p752_p9 = pnand %p751_p8, %p745_p5 }
  0x14   :  { %755 = shalt.err (!%p752_p9)
}
  0x15   :  { %24 = dma.hbm_to_vmem [thread:$0]  %s876_s1, 1536, %s19_s18, [#allocation3], %s782_s20, %s782_s20, %s783_s21  }
  0x16   :  { %s784_s27 = smov [#allocation6]  }
  0x17   :  { %s43_s28 = sshll.u32 %s784_s27, 4  ;;  %s44_s28 = int_to_ptr.vmem [resolvable:$true] %s43_s28 }
  0x18   :  { %s764_s29 = scalar_lea.vmem %s44_s28, 16  ;;  %s768_s30 = scalar_lea.vmem %s44_s28, 32 }
  0x19   :  { %p765_p10 = scmp.ne.s32.totalorder %s44_s28, %s764_s29  ;;  %p769_p11 = scmp.lt.s32.totalorder %s44_s28, %s44_s28 }
  0x1a   :  { %p770_p12 = scmp.lt.s32.totalorder %s768_s30, %s764_s29 }
  0x1c   :  { %p771_p13 = por %p770_p12, %p769_p11 }
  0x1e   :  { %p772_p0 = pnand %p771_p13, %p765_p10 }
  0x20   :  { %775 = shalt.err (!%p772_p0)
}
  0x21   :  { %46 = dma.hbm_to_vmem [thread:$0]  %s878_s3, 16, %s44_s28, [#allocation5]  }
  0x22   :  { %776 = dma.done.wait [#allocation3], 1536  }
  0x23   :  { %777 = vsyncadd [#allocation3], 4294965760 }
  0x24   :  { %778 = dma.done.wait [#allocation5], 1040  }
  0x25   :  { %779 = vsyncadd [#allocation5], 4294966256  ;;  %v785_v0 = vmov 0   ;;  %v657_v1 = vld [vmem:[#allocation2 + $0x38] sm:$0xff]   ;;  %v658_v2 = vld [vmem:[#allocation2 + $0x30] sm:$0xff]   ;;  %vm357_vm0 = vcmask 523264  }
  0x26   :  { %370 = vmatprep.subr.bf16.mxu1 %v785_v0  ;;  %v661_v3 = vld [vmem:[#allocation4 + $0x38] sm:$0xff]   ;;  %v659_v4 = vld [vmem:[#allocation2 + $0x28] sm:$0xff]   ;;  %v663_v5 = vld [vmem:[#allocation4 + $0x30] sm:$0xff]   ;;  %vm122_vm1 = vsmask.f32 7424  ;;  %vm532_vm2 = vcmask 1042432  }
  0x27   :  { %371 = vmatpush1.bf16.msra.mxu1 %v657_v1  ;;  %627 = vmatprep.subr.bf16.mxu0 %v661_v3  ;;  %v665_v6 = vld [vmem:[#allocation4 + $0x28] sm:$0xff]   ;;  %v660_v7 = vld [vmem:[#allocation2 + $0x20] sm:$0xff]   ;;  %v662_v9 = vld [vmem:[#allocation2 + $0x18] sm:$0xff]   ;;  %vm533_vm3 = vsmask.f32 2304 }
  0x28   :  { %372 = vmatprep.subr.bf16.mxu1 %v785_v0  ;;  %628 = vmatpush3.bf16.msra.mxu0 %v661_v3  ;;  %v667_v8 = vld [vmem:[#allocation4 + $0x20] sm:$0xff]   ;;  %v669_v10 = vld [vmem:[#allocation4 + $0x18] sm:$0xff]   ;;  %v664_v11 = vld [vmem:[#allocation2 + $0x10] sm:$0xff]  }
  0x29   :  { %629 = vmatprep.subr.bf16.mxu0 %v663_v5  ;;  %v671_v12 = vld [vmem:[#allocation4 + $0x10] sm:$0xff]   ;;  %v676_v13 = vld [vmem:[%s875_s0] ss:$8 sps:$4 sm:$0xff]   ;;  %v683_v20 = vld [vmem:[%s875_s0 + $0x4] ss:$8 sps:$4 sm:$0xff]  }
  0x2a   :  { %v678_v14 = vld [vmem:[%s875_s0 + $0x10] ss:$8 sps:$4 sm:$0xff]   ;;  %v666_v15 = vld [vmem:[#allocation2 + $0x8] sm:$0xff]   ;;  %v124_v16 = vshrl.u32 %v676_v13, 16  ;;  %v126_v17 = vshll.u32 %v676_v13, 16  ;;  %572 = vmatprep.mubr.msk.bf16.mxu1 %vm357_vm0, %v683_v20  ;;  %v668_v26 = vld [vmem:[#allocation2] sm:$0xff]  }
  0x2b   :  { %373 = vmatpush1.bf16.msra.mxu1 %v658_v2  ;;  %v131_v18 = vshll.u32 %v678_v14, 16  ;;  %v681_v19 = vld [vmem:[%s875_s0 + $0x20] ss:$8 sps:$4 sm:$0xff]   ;;  %v63_v24 = vld [vmem:[%s875_s0 + $0x30] sm:$0x77]  ;;  %v135_v29 = vshrl.u32 %v678_v14, 16  ;;  %vm534_vm4 = vmand %vm532_vm2, %vm533_vm3 }
  0x2c   :  { %374 = vmatprep.subr.bf16.mxu1 %v785_v0  ;;  %630 = vmatpush3.bf16.msra.mxu0 %v663_v5  ;;  %v673_v21 = vld [vmem:[#allocation4 + $0x8] sm:$0xff]   ;;  %v128_v22 = vrot.slane %v126_v17, 1  ;;  %v547_v25 = vcombine.low %v63_v24, %v63_v24  ;;  %v139_v28 = vshll.u32 %v681_v19, 16  ;;  %v675_v30 = vld [vmem:[#allocation4] sm:$0xff]   ;;  %v143_v32 = vshrl.u32 %v681_v19, 16  ;;  %v670_v34 = vld [vmem:[#allocation2 + $0x58] sm:$0xff]  }
  0x2d   :  { %631 = vmatprep.subr.bf16.mxu0 %v665_v6  ;;  %v133_v23 = vrot.slane %v131_v18, 1  ;;  %v672_v39 = vld [vmem:[#allocation2 + $0x50] sm:$0xff]   ;;  %v674_v42 = vld [vmem:[#allocation2 + $0x48] sm:$0xff]   ;;  %v680_v44 = vld [vmem:[#allocation2 + $0x40] sm:$0xff]   ;;  %v559_v48 = vcombine.high %v63_v24, %v63_v24 }
  0x2e   :  { %v129_v27 = vor.u32 %v128_v22, %v124_v16  ;;  %v147_v33 = vshll.u32 %v547_v25, 16  ;;  %v141_v35 = vrot.slane %v139_v28, 1  ;;  %v151_v43 = vshrl.u32 %v547_v25, 16  ;;  %v684_v46 = vld [vmem:[%s875_s0 + $0x14] ss:$8 sps:$4 sm:$0xff]  }
  0x2f   :  { %375 = vmatpush1.bf16.msra.mxu1 %v659_v4  ;;  %v137_v36 = vor.u32 %v135_v29, %v133_v23  ;;  %v686_v47 = vld [vmem:[%s875_s0 + $0x24] ss:$8 sps:$4 sm:$0xff]   ;;  %v576_v56 = vld [vmem:[#allocation6] ss:$0 sm:$0xff] }
  0x30   :  { %376 = vmatprep.subr.bf16.mxu1 %v785_v0  ;;  %632 = vmatpush3.bf16.msra.mxu0 %v665_v6  ;;  %v134_v31 = vsel %vm122_vm1, %v129_v27, %v133_v23  ;;  %v145_v37 = vor.u32 %v143_v32, %v141_v35  ;;  %v149_v38 = vrot.slane %v147_v33, 1 }
  0x31   :  { %633 = vmatprep.subr.bf16.mxu0 %v667_v8  ;;  %643 = vmatprep.mubr.bf16.mxu0 %v134_v31  ;;  %v142_v40 = vsel %vm122_vm1, %v137_v36, %v141_v35 }
  0x32   :  { %v150_v41 = vsel %vm122_vm1, %v145_v37, %v149_v38  ;;  %v153_v45 = vor.u32 %v151_v43, %v149_v38 }
  0x33   :  { %377 = vmatpush1.bf16.msra.mxu1 %v660_v7 }
  0x34   :  { %378 = vmatprep.subr.bf16.mxu1 %v785_v0  ;;  %634 = vmatpush3.bf16.msra.mxu0 %v667_v8 }
  0x35   :  { %635 = vmatprep.subr.bf16.mxu0 %v669_v10 }
  0x37   :  { %379 = vmatpush1.bf16.msra.mxu1 %v662_v9 }
  0x38   :  { %380 = vmatprep.subr.bf16.mxu1 %v785_v0  ;;  %636 = vmatpush3.bf16.msra.mxu0 %v669_v10 }
  0x39   :  { %637 = vmatprep.subr.bf16.mxu0 %v671_v12 }
  0x3b   :  { %381 = vmatpush1.bf16.msra.mxu1 %v664_v11 }
  0x3c   :  { %382 = vmatprep.subr.bf16.mxu1 %v785_v0  ;;  %638 = vmatpush3.bf16.msra.mxu0 %v671_v12 }
  0x3d   :  { %639 = vmatprep.subr.bf16.mxu0 %v673_v21 }
  0x3f   :  { %383 = vmatpush1.bf16.msra.mxu1 %v666_v15 }
  0x40   :  { %384 = vmatprep.subr.bf16.mxu1 %v785_v0  ;;  %640 = vmatpush3.bf16.msra.mxu0 %v673_v21 }
  0x41   :  { %641 = vmatprep.subr.bf16.mxu0 %v675_v30 }
  0x43   :  { %385 = vmatpush1.bf16.msra.mxu1 %v668_v26 }
  0x44   :  { %394 = vmatprep.subr.bf16.mxu1 %v785_v0  ;;  %642 = vmatpush3.bf16.msra.mxu0 %v675_v30 }
  0x47   :  { %395 = vmatpush2.bf16.msra.mxu1 %v670_v34  ;;  %644 = vmatmul.mubr.bf16.vlgmr.msra.gmra.mxu0 %v142_v40 }
  0x48   :  { %396 = vmatprep.subr.bf16.mxu1 %v785_v0  ;;  %647 = vmatprep.mubr.bf16.mxu0 %v150_v41 }
  0x4b   :  { %397 = vmatpush2.bf16.msra.mxu1 %v672_v39 }
  0x4c   :  { %398 = vmatprep.subr.bf16.mxu1 %v785_v0 }
  0x4f   :  { %399 = vmatpush2.bf16.msra.mxu1 %v674_v42  ;;  %648 = vmatmul.mubr.bf16.gmra.mxu0 %v153_v45 }
  0x50   :  { %400 = vmatprep.subr.bf16.mxu1 %v785_v0 }
  0x53   :  { %401 = vmatpush2.bf16.msra.mxu1 %v680_v44 }
  0x56   :  { %403 = vmatmul.mubr.bf16.vlgmr.msra.gmra.mxu1 %v676_v13 }
  0x57   :  { %573 = vmatprep.mubr.msk.bf16.mxu1 %vm357_vm0, %v684_v46 }
  0x5e   :  { %411 = vmatmul.mubr.bf16.gmra.mxu1 %v678_v14 }
  0x5f   :  { %574 = vmatprep.mubr.msk.bf16.mxu1 %vm357_vm0, %v686_v47 }
  0x66   :  { %419 = vmatmul.mubr.bf16.gmra.mxu1 %v681_v19 }
  0x67   :  { %575 = vmatprep.mubr.msk.bf16.mxu1 %vm357_vm0, %v559_v48 }
  0x6e   :  { %427 = vmatmul.mubr.bf16.gmra.mxu1 %v547_v25 }
 0x107   :  { %v645_v49 = vpop.f32.mrf.mxu0 }
 0x109   :  { %v240_v50 = vpop.f32.mrf.mxu0 }
 0x10b   :  { %v646_v51 = vpop.f32.mrf.mxu0 }
 0x10d   :  { %v243_v52 = vpop.f32.mrf.mxu0 }
 0x10f   :  { %v649_v53 = vpop.f32.mrf.mxu0 }
 0x111   :  { %v256_v54 = vpop.f32.mrf.mxu0 }
 0x113   :  { %v650_v58 = vpop.f32.mrf.mxu0 }
 0x115   :  { %v259_v16 = vpop.f32.mrf.mxu0 }
 0x116   :  { %v404_v55 = vpop.f32.mrf.mxu1 }
 0x117   :  { %v405_v57 = vadd.f32 %v404_v55, %v240_v50 }
 0x118   :  { %v406_v59 = vpop.f32.mrf.mxu1 }
 0x119   :  { %v441_v60 = vadd.f32 %v576_v56, %v405_v57 }
 0x11a   :  { %v407_v61 = vpop.f32.mrf.mxu1 }
 0x11b   :  { %v577_v62 = vmul.f32 -1.442695, %v441_v60  ;;  %v408_v63 = vadd.f32 %v407_v61, %v243_v52 }
 0x11c   :  { %v409_v0 = vpop.f32.mrf.mxu1 }
 0x11d   :  { %688 = vpow2.f32 %v577_v62  ;;  %v442_v1 = vadd.f32 %v576_v56, %v408_v63  ;;  %v535_v62 = vld [vmem:[%s879_s4 + $0x18] sm:$0x7] }
 0x11e   :  { %v412_v2 = vpop.f32.mrf.mxu1 }
 0x11f   :  { %v578_v3 = vmul.f32 -1.442695, %v442_v1  ;;  %v413_v4 = vadd.f32 %v645_v49, %v412_v2 }
 0x120   :  { %v414_v5 = vpop.f32.mrf.mxu1 }
 0x121   :  { %690 = vpow2.f32 %v578_v3  ;;  %v443_v6 = vadd.f32 %v576_v56, %v413_v4 }
 0x122   :  { %v415_v7 = vpop.f32.mrf.mxu1 }
 0x123   :  { %v579_v8 = vmul.f32 -1.442695, %v443_v6  ;;  %v416_v9 = vadd.f32 %v646_v51, %v415_v7 }
 0x124   :  { %v417_v10 = vpop.f32.mrf.mxu1 }
 0x125   :  { %692 = vpow2.f32 %v579_v8  ;;  %v444_v11 = vadd.f32 %v576_v56, %v416_v9 }
 0x126   :  { %v420_v12 = vpop.f32.mrf.mxu1 }
 0x127   :  { %v580_v13 = vmul.f32 -1.442695, %v444_v11  ;;  %v421_v14 = vadd.f32 %v420_v12, %v256_v54 }
 0x128   :  { %v422_v15 = vpop.f32.mrf.mxu1 }
 0x129   :  { %694 = vpow2.f32 %v580_v13  ;;  %v445_v17 = vadd.f32 %v576_v56, %v421_v14 }
 0x12a   :  { %v689_v18 = vpop.eup %688  ;;  %v423_v19 = vpop.f32.mrf.mxu1 }
 0x12b   :  { %v469_v20 = vadd.f32 1.0, %v689_v18  ;;  %v581_v21 = vmul.f32 -1.442695, %v445_v17  ;;  %v424_v22 = vadd.f32 %v423_v19, %v259_v16 }
 0x12c   :  { %v425_v23 = vpop.f32.mrf.mxu1 }
 0x12d   :  { %v446_v24 = vadd.f32 %v576_v56, %v424_v22  ;;  %696 = vpow2.f32 %v581_v21 }
 0x12e   :  { %v691_v25 = vpop.eup %690  ;;  %v428_v26 = vpop.f32.mrf.mxu1  ;;  %698 = vrcp.f32 %v469_v20 }
 0x12f   :  { %v470_v27 = vadd.f32 1.0, %v691_v25  ;;  %v582_v28 = vmul.f32 -1.442695, %v446_v24  ;;  %v429_v29 = vadd.f32 %v649_v53, %v428_v26 }
 0x130   :  { %v430_v30 = vpop.f32.mrf.mxu1 }
 0x131   :  { %700 = vrcp.f32 %v470_v27  ;;  %v447_v31 = vadd.f32 %v576_v56, %v429_v29 }
 0x132   :  { %v693_v32 = vpop.eup %692  ;;  %702 = vpow2.f32 %v582_v28  ;;  %v431_v33 = vpop.f32.mrf.mxu1 }
 0x133   :  { %v471_v34 = vadd.f32 1.0, %v693_v32  ;;  %v583_v35 = vmul.f32 -1.442695, %v447_v31 }
 0x134   :  { %v432_v36 = vpop.f32.mrf.mxu1 }
 0x135   :  { %704 = vpow2.f32 %v583_v35 }
 0x136   :  { %v695_v37 = vpop.eup %694  ;;  %706 = vrcp.f32 %v471_v34 }
 0x137   :  { %v472_v38 = vadd.f32 1.0, %v695_v37 }
 0x139   :  { %708 = vrcp.f32 %v472_v38 }
 0x13a   :  { %v697_v39 = vpop.eup %696 }
 0x13b   :  { %v699_v40 = vpop.eup %698  ;;  %v473_v41 = vadd.f32 1.0, %v697_v39 }
 0x13c   :  { %v490_v44 = vmul.f32 %v699_v40, %v441_v60 }
 0x13d   :  { %710 = vrcp.f32 %v473_v41 }
 0x13e   :  { %v701_v42 = vpop.eup %700 }
 0x13f   :  { %v703_v43 = vpop.eup %702  ;;  %v491_v45 = vmul.f32 %v701_v42, %v442_v1 }
 0x140   :  { %v474_v46 = vadd.f32 1.0, %v703_v43 }
 0x141   :  { %v601_v47 = vpack.c.bf16 %v491_v45, %v490_v44 }
 0x142   :  { %712 = vrcp.f32 %v474_v46  ;;  %v705_v48 = vpop.eup %704 }
 0x143   :  { %602 = vst [vmem:[%s879_s4] sm:$0xff] %v601_v47   ;;  %v707_v49 = vpop.eup %706  ;;  %v475_v50 = vadd.f32 1.0, %v705_v48 }
 0x144   :  { %v492_v52 = vmul.f32 %v707_v49, %v443_v6 }
 0x145   :  { %714 = vrcp.f32 %v475_v50 }
 0x146   :  { %v709_v51 = vpop.eup %708 }
 0x147   :  { %v493_v53 = vmul.f32 %v709_v51, %v444_v11 }
 0x149   :  { %v606_v54 = vpack.c.bf16 %v493_v53, %v492_v52 }
 0x14a   :  { %v711_v55 = vpop.eup %710 }
 0x14b   :  { %613 = vst [vmem:[%s879_s4 + $0x8] sm:$0xff] %v606_v54   ;;  %v494_v57 = vmul.f32 %v711_v55, %v445_v17 }
 0x14f   :  { %v713_v56 = vpop.eup %712 }
 0x150   :  { %v495_v58 = vmul.f32 %v713_v56, %v446_v24 }
 0x152   :  { %v611_v59 = vpack.c.bf16 %v495_v58, %v494_v57  ;;  %v715_v60 = vpop.eup %714 }
 0x153   :  { %v496_v61 = vmul.f32 %v715_v60, %v447_v31 }
 0x154   :  { %614 = vst [vmem:[%s879_s4 + $0x10] sm:$0xff] %v611_v59  }
 0x155   :  { %v597_v63 = vpack.c.bf16 %v496_v61, %v496_v61 }
 0x157   :  { %v536_v0 = vsel %vm534_vm4, %v597_v63, %v535_v62 }
 0x158   :  { %537 = vst [vmem:[%s879_s4 + $0x18] sm:$0x7] %v536_v0 }
 0x159   :  { %542 = vsyncpa [#allocation3], 1 }
 0x15a   :  { %543 = vsyncpa [#allocation5], 1 }

// kernel: discriminator_p_forward.5
= control target key start
LH: loop header
LB: loop body
LE: loop exit
PB: predicated region body
PF: predicated region fallthrough
CT: control target
= control target key end

     0   :  { %9 = vsyncpa [#allocation3], 0  ;;  %s1277_s0 = inlined_call_operand.vmem [shape: bf16[24,384], index: 0, kind: input, shape index: {}]   ;;  %s1278_s1 = inlined_call_operand.hbm [shape: bf16[384,256], index: 1, kind: input, shape index: {}]   ;;  %s1279_s2 = inlined_call_operand.hbm [shape: bf16[256,256], index: 2, kind: input, shape index: {}]   ;;  %s1280_s3 = inlined_call_operand.hbm [shape: f32[1,256], index: 3, kind: input, shape index: {}]   ;;  %s1281_s4 = inlined_call_operand.vmem [shape: bf16[24,256], index: 4, kind: output, shape index: {}]  }
   0x1   :  { %10 = vsyncpa [#allocation5], 0  ;;  %s1190_s15 = smov [#allocation4]   ;;  %s1191_s17 = smov [#allocation2]  }
   0x2   :  { %s30_s16 = sshll.u32 %s1190_s15, 4  ;;  %s18_s18 = sshll.u32 %s1191_s17, 4  ;;  %s31_s16 = int_to_ptr.vmem [resolvable:$true] %s30_s16  ;;  %s19_s18 = int_to_ptr.vmem [resolvable:$true] %s18_s18 }
   0x3   :  { %s1134_s19 = scalar_lea.vmem %s31_s16, 4096  ;;  %p1139_p1 = scmp.lt.s32.totalorder %s31_s16, %s31_s16 }
   0x4   :  { %p1135_p0 = scmp.ne.s32.totalorder %s31_s16, %s1134_s19  ;;  %p1140_p2 = scmp.lt.s32.totalorder %s1134_s19, %s1134_s19 }
   0x6   :  { %p1141_p3 = por %p1140_p2, %p1139_p1 }
   0x8   :  { %p1142_p4 = pnand %p1141_p3, %p1135_p0 }
   0xa   :  { %1145 = shalt.err (!%p1142_p4)
}
   0xb   :  { %s1192_s20 = smov 128   ;;  %s1193_s21 = smov 8  }
   0xc   :  { %36 = dma.hbm_to_vmem [thread:$0]  %s1279_s2, 4096, %s31_s16, [#allocation5], %s1192_s20, %s1192_s20, %s1193_s21  }
   0xd   :  { %s1154_s24 = scalar_lea.vmem %s19_s18, 6144  ;;  %p1159_p6 = scmp.lt.s32.totalorder %s19_s18, %s19_s18 }
   0xe   :  { %p1155_p5 = scmp.ne.s32.totalorder %s19_s18, %s1154_s24  ;;  %p1160_p7 = scmp.lt.s32.totalorder %s1154_s24, %s1154_s24 }
  0x10   :  { %p1161_p8 = por %p1160_p7, %p1159_p6 }
  0x12   :  { %p1162_p9 = pnand %p1161_p8, %p1155_p5 }
  0x14   :  { %1165 = shalt.err (!%p1162_p9)
}
  0x15   :  { %24 = dma.hbm_to_vmem [thread:$0]  %s1278_s1, 6144, %s19_s18, [#allocation3], %s1192_s20, %s1192_s20, %s1193_s21  }
  0x16   :  { %s1194_s27 = smov [#allocation6]  }
  0x17   :  { %s43_s28 = sshll.u32 %s1194_s27, 4  ;;  %s44_s28 = int_to_ptr.vmem [resolvable:$true] %s43_s28 }
  0x18   :  { %s1174_s29 = scalar_lea.vmem %s44_s28, 32  ;;  %p1179_p11 = scmp.lt.s32.totalorder %s44_s28, %s44_s28 }
  0x19   :  { %p1175_p10 = scmp.ne.s32.totalorder %s44_s28, %s1174_s29  ;;  %p1180_p12 = scmp.lt.s32.totalorder %s1174_s29, %s1174_s29 }
  0x1b   :  { %p1181_p13 = por %p1180_p12, %p1179_p11 }
  0x1d   :  { %p1182_p0 = pnand %p1181_p13, %p1175_p10 }
  0x1f   :  { %1185 = shalt.err (!%p1182_p0)
}
  0x20   :  { %46 = dma.hbm_to_vmem [thread:$0]  %s1280_s3, 32, %s44_s28, [#allocation5]  }
  0x21   :  { %1186 = dma.done.wait [#allocation3], 6144  }
  0x22   :  { %1187 = vsyncadd [#allocation3], 4294961152 }
  0x23   :  { %1188 = dma.done.wait [#allocation5], 4128  }
  0x24   :  { %1189 = vsyncadd [#allocation5], 4294963168  ;;  %v975_v0 = vld [vmem:[#allocation4 + $0x74] ss:$8 sps:$4 sm:$0xff]   ;;  %v979_v2 = vld [vmem:[#allocation4 + $0x70] ss:$8 sps:$4 sm:$0xff]  }
  0x25   :  { %v977_v1 = vld [vmem:[#allocation2 + $0x74] ss:$8 sps:$4 sm:$0xff]   ;;  %351 = vmatprep.subr.bf16.mxu0 %v975_v0  ;;  %v980_v3 = vld [vmem:[#allocation2 + $0x70] ss:$8 sps:$4 sm:$0xff]   ;;  %v981_v4 = vld [vmem:[#allocation4 + $0x64] ss:$8 sps:$4 sm:$0xff]  }
  0x26   :  { %656 = vmatprep.subr.bf16.mxu1 %v977_v1  ;;  %352 = vmatpush1.bf16.msra.mxu0 %v979_v2  ;;  %v983_v5 = vld [vmem:[#allocation2 + $0x64] ss:$8 sps:$4 sm:$0xff]   ;;  %v985_v6 = vld [vmem:[#allocation4 + $0x60] ss:$8 sps:$4 sm:$0xff]   ;;  %v987_v8 = vld [vmem:[#allocation4 + $0x54] ss:$8 sps:$4 sm:$0xff]  }
  0x27   :  { %657 = vmatpush1.bf16.msra.mxu1 %v980_v3  ;;  %353 = vmatprep.subr.bf16.mxu0 %v981_v4  ;;  %v986_v7 = vld [vmem:[#allocation2 + $0x60] ss:$8 sps:$4 sm:$0xff]   ;;  %v989_v9 = vld [vmem:[#allocation2 + $0x54] ss:$8 sps:$4 sm:$0xff]   ;;  %v991_v10 = vld [vmem:[#allocation4 + $0x50] ss:$8 sps:$4 sm:$0xff]  }
  0x28   :  { %658 = vmatprep.subr.bf16.mxu1 %v983_v5  ;;  %v992_v11 = vld [vmem:[#allocation2 + $0x50] ss:$8 sps:$4 sm:$0xff]   ;;  %v993_v12 = vld [vmem:[#allocation4 + $0x44] ss:$8 sps:$4 sm:$0xff]   ;;  %v997_v14 = vld [vmem:[#allocation4 + $0x40] ss:$8 sps:$4 sm:$0xff]  }
  0x29   :  { %v995_v13 = vld [vmem:[#allocation2 + $0x44] ss:$8 sps:$4 sm:$0xff]   ;;  %v998_v15 = vld [vmem:[#allocation2 + $0x40] ss:$8 sps:$4 sm:$0xff]   ;;  %v999_v16 = vld [vmem:[#allocation4 + $0x34] ss:$8 sps:$4 sm:$0xff]  }
  0x2a   :  { %354 = vmatpush1.bf16.msra.mxu0 %v985_v6  ;;  %v1001_v17 = vld [vmem:[#allocation2 + $0x34] ss:$8 sps:$4 sm:$0xff]   ;;  %v1003_v18 = vld [vmem:[#allocation4 + $0x30] ss:$8 sps:$4 sm:$0xff]   ;;  %v1005_v20 = vld [vmem:[#allocation4 + $0x24] ss:$8 sps:$4 sm:$0xff]  }
  0x2b   :  { %659 = vmatpush1.bf16.msra.mxu1 %v986_v7  ;;  %355 = vmatprep.subr.bf16.mxu0 %v987_v8  ;;  %v1004_v19 = vld [vmem:[#allocation2 + $0x30] ss:$8 sps:$4 sm:$0xff]   ;;  %v1007_v21 = vld [vmem:[#allocation2 + $0x24] ss:$8 sps:$4 sm:$0xff]   ;;  %v1009_v22 = vld [vmem:[#allocation4 + $0x20] ss:$8 sps:$4 sm:$0xff]  }
  0x2c   :  { %660 = vmatprep.subr.bf16.mxu1 %v989_v9  ;;  %v1010_v23 = vld [vmem:[#allocation2 + $0x20] ss:$8 sps:$4 sm:$0xff]   ;;  %v1011_v24 = vld [vmem:[#allocation4 + $0x14] ss:$8 sps:$4 sm:$0xff]   ;;  %v1015_v26 = vld [vmem:[#allocation4 + $0x10] ss:$8 sps:$4 sm:$0xff]  }
  0x2d   :  { %v1013_v25 = vld [vmem:[#allocation2 + $0x14] ss:$8 sps:$4 sm:$0xff]   ;;  %v1016_v27 = vld [vmem:[#allocation2 + $0x10] ss:$8 sps:$4 sm:$0xff]   ;;  %v1017_v28 = vld [vmem:[#allocation4 + $0x4] ss:$8 sps:$4 sm:$0xff]  }
  0x2e   :  { %356 = vmatpush1.bf16.msra.mxu0 %v991_v10  ;;  %v1019_v29 = vld [vmem:[#allocation2 + $0x4] ss:$8 sps:$4 sm:$0xff]   ;;  %v1021_v30 = vld [vmem:[#allocation4] ss:$8 sps:$4 sm:$0xff]   ;;  %v1023_v32 = vld [vmem:[#allocation4 + $0xf4] ss:$8 sps:$4 sm:$0xff]  }
  0x2f   :  { %661 = vmatpush1.bf16.msra.mxu1 %v992_v11  ;;  %357 = vmatprep.subr.bf16.mxu0 %v993_v12  ;;  %v1022_v31 = vld [vmem:[#allocation2] ss:$8 sps:$4 sm:$0xff]   ;;  %v1025_v33 = vld [vmem:[#allocation2 + $0xf4] ss:$8 sps:$4 sm:$0xff]   ;;  %v1027_v34 = vld [vmem:[#allocation4 + $0xf0] ss:$8 sps:$4 sm:$0xff]  }
  0x30   :  { %662 = vmatprep.subr.bf16.mxu1 %v995_v13  ;;  %v1028_v35 = vld [vmem:[#allocation2 + $0xf0] ss:$8 sps:$4 sm:$0xff]   ;;  %v1029_v36 = vld [vmem:[#allocation4 + $0xe4] ss:$8 sps:$4 sm:$0xff]   ;;  %v1033_v38 = vld [vmem:[#allocation4 + $0xe0] ss:$8 sps:$4 sm:$0xff]  }
  0x31   :  { %v1031_v37 = vld [vmem:[#allocation2 + $0xe4] ss:$8 sps:$4 sm:$0xff]   ;;  %v1034_v39 = vld [vmem:[#allocation2 + $0xe0] ss:$8 sps:$4 sm:$0xff]   ;;  %v1035_v40 = vld [vmem:[#allocation4 + $0xd4] ss:$8 sps:$4 sm:$0xff]  }
  0x32   :  { %358 = vmatpush1.bf16.msra.mxu0 %v997_v14  ;;  %v1037_v41 = vld [vmem:[#allocation2 + $0xd4] ss:$8 sps:$4 sm:$0xff]   ;;  %v1039_v42 = vld [vmem:[#allocation4 + $0xd0] ss:$8 sps:$4 sm:$0xff]   ;;  %v1041_v44 = vld [vmem:[#allocation4 + $0xc4] ss:$8 sps:$4 sm:$0xff]  }
  0x33   :  { %663 = vmatpush1.bf16.msra.mxu1 %v998_v15  ;;  %359 = vmatprep.subr.bf16.mxu0 %v999_v16  ;;  %v1040_v43 = vld [vmem:[#allocation2 + $0xd0] ss:$8 sps:$4 sm:$0xff]   ;;  %v1043_v45 = vld [vmem:[#allocation2 + $0xc4] ss:$8 sps:$4 sm:$0xff]   ;;  %v1045_v46 = vld [vmem:[#allocation4 + $0xc0] ss:$8 sps:$4 sm:$0xff]  }
  0x34   :  { %664 = vmatprep.subr.bf16.mxu1 %v1001_v17  ;;  %v61_v47 = vld [vmem:[%s1277_s0 + $0x18] sm:$0xff]  ;;  %v1071_v48 = vld [vmem:[%s1277_s0 + $0x4] ss:$12 sps:$4 sm:$0xff]   ;;  %v1046_v49 = vld [vmem:[#allocation2 + $0xc0] ss:$8 sps:$4 sm:$0xff]   ;;  %vm843_vm1 = vcmask 1047556  }
  0x35   :  { %v1236_v50 = vcombine.high %v61_v47, %v61_v47  ;;  %v1047_v51 = vld [vmem:[#allocation4 + $0xb4] ss:$8 sps:$4 sm:$0xff]   ;;  %v170_v53 = vshrl.u32 %v1071_v48, 16  ;;  %v172_v54 = vshll.u32 %v1071_v48, 16  ;;  %vm156_vm0 = vsmask.f32 7424  ;;  %688 = vmatprep.mubr.bf16.mxu1 %v1071_v48 }
  0x36   :  { %360 = vmatpush1.bf16.msra.mxu0 %v1003_v18  ;;  %v1049_v52 = vld [vmem:[#allocation2 + $0xb4] ss:$8 sps:$4 sm:$0xff]   ;;  %v1051_v56 = vld [vmem:[#allocation4 + $0xb0] ss:$8 sps:$4 sm:$0xff]   ;;  %v1053_v59 = vld [vmem:[#allocation4 + $0xa4] ss:$8 sps:$4 sm:$0xff]   ;;  %v857_v4 = vcombine.low %v61_v47, %v61_v47 }
  0x37   :  { %665 = vmatpush1.bf16.msra.mxu1 %v1004_v19  ;;  %361 = vmatprep.subr.bf16.mxu0 %v1005_v20  ;;  %v177_v55 = vshll.u32 %v1236_v50, 16  ;;  %v1052_v57 = vld [vmem:[#allocation2 + $0xb0] ss:$8 sps:$4 sm:$0xff]   ;;  %v174_v58 = vrot.slane %v172_v54, 1  ;;  %v1074_v61 = vld [vmem:[%s1277_s0] ss:$12 sps:$4 sm:$0xff]   ;;  %vm1253_vm4 = vmand %vm843_vm1, %vm156_vm0 }
  0x38   :  { %666 = vmatprep.subr.bf16.mxu1 %v1007_v21  ;;  %v1055_v62 = vld [vmem:[#allocation2 + $0xa4] ss:$8 sps:$4 sm:$0xff]   ;;  %v1057_v0 = vld [vmem:[#allocation4 + $0xa0] ss:$8 sps:$4 sm:$0xff]   ;;  %v1059_v3 = vld [vmem:[#allocation4 + $0x94] ss:$8 sps:$4 sm:$0xff]  }
  0x39   :  { %v179_v60 = vrot.slane %v177_v55, 1  ;;  %v175_v63 = vor.u32 %v174_v58, %v170_v53  ;;  %v1058_v1 = vld [vmem:[#allocation2 + $0xa0] ss:$8 sps:$4 sm:$0xff]   ;;  %v160_v5 = vshll.u32 %v1074_v61, 16  ;;  %v1061_v6 = vld [vmem:[#allocation2 + $0x94] ss:$8 sps:$4 sm:$0xff]   ;;  %v760_v58 = vlaneseq }
  0x3a   :  { %362 = vmatpush1.bf16.msra.mxu0 %v1009_v22  ;;  %v1063_v7 = vld [vmem:[#allocation4 + $0x90] ss:$8 sps:$4 sm:$0xff]   ;;  %v158_v9 = vshrl.u32 %v1074_v61, 16  ;;  %v165_v11 = vshll.u32 %v857_v4, 16  ;;  %v1065_v12 = vld [vmem:[#allocation4 + $0x84] ss:$8 sps:$4 sm:$0xff]  }
  0x3b   :  { %667 = vmatpush1.bf16.msra.mxu1 %v1010_v23  ;;  %363 = vmatprep.subr.bf16.mxu0 %v1011_v24  ;;  %v180_v2 = vsel %vm156_vm0, %v175_v63, %v179_v60  ;;  %v1064_v8 = vld [vmem:[#allocation2 + $0x90] ss:$8 sps:$4 sm:$0xff]   ;;  %v162_v10 = vrot.slane %v160_v5, 1  ;;  %v1067_v13 = vld [vmem:[#allocation2 + $0x84] ss:$8 sps:$4 sm:$0xff]   ;;  %v184_v19 = vshrl.u32 %v1236_v50, 16 }
  0x3c   :  { %668 = vmatprep.subr.bf16.mxu1 %v1013_v25  ;;  %383 = vmatprep.mubr.bf16.mxu0 %v180_v2  ;;  %v1069_v14 = vld [vmem:[#allocation4 + $0x80] ss:$8 sps:$4 sm:$0xff]   ;;  %v167_v17 = vrot.slane %v165_v11, 1  ;;  %v1078_v18 = vld [vmem:[#allocation2 + $0x174] ss:$8 sps:$4 sm:$0xff]   ;;  %v181_v24 = vshrl.u32 %v857_v4, 16 }
  0x3d   :  { %v1070_v15 = vld [vmem:[#allocation2 + $0x80] ss:$8 sps:$4 sm:$0xff]   ;;  %v163_v16 = vor.u32 %v162_v10, %v158_v9  ;;  %v1076_v21 = vld [vmem:[#allocation2 + $0x170] ss:$8 sps:$4 sm:$0xff]   ;;  %v1081_v22 = vld [vmem:[#allocation2 + $0x164] ss:$8 sps:$4 sm:$0xff]   ;;  %v186_v23 = vor.u32 %v184_v19, %v179_v60 }
  0x3e   :  { %364 = vmatpush1.bf16.msra.mxu0 %v1015_v26  ;;  %v1079_v25 = vld [vmem:[#allocation2 + $0x160] ss:$8 sps:$4 sm:$0xff]   ;;  %v1084_v26 = vld [vmem:[#allocation2 + $0x154] ss:$8 sps:$4 sm:$0xff]   ;;  %vm840_vm2 = vcmask 1043456  }
  0x3f   :  { %669 = vmatpush1.bf16.msra.mxu1 %v1016_v27  ;;  %365 = vmatprep.subr.bf16.mxu0 %v1017_v28  ;;  %v168_v20 = vsel %vm156_vm0, %v163_v16, %v167_v17  ;;  %v183_v27 = vor.u32 %v181_v24, %v167_v17  ;;  %v1082_v28 = vld [vmem:[#allocation2 + $0x150] ss:$8 sps:$4 sm:$0xff]   ;;  %vm841_vm3 = vsmask.f32 3328 }
  0x40   :  { %670 = vmatprep.subr.bf16.mxu1 %v1019_v29  ;;  %v1087_v29 = vld [vmem:[#allocation2 + $0x144] ss:$8 sps:$4 sm:$0xff]   ;;  %vm1257_vm5 = vmand %vm840_vm2, %vm841_vm3 }
  0x41   :  { %vm845_vm6 = vmor %vm1253_vm4, %vm1257_vm5 }
  0x42   :  { %366 = vmatpush1.bf16.msra.mxu0 %v1021_v30  ;;  %v1085_v30 = vld [vmem:[#allocation2 + $0x140] ss:$8 sps:$4 sm:$0xff]  }
  0x43   :  { %671 = vmatpush1.bf16.msra.mxu1 %v1022_v31  ;;  %367 = vmatprep.subr.bf16.mxu0 %v1023_v32  ;;  %v1090_v31 = vld [vmem:[#allocation2 + $0x134] ss:$8 sps:$4 sm:$0xff]   ;;  %v1195_v32 = vmov 0  }
  0x44   :  { %672 = vmatprep.subr.bf16.mxu1 %v1025_v33  ;;  %v1088_v33 = vld [vmem:[#allocation2 + $0x130] ss:$8 sps:$4 sm:$0xff]  }
  0x46   :  { %368 = vmatpush2.bf16.msra.mxu0 %v1027_v34  ;;  %v1093_v34 = vld [vmem:[#allocation2 + $0x124] ss:$8 sps:$4 sm:$0xff]  }
  0x47   :  { %673 = vmatpush2.bf16.msra.mxu1 %v1028_v35  ;;  %369 = vmatprep.subr.bf16.mxu0 %v1029_v36  ;;  %v1091_v35 = vld [vmem:[#allocation2 + $0x120] ss:$8 sps:$4 sm:$0xff]   ;;  %v1096_v36 = vld [vmem:[#allocation2 + $0x114] ss:$8 sps:$4 sm:$0xff]  }
  0x48   :  { %674 = vmatprep.subr.bf16.mxu1 %v1031_v37  ;;  %v1094_v37 = vld [vmem:[#allocation2 + $0x110] ss:$8 sps:$4 sm:$0xff]  }
  0x4a   :  { %370 = vmatpush2.bf16.msra.mxu0 %v1033_v38  ;;  %v1099_v38 = vld [vmem:[#allocation2 + $0x104] ss:$8 sps:$4 sm:$0xff]  }
  0x4b   :  { %675 = vmatpush2.bf16.msra.mxu1 %v1034_v39  ;;  %371 = vmatprep.subr.bf16.mxu0 %v1035_v40  ;;  %v1097_v39 = vld [vmem:[#allocation2 + $0x100] ss:$8 sps:$4 sm:$0xff]  }
  0x4c   :  { %676 = vmatprep.subr.bf16.mxu1 %v1037_v41  ;;  %v1100_v40 = vld [vmem:[%s1277_s0 + $0x8] ss:$12 sps:$4 sm:$0xff]   ;;  %v1101_v41 = vld [vmem:[%s1277_s0 + $0x20] ss:$0 sps:$4 sm:$0xff]  }
  0x4e   :  { %372 = vmatpush2.bf16.msra.mxu0 %v1039_v42 }
  0x4f   :  { %677 = vmatpush2.bf16.msra.mxu1 %v1040_v43  ;;  %373 = vmatprep.subr.bf16.mxu0 %v1041_v44 }
  0x50   :  { %678 = vmatprep.subr.bf16.mxu1 %v1043_v45 }
  0x52   :  { %374 = vmatpush2.bf16.msra.mxu0 %v1045_v46 }
  0x53   :  { %679 = vmatpush2.bf16.msra.mxu1 %v1046_v49  ;;  %375 = vmatprep.subr.bf16.mxu0 %v1047_v51 }
  0x54   :  { %680 = vmatprep.subr.bf16.mxu1 %v1049_v52 }
  0x56   :  { %376 = vmatpush2.bf16.msra.mxu0 %v1051_v56 }
  0x57   :  { %681 = vmatpush2.bf16.msra.mxu1 %v1052_v57  ;;  %377 = vmatprep.subr.bf16.mxu0 %v1053_v59  ;;  %v761_v59 = vshrl.u32 %v760_v58, 7 }
  0x58   :  { %682 = vmatprep.subr.bf16.mxu1 %v1055_v62 }
  0x59   :  { %v762_v60 = vsub.s32 0, %v761_v59  ;;  %v766_v62 = vsub.s32 1, %v761_v59 }
  0x5a   :  { %378 = vmatpush2.bf16.msra.mxu0 %v1057_v0 }
  0x5b   :  { %683 = vmatpush2.bf16.msra.mxu1 %v1058_v1  ;;  %379 = vmatprep.subr.bf16.mxu0 %v1059_v3 }
  0x5c   :  { %684 = vmatprep.subr.bf16.mxu1 %v1061_v6 }
  0x5e   :  { %380 = vmatpush2.bf16.msra.mxu0 %v1063_v7 }
  0x5f   :  { %685 = vmatpush2.bf16.msra.mxu1 %v1064_v8  ;;  %381 = vmatprep.subr.bf16.mxu0 %v1065_v12 }
  0x60   :  { %686 = vmatprep.subr.bf16.mxu1 %v1067_v13 }
  0x62   :  { %382 = vmatpush2.bf16.msra.mxu0 %v1069_v14 }
  0x63   :  { %687 = vmatpush2.bf16.msra.mxu1 %v1070_v15  ;;  %707 = vmatprep.subr.bf16.mxu0 %v1078_v18 }
  0x64   :  { %953 = vmatprep.subr.bf16.mxu1 %v1078_v18 }
  0x65   :  { %384 = vmatmul.mubr.bf16.vlgmr.msra.gmra.mxu0 %v168_v20 }
  0x66   :  { %689 = vmatmul.mubr.bf16.vlgmr.msra.gmra.mxu1 %v1074_v61  ;;  %708 = vmatpush1.bf16.msra.mxu0 %v1076_v21  ;;  %v758_v61 = vld [vmem:[#allocation6] sm:$0x3] }
  0x67   :  { %961 = vmatpush1.bf16.msra.mxu1 %v1076_v21  ;;  %709 = vmatprep.subr.bf16.mxu0 %v1081_v22  ;;  %v763_v1 = vrot.slane %v758_v61, %v762_v60 }
  0x68   :  { %954 = vmatprep.subr.bf16.mxu1 %v1081_v22  ;;  %393 = vmatprep.mubr.bf16.mxu0 %v186_v23 }
  0x69   :  { %698 = vmatprep.mubr.bf16.mxu1 %v1236_v50 }
  0x6a   :  { %710 = vmatpush1.bf16.msra.mxu0 %v1079_v25 }
  0x6b   :  { %962 = vmatpush1.bf16.msra.mxu1 %v1079_v25  ;;  %711 = vmatprep.subr.bf16.mxu0 %v1084_v26 }
  0x6c   :  { %955 = vmatprep.subr.bf16.mxu1 %v1084_v26 }
  0x6d   :  { %394 = vmatmul.mubr.bf16.gmra.mxu0 %v183_v27 }
  0x6e   :  { %699 = vmatmul.mubr.bf16.gmra.mxu1 %v857_v4  ;;  %712 = vmatpush1.bf16.msra.mxu0 %v1082_v28  ;;  %v767_v4 = vrot.slane %v758_v61, %v766_v62 }
  0x6f   :  { %963 = vmatpush1.bf16.msra.mxu1 %v1082_v28  ;;  %713 = vmatprep.subr.bf16.mxu0 %v1087_v29 }
  0x70   :  { %956 = vmatprep.subr.bf16.mxu1 %v1087_v29  ;;  %739 = vmatprep.mubr.bf16.mxu0 %v1195_v32 }
  0x71   :  { %749 = vmatprep.mubr.bf16.mxu1 %v1195_v32 }
  0x72   :  { %714 = vmatpush1.bf16.msra.mxu0 %v1085_v30 }
  0x73   :  { %964 = vmatpush1.bf16.msra.mxu1 %v1085_v30  ;;  %715 = vmatprep.subr.bf16.mxu0 %v1090_v31 }
  0x74   :  { %957 = vmatprep.subr.bf16.mxu1 %v1090_v31 }
  0x76   :  { %716 = vmatpush1.bf16.msra.mxu0 %v1088_v33 }
  0x77   :  { %965 = vmatpush1.bf16.msra.mxu1 %v1088_v33  ;;  %717 = vmatprep.subr.bf16.mxu0 %v1093_v34 }
  0x78   :  { %958 = vmatprep.subr.bf16.mxu1 %v1093_v34 }
  0x7a   :  { %718 = vmatpush1.bf16.msra.mxu0 %v1091_v35 }
  0x7b   :  { %966 = vmatpush1.bf16.msra.mxu1 %v1091_v35  ;;  %719 = vmatprep.subr.bf16.mxu0 %v1096_v36 }
  0x7c   :  { %959 = vmatprep.subr.bf16.mxu1 %v1096_v36 }
  0x7e   :  { %720 = vmatpush1.bf16.msra.mxu0 %v1094_v37 }
  0x7f   :  { %967 = vmatpush1.bf16.msra.mxu1 %v1094_v37  ;;  %721 = vmatprep.subr.bf16.mxu0 %v1099_v38 }
  0x80   :  { %960 = vmatprep.subr.bf16.mxu1 %v1099_v38 }
  0x82   :  { %722 = vmatpush1.bf16.msra.mxu0 %v1097_v39 }
  0x83   :  { %968 = vmatpush1.bf16.msra.mxu1 %v1097_v39 }
  0x85   :  { %740 = vmatmul.mubr.bf16.vlgmr.msra.gmra.mxu0 %v1100_v40 }
  0x86   :  { %750 = vmatmul.mubr.bf16.vlgmr.msra.gmra.mxu1 %v1101_v41 }
 0x125   :  { %v385_v42 = vpop.f32.mrf.mxu0 }
 0x126   :  { %v690_v43 = vpop.f32.mrf.mxu1 }
 0x127   :  { %v387_v44 = vpop.f32.mrf.mxu0  ;;  %v691_v63 = vadd.f32 %v690_v43, %v385_v42 }
 0x128   :  { %v692_v45 = vpop.f32.mrf.mxu1 }
 0x129   :  { %v389_v46 = vpop.f32.mrf.mxu0  ;;  %v693_v5 = vadd.f32 %v692_v45, %v387_v44 }
 0x12a   :  { %v694_v47 = vpop.f32.mrf.mxu1 }
 0x12b   :  { %v391_v48 = vpop.f32.mrf.mxu0  ;;  %v695_v15 = vadd.f32 %v694_v47, %v389_v46 }
 0x12c   :  { %v696_v49 = vpop.f32.mrf.mxu1 }
 0x12d   :  { %v395_v50 = vpop.f32.mrf.mxu0  ;;  %v697_v16 = vadd.f32 %v696_v49, %v391_v48 }
 0x12e   :  { %v700_v51 = vpop.f32.mrf.mxu1 }
 0x12f   :  { %v397_v52 = vpop.f32.mrf.mxu0  ;;  %v701_v0 = vadd.f32 %v700_v51, %v395_v50 }
 0x130   :  { %v702_v53 = vpop.f32.mrf.mxu1 }
 0x131   :  { %v399_v54 = vpop.f32.mrf.mxu0  ;;  %v703_v6 = vadd.f32 %v702_v53, %v397_v52 }
 0x132   :  { %v704_v55 = vpop.f32.mrf.mxu1 }
 0x133   :  { %v400_v56 = vpop.f32.mrf.mxu0 }
 0x134   :  { %v705_v57 = vpop.f32.mrf.mxu1 }
 0x135   :  { %v846_v57 = vld [vmem:[%s1281_s4 + $0x10] sm:$0xff] }
 0x145   :  { %v741_v2 = vpop.f32.mrf.mxu0 }
 0x146   :  { %v751_v3 = vpop.f32.mrf.mxu1  ;;  %v742_v7 = vadd.f32 %v741_v2, %v691_v63 }
 0x147   :  { %v752_v8 = vadd.f32 %v751_v3, %v701_v0  ;;  %v743_v9 = vpop.f32.mrf.mxu0 }
 0x148   :  { %v753_v10 = vpop.f32.mrf.mxu1  ;;  %v770_v11 = vadd.f32 %v763_v1, %v742_v7  ;;  %v744_v13 = vadd.f32 %v743_v9, %v693_v5 }
 0x149   :  { %v774_v12 = vadd.f32 %v763_v1, %v752_v8  ;;  %v754_v14 = vadd.f32 %v753_v10, %v703_v6  ;;  %v745_v17 = vpop.f32.mrf.mxu0 }
 0x14a   :  { %v755_v18 = vpop.f32.mrf.mxu1  ;;  %v941_v19 = vmul.f32 -1.442695, %v770_v11  ;;  %v771_v21 = vadd.f32 %v767_v4, %v744_v13  ;;  %v746_v23 = vadd.f32 %v745_v17, %v695_v15 }
 0x14b   :  { %v945_v20 = vmul.f32 -1.442695, %v774_v12  ;;  %v775_v22 = vadd.f32 %v767_v4, %v754_v14  ;;  %v747_v24 = vpop.f32.mrf.mxu0 }
 0x14c   :  { %v756_v25 = vpop.f32.mrf.mxu1  ;;  %1102 = vpow2.f32 %v941_v19  ;;  %v942_v26 = vmul.f32 -1.442695, %v771_v21  ;;  %v748_v28 = vadd.f32 %v747_v24, %v697_v16  ;;  %v772_v29 = vadd.f32 %v763_v1, %v746_v23 }
 0x14d   :  { %v946_v27 = vmul.f32 -1.442695, %v775_v22  ;;  %1104 = vpow2.f32 %v945_v20 }
 0x14e   :  { %1106 = vpow2.f32 %v942_v26  ;;  %v773_v30 = vadd.f32 %v767_v4, %v748_v28  ;;  %v943_v31 = vmul.f32 -1.442695, %v772_v29 }
 0x14f   :  { %1108 = vpow2.f32 %v946_v27 }
 0x150   :  { %v944_v32 = vmul.f32 -1.442695, %v773_v30  ;;  %1110 = vpow2.f32 %v943_v31 }
 0x152   :  { %1112 = vpow2.f32 %v944_v32 }
 0x159   :  { %v1103_v33 = vpop.eup %1102 }
 0x15a   :  { %v1105_v34 = vpop.eup %1104  ;;  %v794_v35 = vadd.f32 1.0, %v1103_v33 }
 0x15b   :  { %v1107_v36 = vpop.eup %1106  ;;  %v798_v37 = vadd.f32 1.0, %v1105_v34 }
 0x15c   :  { %v1109_v38 = vpop.eup %1108  ;;  %1114 = vrcp.f32 %v794_v35  ;;  %v795_v39 = vadd.f32 1.0, %v1107_v36 }
 0x15d   :  { %1116 = vrcp.f32 %v798_v37  ;;  %v799_v40 = vadd.f32 1.0, %v1109_v38  ;;  %v1111_v41 = vpop.eup %1110 }
 0x15e   :  { %1118 = vrcp.f32 %v795_v39  ;;  %v796_v43 = vadd.f32 1.0, %v1111_v41 }
 0x15f   :  { %v1113_v42 = vpop.eup %1112  ;;  %1120 = vrcp.f32 %v799_v40 }
 0x160   :  { %v797_v44 = vadd.f32 1.0, %v1113_v42  ;;  %1122 = vrcp.f32 %v796_v43 }
 0x162   :  { %1124 = vrcp.f32 %v797_v44 }
 0x169   :  { %v1115_v45 = vpop.eup %1114 }
 0x16a   :  { %v1117_v46 = vpop.eup %1116  ;;  %v812_v51 = vmul.f32 %v1115_v45, %v770_v11 }
 0x16b   :  { %v1119_v48 = vpop.eup %1118  ;;  %v816_v53 = vmul.f32 %v1117_v46, %v774_v12 }
 0x16c   :  { %v1121_v50 = vpop.eup %1120  ;;  %v813_v52 = vmul.f32 %v1119_v48, %v771_v21 }
 0x16d   :  { %v817_v54 = vmul.f32 %v1121_v50, %v775_v22  ;;  %v1123_v55 = vpop.eup %1122 }
 0x16e   :  { %v950_v56 = vpack.c.bf16 %v813_v52, %v812_v51  ;;  %v814_v60 = vmul.f32 %v1123_v55, %v772_v29 }
 0x16f   :  { %v1125_v58 = vpop.eup %1124  ;;  %v952_v59 = vpack.c.bf16 %v817_v54, %v816_v53 }
 0x170   :  { %838 = vst [vmem:[%s1281_s4] sm:$0xff] %v950_v56  ;;  %v815_v61 = vmul.f32 %v1125_v58, %v773_v30 }
 0x171   :  { %v847_v62 = vsel %vm845_vm6, %v952_v59, %v846_v57 }
 0x172   :  { %848 = vst [vmem:[%s1281_s4 + $0x10] sm:$0xff] %v847_v62  ;;  %v951_v63 = vpack.c.bf16 %v815_v61, %v814_v60 }
 0x174   :  { %839 = vst [vmem:[%s1281_s4 + $0x8] sm:$0xff] %v951_v63 }
 0x175   :  { %853 = vsyncpa [#allocation3], 1 }
 0x176   :  { %854 = vsyncpa [#allocation5], 1 }

// kernel: reverse
= control target key start
LH: loop header
LB: loop body
LE: loop exit
PB: predicated region body
PF: predicated region fallthrough
CT: control target
= control target key end

     0   :  { %s443_s6 = smov 0   ;;  %s445_s7 = smov 0   ;;  %s483_s0 = inlined_call_operand.vmem [shape: bf16[3,1024,1], index: 0, kind: input, shape index: {}]   ;;  %s484_s1 = inlined_call_operand.vmem [shape: bf16[3,1024,1], index: 1, kind: output, shape index: {}]  }
   0x1   :  { %s447_s8 = smov 0  }
   0x2 LB: > { %s310_s9 = sadd.s32 4294967295, %s422_s8   ;;  %s19_s10 = sadd.s32 1, %s418_s7  ;;  %s422_s8 = sphi %s447_s8, %s7_s8   ;;  %s418_s7 = sphi %s445_s7, %s486_s7   ;;  %s414_s6 = sphi %s443_s6, %s485_s6  }
   0x3   : > { %p20_p0 = scmp.ge.s32.totalorder %s19_s10, 8  ;;  %p312_p1 = scmp.ge.s32.totalorder %s422_s8, 8 }
   0x4   : > { %s42_s11 = sand.u32 (!%p312_p1), 1, %s422_s8   ;;  %s314_s12 = sshll.u32 (!%p312_p1), %s418_s7, 1 }
   0x5   : > { %s488_s10 = smov (%p20_p0, %s19_s10), 0  ;;  %40 = sbr.rel (%p312_p1) target bundleno = 18 (0x12), region = 16 }
   0x6   : > { %s313_s13 = sshll.u32 (!%p312_p1), %s42_s11, 2  ;;  %s57_s16 = scalar_lea.vmem (!%p312_p1), %s483_s0, %s314_s12  }
   0x7   : > { %s44_s17 = scalar_lea.vmem (!%p312_p1), [#allocation1], %s313_s13  ;;  %s428_s20 = smov (!%p312_p1), 0  }
   0x8   : > { %s59_s18 = scalar_lea.vmem (!%p312_p1), %s44_s17, 2 [#allocation1]  }
   0x9   : > { %s424_s19 = smov (!%p312_p1), %s59_s18  }
   0xa LB: >> { %v79_v0 = vld [vmem:[%s57_s16] sm:$0x3]  ;;  %s73_s20 = sadd.s32 1, %s430_s20   ;;  %s430_s20 = sphi %s428_s20, %s73_s20   ;;  %s426_s19 = sphi %s424_s19, %s425_s19  }
   0xb   : >> { %80 = vst [vmem:[%s426_s19] sm:$0x3] %v79_v0  ;;  %p72_p2 = scmp.ge.s32.totalorder %s73_s20, 1  ;;  %s425_s19 = smov %s59_s18  }
   0xd   : > { %75 = sbr.rel (!%p72_p2) target bundleno = 10 (0xa), region = 116 }
  0x12 PF: > { %p319_p3 = scmp.ge.s32.totalorder %s422_s8, 1  ;;  %p112_p4 = scmp.lt.s32.totalorder %s422_s8, 9 }
  0x14   : > { %p113_p5 = pnand %p319_p3, %p112_p4 }
  0x15   : > { %s123_s21 = sand.u32 (!%p113_p5), 1, %s310_s9   ;;  %s324_s26 = sshll.u32 (!%p113_p5), %s414_s6, 1 }
  0x16   : > { %116 = sbr.rel (%p113_p5) target bundleno = 60 (0x3c), region = 50  ;;  %s320_s22 = sshll.u32 (!%p113_p5), %s123_s21, 2 }
  0x17   : > { %s125_s23 = scalar_lea.vmem (!%p113_p5), [#allocation1], %s320_s22  ;;  %s321_s24 = sshll.u32 (!%p113_p5), %s123_s21, 1 }
  0x18   : > { %s129_s25 = scalar_lea.vmem (!%p113_p5), [#allocation3], %s321_s24  ;;  %s197_s29 = scalar_lea.vmem (!%p113_p5), %s484_s1, %s324_s26 }
  0x1b   : > { %v322_v1 = vld [vmem:[%s125_s23] sm:$0xf]   ;;  %v174_v3 = vlaneseq  ;;  %v432_v10 = vmov 0.0  }
  0x1c   : > { %v145_v2 = vunpack.c.l.bf16 %v322_v1 }
  0x1d   : > { %v175_v4 = vshrl.u32 %v174_v3, 7 }
  0x1e   : > { %148 = vst [vmem:[#allocation0] ss:$8 sps:$4 sm:$0xff] %v145_v2  }
  0x1f   : > { %vm176_vm0 = vcmp.lt.s32.totalorder %v175_v4, 3 }
  0x25   : > { %v167_v5 = vld [vmem:[#allocation0 + $0x7] ss:$-1 sm:$0xff]  ;;  %v172_v6 = vld [vmem:[#allocation0 + $0xf] ss:$-1 sm:$0xff] }
  0x26   : > { %v168_v7 = vrot.slane %v167_v5, 5  ;;  %v173_v8 = vrot.slane %v172_v6, 5 }
  0x28   : > { %169 = vst [vmem:[#allocation2] sm:$0xff] %v168_v7 }
  0x29   : > { %177 = vst.msk [vmem:[#allocation2] sm:$0xff] %vm176_vm0, %v173_v8 }
  0x30   : > { %v183_v9 = vld [vmem:[#allocation2] sm:$0xf] }
  0x31   : > { %v184_v11 = vpack.c.bf16 %v432_v10, %v183_v9 }
  0x33   : > { %187 = vst [vmem:[%s129_s25] sm:$0x3] %v184_v11 }
  0x3a   : > { %v214_v12 = vld [vmem:[%s129_s25] sm:$0x3] }
  0x3b   : > { %215 = vst [vmem:[%s197_s29] sm:$0x3] %v214_v12 }
  0x3c PF: > { %s7_s8 = sadd.s32 1, %s422_s8   ;;  %s485_s6 = smov %s418_s7 }
  0x3d   : > { %p4_p6 = scmp.ge.s32.totalorder %s7_s8, 10   ;;  %s486_s7 = smov %s488_s10 }
  0x3f   :  { %6 = sbr.rel (!%p4_p6) target bundleno = 2 (0x2), region = 127 }

// kernel: discriminator_p_forward.6
= control target key start
LH: loop header
LB: loop body
LE: loop exit
PB: predicated region body
PF: predicated region fallthrough
CT: control target
= control target key end

     0   :  { %9 = vsyncpa [#allocation3], 0  ;;  %s4045_s0 = inlined_call_operand.vmem [shape: bf16[18,768], index: 0, kind: input, shape index: {}]   ;;  %s4046_s1 = inlined_call_operand.hbm [shape: bf16[768,512], index: 1, kind: input, shape index: {}]   ;;  %s4047_s2 = inlined_call_operand.hbm [shape: bf16[512,512], index: 2, kind: input, shape index: {}]   ;;  %s4048_s3 = inlined_call_operand.hbm [shape: f32[1,512], index: 3, kind: input, shape index: {}]   ;;  %s4049_s4 = inlined_call_operand.vmem [shape: bf16[18,512], index: 4, kind: output, shape index: {}]  }
   0x1   :  { %10 = vsyncpa [#allocation5], 0  ;;  %s3764_s15 = smov [#allocation4]   ;;  %s3765_s17 = smov [#allocation2]  }
   0x2   :  { %s30_s16 = sshll.u32 %s3764_s15, 4  ;;  %s18_s18 = sshll.u32 %s3765_s17, 4  ;;  %s31_s16 = int_to_ptr.vmem [resolvable:$true] %s30_s16  ;;  %s19_s18 = int_to_ptr.vmem [resolvable:$true] %s18_s18 }
   0x3   :  { %s3708_s19 = scalar_lea.vmem %s31_s16, 16384  ;;  %p3713_p1 = scmp.lt.s32.totalorder %s31_s16, %s31_s16 }
   0x4   :  { %p3709_p0 = scmp.ne.s32.totalorder %s31_s16, %s3708_s19  ;;  %p3714_p2 = scmp.lt.s32.totalorder %s3708_s19, %s3708_s19 }
   0x6   :  { %p3715_p3 = por %p3714_p2, %p3713_p1 }
   0x8   :  { %p3716_p4 = pnand %p3715_p3, %p3709_p0 }
   0xa   :  { %3719 = shalt.err (!%p3716_p4)
}
   0xb   :  { %s3766_s20 = smov 256   ;;  %s3767_s21 = smov 16  }
   0xc   :  { %36 = dma.hbm_to_vmem [thread:$0]  %s4047_s2, 16384, %s31_s16, [#allocation5], %s3766_s20, %s3766_s20, %s3767_s21  }
   0xd   :  { %s3728_s24 = scalar_lea.vmem %s19_s18, 24576  ;;  %p3733_p6 = scmp.lt.s32.totalorder %s19_s18, %s19_s18 }
   0xe   :  { %p3729_p5 = scmp.ne.s32.totalorder %s19_s18, %s3728_s24  ;;  %p3734_p7 = scmp.lt.s32.totalorder %s3728_s24, %s3728_s24 }
  0x10   :  { %p3735_p8 = por %p3734_p7, %p3733_p6 }
  0x12   :  { %p3736_p9 = pnand %p3735_p8, %p3729_p5 }
  0x14   :  { %3739 = shalt.err (!%p3736_p9)
}
  0x15   :  { %24 = dma.hbm_to_vmem [thread:$0]  %s4046_s1, 24576, %s19_s18, [#allocation3], %s3766_s20, %s3766_s20, %s3767_s21  }
  0x16   :  { %s3768_s27 = smov [#allocation6]  }
  0x17   :  { %s43_s28 = sshll.u32 %s3768_s27, 4  ;;  %s44_s28 = int_to_ptr.vmem [resolvable:$true] %s43_s28 }
  0x18   :  { %s3748_s29 = scalar_lea.vmem %s44_s28, 64  ;;  %p3753_p11 = scmp.lt.s32.totalorder %s44_s28, %s44_s28 }
  0x19   :  { %p3749_p10 = scmp.ne.s32.totalorder %s44_s28, %s3748_s29  ;;  %p3754_p12 = scmp.lt.s32.totalorder %s3748_s29, %s3748_s29 }
  0x1b   :  { %p3755_p13 = por %p3754_p12, %p3753_p11 }
  0x1d   :  { %p3756_p0 = pnand %p3755_p13, %p3749_p10 }
  0x1f   :  { %3759 = shalt.err (!%p3756_p0)
}
  0x20   :  { %46 = dma.hbm_to_vmem [thread:$0]  %s4048_s3, 64, %s44_s28, [#allocation5]  }
  0x21   :  { %3760 = dma.done.wait [#allocation3], 24576  }
  0x22   :  { %3761 = vsyncadd [#allocation3], 4294942720 }
  0x23   :  { %3762 = dma.done.wait [#allocation5], 16448  }
  0x24   :  { %3763 = vsyncadd [#allocation5], 4294950848  ;;  %v3153_v0 = vld [vmem:[#allocation4 + $0xe4] ss:$16 sps:$4 sm:$0xff]   ;;  %v3157_v2 = vld [vmem:[#allocation4 + $0xe0] ss:$16 sps:$4 sm:$0xff]  }
  0x25   :  { %v3155_v1 = vld [vmem:[#allocation4 + $0x2e4] ss:$16 sps:$4 sm:$0xff]   ;;  %1116 = vmatprep.subr.bf16.mxu0 %v3153_v0  ;;  %v3158_v3 = vld [vmem:[#allocation4 + $0x2e0] ss:$16 sps:$4 sm:$0xff]   ;;  %vm411_vm0 = vsmask.f32 7424 }
  0x26   :  { %1167 = vmatprep.subr.bf16.mxu1 %v3155_v1  ;;  %v3159_v4 = vld [vmem:[#allocation4 + $0xc4] ss:$16 sps:$4 sm:$0xff]   ;;  %1117 = vmatpush1.bf16.msra.mxu0 %v3157_v2  ;;  %v3163_v6 = vld [vmem:[#allocation4 + $0xc0] ss:$16 sps:$4 sm:$0xff]   ;;  %v63_v52 = vld [vmem:[%s4045_s0 + $0x38] sm:$0x11] }
  0x27   :  { %1168 = vmatpush1.bf16.msra.mxu1 %v3158_v3  ;;  %v3161_v5 = vld [vmem:[#allocation4 + $0x2c4] ss:$16 sps:$4 sm:$0xff]   ;;  %1118 = vmatprep.subr.bf16.mxu0 %v3159_v4  ;;  %v3164_v7 = vld [vmem:[#allocation4 + $0x2c0] ss:$16 sps:$4 sm:$0xff]   ;;  %v3823_v57 = vcombine.high %v63_v52, %v63_v52  ;;  %vm2773_vm1 = vcmask 1040384   ;;  %vm2776_vm3 = vcmask 1044484  }
  0x28   :  { %1169 = vmatprep.subr.bf16.mxu1 %v3161_v5  ;;  %v3165_v8 = vld [vmem:[#allocation4 + $0xa4] ss:$16 sps:$4 sm:$0xff]   ;;  %v3169_v10 = vld [vmem:[#allocation4 + $0xa0] ss:$16 sps:$4 sm:$0xff]   ;;  %vm2774_vm2 = vsmask.f32 256 }
  0x29   :  { %v3167_v9 = vld [vmem:[#allocation4 + $0x2a4] ss:$16 sps:$4 sm:$0xff]   ;;  %v3170_v11 = vld [vmem:[#allocation4 + $0x2a0] ss:$16 sps:$4 sm:$0xff]   ;;  %v456_v2 = vshll.u32 %v3823_v57, 16  ;;  %vm3989_vm5 = vmand %vm2773_vm1, %vm2774_vm2 }
  0x2a   :  { %1119 = vmatpush1.bf16.msra.mxu0 %v3163_v6  ;;  %v3171_v12 = vld [vmem:[#allocation4 + $0x84] ss:$16 sps:$4 sm:$0xff]   ;;  %v3175_v14 = vld [vmem:[#allocation4 + $0x80] ss:$16 sps:$4 sm:$0xff]   ;;  %vm2777_vm4 = vsmask.f32 4352 }
  0x2b   :  { %1170 = vmatpush1.bf16.msra.mxu1 %v3164_v7  ;;  %1120 = vmatprep.subr.bf16.mxu0 %v3165_v8  ;;  %v3173_v13 = vld [vmem:[#allocation4 + $0x284] ss:$16 sps:$4 sm:$0xff]   ;;  %v3176_v15 = vld [vmem:[#allocation4 + $0x280] ss:$16 sps:$4 sm:$0xff]   ;;  %v458_v8 = vrot.slane %v456_v2, 1  ;;  %vm3993_vm6 = vmand %vm2776_vm3, %vm2777_vm4 }
  0x2c   :  { %1171 = vmatprep.subr.bf16.mxu1 %v3167_v9  ;;  %v3177_v16 = vld [vmem:[#allocation4 + $0x64] ss:$16 sps:$4 sm:$0xff]   ;;  %v3181_v18 = vld [vmem:[#allocation4 + $0x60] ss:$16 sps:$4 sm:$0xff]   ;;  %v3291_v2 = vld [vmem:[#allocation4 + $0x4c] ss:$16 sps:$4 sm:$0xff]  }
  0x2d   :  { %v3179_v17 = vld [vmem:[#allocation4 + $0x264] ss:$16 sps:$4 sm:$0xff]   ;;  %v3182_v19 = vld [vmem:[#allocation4 + $0x260] ss:$16 sps:$4 sm:$0xff]   ;;  %vm2779_vm7 = vmor %vm3993_vm6, %vm3989_vm5 }
  0x2e   :  { %1121 = vmatpush1.bf16.msra.mxu0 %v3169_v10  ;;  %v3183_v20 = vld [vmem:[#allocation4 + $0x44] ss:$16 sps:$4 sm:$0xff]   ;;  %v3187_v22 = vld [vmem:[#allocation4 + $0x40] ss:$16 sps:$4 sm:$0xff]  }
  0x2f   :  { %1172 = vmatpush1.bf16.msra.mxu1 %v3170_v11  ;;  %1122 = vmatprep.subr.bf16.mxu0 %v3171_v12  ;;  %v3185_v21 = vld [vmem:[#allocation4 + $0x244] ss:$16 sps:$4 sm:$0xff]   ;;  %v3188_v23 = vld [vmem:[#allocation4 + $0x240] ss:$16 sps:$4 sm:$0xff]  }
  0x30   :  { %1173 = vmatprep.subr.bf16.mxu1 %v3173_v13  ;;  %v3189_v24 = vld [vmem:[#allocation4 + $0x24] ss:$16 sps:$4 sm:$0xff]   ;;  %v3193_v26 = vld [vmem:[#allocation4 + $0x20] ss:$16 sps:$4 sm:$0xff]  }
  0x31   :  { %v3191_v25 = vld [vmem:[#allocation4 + $0x224] ss:$16 sps:$4 sm:$0xff]   ;;  %v3194_v27 = vld [vmem:[#allocation4 + $0x220] ss:$16 sps:$4 sm:$0xff]  }
  0x32   :  { %1123 = vmatpush1.bf16.msra.mxu0 %v3175_v14  ;;  %v3195_v28 = vld [vmem:[#allocation4 + $0x4] ss:$16 sps:$4 sm:$0xff]   ;;  %v3199_v30 = vld [vmem:[#allocation4] ss:$16 sps:$4 sm:$0xff]  }
  0x33   :  { %1174 = vmatpush1.bf16.msra.mxu1 %v3176_v15  ;;  %1124 = vmatprep.subr.bf16.mxu0 %v3177_v16  ;;  %v3197_v29 = vld [vmem:[#allocation4 + $0x204] ss:$16 sps:$4 sm:$0xff]   ;;  %v3200_v31 = vld [vmem:[#allocation4 + $0x200] ss:$16 sps:$4 sm:$0xff]   ;;  %v3840_v16 = vcombine.low %v63_v52, %v63_v52 }
  0x34   :  { %1175 = vmatprep.subr.bf16.mxu1 %v3179_v17  ;;  %v3201_v32 = vld [vmem:[#allocation4 + $0x1e4] ss:$16 sps:$4 sm:$0xff]   ;;  %v3205_v34 = vld [vmem:[#allocation4 + $0x1e0] ss:$16 sps:$4 sm:$0xff]  }
  0x35   :  { %v3203_v33 = vld [vmem:[#allocation4 + $0x3e4] ss:$16 sps:$4 sm:$0xff]   ;;  %v3206_v35 = vld [vmem:[#allocation4 + $0x3e0] ss:$16 sps:$4 sm:$0xff]  }
  0x36   :  { %1125 = vmatpush1.bf16.msra.mxu0 %v3181_v18  ;;  %v3207_v36 = vld [vmem:[#allocation4 + $0x1c4] ss:$16 sps:$4 sm:$0xff]   ;;  %v3211_v38 = vld [vmem:[#allocation4 + $0x1c0] ss:$16 sps:$4 sm:$0xff]  }
  0x37   :  { %1176 = vmatpush1.bf16.msra.mxu1 %v3182_v19  ;;  %1126 = vmatprep.subr.bf16.mxu0 %v3183_v20  ;;  %v3209_v37 = vld [vmem:[#allocation4 + $0x3c4] ss:$16 sps:$4 sm:$0xff]   ;;  %v3212_v39 = vld [vmem:[#allocation4 + $0x3c0] ss:$16 sps:$4 sm:$0xff]  }
  0x38   :  { %1177 = vmatprep.subr.bf16.mxu1 %v3185_v21  ;;  %v3213_v40 = vld [vmem:[#allocation4 + $0x1a4] ss:$16 sps:$4 sm:$0xff]   ;;  %v3217_v42 = vld [vmem:[#allocation4 + $0x1a0] ss:$16 sps:$4 sm:$0xff]  }
  0x39   :  { %v3215_v41 = vld [vmem:[#allocation4 + $0x3a4] ss:$16 sps:$4 sm:$0xff]   ;;  %v3218_v43 = vld [vmem:[#allocation4 + $0x3a0] ss:$16 sps:$4 sm:$0xff]  }
  0x3a   :  { %1127 = vmatpush1.bf16.msra.mxu0 %v3187_v22  ;;  %v3219_v44 = vld [vmem:[#allocation4 + $0x184] ss:$16 sps:$4 sm:$0xff]   ;;  %v3223_v46 = vld [vmem:[#allocation4 + $0x180] ss:$16 sps:$4 sm:$0xff]  }
  0x3b   :  { %1178 = vmatpush1.bf16.msra.mxu1 %v3188_v23  ;;  %1128 = vmatprep.subr.bf16.mxu0 %v3189_v24  ;;  %v3221_v45 = vld [vmem:[#allocation4 + $0x384] ss:$16 sps:$4 sm:$0xff]   ;;  %v3224_v47 = vld [vmem:[#allocation4 + $0x380] ss:$16 sps:$4 sm:$0xff]  }
  0x3c   :  { %1179 = vmatprep.subr.bf16.mxu1 %v3191_v25  ;;  %v3225_v48 = vld [vmem:[#allocation4 + $0x164] ss:$16 sps:$4 sm:$0xff]   ;;  %v3229_v58 = vld [vmem:[#allocation4 + $0x160] ss:$16 sps:$4 sm:$0xff]  }
  0x3d   :  { %v62_v49 = vld [vmem:[%s4045_s0 + $0x30] sm:$0x11]  ;;  %v3809_v50 = vld [vmem:[%s4045_s0 + $0x4] ss:$24 sps:$4 sm:$0xff]   ;;  %v3255_v4 = vld [vmem:[%s4045_s0] ss:$24 sps:$4 sm:$0xff]  }
  0x3e   :  { %1129 = vmatpush1.bf16.msra.mxu0 %v3193_v26  ;;  %v3811_v51 = vcombine.high %v62_v49, %v62_v49  ;;  %v3227_v53 = vld [vmem:[#allocation4 + $0x364] ss:$16 sps:$4 sm:$0xff]   ;;  %v425_v54 = vshrl.u32 %v3809_v50, 16  ;;  %v427_v55 = vshll.u32 %v3809_v50, 16  ;;  %v3230_v59 = vld [vmem:[#allocation4 + $0x360] ss:$16 sps:$4 sm:$0xff]   ;;  %v3838_v13 = vcombine.low %v62_v49, %v62_v49 }
  0x3f   :  { %1180 = vmatpush1.bf16.msra.mxu1 %v3194_v27  ;;  %1130 = vmatprep.subr.bf16.mxu0 %v3195_v28  ;;  %v3821_v56 = vld [vmem:[%s4045_s0 + $0xc] ss:$24 sps:$4 sm:$0xff]   ;;  %v3257_v5 = vld [vmem:[%s4045_s0 + $0x8] ss:$24 sps:$4 sm:$0xff]   ;;  %v415_v15 = vshll.u32 %v3255_v4, 16  ;;  %v413_v23 = vshrl.u32 %v3255_v4, 16 }
  0x40   :  { %1181 = vmatprep.subr.bf16.mxu1 %v3197_v29  ;;  %v432_v60 = vshll.u32 %v3811_v51, 16  ;;  %v3231_v61 = vld [vmem:[#allocation4 + $0x144] ss:$16 sps:$4 sm:$0xff]   ;;  %v429_v63 = vrot.slane %v427_v55, 1  ;;  %v449_v0 = vshrl.u32 %v3821_v56, 16  ;;  %v451_v1 = vshll.u32 %v3821_v56, 16 }
  0x41   :  { %v3233_v62 = vld [vmem:[#allocation4 + $0x344] ss:$16 sps:$4 sm:$0xff]   ;;  %v3235_v9 = vld [vmem:[#allocation4 + $0x140] ss:$16 sps:$4 sm:$0xff]   ;;  %v439_v17 = vshll.u32 %v3257_v5, 16  ;;  %v420_v24 = vshll.u32 %v3838_v13, 16 }
  0x42   :  { %1131 = vmatpush1.bf16.msra.mxu0 %v3199_v30  ;;  %v434_v3 = vrot.slane %v432_v60, 1  ;;  %v430_v6 = vor.u32 %v429_v63, %v425_v54  ;;  %v453_v7 = vrot.slane %v451_v1, 1  ;;  %v3236_v10 = vld [vmem:[#allocation4 + $0x340] ss:$16 sps:$4 sm:$0xff]   ;;  %v3237_v14 = vld [vmem:[#allocation4 + $0x124] ss:$16 sps:$4 sm:$0xff]  }
  0x43   :  { %1182 = vmatpush1.bf16.msra.mxu1 %v3200_v31  ;;  %1132 = vmatprep.subr.bf16.mxu0 %v3201_v32  ;;  %v3239_v18 = vld [vmem:[#allocation4 + $0x324] ss:$16 sps:$4 sm:$0xff]   ;;  %v3241_v20 = vld [vmem:[#allocation4 + $0x120] ss:$16 sps:$4 sm:$0xff]   ;;  %v417_v25 = vrot.slane %v415_v15, 1  ;;  %v437_v26 = vshrl.u32 %v3257_v5, 16 }
  0x44   :  { %1183 = vmatprep.subr.bf16.mxu1 %v3203_v33  ;;  %v3836_v11 = vsel %vm411_vm0, %v430_v6, %v434_v3  ;;  %v454_v12 = vor.u32 %v453_v7, %v449_v0  ;;  %v3242_v21 = vld [vmem:[#allocation4 + $0x320] ss:$16 sps:$4 sm:$0xff]   ;;  %v3243_v22 = vld [vmem:[#allocation4 + $0x104] ss:$16 sps:$4 sm:$0xff]   ;;  %v441_v27 = vrot.slane %v439_v17, 1  ;;  %v444_v28 = vshll.u32 %v3840_v16, 16 }
  0x45   :  { %1148 = vmatprep.mubr.bf16.mxu0 %v3836_v11  ;;  %v3245_v29 = vld [vmem:[#allocation4 + $0x304] ss:$16 sps:$4 sm:$0xff]   ;;  %v3247_v30 = vld [vmem:[#allocation4 + $0x100] ss:$16 sps:$4 sm:$0xff]   ;;  %v418_v32 = vor.u32 %v417_v25, %v413_v23  ;;  %v422_v33 = vrot.slane %v420_v24, 1  ;;  %v460_v52 = vshrl.u32 %v3838_v13, 16 }
  0x46   :  { %1133 = vmatpush2.bf16.msra.mxu0 %v3205_v34  ;;  %v3843_v19 = vsel %vm411_vm0, %v454_v12, %v458_v8  ;;  %v3248_v31 = vld [vmem:[#allocation4 + $0x300] ss:$16 sps:$4 sm:$0xff]   ;;  %v442_v34 = vor.u32 %v441_v27, %v437_v26  ;;  %v3276_v49 = vld [vmem:[#allocation4 + $0x2ac] ss:$16 sps:$4 sm:$0xff]   ;;  %v3274_v54 = vld [vmem:[#allocation4 + $0x2a8] ss:$16 sps:$4 sm:$0xff]  }
  0x47   :  { %1184 = vmatpush2.bf16.msra.mxu1 %v3206_v35  ;;  %1134 = vmatprep.subr.bf16.mxu0 %v3207_v36  ;;  %v446_v35 = vrot.slane %v444_v28, 1  ;;  %v3261_v36 = vld [vmem:[#allocation4 + $0xec] ss:$16 sps:$4 sm:$0xff]   ;;  %v464_v55 = vshrl.u32 %v3840_v16, 16  ;;  %v3277_v60 = vld [vmem:[#allocation4 + $0x88] ss:$16 sps:$4 sm:$0xff]  }
  0x48   :  { %1185 = vmatprep.subr.bf16.mxu1 %v3209_v37  ;;  %1199 = vmatprep.mubr.bf16.mxu1 %v3843_v19  ;;  %v3264_v37 = vld [vmem:[#allocation4 + $0x2ec] ss:$16 sps:$4 sm:$0xff]   ;;  %v3283_v0 = vld [vmem:[#allocation4 + $0x68] ss:$16 sps:$4 sm:$0xff]  }
  0x49   :  { %v3288_v63 = vld [vmem:[#allocation4 + $0x26c] ss:$16 sps:$4 sm:$0xff]   ;;  %v3286_v1 = vld [vmem:[#allocation4 + $0x268] ss:$16 sps:$4 sm:$0xff]  }
  0x4a   :  { %1135 = vmatpush2.bf16.msra.mxu0 %v3211_v38  ;;  %v3259_v38 = vld [vmem:[#allocation4 + $0xe8] ss:$16 sps:$4 sm:$0xff]   ;;  %v3294_v3 = vld [vmem:[#allocation4 + $0x24c] ss:$16 sps:$4 sm:$0xff]  }
  0x4b   :  { %1186 = vmatpush2.bf16.msra.mxu1 %v3212_v39  ;;  %1136 = vmatprep.subr.bf16.mxu0 %v3213_v40  ;;  %v3262_v39 = vld [vmem:[#allocation4 + $0x2e8] ss:$16 sps:$4 sm:$0xff]   ;;  %v3850_v40 = vsel %vm411_vm0, %v418_v32, %v422_v33  ;;  %v3297_v6 = vld [vmem:[#allocation4 + $0x2c] ss:$16 sps:$4 sm:$0xff]  }
  0x4c   :  { %1187 = vmatprep.subr.bf16.mxu1 %v3215_v41  ;;  %v3853_v41 = vsel %vm411_vm0, %v442_v34, %v446_v35  ;;  %v3289_v4 = vld [vmem:[#allocation4 + $0x48] ss:$16 sps:$4 sm:$0xff]   ;;  %v3300_v7 = vld [vmem:[#allocation4 + $0x22c] ss:$16 sps:$4 sm:$0xff]  }
  0x4d   :  { %v3292_v5 = vld [vmem:[#allocation4 + $0x248] ss:$16 sps:$4 sm:$0xff]   ;;  %v3309_v15 = vld [vmem:[#allocation4 + $0x1ec] ss:$16 sps:$4 sm:$0xff]  }
  0x4e   :  { %1137 = vmatpush2.bf16.msra.mxu0 %v3217_v42  ;;  %v3267_v42 = vld [vmem:[#allocation4 + $0xcc] ss:$16 sps:$4 sm:$0xff]   ;;  %v3295_v8 = vld [vmem:[#allocation4 + $0x28] ss:$16 sps:$4 sm:$0xff]  }
  0x4f   :  { %1188 = vmatpush2.bf16.msra.mxu1 %v3218_v43  ;;  %1138 = vmatprep.subr.bf16.mxu0 %v3219_v44  ;;  %v3270_v43 = vld [vmem:[#allocation4 + $0x2cc] ss:$16 sps:$4 sm:$0xff]   ;;  %v462_v44 = vshrl.u32 %v3811_v51, 16  ;;  %v3301_v12 = vld [vmem:[#allocation4 + $0x8] ss:$16 sps:$4 sm:$0xff]  }
  0x50   :  { %1189 = vmatprep.subr.bf16.mxu1 %v3221_v45  ;;  %v466_v45 = vshrl.u32 %v3823_v57, 16  ;;  %v3312_v17 = vld [vmem:[#allocation4 + $0x3ec] ss:$16 sps:$4 sm:$0xff]   ;;  %v3316_v23 = vld [vmem:[#allocation4 + $0x3c8] ss:$16 sps:$4 sm:$0xff]  }
  0x51   :  { %v3321_v24 = vld [vmem:[#allocation4 + $0x1ac] ss:$16 sps:$4 sm:$0xff]   ;;  %v3319_v26 = vld [vmem:[#allocation4 + $0x1a8] ss:$16 sps:$4 sm:$0xff]  }
  0x52   :  { %1139 = vmatpush2.bf16.msra.mxu0 %v3223_v46  ;;  %v3265_v46 = vld [vmem:[#allocation4 + $0xc8] ss:$16 sps:$4 sm:$0xff]   ;;  %v3324_v25 = vld [vmem:[#allocation4 + $0x3ac] ss:$16 sps:$4 sm:$0xff]  }
  0x53   :  { %1190 = vmatpush2.bf16.msra.mxu1 %v3224_v47  ;;  %1140 = vmatprep.subr.bf16.mxu0 %v3225_v48  ;;  %v3268_v47 = vld [vmem:[#allocation4 + $0x2c8] ss:$16 sps:$4 sm:$0xff]   ;;  %v3273_v48 = vld [vmem:[#allocation4 + $0xac] ss:$16 sps:$4 sm:$0xff]  }
  0x54   :  { %1191 = vmatprep.subr.bf16.mxu1 %v3227_v53  ;;  %v3271_v53 = vld [vmem:[#allocation4 + $0xa8] ss:$16 sps:$4 sm:$0xff]   ;;  %v3327_v28 = vld [vmem:[#allocation4 + $0x18c] ss:$16 sps:$4 sm:$0xff]  }
  0x55   :  { %v3322_v27 = vld [vmem:[#allocation4 + $0x3a8] ss:$16 sps:$4 sm:$0xff]   ;;  %v3333_v32 = vld [vmem:[#allocation4 + $0x16c] ss:$16 sps:$4 sm:$0xff]  }
  0x56   :  { %1141 = vmatpush2.bf16.msra.mxu0 %v3229_v58  ;;  %v3279_v58 = vld [vmem:[#allocation4 + $0x8c] ss:$16 sps:$4 sm:$0xff]   ;;  %v3331_v34 = vld [vmem:[#allocation4 + $0x168] ss:$16 sps:$4 sm:$0xff]  }
  0x57   :  { %1192 = vmatpush2.bf16.msra.mxu1 %v3230_v59  ;;  %1142 = vmatprep.subr.bf16.mxu0 %v3231_v61  ;;  %v3282_v59 = vld [vmem:[#allocation4 + $0x28c] ss:$16 sps:$4 sm:$0xff]   ;;  %v3280_v61 = vld [vmem:[#allocation4 + $0x288] ss:$16 sps:$4 sm:$0xff]  }
  0x58   :  { %1193 = vmatprep.subr.bf16.mxu1 %v3233_v62  ;;  %v3285_v62 = vld [vmem:[#allocation4 + $0x6c] ss:$16 sps:$4 sm:$0xff]   ;;  %v3334_v35 = vld [vmem:[#allocation4 + $0x368] ss:$16 sps:$4 sm:$0xff]  }
  0x59   :  { %v3336_v33 = vld [vmem:[#allocation4 + $0x36c] ss:$16 sps:$4 sm:$0xff]  }
  0x5a   :  { %1143 = vmatpush2.bf16.msra.mxu0 %v3235_v9  ;;  %v3298_v9 = vld [vmem:[#allocation4 + $0x228] ss:$16 sps:$4 sm:$0xff]  }
  0x5b   :  { %1194 = vmatpush2.bf16.msra.mxu1 %v3236_v10  ;;  %1144 = vmatprep.subr.bf16.mxu0 %v3237_v14  ;;  %v3303_v10 = vld [vmem:[#allocation4 + $0xc] ss:$16 sps:$4 sm:$0xff]   ;;  %v3304_v14 = vld [vmem:[#allocation4 + $0x208] ss:$16 sps:$4 sm:$0xff]  }
  0x5c   :  { %1195 = vmatprep.subr.bf16.mxu1 %v3239_v18  ;;  %v3307_v18 = vld [vmem:[#allocation4 + $0x1e8] ss:$16 sps:$4 sm:$0xff]  }
  0x5e   :  { %1145 = vmatpush2.bf16.msra.mxu0 %v3241_v20  ;;  %v3315_v20 = vld [vmem:[#allocation4 + $0x1cc] ss:$16 sps:$4 sm:$0xff]  }
  0x5f   :  { %1196 = vmatpush2.bf16.msra.mxu1 %v3242_v21  ;;  %1146 = vmatprep.subr.bf16.mxu0 %v3243_v22  ;;  %v3318_v21 = vld [vmem:[#allocation4 + $0x3cc] ss:$16 sps:$4 sm:$0xff]   ;;  %v3313_v22 = vld [vmem:[#allocation4 + $0x1c8] ss:$16 sps:$4 sm:$0xff]  }
  0x60   :  { %1197 = vmatprep.subr.bf16.mxu1 %v3245_v29  ;;  %v3330_v29 = vld [vmem:[#allocation4 + $0x38c] ss:$16 sps:$4 sm:$0xff]  }
  0x62   :  { %1147 = vmatpush2.bf16.msra.mxu0 %v3247_v30  ;;  %v3325_v30 = vld [vmem:[#allocation4 + $0x188] ss:$16 sps:$4 sm:$0xff]  }
  0x63   :  { %1198 = vmatpush2.bf16.msra.mxu1 %v3248_v31  ;;  %1218 = vmatprep.subr.bf16.mxu0 %v3261_v36  ;;  %v3328_v31 = vld [vmem:[#allocation4 + $0x388] ss:$16 sps:$4 sm:$0xff]   ;;  %v3339_v36 = vld [vmem:[#allocation4 + $0x14c] ss:$16 sps:$4 sm:$0xff]  }
  0x64   :  { %1269 = vmatprep.subr.bf16.mxu1 %v3264_v37  ;;  %v3342_v37 = vld [vmem:[#allocation4 + $0x34c] ss:$16 sps:$4 sm:$0xff]  }
  0x65   :  { %1149 = vmatmul.mubr.bf16.vlgmr.msra.gmra.mxu0 %v3850_v40 }
  0x66   :  { %1200 = vmatmul.mubr.bf16.vlgmr.msra.gmra.mxu1 %v3853_v41  ;;  %1219 = vmatpush1.bf16.msra.mxu0 %v3259_v38  ;;  %v3337_v38 = vld [vmem:[#allocation4 + $0x148] ss:$16 sps:$4 sm:$0xff]  }
  0x67   :  { %1270 = vmatpush1.bf16.msra.mxu1 %v3262_v39  ;;  %1220 = vmatprep.subr.bf16.mxu0 %v3267_v42  ;;  %v3340_v39 = vld [vmem:[#allocation4 + $0x348] ss:$16 sps:$4 sm:$0xff]   ;;  %v3345_v42 = vld [vmem:[#allocation4 + $0x12c] ss:$16 sps:$4 sm:$0xff]  }
  0x68   :  { %1271 = vmatprep.subr.bf16.mxu1 %v3270_v43  ;;  %1158 = vmatprep.mubr.bf16.mxu0 %v462_v44  ;;  %v3348_v43 = vld [vmem:[#allocation4 + $0x32c] ss:$16 sps:$4 sm:$0xff]  }
  0x69   :  { %1209 = vmatprep.mubr.bf16.mxu1 %v466_v45 }
  0x6a   :  { %1221 = vmatpush1.bf16.msra.mxu0 %v3265_v46  ;;  %v3343_v46 = vld [vmem:[#allocation4 + $0x128] ss:$16 sps:$4 sm:$0xff]  }
  0x6b   :  { %1272 = vmatpush1.bf16.msra.mxu1 %v3268_v47  ;;  %1222 = vmatprep.subr.bf16.mxu0 %v3273_v48  ;;  %v3346_v47 = vld [vmem:[#allocation4 + $0x328] ss:$16 sps:$4 sm:$0xff]   ;;  %v3351_v48 = vld [vmem:[#allocation4 + $0x10c] ss:$16 sps:$4 sm:$0xff]  }
  0x6c   :  { %1273 = vmatprep.subr.bf16.mxu1 %v3276_v49  ;;  %v3354_v49 = vld [vmem:[#allocation4 + $0x30c] ss:$16 sps:$4 sm:$0xff]  }
  0x6d   :  { %1159 = vmatmul.mubr.bf16.gmra.mxu0 %v460_v52 }
  0x6e   :  { %1210 = vmatmul.mubr.bf16.gmra.mxu1 %v464_v55  ;;  %1223 = vmatpush1.bf16.msra.mxu0 %v3271_v53  ;;  %v3349_v53 = vld [vmem:[#allocation4 + $0x108] ss:$16 sps:$4 sm:$0xff]  }
  0x6f   :  { %1274 = vmatpush1.bf16.msra.mxu1 %v3274_v54  ;;  %1224 = vmatprep.subr.bf16.mxu0 %v3279_v58  ;;  %v3352_v54 = vld [vmem:[#allocation4 + $0x308] ss:$16 sps:$4 sm:$0xff]   ;;  %v3357_v58 = vld [vmem:[#allocation2 + $0xe4] ss:$16 sps:$4 sm:$0xff]  }
  0x70   :  { %1275 = vmatprep.subr.bf16.mxu1 %v3282_v59  ;;  %1250 = vmatprep.mubr.bf16.mxu0 %v3836_v11  ;;  %v3306_v11 = vld [vmem:[#allocation4 + $0x20c] ss:$16 sps:$4 sm:$0xff]   ;;  %v3360_v59 = vld [vmem:[#allocation2 + $0x2e4] ss:$16 sps:$4 sm:$0xff]  }
  0x71   :  { %1301 = vmatprep.mubr.bf16.mxu1 %v3843_v19  ;;  %v3310_v19 = vld [vmem:[#allocation4 + $0x3e8] ss:$16 sps:$4 sm:$0xff]  }
  0x72   :  { %1225 = vmatpush1.bf16.msra.mxu0 %v3277_v60  ;;  %v3355_v60 = vld [vmem:[#allocation2 + $0xe0] ss:$16 sps:$4 sm:$0xff]  }
  0x73   :  { %1276 = vmatpush1.bf16.msra.mxu1 %v3280_v61  ;;  %1226 = vmatprep.subr.bf16.mxu0 %v3285_v62  ;;  %v3358_v61 = vld [vmem:[#allocation2 + $0x2e0] ss:$16 sps:$4 sm:$0xff]   ;;  %v3363_v62 = vld [vmem:[#allocation2 + $0xc4] ss:$16 sps:$4 sm:$0xff]  }
  0x74   :  { %1277 = vmatprep.subr.bf16.mxu1 %v3288_v63  ;;  %v3366_v63 = vld [vmem:[#allocation2 + $0x2c4] ss:$16 sps:$4 sm:$0xff]  }
  0x76   :  { %1227 = vmatpush1.bf16.msra.mxu0 %v3283_v0  ;;  %v3361_v0 = vld [vmem:[#allocation2 + $0xc0] ss:$16 sps:$4 sm:$0xff]  }
  0x77   :  { %1278 = vmatpush1.bf16.msra.mxu1 %v3286_v1  ;;  %1228 = vmatprep.subr.bf16.mxu0 %v3291_v2  ;;  %v3364_v1 = vld [vmem:[#allocation2 + $0x2c0] ss:$16 sps:$4 sm:$0xff]   ;;  %v3369_v2 = vld [vmem:[#allocation2 + $0xa4] ss:$16 sps:$4 sm:$0xff]  }
  0x78   :  { %1279 = vmatprep.subr.bf16.mxu1 %v3294_v3  ;;  %v3372_v3 = vld [vmem:[#allocation2 + $0x2a4] ss:$16 sps:$4 sm:$0xff]  }
  0x7a   :  { %1229 = vmatpush1.bf16.msra.mxu0 %v3289_v4  ;;  %v3367_v4 = vld [vmem:[#allocation2 + $0xa0] ss:$16 sps:$4 sm:$0xff]  }
  0x7b   :  { %1280 = vmatpush1.bf16.msra.mxu1 %v3292_v5  ;;  %1230 = vmatprep.subr.bf16.mxu0 %v3297_v6  ;;  %v3370_v5 = vld [vmem:[#allocation2 + $0x2a0] ss:$16 sps:$4 sm:$0xff]  }
  0x7c   :  { %1281 = vmatprep.subr.bf16.mxu1 %v3300_v7  ;;  %v3373_v6 = vld [vmem:[#allocation2 + $0x80] ss:$16 sps:$4 sm:$0xff]  }
  0x7d   :  { %v3376_v7 = vld [vmem:[#allocation2 + $0x280] ss:$16 sps:$4 sm:$0xff]  }
  0x7e   :  { %1231 = vmatpush1.bf16.msra.mxu0 %v3295_v8  ;;  %v3379_v8 = vld [vmem:[#allocation2 + $0x60] ss:$16 sps:$4 sm:$0xff]  }
  0x7f   :  { %1282 = vmatpush1.bf16.msra.mxu1 %v3298_v9  ;;  %1232 = vmatprep.subr.bf16.mxu0 %v3303_v10  ;;  %v3382_v9 = vld [vmem:[#allocation2 + $0x260] ss:$16 sps:$4 sm:$0xff]   ;;  %v3387_v10 = vld [vmem:[#allocation2 + $0x44] ss:$16 sps:$4 sm:$0xff]  }
  0x80   :  { %1283 = vmatprep.subr.bf16.mxu1 %v3306_v11  ;;  %v3385_v11 = vld [vmem:[#allocation2 + $0x40] ss:$16 sps:$4 sm:$0xff]  }
  0x82   :  { %1233 = vmatpush1.bf16.msra.mxu0 %v3301_v12  ;;  %v3393_v12 = vld [vmem:[#allocation2 + $0x24] ss:$16 sps:$4 sm:$0xff]  }
  0x83   :  { %1284 = vmatpush1.bf16.msra.mxu1 %v3304_v14  ;;  %1234 = vmatprep.subr.bf16.mxu0 %v3309_v15  ;;  %v3396_v14 = vld [vmem:[#allocation2 + $0x224] ss:$16 sps:$4 sm:$0xff]   ;;  %v3391_v15 = vld [vmem:[#allocation2 + $0x20] ss:$16 sps:$4 sm:$0xff]  }
  0x84   :  { %1285 = vmatprep.subr.bf16.mxu1 %v3312_v17  ;;  %v3402_v17 = vld [vmem:[#allocation2 + $0x204] ss:$16 sps:$4 sm:$0xff]  }
  0x86   :  { %1235 = vmatpush2.bf16.msra.mxu0 %v3307_v18  ;;  %v3397_v18 = vld [vmem:[#allocation2] ss:$16 sps:$4 sm:$0xff]  }
  0x87   :  { %1286 = vmatpush2.bf16.msra.mxu1 %v3310_v19  ;;  %1236 = vmatprep.subr.bf16.mxu0 %v3315_v20  ;;  %v3400_v19 = vld [vmem:[#allocation2 + $0x200] ss:$16 sps:$4 sm:$0xff]   ;;  %v3405_v20 = vld [vmem:[#allocation2 + $0x1e4] ss:$16 sps:$4 sm:$0xff]  }
  0x88   :  { %1287 = vmatprep.subr.bf16.mxu1 %v3318_v21  ;;  %v3408_v21 = vld [vmem:[#allocation2 + $0x3e4] ss:$16 sps:$4 sm:$0xff]  }
  0x8a   :  { %1237 = vmatpush2.bf16.msra.mxu0 %v3313_v22  ;;  %v3403_v22 = vld [vmem:[#allocation2 + $0x1e0] ss:$16 sps:$4 sm:$0xff]  }
  0x8b   :  { %1288 = vmatpush2.bf16.msra.mxu1 %v3316_v23  ;;  %1238 = vmatprep.subr.bf16.mxu0 %v3321_v24  ;;  %v3406_v23 = vld [vmem:[#allocation2 + $0x3e0] ss:$16 sps:$4 sm:$0xff]   ;;  %v3411_v24 = vld [vmem:[#allocation2 + $0x1c4] ss:$16 sps:$4 sm:$0xff]  }
  0x8c   :  { %1289 = vmatprep.subr.bf16.mxu1 %v3324_v25  ;;  %v3414_v25 = vld [vmem:[#allocation2 + $0x3c4] ss:$16 sps:$4 sm:$0xff]  }
  0x8e   :  { %1239 = vmatpush2.bf16.msra.mxu0 %v3319_v26  ;;  %v3409_v26 = vld [vmem:[#allocation2 + $0x1c0] ss:$16 sps:$4 sm:$0xff]  }
  0x8f   :  { %1290 = vmatpush2.bf16.msra.mxu1 %v3322_v27  ;;  %1240 = vmatprep.subr.bf16.mxu0 %v3327_v28  ;;  %v3412_v27 = vld [vmem:[#allocation2 + $0x3c0] ss:$16 sps:$4 sm:$0xff]   ;;  %v3417_v28 = vld [vmem:[#allocation2 + $0x1a4] ss:$16 sps:$4 sm:$0xff]  }
  0x90   :  { %1291 = vmatprep.subr.bf16.mxu1 %v3330_v29  ;;  %v3420_v29 = vld [vmem:[#allocation2 + $0x3a4] ss:$16 sps:$4 sm:$0xff]  }
  0x92   :  { %1241 = vmatpush2.bf16.msra.mxu0 %v3325_v30  ;;  %v3415_v30 = vld [vmem:[#allocation2 + $0x1a0] ss:$16 sps:$4 sm:$0xff]  }
  0x93   :  { %1292 = vmatpush2.bf16.msra.mxu1 %v3328_v31  ;;  %1242 = vmatprep.subr.bf16.mxu0 %v3333_v32  ;;  %v3418_v31 = vld [vmem:[#allocation2 + $0x3a0] ss:$16 sps:$4 sm:$0xff]   ;;  %v3423_v32 = vld [vmem:[#allocation2 + $0x184] ss:$16 sps:$4 sm:$0xff]  }
  0x94   :  { %1293 = vmatprep.subr.bf16.mxu1 %v3336_v33  ;;  %v3426_v33 = vld [vmem:[#allocation2 + $0x384] ss:$16 sps:$4 sm:$0xff]  }
  0x96   :  { %1243 = vmatpush2.bf16.msra.mxu0 %v3331_v34  ;;  %v3421_v34 = vld [vmem:[#allocation2 + $0x180] ss:$16 sps:$4 sm:$0xff]  }
  0x97   :  { %1294 = vmatpush2.bf16.msra.mxu1 %v3334_v35  ;;  %1244 = vmatprep.subr.bf16.mxu0 %v3339_v36  ;;  %v3424_v35 = vld [vmem:[#allocation2 + $0x380] ss:$16 sps:$4 sm:$0xff]   ;;  %v3429_v36 = vld [vmem:[#allocation2 + $0x164] ss:$16 sps:$4 sm:$0xff]  }
  0x98   :  { %1295 = vmatprep.subr.bf16.mxu1 %v3342_v37  ;;  %v3432_v37 = vld [vmem:[#allocation2 + $0x364] ss:$16 sps:$4 sm:$0xff]  }
  0x9a   :  { %1245 = vmatpush2.bf16.msra.mxu0 %v3337_v38  ;;  %v3427_v38 = vld [vmem:[#allocation2 + $0x160] ss:$16 sps:$4 sm:$0xff]  }
  0x9b   :  { %1296 = vmatpush2.bf16.msra.mxu1 %v3340_v39  ;;  %1246 = vmatprep.subr.bf16.mxu0 %v3345_v42  ;;  %v3430_v39 = vld [vmem:[#allocation2 + $0x360] ss:$16 sps:$4 sm:$0xff]   ;;  %v3435_v42 = vld [vmem:[#allocation2 + $0x144] ss:$16 sps:$4 sm:$0xff]  }
  0x9c   :  { %1297 = vmatprep.subr.bf16.mxu1 %v3348_v43  ;;  %v3438_v43 = vld [vmem:[#allocation2 + $0x344] ss:$16 sps:$4 sm:$0xff]  }
  0x9e   :  { %1247 = vmatpush2.bf16.msra.mxu0 %v3343_v46  ;;  %v3433_v46 = vld [vmem:[#allocation2 + $0x140] ss:$16 sps:$4 sm:$0xff]  }
  0x9f   :  { %1298 = vmatpush2.bf16.msra.mxu1 %v3346_v47  ;;  %1248 = vmatprep.subr.bf16.mxu0 %v3351_v48  ;;  %v3436_v47 = vld [vmem:[#allocation2 + $0x340] ss:$16 sps:$4 sm:$0xff]   ;;  %v3441_v48 = vld [vmem:[#allocation2 + $0x124] ss:$16 sps:$4 sm:$0xff]  }
  0xa0   :  { %1299 = vmatprep.subr.bf16.mxu1 %v3354_v49  ;;  %v3444_v49 = vld [vmem:[#allocation2 + $0x324] ss:$16 sps:$4 sm:$0xff]  }
  0xa2   :  { %1249 = vmatpush2.bf16.msra.mxu0 %v3349_v53  ;;  %v3439_v53 = vld [vmem:[#allocation2 + $0x120] ss:$16 sps:$4 sm:$0xff]  }
  0xa3   :  { %1300 = vmatpush2.bf16.msra.mxu1 %v3352_v54  ;;  %2305 = vmatprep.subr.bf16.mxu0 %v3357_v58  ;;  %v3442_v54 = vld [vmem:[#allocation2 + $0x320] ss:$16 sps:$4 sm:$0xff]   ;;  %v3447_v58 = vld [vmem:[#allocation2 + $0x104] ss:$16 sps:$4 sm:$0xff]  }
  0xa4   :  { %2356 = vmatprep.subr.bf16.mxu1 %v3360_v59  ;;  %v3450_v59 = vld [vmem:[#allocation2 + $0x304] ss:$16 sps:$4 sm:$0xff]  }
  0xa5   :  { %1251 = vmatmul.mubr.bf16.vlgmr.msra.gmra.mxu0 %v3850_v40  ;;  %v3375_v40 = vld [vmem:[#allocation2 + $0x84] ss:$16 sps:$4 sm:$0xff]  }
  0xa6   :  { %1302 = vmatmul.mubr.bf16.vlgmr.msra.gmra.mxu1 %v3853_v41  ;;  %2306 = vmatpush1.bf16.msra.mxu0 %v3355_v60  ;;  %v3378_v41 = vld [vmem:[#allocation2 + $0x284] ss:$16 sps:$4 sm:$0xff]   ;;  %v3445_v60 = vld [vmem:[#allocation2 + $0x100] ss:$16 sps:$4 sm:$0xff]  }
  0xa7   :  { %2357 = vmatpush1.bf16.msra.mxu1 %v3358_v61  ;;  %2307 = vmatprep.subr.bf16.mxu0 %v3363_v62  ;;  %v3448_v61 = vld [vmem:[#allocation2 + $0x300] ss:$16 sps:$4 sm:$0xff]   ;;  %v3453_v62 = vld [vmem:[#allocation2 + $0x4e4] ss:$16 sps:$4 sm:$0xff]  }
  0xa8   :  { %2358 = vmatprep.subr.bf16.mxu1 %v3366_v63  ;;  %1260 = vmatprep.mubr.bf16.mxu0 %v462_v44  ;;  %v3381_v44 = vld [vmem:[#allocation2 + $0x64] ss:$16 sps:$4 sm:$0xff]   ;;  %v3456_v63 = vld [vmem:[#allocation2 + $0xec] ss:$16 sps:$4 sm:$0xff]  }
  0xa9   :  { %1311 = vmatprep.mubr.bf16.mxu1 %v466_v45  ;;  %v3384_v45 = vld [vmem:[#allocation2 + $0x264] ss:$16 sps:$4 sm:$0xff]  }
  0xaa   :  { %2308 = vmatpush1.bf16.msra.mxu0 %v3361_v0  ;;  %v3451_v0 = vld [vmem:[#allocation2 + $0x4e0] ss:$16 sps:$4 sm:$0xff]  }
  0xab   :  { %2359 = vmatpush1.bf16.msra.mxu1 %v3364_v1  ;;  %2309 = vmatprep.subr.bf16.mxu0 %v3369_v2  ;;  %v3454_v1 = vld [vmem:[#allocation2 + $0xe8] ss:$16 sps:$4 sm:$0xff]   ;;  %v3459_v2 = vld [vmem:[#allocation2 + $0x4c4] ss:$16 sps:$4 sm:$0xff]  }
  0xac   :  { %2360 = vmatprep.subr.bf16.mxu1 %v3372_v3  ;;  %v3462_v3 = vld [vmem:[#allocation2 + $0xcc] ss:$16 sps:$4 sm:$0xff]  }
  0xad   :  { %1261 = vmatmul.mubr.bf16.gmra.mxu0 %v460_v52  ;;  %v3390_v52 = vld [vmem:[#allocation2 + $0x244] ss:$16 sps:$4 sm:$0xff]  }
  0xae   :  { %1312 = vmatmul.mubr.bf16.gmra.mxu1 %v464_v55  ;;  %2310 = vmatpush1.bf16.msra.mxu0 %v3367_v4  ;;  %v3388_v55 = vld [vmem:[#allocation2 + $0x240] ss:$16 sps:$4 sm:$0xff]  }
  0xaf   :  { %2361 = vmatpush1.bf16.msra.mxu1 %v3370_v5  ;;  %2311 = vmatprep.subr.bf16.mxu0 %v3375_v40  ;;  %v3886_v4 = vld [vmem:[%s4045_s0] ss:$24 sps:$4 sm:$0xff]  }
  0xb0   :  { %2362 = vmatprep.subr.bf16.mxu1 %v3378_v41  ;;  %2337 = vmatprep.mubr.bf16.mxu0 %v3809_v50  ;;  %v3394_v50 = vld [vmem:[#allocation2 + $0x220] ss:$16 sps:$4 sm:$0xff]   ;;  %v3460_v41 = vld [vmem:[#allocation2 + $0xc8] ss:$16 sps:$4 sm:$0xff]  }
  0xb1   :  { %2388 = vmatprep.mubr.bf16.mxu1 %v3821_v56  ;;  %v3399_v56 = vld [vmem:[#allocation2 + $0x4] ss:$16 sps:$4 sm:$0xff]   ;;  %v3892_v5 = vld [vmem:[%s4045_s0 + $0x8] ss:$24 sps:$4 sm:$0xff]  }
  0xb2   :  { %2312 = vmatpush1.bf16.msra.mxu0 %v3373_v6  ;;  %v3457_v40 = vld [vmem:[#allocation2 + $0x4c0] ss:$16 sps:$4 sm:$0xff]   ;;  %v3465_v6 = vld [vmem:[#allocation2 + $0x4a4] ss:$16 sps:$4 sm:$0xff]  }
  0xb3   :  { %2363 = vmatpush1.bf16.msra.mxu1 %v3376_v7  ;;  %2313 = vmatprep.subr.bf16.mxu0 %v3381_v44  ;;  %v3468_v7 = vld [vmem:[#allocation2 + $0xac] ss:$16 sps:$4 sm:$0xff]   ;;  %v3463_v44 = vld [vmem:[#allocation2 + $0x4a0] ss:$16 sps:$4 sm:$0xff]  }
  0xb4   :  { %2364 = vmatprep.subr.bf16.mxu1 %v3384_v45  ;;  %v3466_v45 = vld [vmem:[#allocation2 + $0xa8] ss:$16 sps:$4 sm:$0xff]  }
  0xb6   :  { %2314 = vmatpush1.bf16.msra.mxu0 %v3379_v8  ;;  %v3471_v8 = vld [vmem:[#allocation2 + $0x484] ss:$16 sps:$4 sm:$0xff]  }
  0xb7   :  { %2365 = vmatpush1.bf16.msra.mxu1 %v3382_v9  ;;  %2315 = vmatprep.subr.bf16.mxu0 %v3387_v10  ;;  %v3474_v9 = vld [vmem:[#allocation2 + $0x8c] ss:$16 sps:$4 sm:$0xff]  }
  0xb8   :  { %2366 = vmatprep.subr.bf16.mxu1 %v3390_v52  ;;  %v3900_v10 = vld [vmem:[%s4045_s0 + $0x14] ss:$24 sps:$4 sm:$0xff]   ;;  %v3469_v52 = vld [vmem:[#allocation2 + $0x480] ss:$16 sps:$4 sm:$0xff]  }
  0xba   :  { %2316 = vmatpush1.bf16.msra.mxu0 %v3385_v11  ;;  %v3472_v11 = vld [vmem:[#allocation2 + $0x88] ss:$16 sps:$4 sm:$0xff]  }
  0xbb   :  { %2367 = vmatpush1.bf16.msra.mxu1 %v3388_v55  ;;  %2317 = vmatprep.subr.bf16.mxu0 %v3393_v12  ;;  %v3477_v55 = vld [vmem:[#allocation2 + $0x464] ss:$16 sps:$4 sm:$0xff]   ;;  %v3480_v12 = vld [vmem:[#allocation2 + $0x6c] ss:$16 sps:$4 sm:$0xff]  }
  0xbc   :  { %2368 = vmatprep.subr.bf16.mxu1 %v3396_v14  ;;  %v3698_v14 = vld [vmem:[%s4045_s0 + $0x4] ss:$24 sps:$4 sm:$0xff]  }
  0xbe   :  { %2318 = vmatpush1.bf16.msra.mxu0 %v3391_v15  ;;  %v3475_v15 = vld [vmem:[#allocation2 + $0x460] ss:$16 sps:$4 sm:$0xff]  }
  0xbf   :  { %2369 = vmatpush1.bf16.msra.mxu1 %v3394_v50  ;;  %2319 = vmatprep.subr.bf16.mxu0 %v3399_v56  ;;  %v3478_v50 = vld [vmem:[#allocation2 + $0x68] ss:$16 sps:$4 sm:$0xff]   ;;  %v3483_v56 = vld [vmem:[#allocation2 + $0x444] ss:$16 sps:$4 sm:$0xff]  }
  0xc0   :  { %2370 = vmatprep.subr.bf16.mxu1 %v3402_v17  ;;  %v3486_v17 = vld [vmem:[#allocation2 + $0x4c] ss:$16 sps:$4 sm:$0xff]  }
  0xc2   :  { %2320 = vmatpush1.bf16.msra.mxu0 %v3397_v18  ;;  %v3481_v18 = vld [vmem:[#allocation2 + $0x440] ss:$16 sps:$4 sm:$0xff]  }
  0xc3   :  { %2371 = vmatpush1.bf16.msra.mxu1 %v3400_v19  ;;  %2321 = vmatprep.subr.bf16.mxu0 %v3405_v20  ;;  %v3484_v19 = vld [vmem:[#allocation2 + $0x48] ss:$16 sps:$4 sm:$0xff]   ;;  %v3489_v20 = vld [vmem:[#allocation2 + $0x424] ss:$16 sps:$4 sm:$0xff]  }
  0xc4   :  { %2372 = vmatprep.subr.bf16.mxu1 %v3408_v21  ;;  %v3492_v21 = vld [vmem:[#allocation2 + $0x2c] ss:$16 sps:$4 sm:$0xff]  }
  0xc6   :  { %2322 = vmatpush2.bf16.msra.mxu0 %v3403_v22  ;;  %v3487_v22 = vld [vmem:[#allocation2 + $0x420] ss:$16 sps:$4 sm:$0xff]  }
  0xc7   :  { %2373 = vmatpush2.bf16.msra.mxu1 %v3406_v23  ;;  %2323 = vmatprep.subr.bf16.mxu0 %v3411_v24  ;;  %v3490_v23 = vld [vmem:[#allocation2 + $0x28] ss:$16 sps:$4 sm:$0xff]   ;;  %v3495_v24 = vld [vmem:[#allocation2 + $0x404] ss:$16 sps:$4 sm:$0xff]  }
  0xc8   :  { %2374 = vmatprep.subr.bf16.mxu1 %v3414_v25  ;;  %v3498_v25 = vld [vmem:[#allocation2 + $0xc] ss:$16 sps:$4 sm:$0xff]  }
  0xca   :  { %2324 = vmatpush2.bf16.msra.mxu0 %v3409_v26  ;;  %v3493_v26 = vld [vmem:[#allocation2 + $0x400] ss:$16 sps:$4 sm:$0xff]  }
  0xcb   :  { %2375 = vmatpush2.bf16.msra.mxu1 %v3412_v27  ;;  %2325 = vmatprep.subr.bf16.mxu0 %v3417_v28  ;;  %v3496_v27 = vld [vmem:[#allocation2 + $0x8] ss:$16 sps:$4 sm:$0xff]   ;;  %v3501_v28 = vld [vmem:[#allocation2 + $0x5e4] ss:$16 sps:$4 sm:$0xff]  }
  0xcc   :  { %2376 = vmatprep.subr.bf16.mxu1 %v3420_v29  ;;  %v3504_v29 = vld [vmem:[#allocation2 + $0x1ec] ss:$16 sps:$4 sm:$0xff]  }
  0xce   :  { %2326 = vmatpush2.bf16.msra.mxu0 %v3415_v30  ;;  %v3499_v30 = vld [vmem:[#allocation2 + $0x5e0] ss:$16 sps:$4 sm:$0xff]  }
  0xcf   :  { %2377 = vmatpush2.bf16.msra.mxu1 %v3418_v31  ;;  %2327 = vmatprep.subr.bf16.mxu0 %v3423_v32  ;;  %v3502_v31 = vld [vmem:[#allocation2 + $0x1e8] ss:$16 sps:$4 sm:$0xff]   ;;  %v3507_v32 = vld [vmem:[#allocation2 + $0x5c4] ss:$16 sps:$4 sm:$0xff]  }
  0xd0   :  { %2378 = vmatprep.subr.bf16.mxu1 %v3426_v33  ;;  %v3510_v33 = vld [vmem:[#allocation2 + $0x1cc] ss:$16 sps:$4 sm:$0xff]  }
  0xd2   :  { %2328 = vmatpush2.bf16.msra.mxu0 %v3421_v34  ;;  %v3505_v34 = vld [vmem:[#allocation2 + $0x5c0] ss:$16 sps:$4 sm:$0xff]  }
  0xd3   :  { %2379 = vmatpush2.bf16.msra.mxu1 %v3424_v35  ;;  %2329 = vmatprep.subr.bf16.mxu0 %v3429_v36  ;;  %v3508_v35 = vld [vmem:[#allocation2 + $0x1c8] ss:$16 sps:$4 sm:$0xff]   ;;  %v3513_v36 = vld [vmem:[#allocation2 + $0x5a4] ss:$16 sps:$4 sm:$0xff]  }
  0xd4   :  { %2380 = vmatprep.subr.bf16.mxu1 %v3432_v37  ;;  %v3516_v37 = vld [vmem:[#allocation2 + $0x1ac] ss:$16 sps:$4 sm:$0xff]  }
  0xd6   :  { %2330 = vmatpush2.bf16.msra.mxu0 %v3427_v38  ;;  %v3511_v38 = vld [vmem:[#allocation2 + $0x5a0] ss:$16 sps:$4 sm:$0xff]  }
  0xd7   :  { %2381 = vmatpush2.bf16.msra.mxu1 %v3430_v39  ;;  %2331 = vmatprep.subr.bf16.mxu0 %v3435_v42  ;;  %v3514_v39 = vld [vmem:[#allocation2 + $0x1a8] ss:$16 sps:$4 sm:$0xff]   ;;  %v3519_v42 = vld [vmem:[#allocation2 + $0x584] ss:$16 sps:$4 sm:$0xff]  }
  0xd8   :  { %2382 = vmatprep.subr.bf16.mxu1 %v3438_v43  ;;  %v3522_v43 = vld [vmem:[#allocation2 + $0x18c] ss:$16 sps:$4 sm:$0xff]  }
  0xda   :  { %2332 = vmatpush2.bf16.msra.mxu0 %v3433_v46  ;;  %v3517_v46 = vld [vmem:[#allocation2 + $0x580] ss:$16 sps:$4 sm:$0xff]  }
  0xdb   :  { %2383 = vmatpush2.bf16.msra.mxu1 %v3436_v47  ;;  %2333 = vmatprep.subr.bf16.mxu0 %v3441_v48  ;;  %v3520_v47 = vld [vmem:[#allocation2 + $0x188] ss:$16 sps:$4 sm:$0xff]   ;;  %v3525_v48 = vld [vmem:[#allocation2 + $0x564] ss:$16 sps:$4 sm:$0xff]  }
  0xdc   :  { %2384 = vmatprep.subr.bf16.mxu1 %v3444_v49  ;;  %v3528_v49 = vld [vmem:[#allocation2 + $0x16c] ss:$16 sps:$4 sm:$0xff]  }
  0xde   :  { %2334 = vmatpush2.bf16.msra.mxu0 %v3439_v53  ;;  %v3523_v53 = vld [vmem:[#allocation2 + $0x560] ss:$16 sps:$4 sm:$0xff]  }
  0xdf   :  { %2385 = vmatpush2.bf16.msra.mxu1 %v3442_v54  ;;  %2335 = vmatprep.subr.bf16.mxu0 %v3447_v58  ;;  %v3526_v54 = vld [vmem:[#allocation2 + $0x168] ss:$16 sps:$4 sm:$0xff]   ;;  %v3531_v58 = vld [vmem:[#allocation2 + $0x544] ss:$16 sps:$4 sm:$0xff]  }
  0xe0   :  { %2386 = vmatprep.subr.bf16.mxu1 %v3450_v59  ;;  %v3534_v59 = vld [vmem:[#allocation2 + $0x14c] ss:$16 sps:$4 sm:$0xff]  }
  0xe2   :  { %2336 = vmatpush2.bf16.msra.mxu0 %v3445_v60  ;;  %v3529_v60 = vld [vmem:[#allocation2 + $0x540] ss:$16 sps:$4 sm:$0xff]  }
  0xe3   :  { %2387 = vmatpush2.bf16.msra.mxu1 %v3448_v61  ;;  %2407 = vmatprep.subr.bf16.mxu0 %v3453_v62  ;;  %v3532_v61 = vld [vmem:[#allocation2 + $0x148] ss:$16 sps:$4 sm:$0xff]   ;;  %v3537_v62 = vld [vmem:[#allocation2 + $0x524] ss:$16 sps:$4 sm:$0xff]  }
  0xe4   :  { %2458 = vmatprep.subr.bf16.mxu1 %v3456_v63  ;;  %v3540_v63 = vld [vmem:[#allocation2 + $0x12c] ss:$16 sps:$4 sm:$0xff]  }
  0xe5   :  { %2338 = vmatmul.mubr.bf16.vlgmr.msra.gmra.mxu0 %v3886_v4 }
  0xe6   :  { %2389 = vmatmul.mubr.bf16.vlgmr.msra.gmra.mxu1 %v3892_v5  ;;  %2408 = vmatpush1.bf16.msra.mxu0 %v3451_v0  ;;  %v3535_v0 = vld [vmem:[#allocation2 + $0x520] ss:$16 sps:$4 sm:$0xff]  }
  0xe7   :  { %2459 = vmatpush1.bf16.msra.mxu1 %v3454_v1  ;;  %2409 = vmatprep.subr.bf16.mxu0 %v3459_v2  ;;  %v3538_v1 = vld [vmem:[#allocation2 + $0x128] ss:$16 sps:$4 sm:$0xff]   ;;  %v3543_v2 = vld [vmem:[#allocation2 + $0x504] ss:$16 sps:$4 sm:$0xff]  }
  0xe8   :  { %2460 = vmatprep.subr.bf16.mxu1 %v3462_v3  ;;  %2347 = vmatprep.mubr.bf16.mxu0 %v3811_v51  ;;  %v3546_v3 = vld [vmem:[#allocation2 + $0x10c] ss:$16 sps:$4 sm:$0xff]  }
  0xe9   :  { %2398 = vmatprep.mubr.bf16.mxu1 %v3823_v57 }
  0xea   :  { %2410 = vmatpush1.bf16.msra.mxu0 %v3457_v40  ;;  %v3541_v40 = vld [vmem:[#allocation2 + $0x500] ss:$16 sps:$4 sm:$0xff]  }
  0xeb   :  { %2461 = vmatpush1.bf16.msra.mxu1 %v3460_v41  ;;  %2411 = vmatprep.subr.bf16.mxu0 %v3465_v6  ;;  %v3544_v41 = vld [vmem:[#allocation2 + $0x108] ss:$16 sps:$4 sm:$0xff]   ;;  %v3552_v6 = vld [vmem:[#allocation2 + $0x2ec] ss:$16 sps:$4 sm:$0xff]  }
  0xec   :  { %2462 = vmatprep.subr.bf16.mxu1 %v3468_v7  ;;  %v3555_v7 = vld [vmem:[#allocation2 + $0x4ec] ss:$16 sps:$4 sm:$0xff]  }
  0xed   :  { %2348 = vmatmul.mubr.bf16.gmra.mxu0 %v3838_v13 }
  0xee   :  { %2399 = vmatmul.mubr.bf16.gmra.mxu1 %v3840_v16  ;;  %2412 = vmatpush1.bf16.msra.mxu0 %v3463_v44  ;;  %v3911_v44 = vld [vmem:[%s4045_s0 + $0x10] ss:$24 sps:$4 sm:$0xff]  }
  0xef   :  { %2463 = vmatpush1.bf16.msra.mxu1 %v3466_v45  ;;  %2413 = vmatprep.subr.bf16.mxu0 %v3471_v8  ;;  %v64_v45 = vld [vmem:[%s4045_s0 + $0x40] sm:$0x11]  ;;  %v3550_v8 = vld [vmem:[#allocation2 + $0x2e8] ss:$16 sps:$4 sm:$0xff]  }
  0xf0   :  { %2464 = vmatprep.subr.bf16.mxu1 %v3474_v9  ;;  %2439 = vmatprep.mubr.bf16.mxu0 %v3900_v10  ;;  %v3553_v9 = vld [vmem:[#allocation2 + $0x4e8] ss:$16 sps:$4 sm:$0xff]  }
  0xf1   :  { %2490 = vmatprep.mubr.bf16.mxu1 %v3698_v14 }
  0xf2   :  { %2414 = vmatpush1.bf16.msra.mxu0 %v3469_v52  ;;  %v3558_v52 = vld [vmem:[#allocation2 + $0x2cc] ss:$16 sps:$4 sm:$0xff]  }
  0xf3   :  { %2465 = vmatpush1.bf16.msra.mxu1 %v3472_v11  ;;  %2415 = vmatprep.subr.bf16.mxu0 %v3477_v55  ;;  %v3561_v11 = vld [vmem:[#allocation2 + $0x4cc] ss:$16 sps:$4 sm:$0xff]   ;;  %v3916_v55 = vcombine.high %v64_v45, %v64_v45 }
  0xf4   :  { %2466 = vmatprep.subr.bf16.mxu1 %v3480_v12 }
  0xf6   :  { %2416 = vmatpush1.bf16.msra.mxu0 %v3475_v15 }
  0xf7   :  { %2467 = vmatpush1.bf16.msra.mxu1 %v3478_v50  ;;  %2417 = vmatprep.subr.bf16.mxu0 %v3483_v56  ;;  %v3556_v50 = vld [vmem:[#allocation2 + $0x2c8] ss:$16 sps:$4 sm:$0xff]  }
  0xf8   :  { %2468 = vmatprep.subr.bf16.mxu1 %v3486_v17  ;;  %v3559_v56 = vld [vmem:[#allocation2 + $0x4c8] ss:$16 sps:$4 sm:$0xff]  }
  0xfa   :  { %2418 = vmatpush1.bf16.msra.mxu0 %v3481_v18 }
  0xfb   :  { %2469 = vmatpush1.bf16.msra.mxu1 %v3484_v19  ;;  %2419 = vmatprep.subr.bf16.mxu0 %v3489_v20  ;;  %v3566_v19 = vld [vmem:[#allocation2 + $0x2ac] ss:$16 sps:$4 sm:$0xff]  }
  0xfc   :  { %2470 = vmatprep.subr.bf16.mxu1 %v3492_v21  ;;  %v3569_v20 = vld [vmem:[#allocation2 + $0x4ac] ss:$16 sps:$4 sm:$0xff]  }
  0xfe   :  { %2420 = vmatpush1.bf16.msra.mxu0 %v3487_v22 }
  0xff   :  { %2471 = vmatpush1.bf16.msra.mxu1 %v3490_v23  ;;  %2421 = vmatprep.subr.bf16.mxu0 %v3495_v24  ;;  %v3926_v23 = vcombine.low %v64_v45, %v64_v45  ;;  %v3608_v45 = vld [vmem:[#allocation2 + $0x3cc] ss:$16 sps:$4 sm:$0xff]  }
 0x100   :  { %2472 = vmatprep.subr.bf16.mxu1 %v3498_v25  ;;  %v3564_v25 = vld [vmem:[#allocation2 + $0x2a8] ss:$16 sps:$4 sm:$0xff]  }
 0x102   :  { %2422 = vmatpush1.bf16.msra.mxu0 %v3493_v26  ;;  %v3567_v26 = vld [vmem:[#allocation2 + $0x4a8] ss:$16 sps:$4 sm:$0xff]  }
 0x103   :  { %2473 = vmatpush1.bf16.msra.mxu1 %v3496_v27  ;;  %2423 = vmatprep.subr.bf16.mxu0 %v3501_v28 }
 0x104   :  { %2474 = vmatprep.subr.bf16.mxu1 %v3504_v29  ;;  %v3572_v29 = vld [vmem:[#allocation2 + $0x28c] ss:$16 sps:$4 sm:$0xff]  }
 0x106   :  { %2424 = vmatpush2.bf16.msra.mxu0 %v3499_v30  ;;  %v3575_v30 = vld [vmem:[#allocation2 + $0x48c] ss:$16 sps:$4 sm:$0xff]  }
 0x107   :  { %2475 = vmatpush2.bf16.msra.mxu1 %v3502_v31  ;;  %2425 = vmatprep.subr.bf16.mxu0 %v3507_v32 }
 0x108   :  { %2476 = vmatprep.subr.bf16.mxu1 %v3510_v33  ;;  %v3570_v33 = vld [vmem:[#allocation2 + $0x288] ss:$16 sps:$4 sm:$0xff]  }
 0x10a   :  { %2426 = vmatpush2.bf16.msra.mxu0 %v3505_v34  ;;  %v3573_v34 = vld [vmem:[#allocation2 + $0x488] ss:$16 sps:$4 sm:$0xff]  }
 0x10b   :  { %2477 = vmatpush2.bf16.msra.mxu1 %v3508_v35  ;;  %2427 = vmatprep.subr.bf16.mxu0 %v3513_v36  ;;  %v3578_v36 = vld [vmem:[#allocation2 + $0x26c] ss:$16 sps:$4 sm:$0xff]  }
 0x10c   :  { %2478 = vmatprep.subr.bf16.mxu1 %v3516_v37  ;;  %v3581_v37 = vld [vmem:[#allocation2 + $0x46c] ss:$16 sps:$4 sm:$0xff]  }
 0x10e   :  { %2428 = vmatpush2.bf16.msra.mxu0 %v3511_v38 }
 0x10f   :  { %2479 = vmatpush2.bf16.msra.mxu1 %v3514_v39  ;;  %2429 = vmatprep.subr.bf16.mxu0 %v3519_v42 }
 0x110   :  { %2480 = vmatprep.subr.bf16.mxu1 %v3522_v43 }
 0x112   :  { %2430 = vmatpush2.bf16.msra.mxu0 %v3517_v46 }
 0x113   :  { %2481 = vmatpush2.bf16.msra.mxu1 %v3520_v47  ;;  %2431 = vmatprep.subr.bf16.mxu0 %v3525_v48  ;;  %v3576_v47 = vld [vmem:[#allocation2 + $0x268] ss:$16 sps:$4 sm:$0xff]  }
 0x114   :  { %2482 = vmatprep.subr.bf16.mxu1 %v3528_v49  ;;  %v3579_v48 = vld [vmem:[#allocation2 + $0x468] ss:$16 sps:$4 sm:$0xff]   ;;  %v3584_v49 = vld [vmem:[#allocation2 + $0x24c] ss:$16 sps:$4 sm:$0xff]  }
 0x116   :  { %2432 = vmatpush2.bf16.msra.mxu0 %v3523_v53  ;;  %v3587_v53 = vld [vmem:[#allocation2 + $0x44c] ss:$16 sps:$4 sm:$0xff]  }
 0x117   :  { %2483 = vmatpush2.bf16.msra.mxu1 %v3526_v54  ;;  %2433 = vmatprep.subr.bf16.mxu0 %v3531_v58 }
 0x118   :  { %2484 = vmatprep.subr.bf16.mxu1 %v3534_v59  ;;  %v3582_v59 = vld [vmem:[#allocation2 + $0x248] ss:$16 sps:$4 sm:$0xff]  }
 0x11a   :  { %2434 = vmatpush2.bf16.msra.mxu0 %v3529_v60  ;;  %v3585_v60 = vld [vmem:[#allocation2 + $0x448] ss:$16 sps:$4 sm:$0xff]  }
 0x11b   :  { %2485 = vmatpush2.bf16.msra.mxu1 %v3532_v61  ;;  %2435 = vmatprep.subr.bf16.mxu0 %v3537_v62  ;;  %v3590_v61 = vld [vmem:[#allocation2 + $0x22c] ss:$16 sps:$4 sm:$0xff]   ;;  %v3588_v62 = vld [vmem:[#allocation2 + $0x228] ss:$16 sps:$4 sm:$0xff]  }
 0x11c   :  { %2486 = vmatprep.subr.bf16.mxu1 %v3540_v63  ;;  %v3591_v63 = vld [vmem:[#allocation2 + $0x428] ss:$16 sps:$4 sm:$0xff]  }
 0x11e   :  { %2436 = vmatpush2.bf16.msra.mxu0 %v3535_v0  ;;  %v3596_v0 = vld [vmem:[#allocation2 + $0x20c] ss:$16 sps:$4 sm:$0xff]  }
 0x11f   :  { %2487 = vmatpush2.bf16.msra.mxu1 %v3538_v1  ;;  %2437 = vmatprep.subr.bf16.mxu0 %v3543_v2  ;;  %v3599_v1 = vld [vmem:[#allocation2 + $0x40c] ss:$16 sps:$4 sm:$0xff]   ;;  %v3594_v2 = vld [vmem:[#allocation2 + $0x208] ss:$16 sps:$4 sm:$0xff]  }
 0x120   :  { %2488 = vmatprep.subr.bf16.mxu1 %v3546_v3  ;;  %v3597_v3 = vld [vmem:[#allocation2 + $0x408] ss:$16 sps:$4 sm:$0xff]  }
 0x122   :  { %2438 = vmatpush2.bf16.msra.mxu0 %v3541_v40  ;;  %v3602_v40 = vld [vmem:[#allocation2 + $0x3ec] ss:$16 sps:$4 sm:$0xff]  }
 0x123   :  { %2489 = vmatpush2.bf16.msra.mxu1 %v3544_v41  ;;  %2509 = vmatprep.subr.bf16.mxu0 %v3552_v6  ;;  %v3605_v41 = vld [vmem:[#allocation2 + $0x5ec] ss:$16 sps:$4 sm:$0xff]   ;;  %v3600_v6 = vld [vmem:[#allocation2 + $0x3e8] ss:$16 sps:$4 sm:$0xff]  }
 0x124   :  { %2560 = vmatprep.subr.bf16.mxu1 %v3555_v7  ;;  %v3603_v7 = vld [vmem:[#allocation2 + $0x5e8] ss:$16 sps:$4 sm:$0xff]  }
 0x125   :  { %v1150_v12 = vpop.f32.mrf.mxu0  ;;  %2440 = vmatmul.mubr.bf16.vlgmr.msra.gmra.mxu0 %v3911_v44 }
 0x126   :  { %v1201_v14 = vpop.f32.mrf.mxu1  ;;  %2491 = vmatmul.mubr.bf16.vlgmr.msra.gmra.mxu1 %v3886_v4  ;;  %2510 = vmatpush1.bf16.msra.mxu0 %v3550_v8  ;;  %v3611_v8 = vld [vmem:[#allocation2 + $0x5cc] ss:$16 sps:$4 sm:$0xff]  }
 0x127   :  { %v3920_v15 = vadd.f32 %v1201_v14, %v1150_v12  ;;  %2561 = vmatpush1.bf16.msra.mxu1 %v3553_v9  ;;  %v1152_v17 = vpop.f32.mrf.mxu0  ;;  %2511 = vmatprep.subr.bf16.mxu0 %v3558_v52  ;;  %v3606_v9 = vld [vmem:[#allocation2 + $0x3c8] ss:$16 sps:$4 sm:$0xff]   ;;  %v3617_v12 = vld [vmem:[#allocation2 + $0x5ac] ss:$16 sps:$4 sm:$0xff]  }
 0x128   :  { %v1203_v18 = vpop.f32.mrf.mxu1  ;;  %2562 = vmatprep.subr.bf16.mxu1 %v3561_v11  ;;  %2449 = vmatprep.mubr.bf16.mxu0 %v3916_v55  ;;  %v3609_v52 = vld [vmem:[#allocation2 + $0x5c8] ss:$16 sps:$4 sm:$0xff]   ;;  %v3614_v11 = vld [vmem:[#allocation2 + $0x3ac] ss:$16 sps:$4 sm:$0xff]  }
 0x129   :  { %v3922_v21 = vadd.f32 %v1203_v18, %v1152_v17  ;;  %2500 = vmatprep.mubr.bf16.mxu1 %v3811_v51  ;;  %v1154_v22 = vpop.f32.mrf.mxu0  ;;  %v3612_v14 = vld [vmem:[#allocation2 + $0x3a8] ss:$16 sps:$4 sm:$0xff]   ;;  %v3623_v17 = vld [vmem:[#allocation2 + $0x58c] ss:$16 sps:$4 sm:$0xff]  }
 0x12a   :  { %v1205_v4 = vpop.f32.mrf.mxu1  ;;  %2512 = vmatpush1.bf16.msra.mxu0 %v3556_v50  ;;  %v3615_v50 = vld [vmem:[#allocation2 + $0x5a8] ss:$16 sps:$4 sm:$0xff]  }
 0x12b   :  { %v3928_v24 = vadd.f32 %v1205_v4, %v1154_v22  ;;  %2563 = vmatpush1.bf16.msra.mxu1 %v3559_v56  ;;  %v1156_v27 = vpop.f32.mrf.mxu0  ;;  %2513 = vmatprep.subr.bf16.mxu0 %v3566_v19  ;;  %v3620_v56 = vld [vmem:[#allocation2 + $0x38c] ss:$16 sps:$4 sm:$0xff]   ;;  %v3618_v18 = vld [vmem:[#allocation2 + $0x388] ss:$16 sps:$4 sm:$0xff]  }
 0x12c   :  { %v1207_v28 = vpop.f32.mrf.mxu1  ;;  %2564 = vmatprep.subr.bf16.mxu1 %v3569_v20  ;;  %v3621_v19 = vld [vmem:[#allocation2 + $0x588] ss:$16 sps:$4 sm:$0xff]   ;;  %v3626_v20 = vld [vmem:[#allocation2 + $0x36c] ss:$16 sps:$4 sm:$0xff]  }
 0x12d   :  { %v3930_v31 = vadd.f32 %v1207_v28, %v1156_v27  ;;  %2450 = vmatmul.mubr.bf16.gmra.mxu0 %v3926_v23  ;;  %v1160_v51 = vpop.f32.mrf.mxu0  ;;  %v3629_v22 = vld [vmem:[#allocation2 + $0x56c] ss:$16 sps:$4 sm:$0xff]   ;;  %v3624_v4 = vld [vmem:[#allocation2 + $0x368] ss:$16 sps:$4 sm:$0xff]  }
 0x12e   :  { %2501 = vmatmul.mubr.bf16.gmra.mxu1 %v3838_v13  ;;  %v1211_v32 = vpop.f32.mrf.mxu1  ;;  %2514 = vmatpush1.bf16.msra.mxu0 %v3564_v25  ;;  %v3699_v13 = vld [vmem:[%s4045_s0 + $0xc] ss:$24 sps:$4 sm:$0xff]   ;;  %v3627_v25 = vld [vmem:[#allocation2 + $0x568] ss:$16 sps:$4 sm:$0xff]  }
 0x12f   :  { %2565 = vmatpush1.bf16.msra.mxu1 %v3567_v26  ;;  %v3934_v35 = vadd.f32 %v1211_v32, %v1160_v51  ;;  %2515 = vmatprep.subr.bf16.mxu0 %v3572_v29  ;;  %v1162_v38 = vpop.f32.mrf.mxu0  ;;  %v3632_v26 = vld [vmem:[#allocation2 + $0x34c] ss:$16 sps:$4 sm:$0xff]   ;;  %v3630_v28 = vld [vmem:[#allocation2 + $0x348] ss:$16 sps:$4 sm:$0xff]  }
 0x130   :  { %2566 = vmatprep.subr.bf16.mxu1 %v3575_v30  ;;  %v1213_v39 = vpop.f32.mrf.mxu1  ;;  %2541 = vmatprep.mubr.bf16.mxu0 %v3699_v13  ;;  %v3635_v27 = vld [vmem:[#allocation2 + $0x54c] ss:$16 sps:$4 sm:$0xff]   ;;  %v3633_v29 = vld [vmem:[#allocation2 + $0x548] ss:$16 sps:$4 sm:$0xff]  }
 0x131   :  { %v3936_v42 = vadd.f32 %v1213_v39, %v1162_v38  ;;  %2592 = vmatprep.mubr.bf16.mxu1 %v3900_v10  ;;  %v1164_v43 = vpop.f32.mrf.mxu0  ;;  %v3593_v10 = vld [vmem:[#allocation2 + $0x42c] ss:$16 sps:$4 sm:$0xff]   ;;  %v3636_v32 = vld [vmem:[#allocation2 + $0x328] ss:$16 sps:$4 sm:$0xff]  }
 0x132   :  { %v1215_v46 = vpop.f32.mrf.mxu1  ;;  %2516 = vmatpush1.bf16.msra.mxu0 %v3570_v33  ;;  %v3638_v30 = vld [vmem:[#allocation2 + $0x32c] ss:$16 sps:$4 sm:$0xff]   ;;  %v3639_v33 = vld [vmem:[#allocation2 + $0x528] ss:$16 sps:$4 sm:$0xff]  }
 0x133   :  { %2567 = vmatpush1.bf16.msra.mxu1 %v3573_v34  ;;  %2517 = vmatprep.subr.bf16.mxu0 %v3578_v36  ;;  %v1165_v54 = vpop.f32.mrf.mxu0  ;;  %v3641_v51 = vld [vmem:[#allocation2 + $0x52c] ss:$16 sps:$4 sm:$0xff]   ;;  %v3645_v38 = vld [vmem:[#allocation2 + $0x508] ss:$16 sps:$4 sm:$0xff]  }
 0x134   :  { %2568 = vmatprep.subr.bf16.mxu1 %v3581_v37  ;;  %v1216_v58 = vpop.f32.mrf.mxu1  ;;  %v3644_v34 = vld [vmem:[#allocation2 + $0x30c] ss:$16 sps:$4 sm:$0xff]   ;;  %v3642_v37 = vld [vmem:[#allocation2 + $0x308] ss:$16 sps:$4 sm:$0xff]  }
 0x135   :  { %v3647_v36 = vld [vmem:[#allocation2 + $0x50c] ss:$16 sps:$4 sm:$0xff]  }
 0x136   :  { %2518 = vmatpush1.bf16.msra.mxu0 %v3576_v47 }
 0x137   :  { %2569 = vmatpush1.bf16.msra.mxu1 %v3579_v48  ;;  %2519 = vmatprep.subr.bf16.mxu0 %v3584_v49 }
 0x138   :  { %2570 = vmatprep.subr.bf16.mxu1 %v3587_v53 }
 0x13a   :  { %2520 = vmatpush1.bf16.msra.mxu0 %v3582_v59 }
 0x13b   :  { %2571 = vmatpush1.bf16.msra.mxu1 %v3585_v60  ;;  %2521 = vmatprep.subr.bf16.mxu0 %v3590_v61 }
 0x13c   :  { %2572 = vmatprep.subr.bf16.mxu1 %v3593_v10 }
 0x13e   :  { %2522 = vmatpush1.bf16.msra.mxu0 %v3588_v62 }
 0x13f   :  { %2573 = vmatpush1.bf16.msra.mxu1 %v3591_v63  ;;  %2523 = vmatprep.subr.bf16.mxu0 %v3596_v0 }
 0x140   :  { %2574 = vmatprep.subr.bf16.mxu1 %v3599_v1 }
 0x142   :  { %2524 = vmatpush1.bf16.msra.mxu0 %v3594_v2 }
 0x143   :  { %2575 = vmatpush1.bf16.msra.mxu1 %v3597_v3  ;;  %2525 = vmatprep.subr.bf16.mxu0 %v3602_v40 }
 0x144   :  { %2576 = vmatprep.subr.bf16.mxu1 %v3605_v41 }
 0x146   :  { %2526 = vmatpush2.bf16.msra.mxu0 %v3600_v6 }
 0x147   :  { %2577 = vmatpush2.bf16.msra.mxu1 %v3603_v7  ;;  %2527 = vmatprep.subr.bf16.mxu0 %v3608_v45 }
 0x148   :  { %2578 = vmatprep.subr.bf16.mxu1 %v3611_v8 }
 0x14a   :  { %2528 = vmatpush2.bf16.msra.mxu0 %v3606_v9 }
 0x14b   :  { %2579 = vmatpush2.bf16.msra.mxu1 %v3609_v52  ;;  %2529 = vmatprep.subr.bf16.mxu0 %v3614_v11 }
 0x14c   :  { %2580 = vmatprep.subr.bf16.mxu1 %v3617_v12 }
 0x14e   :  { %2530 = vmatpush2.bf16.msra.mxu0 %v3612_v14 }
 0x14f   :  { %2581 = vmatpush2.bf16.msra.mxu1 %v3615_v50  ;;  %2531 = vmatprep.subr.bf16.mxu0 %v3620_v56 }
 0x150   :  { %2582 = vmatprep.subr.bf16.mxu1 %v3623_v17 }
 0x152   :  { %2532 = vmatpush2.bf16.msra.mxu0 %v3618_v18 }
 0x153   :  { %2583 = vmatpush2.bf16.msra.mxu1 %v3621_v19  ;;  %2533 = vmatprep.subr.bf16.mxu0 %v3626_v20 }
 0x154   :  { %2584 = vmatprep.subr.bf16.mxu1 %v3629_v22  ;;  %v2613_v22 = vlaneseq }
 0x156   :  { %2534 = vmatpush2.bf16.msra.mxu0 %v3624_v4  ;;  %v3961_v4 = vshrl.u32 %v2613_v22, 7 }
 0x157   :  { %2585 = vmatpush2.bf16.msra.mxu1 %v3627_v25  ;;  %2535 = vmatprep.subr.bf16.mxu0 %v3632_v26 }
 0x158   :  { %2586 = vmatprep.subr.bf16.mxu1 %v3635_v27  ;;  %v2615_v25 = vsub.s32 0, %v3961_v4  ;;  %v2619_v27 = vsub.s32 1, %v3961_v4 }
 0x15a   :  { %2536 = vmatpush2.bf16.msra.mxu0 %v3630_v28 }
 0x15b   :  { %2587 = vmatpush2.bf16.msra.mxu1 %v3633_v29  ;;  %2537 = vmatprep.subr.bf16.mxu0 %v3638_v30 }
 0x15c   :  { %2588 = vmatprep.subr.bf16.mxu1 %v3641_v51 }
 0x15e   :  { %2538 = vmatpush2.bf16.msra.mxu0 %v3636_v32 }
 0x15f   :  { %2589 = vmatpush2.bf16.msra.mxu1 %v3639_v33  ;;  %2539 = vmatprep.subr.bf16.mxu0 %v3644_v34 }
 0x160   :  { %2590 = vmatprep.subr.bf16.mxu1 %v3647_v36 }
 0x162   :  { %2540 = vmatpush2.bf16.msra.mxu0 %v3642_v37 }
 0x163   :  { %2591 = vmatpush2.bf16.msra.mxu1 %v3645_v38 }
 0x165   :  { %v1252_v39 = vpop.f32.mrf.mxu0  ;;  %2542 = vmatmul.mubr.bf16.vlgmr.msra.gmra.mxu0 %v3892_v5 }
 0x166   :  { %v1303_v13 = vpop.f32.mrf.mxu1  ;;  %2593 = vmatmul.mubr.bf16.vlgmr.msra.gmra.mxu1 %v3911_v44  ;;  %2551 = vmatprep.mubr.bf16.mxu0 %v3823_v57 }
 0x167   :  { %v1304_v43 = vadd.f32 %v1303_v13, %v1252_v39  ;;  %2602 = vmatprep.mubr.bf16.mxu1 %v3916_v55  ;;  %v1254_v46 = vpop.f32.mrf.mxu0 }
 0x168   :  { %v1305_v47 = vpop.f32.mrf.mxu1 }
 0x169   :  { %v3946_v48 = vadd.f32 %v1305_v47, %v1254_v46  ;;  %v1256_v49 = vpop.f32.mrf.mxu0 }
 0x16a   :  { %v1307_v53 = vpop.f32.mrf.mxu1 }
 0x16b   :  { %v3948_v54 = vadd.f32 %v1307_v53, %v1256_v49  ;;  %v1258_v58 = vpop.f32.mrf.mxu0 }
 0x16c   :  { %v1309_v59 = vpop.f32.mrf.mxu1 }
 0x16d   :  { %v3950_v60 = vadd.f32 %v1309_v59, %v1258_v58  ;;  %2552 = vmatmul.mubr.bf16.gmra.mxu0 %v3840_v16  ;;  %v1262_v5 = vpop.f32.mrf.mxu0 }
 0x16e   :  { %2603 = vmatmul.mubr.bf16.gmra.mxu1 %v3926_v23  ;;  %v1313_v57 = vpop.f32.mrf.mxu1 }
 0x16f   :  { %v3954_v44 = vadd.f32 %v1313_v57, %v1262_v5  ;;  %v1264_v55 = vpop.f32.mrf.mxu0 }
 0x170   :  { %v1315_v61 = vpop.f32.mrf.mxu1 }
 0x171   :  { %v3956_v10 = vadd.f32 %v1315_v61, %v1264_v55  ;;  %v1266_v62 = vpop.f32.mrf.mxu0 }
 0x172   :  { %v1317_v63 = vpop.f32.mrf.mxu1 }
 0x173   :  { %v1267_v0 = vpop.f32.mrf.mxu0 }
 0x174   :  { %v1318_v1 = vpop.f32.mrf.mxu1 }
 0x1a5   :  { %v2339_v2 = vpop.f32.mrf.mxu0 }
 0x1a6   :  { %v2390_v3 = vpop.f32.mrf.mxu1  ;;  %v2340_v40 = vadd.f32 %v2339_v2, %v3920_v15 }
 0x1a7   :  { %v2341_v41 = vpop.f32.mrf.mxu0 }
 0x1a8   :  { %v2392_v16 = vpop.f32.mrf.mxu1  ;;  %v2391_v6 = vadd.f32 %v2390_v3, %v2340_v40  ;;  %v2342_v26 = vadd.f32 %v2341_v41, %v3922_v21 }
 0x1a9   :  { %v2343_v23 = vpop.f32.mrf.mxu0 }
 0x1aa   :  { %v2394_v7 = vpop.f32.mrf.mxu1  ;;  %v2344_v45 = vadd.f32 %v2343_v23, %v3928_v24  ;;  %v3964_v24 = vld [vmem:[#allocation6] sm:$0xf]  ;;  %v2393_v51 = vadd.f32 %v2392_v16, %v2342_v26 }
 0x1ab   :  { %v2345_v8 = vpop.f32.mrf.mxu0  ;;  %v2620_v34 = vrot.slane %v3964_v24, %v2619_v27 }
 0x1ac   :  { %v2396_v9 = vpop.f32.mrf.mxu1  ;;  %v2395_v52 = vadd.f32 %v2394_v7, %v2344_v45  ;;  %v2346_v28 = vadd.f32 %v2345_v8, %v3930_v31 }
 0x1ad   :  { %v2349_v11 = vpop.f32.mrf.mxu0 }
 0x1ae   :  { %v2400_v12 = vpop.f32.mrf.mxu1  ;;  %v2350_v14 = vadd.f32 %v2349_v11, %v3934_v35  ;;  %v2616_v35 = vrot.slane %v3964_v24, %v2615_v25  ;;  %v2397_v21 = vadd.f32 %v2396_v9, %v2346_v28 }
 0x1af   :  { %v2351_v50 = vpop.f32.mrf.mxu0 }
 0x1b0   :  { %v2402_v56 = vpop.f32.mrf.mxu1  ;;  %v2401_v17 = vadd.f32 %v2400_v12, %v2350_v14  ;;  %v2352_v13 = vadd.f32 %v2351_v50, %v3936_v42 }
 0x1b1   :  { %v2353_v18 = vpop.f32.mrf.mxu0 }
 0x1b2   :  { %v2404_v19 = vpop.f32.mrf.mxu1  ;;  %v2403_v61 = vadd.f32 %v2402_v56, %v2352_v13 }
 0x1b3   :  { %v2354_v15 = vpop.f32.mrf.mxu0 }
 0x1b4   :  { %v2405_v20 = vpop.f32.mrf.mxu1 }
 0x1e5   :  { %v2441_v29 = vpop.f32.mrf.mxu0 }
 0x1e6   :  { %v2492_v30 = vpop.f32.mrf.mxu1  ;;  %v2442_v32 = vadd.f32 %v2441_v29, %v2391_v6 }
 0x1e7   :  { %v3970_v33 = vadd.f32 %v2492_v30, %v1304_v43  ;;  %v2443_v36 = vpop.f32.mrf.mxu0 }
 0x1e8   :  { %v3973_v37 = vpop.f32.mrf.mxu1  ;;  %v2633_v38 = vadd.f32 %v2616_v35, %v2442_v32  ;;  %v2444_v39 = vadd.f32 %v2443_v36, %v2393_v51 }
 0x1e9   :  { %v2445_v46 = vpop.f32.mrf.mxu0 }
 0x1ea   :  { %v2496_v47 = vpop.f32.mrf.mxu1  ;;  %v3124_v49 = vmul.f32 -1.442695, %v2633_v38  ;;  %v2634_v31 = vadd.f32 %v2620_v34, %v2444_v39  ;;  %v2446_v53 = vadd.f32 %v2445_v46, %v2395_v52 }
 0x1eb   :  { %v3977_v58 = vadd.f32 %v2496_v47, %v3948_v54  ;;  %v2447_v43 = vpop.f32.mrf.mxu0  ;;  %v2780_v47 = vld [vmem:[%s4049_s4 + $0x20] sm:$0x11] }
 0x1ec   :  { %v3979_v59 = vpop.f32.mrf.mxu1  ;;  %3648 = vpow2.f32 %v3124_v49  ;;  %v3125_v5 = vmul.f32 -1.442695, %v2634_v31  ;;  %v2637_v57 = vadd.f32 %v2616_v35, %v2446_v53  ;;  %v2448_v55 = vadd.f32 %v2447_v43, %v2397_v21 }
 0x1ed   :  { %v2451_v62 = vpop.f32.mrf.mxu0  ;;  %v2623_v53 = vsub.s32 2, %v3961_v4  ;;  %v2627_v43 = vsub.s32 3, %v3961_v4  ;;  %v2499_v4 = vadd.f32 %v3979_v59, %v3950_v60 }
 0x1ee   :  { %v2502_v63 = vpop.f32.mrf.mxu1  ;;  %3650 = vpow2.f32 %v3125_v5  ;;  %v3128_v42 = vmul.f32 -1.442695, %v2637_v57  ;;  %v2638_v0 = vadd.f32 %v2620_v34, %v2448_v55  ;;  %v2452_v1 = vadd.f32 %v2451_v62, %v2401_v17 }
 0x1ef   :  { %v3982_v2 = vadd.f32 %v2502_v63, %v3954_v44  ;;  %v2453_v3 = vpop.f32.mrf.mxu0  ;;  %v2495_v55 = vadd.f32 %v3973_v37, %v3946_v48  ;;  %v2624_v62 = vrot.slane %v3964_v24, %v2623_v53 }
 0x1f0   :  { %v3984_v54 = vpop.f32.mrf.mxu1  ;;  %3652 = vpow2.f32 %v3128_v42  ;;  %v3129_v40 = vmul.f32 -1.442695, %v2638_v0  ;;  %v2641_v41 = vadd.f32 %v2616_v35, %v2452_v1  ;;  %v2454_v16 = vadd.f32 %v2453_v3, %v2403_v61 }
 0x1f1   :  { %v2455_v6 = vpop.f32.mrf.mxu0  ;;  %v2628_v3 = vrot.slane %v3964_v24, %v2627_v43 }
 0x1f2   :  { %v2506_v23 = vpop.f32.mrf.mxu1  ;;  %3654 = vpow2.f32 %v3129_v40  ;;  %v3132_v7 = vmul.f32 -1.442695, %v2641_v41  ;;  %v2642_v45 = vadd.f32 %v2620_v34, %v2454_v16 }
 0x1f3   :  { %v2456_v8 = vpop.f32.mrf.mxu0 }
 0x1f4   :  { %v2507_v9 = vpop.f32.mrf.mxu1  ;;  %3656 = vpow2.f32 %v3132_v7  ;;  %v3133_v52 = vmul.f32 -1.442695, %v2642_v45 }
 0x1f5   :  { %v2505_v9 = vadd.f32 %v3984_v54, %v3956_v10 }
 0x1f6   :  { %3658 = vpow2.f32 %v3133_v52 }
 0x1f9   :  { %v3649_v11 = vpop.eup %3648 }
 0x1fa   :  { %v2681_v44 = vadd.f32 1.0, %v3649_v11 }
 0x1fb   :  { %v3651_v12 = vpop.eup %3650 }
 0x1fc   :  { %3660 = vrcp.f32 %v2681_v44  ;;  %v2682_v14 = vadd.f32 1.0, %v3651_v12 }
 0x1fd   :  { %v3653_v50 = vpop.eup %3652 }
 0x1fe   :  { %3662 = vrcp.f32 %v2682_v14  ;;  %v2685_v56 = vadd.f32 1.0, %v3653_v50 }
 0x1ff   :  { %v3655_v17 = vpop.eup %3654 }
 0x200   :  { %3664 = vrcp.f32 %v2685_v56  ;;  %v2686_v18 = vadd.f32 1.0, %v3655_v17 }
 0x201   :  { %v3657_v19 = vpop.eup %3656 }
 0x202   :  { %3666 = vrcp.f32 %v2686_v18  ;;  %v2689_v15 = vadd.f32 1.0, %v3657_v19 }
 0x203   :  { %v3659_v20 = vpop.eup %3658 }
 0x204   :  { %3668 = vrcp.f32 %v2689_v15  ;;  %v2690_v22 = vadd.f32 1.0, %v3659_v20 }
 0x206   :  { %3670 = vrcp.f32 %v2690_v22 }
 0x209   :  { %v3661_v25 = vpop.eup %3660 }
 0x20a   :  { %v2717_v27 = vmul.f32 %v3661_v25, %v2633_v38 }
 0x20b   :  { %v3663_v26 = vpop.eup %3662 }
 0x20c   :  { %v2718_v35 = vmul.f32 %v3663_v26, %v2634_v31 }
 0x20d   :  { %v3665_v28 = vpop.eup %3664 }
 0x20e   :  { %v3142_v29 = vpack.c.bf16 %v2718_v35, %v2717_v27  ;;  %v2721_v51 = vmul.f32 %v3665_v28, %v2637_v57 }
 0x20f   :  { %v3667_v30 = vpop.eup %3666 }
 0x210   :  { %2769 = vst [vmem:[%s4049_s4] sm:$0xff] %v3142_v29  ;;  %v2722_v32 = vmul.f32 %v3667_v30, %v2638_v0 }
 0x211   :  { %v3669_v34 = vpop.eup %3668 }
 0x212   :  { %v3144_v38 = vpack.c.bf16 %v2722_v32, %v2721_v51  ;;  %v2725_v13 = vmul.f32 %v3669_v34, %v2641_v41 }
 0x213   :  { %v3671_v21 = vpop.eup %3670 }
 0x214   :  { %2771 = vst [vmem:[%s4049_s4 + $0x10] sm:$0xff] %v3144_v38  ;;  %v2726_v46 = vmul.f32 %v3671_v21, %v2642_v45 }
 0x216   :  { %v3146_v49 = vpack.c.bf16 %v2726_v46, %v2725_v13 }
 0x218   :  { %v2781_v31 = vsel %vm2779_vm7, %v3146_v49, %v2780_v47 }
 0x219   :  { %2782 = vst [vmem:[%s4049_s4 + $0x20] sm:$0x11] %v2781_v31 }
 0x225   :  { %v2543_v5 = vpop.f32.mrf.mxu0 }
 0x226   :  { %v2594_v57 = vpop.f32.mrf.mxu1  ;;  %v2544_v61 = vadd.f32 %v2543_v5, %v3970_v33 }
 0x227   :  { %v2545_v63 = vpop.f32.mrf.mxu0 }
 0x228   :  { %v2596_v42 = vpop.f32.mrf.mxu1  ;;  %v2595_v0 = vadd.f32 %v2594_v57, %v2544_v61  ;;  %v2546_v1 = vadd.f32 %v2545_v63, %v2495_v55 }
 0x229   :  { %v2547_v40 = vpop.f32.mrf.mxu0 }
 0x22a   :  { %v2598_v41 = vpop.f32.mrf.mxu1  ;;  %v2635_v16 = vadd.f32 %v2624_v62, %v2595_v0  ;;  %v2597_v6 = vadd.f32 %v2596_v42, %v2546_v1  ;;  %v2548_v23 = vadd.f32 %v2547_v40, %v3977_v58 }
 0x22b   :  { %v2549_v48 = vpop.f32.mrf.mxu0 }
 0x22c   :  { %v2600_v37 = vpop.f32.mrf.mxu1  ;;  %v3126_v33 = vmul.f32 -1.442695, %v2635_v16  ;;  %v2636_v7 = vadd.f32 %v2628_v3, %v2597_v6  ;;  %v2599_v45 = vadd.f32 %v2598_v41, %v2548_v23  ;;  %v2550_v8 = vadd.f32 %v2549_v48, %v2499_v4 }
 0x22d   :  { %v2553_v52 = vpop.f32.mrf.mxu0 }
 0x22e   :  { %v2604_v24 = vpop.f32.mrf.mxu1  ;;  %3672 = vpow2.f32 %v3126_v33  ;;  %v3127_v11 = vmul.f32 -1.442695, %v2636_v7  ;;  %v2639_v44 = vadd.f32 %v2624_v62, %v2599_v45  ;;  %v2601_v12 = vadd.f32 %v2600_v37, %v2550_v8 }
 0x22f   :  { %v2554_v60 = vadd.f32 %v2553_v52, %v3982_v2  ;;  %v2555_v59 = vpop.f32.mrf.mxu0 }
 0x230   :  { %v2606_v14 = vpop.f32.mrf.mxu1  ;;  %3674 = vpow2.f32 %v3127_v11  ;;  %v3130_v58 = vmul.f32 -1.442695, %v2639_v44  ;;  %v2640_v50 = vadd.f32 %v2628_v3, %v2601_v12  ;;  %v2556_v56 = vadd.f32 %v2555_v59, %v2505_v9 }
 0x231   :  { %v2605_v17 = vadd.f32 %v2604_v24, %v2554_v60  ;;  %v2557_v18 = vpop.f32.mrf.mxu0 }
 0x232   :  { %v2608_v19 = vpop.f32.mrf.mxu1  ;;  %3676 = vpow2.f32 %v3130_v58  ;;  %v3131_v15 = vmul.f32 -1.442695, %v2640_v50  ;;  %v2607_v10 = vadd.f32 %v2606_v14, %v2556_v56 }
 0x233   :  { %v2643_v54 = vadd.f32 %v2624_v62, %v2605_v17  ;;  %v2558_v20 = vpop.f32.mrf.mxu0 }
 0x234   :  { %v2609_v22 = vpop.f32.mrf.mxu1  ;;  %3678 = vpow2.f32 %v3131_v15  ;;  %v2644_v25 = vadd.f32 %v2628_v3, %v2607_v10  ;;  %v2783_v3 = vld [vmem:[%s4049_s4 + $0x28] sm:$0x11] }
 0x235   :  { %v3134_v26 = vmul.f32 -1.442695, %v2643_v54 }
 0x236   :  { %v3135_v27 = vmul.f32 -1.442695, %v2644_v25 }
 0x237   :  { %3680 = vpow2.f32 %v3134_v26 }
 0x238   :  { %3682 = vpow2.f32 %v3135_v27 }
 0x23b   :  { %v3673_v2 = vpop.eup %3672 }
 0x23c   :  { %v2683_v35 = vadd.f32 1.0, %v3673_v2 }
 0x23d   :  { %v3675_v28 = vpop.eup %3674 }
 0x23e   :  { %3684 = vrcp.f32 %v2683_v35  ;;  %v2684_v29 = vadd.f32 1.0, %v3675_v28 }
 0x23f   :  { %v3677_v30 = vpop.eup %3676 }
 0x240   :  { %3686 = vrcp.f32 %v2684_v29  ;;  %v2687_v51 = vadd.f32 1.0, %v3677_v30 }
 0x241   :  { %v3679_v32 = vpop.eup %3678 }
 0x242   :  { %3688 = vrcp.f32 %v2687_v51  ;;  %v2688_v34 = vadd.f32 1.0, %v3679_v32 }
 0x244   :  { %v3681_v38 = vpop.eup %3680  ;;  %3690 = vrcp.f32 %v2688_v34 }
 0x245   :  { %v3683_v21 = vpop.eup %3682  ;;  %v2691_v13 = vadd.f32 1.0, %v3681_v38 }
 0x246   :  { %v2692_v46 = vadd.f32 1.0, %v3683_v21 }
 0x247   :  { %3692 = vrcp.f32 %v2691_v13 }
 0x248   :  { %3694 = vrcp.f32 %v2692_v46 }
 0x24b   :  { %v3685_v47 = vpop.eup %3684 }
 0x24c   :  { %v2719_v31 = vmul.f32 %v3685_v47, %v2635_v16 }
 0x24d   :  { %v3687_v49 = vpop.eup %3686 }
 0x24e   :  { %v2720_v53 = vmul.f32 %v3687_v49, %v2636_v7 }
 0x24f   :  { %v3689_v43 = vpop.eup %3688 }
 0x250   :  { %v3143_v5 = vpack.c.bf16 %v2720_v53, %v2719_v31  ;;  %v2723_v55 = vmul.f32 %v3689_v43, %v2639_v44 }
 0x251   :  { %v3691_v57 = vpop.eup %3690 }
 0x252   :  { %2770 = vst [vmem:[%s4049_s4 + $0x8] sm:$0xff] %v3143_v5  ;;  %v2724_v61 = vmul.f32 %v3691_v57, %v2640_v50 }
 0x254   :  { %v3693_v62 = vpop.eup %3692  ;;  %v3145_v63 = vpack.c.bf16 %v2724_v61, %v2723_v55 }
 0x255   :  { %v3695_v42 = vpop.eup %3694  ;;  %v2727_v0 = vmul.f32 %v3693_v62, %v2643_v54 }
 0x256   :  { %2772 = vst [vmem:[%s4049_s4 + $0x18] sm:$0xff] %v3145_v63  ;;  %v2728_v1 = vmul.f32 %v3695_v42, %v2644_v25 }
 0x258   :  { %v3147_v40 = vpack.c.bf16 %v2728_v1, %v2727_v0 }
 0x25a   :  { %v2784_v41 = vsel %vm2779_vm7, %v3147_v40, %v2783_v3 }
 0x25b   :  { %2785 = vst [vmem:[%s4049_s4 + $0x28] sm:$0x11] %v2784_v41 }
 0x25c   :  { %2790 = vsyncpa [#allocation3], 1 }
 0x25d   :  { %2791 = vsyncpa [#allocation5], 1 }

// kernel: discriminator_p_forward.7
= control target key start
LH: loop header
LB: loop body
LE: loop exit
PB: predicated region body
PF: predicated region fallthrough
CT: control target
= control target key end

     0   :  { %9 = vsyncpa [#allocation3], 0  ;;  %s13412_s0 = inlined_call_operand.vmem [shape: bf16[12,1536], index: 0, kind: input, shape index: {}]   ;;  %s13413_s1 = inlined_call_operand.hbm [shape: bf16[1536,1024], index: 1, kind: input, shape index: {}]   ;;  %s13414_s2 = inlined_call_operand.vmem [shape: bf16[1024,1024], index: 2, kind: input, shape index: {}]   ;;  %s13415_s3 = inlined_call_operand.hbm [shape: f32[1,1024], index: 3, kind: input, shape index: {}]   ;;  %s13416_s4 = inlined_call_operand.vmem [shape: bf16[12,1024], index: 4, kind: output, shape index: {}]  }
   0x1   :  { %10 = vsyncpa [#allocation5], 0  ;;  %s11326_s15 = smov [#allocation2]  }
   0x2   :  { %s18_s16 = sshll.u32 %s11326_s15, 4  ;;  %s19_s16 = int_to_ptr.vmem [resolvable:$true] %s18_s16 }
   0x3   :  { %s11290_s17 = scalar_lea.vmem %s19_s16, 98304  ;;  %p11295_p1 = scmp.lt.s32.totalorder %s19_s16, %s19_s16 }
   0x4   :  { %p11291_p0 = scmp.ne.s32.totalorder %s19_s16, %s11290_s17  ;;  %p11296_p2 = scmp.lt.s32.totalorder %s11290_s17, %s11290_s17 }
   0x6   :  { %p11297_p3 = por %p11296_p2, %p11295_p1 }
   0x8   :  { %p11298_p4 = pnand %p11297_p3, %p11291_p0 }
   0xa   :  { %11301 = shalt.err (!%p11298_p4)
}
   0xb   :  { %s11327_s18 = smov 512   ;;  %s11328_s19 = smov 32  }
   0xc   :  { %24 = dma.hbm_to_vmem [thread:$0]  %s13413_s1, 98304, %s19_s16, [#allocation3], %s11327_s18, %s11327_s18, %s11328_s19  }
   0xd   :  { %s11329_s22 = smov [#allocation4]  }
   0xe   :  { %s33_s23 = sshll.u32 %s11329_s22, 4  ;;  %s34_s23 = int_to_ptr.vmem [resolvable:$true] %s33_s23 }
   0xf   :  { %s11310_s24 = scalar_lea.vmem %s34_s23, 128  ;;  %p11315_p6 = scmp.lt.s32.totalorder %s34_s23, %s34_s23 }
  0x10   :  { %p11311_p5 = scmp.ne.s32.totalorder %s34_s23, %s11310_s24  ;;  %p11316_p7 = scmp.lt.s32.totalorder %s11310_s24, %s11310_s24 }
  0x12   :  { %p11317_p8 = por %p11316_p7, %p11315_p6 }
  0x14   :  { %p11318_p9 = pnand %p11317_p8, %p11311_p5 }
  0x16   :  { %11321 = shalt.err (!%p11318_p9)
}
  0x17   :  { %36 = dma.hbm_to_vmem [thread:$0]  %s13415_s3, 128, %s34_s23, [#allocation5]  }
  0x18   :  { %11322 = dma.done.wait [#allocation3], 98304  }
  0x19   :  { %11323 = vsyncadd [#allocation3], 4294868992 }
  0x1a   :  { %11324 = dma.done.wait [#allocation5], 128  }
  0x1b   :  { %11325 = vsyncadd [#allocation5], 4294967168  ;;  %v879_v0 = vld [vmem:[%s13414_s2 + $0x1c0] sm:$0xff]  ;;  %v11156_v59 = vld [vmem:[%s13412_s0 + $0xc] ss:$48 sps:$4 sm:$0x3f]  }
  0x1c   :  { %v883_v1 = vld [vmem:[%s13414_s2 + $0x1e0] sm:$0xff]  ;;  %vm9801_vm0 = vcmask 1041408   ;;  %vm9802_vm1 = vsmask.f32 1280  ;;  %vm9804_vm2 = vcmask 1045508  }
  0x1d   :  { %v1007_v2 = vld [vmem:[%s13414_s2 + $0x5c0] sm:$0xff]  ;;  %v9891_v3 = vcombine.high %v879_v0, %v883_v1  ;;  %v9890_v5 = vcombine.low %v879_v0, %v883_v1  ;;  %v1389_v1 = vshrl.u32 %v11156_v59, 16  ;;  %vm9805_vm3 = vsmask.f32 5376  ;;  %vm13206_vm4 = vmand %vm9801_vm0, %vm9802_vm1 }
  0x1e   :  { %v1011_v4 = vld [vmem:[%s13414_s2 + $0x5e0] sm:$0xff]  ;;  %vm9806_vm5 = vmand %vm9804_vm2, %vm9805_vm3 }
  0x1f   :  { %v871_v6 = vld [vmem:[%s13414_s2 + $0x180] sm:$0xff]  ;;  %v10019_v8 = vcombine.high %v1007_v2, %v1011_v4  ;;  %v10018_v9 = vcombine.low %v1007_v2, %v1011_v4  ;;  %3991 = vmatprep.subr.bf16.mxu0 %v9891_v3  ;;  %v1391_v2 = vshll.u32 %v11156_v59, 16  ;;  %vm13218_vm6 = vmor %vm9806_vm5, %vm13206_vm4 }
  0x20   :  { %v875_v7 = vld [vmem:[%s13414_s2 + $0x1a0] sm:$0xff]  ;;  %3992 = vmatpush1.bf16.msra.mxu0 %v9890_v5 }
  0x21   :  { %v9883_v10 = vcombine.high %v871_v6, %v875_v7  ;;  %v999_v11 = vld [vmem:[%s13414_s2 + $0x580] sm:$0xff]  ;;  %4034 = vmatprep.subr.bf16.mxu1 %v10019_v8  ;;  %v9882_v18 = vcombine.low %v871_v6, %v875_v7 }
  0x22   :  { %v1003_v12 = vld [vmem:[%s13414_s2 + $0x5a0] sm:$0xff]  ;;  %4035 = vmatpush1.bf16.msra.mxu1 %v10018_v9  ;;  %v1393_v9 = vrot.slane %v1391_v2, 1 }
  0x23   :  { %v863_v13 = vld [vmem:[%s13414_s2 + $0x140] sm:$0xff]  ;;  %v10011_v14 = vcombine.high %v999_v11, %v1003_v12  ;;  %3993 = vmatprep.subr.bf16.mxu0 %v9883_v10  ;;  %v10010_v19 = vcombine.low %v999_v11, %v1003_v12 }
  0x24   :  { %v867_v15 = vld [vmem:[%s13414_s2 + $0x160] sm:$0xff]  ;;  %3994 = vmatpush1.bf16.msra.mxu0 %v9882_v18 }
  0x25   :  { %v991_v16 = vld [vmem:[%s13414_s2 + $0x540] sm:$0xff]  ;;  %v9875_v20 = vcombine.high %v863_v13, %v867_v15  ;;  %4036 = vmatprep.subr.bf16.mxu1 %v10011_v14  ;;  %v9874_v26 = vcombine.low %v863_v13, %v867_v15  ;;  %v11477_v14 = vor.u32 %v1393_v9, %v1389_v1 }
  0x26   :  { %v995_v17 = vld [vmem:[%s13414_s2 + $0x560] sm:$0xff]  ;;  %4037 = vmatpush1.bf16.msra.mxu1 %v10010_v19 }
  0x27   :  { %v10003_v21 = vcombine.high %v991_v16, %v995_v17  ;;  %v855_v22 = vld [vmem:[%s13414_s2 + $0x100] sm:$0xff]  ;;  %3995 = vmatprep.subr.bf16.mxu0 %v9875_v20  ;;  %v10002_v27 = vcombine.low %v991_v16, %v995_v17  ;;  %4066 = vmatprep.mubr.bf16.mxu1 %v11477_v14 }
  0x28   :  { %v859_v23 = vld [vmem:[%s13414_s2 + $0x120] sm:$0xff]  ;;  %3996 = vmatpush1.bf16.msra.mxu0 %v9874_v26 }
  0x29   :  { %v983_v24 = vld [vmem:[%s13414_s2 + $0x500] sm:$0xff]  ;;  %v9867_v28 = vcombine.high %v855_v22, %v859_v23  ;;  %4038 = vmatprep.subr.bf16.mxu1 %v10003_v21  ;;  %v9866_v34 = vcombine.low %v855_v22, %v859_v23 }
  0x2a   :  { %v987_v25 = vld [vmem:[%s13414_s2 + $0x520] sm:$0xff]  ;;  %4039 = vmatpush1.bf16.msra.mxu1 %v10002_v27 }
  0x2b   :  { %v9995_v29 = vcombine.high %v983_v24, %v987_v25  ;;  %v847_v30 = vld [vmem:[%s13414_s2 + $0xc0] sm:$0xff]  ;;  %3997 = vmatprep.subr.bf16.mxu0 %v9867_v28  ;;  %v9994_v35 = vcombine.low %v983_v24, %v987_v25 }
  0x2c   :  { %v851_v31 = vld [vmem:[%s13414_s2 + $0xe0] sm:$0xff]  ;;  %3998 = vmatpush1.bf16.msra.mxu0 %v9866_v34 }
  0x2d   :  { %v975_v32 = vld [vmem:[%s13414_s2 + $0x4c0] sm:$0xff]  ;;  %v9859_v36 = vcombine.high %v847_v30, %v851_v31  ;;  %4040 = vmatprep.subr.bf16.mxu1 %v9995_v29  ;;  %v9858_v42 = vcombine.low %v847_v30, %v851_v31 }
  0x2e   :  { %v979_v33 = vld [vmem:[%s13414_s2 + $0x4e0] sm:$0xff]  ;;  %4041 = vmatpush1.bf16.msra.mxu1 %v9994_v35 }
  0x2f   :  { %v9987_v37 = vcombine.high %v975_v32, %v979_v33  ;;  %v839_v38 = vld [vmem:[%s13414_s2 + $0x80] sm:$0xff]  ;;  %3999 = vmatprep.subr.bf16.mxu0 %v9859_v36  ;;  %v9986_v43 = vcombine.low %v975_v32, %v979_v33 }
  0x30   :  { %v843_v39 = vld [vmem:[%s13414_s2 + $0xa0] sm:$0xff]  ;;  %4000 = vmatpush1.bf16.msra.mxu0 %v9858_v42 }
  0x31   :  { %v967_v40 = vld [vmem:[%s13414_s2 + $0x480] sm:$0xff]  ;;  %v9851_v44 = vcombine.high %v839_v38, %v843_v39  ;;  %4042 = vmatprep.subr.bf16.mxu1 %v9987_v37  ;;  %v9850_v50 = vcombine.low %v839_v38, %v843_v39 }
  0x32   :  { %v971_v41 = vld [vmem:[%s13414_s2 + $0x4a0] sm:$0xff]  ;;  %4043 = vmatpush1.bf16.msra.mxu1 %v9986_v43 }
  0x33   :  { %v9979_v45 = vcombine.high %v967_v40, %v971_v41  ;;  %v831_v46 = vld [vmem:[%s13414_s2 + $0x40] sm:$0xff]  ;;  %4001 = vmatprep.subr.bf16.mxu0 %v9851_v44  ;;  %v9978_v52 = vcombine.low %v967_v40, %v971_v41 }
  0x34   :  { %v835_v47 = vld [vmem:[%s13414_s2 + $0x60] sm:$0xff]  ;;  %4002 = vmatpush1.bf16.msra.mxu0 %v9850_v50 }
  0x35   :  { %v959_v48 = vld [vmem:[%s13414_s2 + $0x440] sm:$0xff]  ;;  %v9843_v53 = vcombine.high %v831_v46, %v835_v47  ;;  %4044 = vmatprep.subr.bf16.mxu1 %v9979_v45  ;;  %v9842_v60 = vcombine.low %v831_v46, %v835_v47 }
  0x36   :  { %v963_v49 = vld [vmem:[%s13414_s2 + $0x460] sm:$0xff]  ;;  %4045 = vmatpush1.bf16.msra.mxu1 %v9978_v52 }
  0x37   :  { %v823_v51 = vld [vmem:[%s13414_s2] sm:$0xff]  ;;  %v9971_v55 = vcombine.high %v959_v48, %v963_v49  ;;  %4003 = vmatprep.subr.bf16.mxu0 %v9843_v53  ;;  %v9970_v63 = vcombine.low %v959_v48, %v963_v49 }
  0x38   :  { %v827_v54 = vld [vmem:[%s13414_s2 + $0x20] sm:$0xff]  ;;  %4004 = vmatpush1.bf16.msra.mxu0 %v9842_v60 }
  0x39   :  { %v11154_v56 = vld [vmem:[%s13412_s0 + $0x4] ss:$48 sps:$4 sm:$0x3f]   ;;  %v9835_v0 = vcombine.high %v823_v51, %v827_v54  ;;  %4046 = vmatprep.subr.bf16.mxu1 %v9971_v55  ;;  %v9834_v10 = vcombine.low %v823_v51, %v827_v54  ;;  %v11158_v60 = vld [vmem:[%s13412_s0] ss:$48 sps:$4 sm:$0x3f]  }
  0x3a   :  { %v951_v57 = vld [vmem:[%s13414_s2 + $0x400] sm:$0xff]  ;;  %v1375_v61 = vshrl.u32 %v11154_v56, 16  ;;  %v1377_v62 = vshll.u32 %v11154_v56, 16  ;;  %4047 = vmatpush1.bf16.msra.mxu1 %v9970_v63 }
  0x3b   :  { %v955_v58 = vld [vmem:[%s13414_s2 + $0x420] sm:$0xff]  ;;  %4005 = vmatprep.subr.bf16.mxu0 %v9835_v0 }
  0x3c   :  { %v9963_v3 = vcombine.high %v951_v57, %v955_v58  ;;  %v943_v4 = vld [vmem:[%s13414_s2 + $0x3c0] sm:$0xff]  ;;  %v1379_v6 = vrot.slane %v1377_v62, 1  ;;  %v9962_v12 = vcombine.low %v951_v57, %v955_v58  ;;  %4006 = vmatpush1.bf16.msra.mxu0 %v9834_v10  ;;  %v11159_v62 = vld [vmem:[%s13412_s0 + $0x8] ss:$48 sps:$4 sm:$0x3f]  }
  0x3d   :  { %v947_v5 = vld [vmem:[%s13414_s2 + $0x3e0] sm:$0xff]  ;;  %v1384_v10 = vshll.u32 %v11159_v62, 16 }
  0x3e   :  { %v1071_v7 = vld [vmem:[%s13414_s2 + $0x7c0] sm:$0xff]  ;;  %v11475_v11 = vor.u32 %v1379_v6, %v1375_v61  ;;  %v9955_v13 = vcombine.high %v943_v4, %v947_v5  ;;  %4048 = vmatprep.subr.bf16.mxu1 %v9963_v3  ;;  %v9954_v20 = vcombine.low %v943_v4, %v947_v5 }
  0x3f   :  { %v1075_v8 = vld [vmem:[%s13414_s2 + $0x7e0] sm:$0xff]  ;;  %4049 = vmatpush1.bf16.msra.mxu1 %v9962_v12 }
  0x40   :  { %v10083_v15 = vcombine.high %v1071_v7, %v1075_v8  ;;  %v935_v16 = vld [vmem:[%s13414_s2 + $0x380] sm:$0xff]  ;;  %4023 = vmatprep.mubr.bf16.mxu0 %v11475_v11  ;;  %4007 = vmatprep.subr.bf16.mxu0 %v9955_v13  ;;  %v10082_v21 = vcombine.low %v1071_v7, %v1075_v8  ;;  %v1370_v7 = vshll.u32 %v11158_v60, 16  ;;  %v11162_v8 = vld [vmem:[%s13412_s0 + $0x1c] ss:$48 sps:$4 sm:$0x3f]  }
  0x41   :  { %v939_v17 = vld [vmem:[%s13414_s2 + $0x3a0] sm:$0xff]  ;;  %4008 = vmatpush2.bf16.msra.mxu0 %v9954_v20 }
  0x42   :  { %v1063_v18 = vld [vmem:[%s13414_s2 + $0x780] sm:$0xff]  ;;  %v9947_v22 = vcombine.high %v935_v16, %v939_v17  ;;  %4050 = vmatprep.subr.bf16.mxu1 %v10083_v15  ;;  %v9946_v28 = vcombine.low %v935_v16, %v939_v17  ;;  %v1372_v20 = vrot.slane %v1370_v7, 1 }
  0x43   :  { %v1067_v19 = vld [vmem:[%s13414_s2 + $0x7a0] sm:$0xff]  ;;  %4051 = vmatpush2.bf16.msra.mxu1 %v10082_v21 }
  0x44   :  { %v10075_v23 = vcombine.high %v1063_v18, %v1067_v19  ;;  %v927_v24 = vld [vmem:[%s13414_s2 + $0x340] sm:$0xff]  ;;  %4009 = vmatprep.subr.bf16.mxu0 %v9947_v22  ;;  %v10074_v29 = vcombine.low %v1063_v18, %v1067_v19  ;;  %v1368_v19 = vshrl.u32 %v11158_v60, 16 }
  0x45   :  { %v931_v25 = vld [vmem:[%s13414_s2 + $0x360] sm:$0xff]  ;;  %4010 = vmatpush2.bf16.msra.mxu0 %v9946_v28 }
  0x46   :  { %v1055_v26 = vld [vmem:[%s13414_s2 + $0x740] sm:$0xff]  ;;  %v9939_v30 = vcombine.high %v927_v24, %v931_v25  ;;  %4052 = vmatprep.subr.bf16.mxu1 %v10075_v23  ;;  %v9938_v36 = vcombine.low %v927_v24, %v931_v25  ;;  %v1419_v23 = vshll.u32 %v11162_v8, 16  ;;  %v1382_v25 = vshrl.u32 %v11159_v62, 16 }
  0x47   :  { %v1059_v27 = vld [vmem:[%s13414_s2 + $0x760] sm:$0xff]  ;;  %4053 = vmatpush2.bf16.msra.mxu1 %v10074_v29 }
  0x48   :  { %v10067_v31 = vcombine.high %v1055_v26, %v1059_v27  ;;  %v919_v32 = vld [vmem:[%s13414_s2 + $0x300] sm:$0xff]  ;;  %4011 = vmatprep.subr.bf16.mxu0 %v9939_v30  ;;  %v10066_v37 = vcombine.low %v1055_v26, %v1059_v27  ;;  %v1386_v26 = vrot.slane %v1384_v10, 1 }
  0x49   :  { %v923_v33 = vld [vmem:[%s13414_s2 + $0x320] sm:$0xff]  ;;  %4012 = vmatpush2.bf16.msra.mxu0 %v9938_v36 }
  0x4a   :  { %v1047_v34 = vld [vmem:[%s13414_s2 + $0x700] sm:$0xff]  ;;  %v9931_v38 = vcombine.high %v919_v32, %v923_v33  ;;  %4054 = vmatprep.subr.bf16.mxu1 %v10067_v31  ;;  %v9930_v44 = vcombine.low %v919_v32, %v923_v33 }
  0x4b   :  { %v1051_v35 = vld [vmem:[%s13414_s2 + $0x720] sm:$0xff]  ;;  %4055 = vmatpush2.bf16.msra.mxu1 %v10066_v37  ;;  %v1417_v37 = vshrl.u32 %v11162_v8, 16 }
  0x4c   :  { %v10059_v39 = vcombine.high %v1047_v34, %v1051_v35  ;;  %v911_v40 = vld [vmem:[%s13414_s2 + $0x2c0] sm:$0xff]  ;;  %4013 = vmatprep.subr.bf16.mxu0 %v9931_v38  ;;  %v10058_v45 = vcombine.low %v1047_v34, %v1051_v35  ;;  %v11595_v34 = vor.u32 %v1372_v20, %v1368_v19  ;;  %v1421_v38 = vrot.slane %v1419_v23, 1 }
  0x4d   :  { %v915_v41 = vld [vmem:[%s13414_s2 + $0x2e0] sm:$0xff]  ;;  %4014 = vmatpush2.bf16.msra.mxu0 %v9930_v44 }
  0x4e   :  { %v1039_v42 = vld [vmem:[%s13414_s2 + $0x6c0] sm:$0xff]  ;;  %v9923_v46 = vcombine.high %v911_v40, %v915_v41  ;;  %4056 = vmatprep.subr.bf16.mxu1 %v10059_v39  ;;  %v9922_v52 = vcombine.low %v911_v40, %v915_v41  ;;  %v11603_v39 = vor.u32 %v1386_v26, %v1382_v25 }
  0x4f   :  { %v1043_v43 = vld [vmem:[%s13414_s2 + $0x6e0] sm:$0xff]  ;;  %4057 = vmatpush2.bf16.msra.mxu1 %v10058_v45 }
  0x50   :  { %v903_v47 = vld [vmem:[%s13414_s2 + $0x280] sm:$0xff]  ;;  %v10051_v49 = vcombine.high %v1039_v42, %v1043_v43  ;;  %4015 = vmatprep.subr.bf16.mxu0 %v9923_v46  ;;  %v10050_v53 = vcombine.low %v1039_v42, %v1043_v43 }
  0x51   :  { %v907_v48 = vld [vmem:[%s13414_s2 + $0x2a0] sm:$0xff]  ;;  %4016 = vmatpush2.bf16.msra.mxu0 %v9922_v52 }
  0x52   :  { %v1031_v50 = vld [vmem:[%s13414_s2 + $0x680] sm:$0xff]  ;;  %v9915_v54 = vcombine.high %v903_v47, %v907_v48  ;;  %4058 = vmatprep.subr.bf16.mxu1 %v10051_v49  ;;  %v9914_v61 = vcombine.low %v903_v47, %v907_v48  ;;  %v11620_v49 = vor.u32 %v1421_v38, %v1417_v37 }
  0x53   :  { %v1035_v51 = vld [vmem:[%s13414_s2 + $0x6a0] sm:$0xff]  ;;  %4059 = vmatpush2.bf16.msra.mxu1 %v10050_v53 }
  0x54   :  { %v10043_v55 = vcombine.high %v1031_v50, %v1035_v51  ;;  %v895_v56 = vld [vmem:[%s13414_s2 + $0x240] sm:$0xff]  ;;  %4017 = vmatprep.subr.bf16.mxu0 %v9915_v54  ;;  %v10042_v63 = vcombine.low %v1031_v50, %v1035_v51 }
  0x55   :  { %v899_v57 = vld [vmem:[%s13414_s2 + $0x260] sm:$0xff]  ;;  %4018 = vmatpush2.bf16.msra.mxu0 %v9914_v61 }
  0x56   :  { %v1023_v58 = vld [vmem:[%s13414_s2 + $0x640] sm:$0xff]  ;;  %v9907_v0 = vcombine.high %v895_v56, %v899_v57  ;;  %4060 = vmatprep.subr.bf16.mxu1 %v10043_v55  ;;  %v9906_v9 = vcombine.low %v895_v56, %v899_v57 }
  0x57   :  { %v1027_v59 = vld [vmem:[%s13414_s2 + $0x660] sm:$0xff]  ;;  %4061 = vmatpush2.bf16.msra.mxu1 %v10042_v63 }
  0x58   :  { %v10035_v1 = vcombine.high %v1023_v58, %v1027_v59  ;;  %v887_v2 = vld [vmem:[%s13414_s2 + $0x200] sm:$0xff]  ;;  %4019 = vmatprep.subr.bf16.mxu0 %v9907_v0  ;;  %v10034_v12 = vcombine.low %v1023_v58, %v1027_v59 }
  0x59   :  { %v891_v3 = vld [vmem:[%s13414_s2 + $0x220] sm:$0xff]  ;;  %4020 = vmatpush2.bf16.msra.mxu0 %v9906_v9 }
  0x5a   :  { %v11160_v4 = vld [vmem:[%s13412_s0 + $0x14] ss:$48 sps:$4 sm:$0x3f]   ;;  %v9899_v13 = vcombine.high %v887_v2, %v891_v3  ;;  %4062 = vmatprep.subr.bf16.mxu1 %v10035_v1  ;;  %v9898_v24 = vcombine.low %v887_v2, %v891_v3 }
  0x5b   :  { %v1015_v5 = vld [vmem:[%s13414_s2 + $0x600] sm:$0xff]  ;;  %v1405_v18 = vshll.u32 %v11160_v4, 16  ;;  %4063 = vmatpush2.bf16.msra.mxu1 %v10034_v12  ;;  %v1403_v32 = vshrl.u32 %v11160_v4, 16 }
  0x5c   :  { %v1019_v6 = vld [vmem:[%s13414_s2 + $0x620] sm:$0xff]  ;;  %4021 = vmatprep.subr.bf16.mxu0 %v9899_v13 }
  0x5d   :  { %v10027_v15 = vcombine.high %v1015_v5, %v1019_v6  ;;  %v1135_v16 = vld [vmem:[%s13414_s2 + $0x9c0] sm:$0xff]  ;;  %v10026_v27 = vcombine.low %v1015_v5, %v1019_v6  ;;  %v1407_v33 = vrot.slane %v1405_v18, 1  ;;  %4022 = vmatpush2.bf16.msra.mxu0 %v9898_v24 }
  0x5e   :  { %v1139_v17 = vld [vmem:[%s13414_s2 + $0x9e0] sm:$0xff] }
  0x5f   :  { %v1263_v21 = vld [vmem:[%s13414_s2 + $0xdc0] sm:$0xff]  ;;  %v10147_v28 = vcombine.high %v1135_v16, %v1139_v17  ;;  %4064 = vmatprep.subr.bf16.mxu1 %v10027_v15  ;;  %v10146_v40 = vcombine.low %v1135_v16, %v1139_v17  ;;  %v11611_v46 = vor.u32 %v1407_v33, %v1403_v32 }
  0x60   :  { %v1267_v22 = vld [vmem:[%s13414_s2 + $0xde0] sm:$0xff]  ;;  %4065 = vmatpush2.bf16.msra.mxu1 %v10026_v27  ;;  %4024 = vmatmul.mubr.bf16.vlgmr.msra.gmra.mxu0 %v11595_v34 }
  0x61   :  { %v10275_v29 = vcombine.high %v1263_v21, %v1267_v22  ;;  %v1127_v30 = vld [vmem:[%s13414_s2 + $0x980] sm:$0xff]  ;;  %4077 = vmatprep.subr.bf16.mxu0 %v10147_v28  ;;  %v10274_v41 = vcombine.low %v1263_v21, %v1267_v22  ;;  %4109 = vmatprep.mubr.bf16.mxu0 %v11611_v46 }
  0x62   :  { %v1131_v31 = vld [vmem:[%s13414_s2 + $0x9a0] sm:$0xff]  ;;  %4078 = vmatpush1.bf16.msra.mxu0 %v10146_v40 }
  0x63   :  { %v1255_v35 = vld [vmem:[%s13414_s2 + $0xd80] sm:$0xff]  ;;  %v10139_v42 = vcombine.high %v1127_v30, %v1131_v31  ;;  %4120 = vmatprep.subr.bf16.mxu1 %v10275_v29  ;;  %4067 = vmatmul.mubr.bf16.vlgmr.msra.gmra.mxu1 %v11603_v39  ;;  %v10138_v50 = vcombine.low %v1127_v30, %v1131_v31 }
  0x64   :  { %v1259_v36 = vld [vmem:[%s13414_s2 + $0xda0] sm:$0xff]  ;;  %4121 = vmatpush1.bf16.msra.mxu1 %v10274_v41  ;;  %4152 = vmatprep.mubr.bf16.mxu1 %v11620_v49 }
  0x65   :  { %v10267_v43 = vcombine.high %v1255_v35, %v1259_v36  ;;  %v1119_v44 = vld [vmem:[%s13414_s2 + $0x940] sm:$0xff]  ;;  %4079 = vmatprep.subr.bf16.mxu0 %v10139_v42  ;;  %v10266_v51 = vcombine.low %v1255_v35, %v1259_v36 }
  0x66   :  { %v1123_v45 = vld [vmem:[%s13414_s2 + $0x960] sm:$0xff]  ;;  %4080 = vmatpush1.bf16.msra.mxu0 %v10138_v50 }
  0x67   :  { %v1247_v47 = vld [vmem:[%s13414_s2 + $0xd40] sm:$0xff]  ;;  %v10131_v52 = vcombine.high %v1119_v44, %v1123_v45  ;;  %4122 = vmatprep.subr.bf16.mxu1 %v10267_v43  ;;  %v10130_v58 = vcombine.low %v1119_v44, %v1123_v45 }
  0x68   :  { %v1251_v48 = vld [vmem:[%s13414_s2 + $0xd60] sm:$0xff]  ;;  %4123 = vmatpush1.bf16.msra.mxu1 %v10266_v51 }
  0x69   :  { %v10259_v53 = vcombine.high %v1247_v47, %v1251_v48  ;;  %v1111_v54 = vld [vmem:[%s13414_s2 + $0x900] sm:$0xff]  ;;  %4081 = vmatprep.subr.bf16.mxu0 %v10131_v52  ;;  %v10258_v59 = vcombine.low %v1247_v47, %v1251_v48 }
  0x6a   :  { %v1115_v55 = vld [vmem:[%s13414_s2 + $0x920] sm:$0xff]  ;;  %4082 = vmatpush1.bf16.msra.mxu0 %v10130_v58 }
  0x6b   :  { %v1239_v56 = vld [vmem:[%s13414_s2 + $0xd00] sm:$0xff]  ;;  %v10123_v60 = vcombine.high %v1111_v54, %v1115_v55  ;;  %4124 = vmatprep.subr.bf16.mxu1 %v10259_v53  ;;  %v10122_v2 = vcombine.low %v1111_v54, %v1115_v55 }
  0x6c   :  { %v1243_v57 = vld [vmem:[%s13414_s2 + $0xd20] sm:$0xff]  ;;  %4125 = vmatpush1.bf16.msra.mxu1 %v10258_v59 }
  0x6d   :  { %v10251_v61 = vcombine.high %v1239_v56, %v1243_v57  ;;  %v1103_v62 = vld [vmem:[%s13414_s2 + $0x8c0] sm:$0xff]  ;;  %4083 = vmatprep.subr.bf16.mxu0 %v10123_v60  ;;  %v10250_v3 = vcombine.low %v1239_v56, %v1243_v57 }
  0x6e   :  { %v1107_v63 = vld [vmem:[%s13414_s2 + $0x8e0] sm:$0xff]  ;;  %4084 = vmatpush1.bf16.msra.mxu0 %v10122_v2 }
  0x6f   :  { %v1231_v0 = vld [vmem:[%s13414_s2 + $0xcc0] sm:$0xff]  ;;  %v10115_v4 = vcombine.high %v1103_v62, %v1107_v63  ;;  %4126 = vmatprep.subr.bf16.mxu1 %v10251_v61  ;;  %v10114_v10 = vcombine.low %v1103_v62, %v1107_v63 }
  0x70   :  { %v1235_v1 = vld [vmem:[%s13414_s2 + $0xce0] sm:$0xff]  ;;  %4127 = vmatpush1.bf16.msra.mxu1 %v10250_v3 }
  0x71   :  { %v10243_v5 = vcombine.high %v1231_v0, %v1235_v1  ;;  %v1095_v6 = vld [vmem:[%s13414_s2 + $0x880] sm:$0xff]  ;;  %4085 = vmatprep.subr.bf16.mxu0 %v10115_v4  ;;  %v10242_v12 = vcombine.low %v1231_v0, %v1235_v1 }
  0x72   :  { %v1099_v7 = vld [vmem:[%s13414_s2 + $0x8a0] sm:$0xff]  ;;  %4086 = vmatpush1.bf16.msra.mxu0 %v10114_v10 }
  0x73   :  { %v1223_v8 = vld [vmem:[%s13414_s2 + $0xc80] sm:$0xff]  ;;  %v10107_v13 = vcombine.high %v1095_v6, %v1099_v7  ;;  %4128 = vmatprep.subr.bf16.mxu1 %v10243_v5  ;;  %v10106_v20 = vcombine.low %v1095_v6, %v1099_v7 }
  0x74   :  { %v1227_v9 = vld [vmem:[%s13414_s2 + $0xca0] sm:$0xff]  ;;  %4129 = vmatpush1.bf16.msra.mxu1 %v10242_v12 }
  0x75   :  { %v10235_v15 = vcombine.high %v1223_v8, %v1227_v9  ;;  %v1087_v16 = vld [vmem:[%s13414_s2 + $0x840] sm:$0xff]  ;;  %4087 = vmatprep.subr.bf16.mxu0 %v10107_v13  ;;  %v10234_v21 = vcombine.low %v1223_v8, %v1227_v9 }
  0x76   :  { %v1091_v17 = vld [vmem:[%s13414_s2 + $0x860] sm:$0xff]  ;;  %4088 = vmatpush1.bf16.msra.mxu0 %v10106_v20 }
  0x77   :  { %v1215_v18 = vld [vmem:[%s13414_s2 + $0xc40] sm:$0xff]  ;;  %v10099_v22 = vcombine.high %v1087_v16, %v1091_v17  ;;  %4130 = vmatprep.subr.bf16.mxu1 %v10235_v15  ;;  %v10098_v28 = vcombine.low %v1087_v16, %v1091_v17 }
  0x78   :  { %v1219_v19 = vld [vmem:[%s13414_s2 + $0xc60] sm:$0xff]  ;;  %4131 = vmatpush1.bf16.msra.mxu1 %v10234_v21 }
  0x79   :  { %v10227_v23 = vcombine.high %v1215_v18, %v1219_v19  ;;  %v1079_v24 = vld [vmem:[%s13414_s2 + $0x800] sm:$0xff]  ;;  %4089 = vmatprep.subr.bf16.mxu0 %v10099_v22  ;;  %v10226_v29 = vcombine.low %v1215_v18, %v1219_v19 }
  0x7a   :  { %v1083_v25 = vld [vmem:[%s13414_s2 + $0x820] sm:$0xff]  ;;  %4090 = vmatpush1.bf16.msra.mxu0 %v10098_v28  ;;  %v11165_v28 = vld [vmem:[%s13412_s0 + $0x18] ss:$48 sps:$4 sm:$0x3f]  }
  0x7b   :  { %v1207_v26 = vld [vmem:[%s13414_s2 + $0xc00] sm:$0xff]  ;;  %v10091_v30 = vcombine.high %v1079_v24, %v1083_v25  ;;  %4132 = vmatprep.subr.bf16.mxu1 %v10227_v23  ;;  %v10090_v37 = vcombine.low %v1079_v24, %v1083_v25 }
  0x7c   :  { %v1211_v27 = vld [vmem:[%s13414_s2 + $0xc20] sm:$0xff]  ;;  %4133 = vmatpush1.bf16.msra.mxu1 %v10226_v29 }
  0x7d   :  { %v10219_v31 = vcombine.high %v1207_v26, %v1211_v27  ;;  %v1199_v32 = vld [vmem:[%s13414_s2 + $0xbc0] sm:$0xff]  ;;  %4091 = vmatprep.subr.bf16.mxu0 %v10091_v30  ;;  %v10218_v38 = vcombine.low %v1207_v26, %v1211_v27 }
  0x7e   :  { %v1203_v33 = vld [vmem:[%s13414_s2 + $0xbe0] sm:$0xff]  ;;  %4092 = vmatpush1.bf16.msra.mxu0 %v10090_v37 }
  0x7f   :  { %v1327_v35 = vld [vmem:[%s13414_s2 + $0xfc0] sm:$0xff]  ;;  %v10211_v40 = vcombine.high %v1199_v32, %v1203_v33  ;;  %4134 = vmatprep.subr.bf16.mxu1 %v10219_v31  ;;  %v10210_v47 = vcombine.low %v1199_v32, %v1203_v33 }
  0x80   :  { %v1331_v36 = vld [vmem:[%s13414_s2 + $0xfe0] sm:$0xff]  ;;  %4135 = vmatpush1.bf16.msra.mxu1 %v10218_v38 }
  0x81   :  { %v10339_v41 = vcombine.high %v1327_v35, %v1331_v36  ;;  %v1191_v42 = vld [vmem:[%s13414_s2 + $0xb80] sm:$0xff]  ;;  %4093 = vmatprep.subr.bf16.mxu0 %v10211_v40  ;;  %v10338_v48 = vcombine.low %v1327_v35, %v1331_v36  ;;  %v1412_v40 = vshll.u32 %v11165_v28, 16 }
  0x82   :  { %v1195_v43 = vld [vmem:[%s13414_s2 + $0xba0] sm:$0xff]  ;;  %4094 = vmatpush2.bf16.msra.mxu0 %v10210_v47 }
  0x83   :  { %v1319_v44 = vld [vmem:[%s13414_s2 + $0xf80] sm:$0xff]  ;;  %v10203_v50 = vcombine.high %v1191_v42, %v1195_v43  ;;  %4136 = vmatprep.subr.bf16.mxu1 %v10339_v41  ;;  %v10202_v56 = vcombine.low %v1191_v42, %v1195_v43 }
  0x84   :  { %v1323_v45 = vld [vmem:[%s13414_s2 + $0xfa0] sm:$0xff]  ;;  %4137 = vmatpush2.bf16.msra.mxu1 %v10338_v48 }
  0x85   :  { %v10331_v51 = vcombine.high %v1319_v44, %v1323_v45  ;;  %v1183_v52 = vld [vmem:[%s13414_s2 + $0xb40] sm:$0xff]  ;;  %4095 = vmatprep.subr.bf16.mxu0 %v10203_v50  ;;  %v10330_v57 = vcombine.low %v1319_v44, %v1323_v45  ;;  %v880_v44 = vld [vmem:[%s13414_s2 + $0x1c8] sm:$0xff] }
  0x86   :  { %v1187_v53 = vld [vmem:[%s13414_s2 + $0xb60] sm:$0xff]  ;;  %4096 = vmatpush2.bf16.msra.mxu0 %v10202_v56  ;;  %v884_v45 = vld [vmem:[%s13414_s2 + $0x1e8] sm:$0xff] }
  0x87   :  { %v1311_v54 = vld [vmem:[%s13414_s2 + $0xf40] sm:$0xff]  ;;  %v10195_v58 = vcombine.high %v1183_v52, %v1187_v53  ;;  %4138 = vmatprep.subr.bf16.mxu1 %v10331_v51  ;;  %v10194_v0 = vcombine.low %v1183_v52, %v1187_v53  ;;  %v1008_v50 = vld [vmem:[%s13414_s2 + $0x5c8] sm:$0xff]  ;;  %v1410_v53 = vshrl.u32 %v11165_v28, 16  ;;  %v9893_v56 = vcombine.high %v880_v44, %v884_v45 }
  0x88   :  { %v1315_v55 = vld [vmem:[%s13414_s2 + $0xf60] sm:$0xff]  ;;  %4139 = vmatpush2.bf16.msra.mxu1 %v10330_v57  ;;  %v1012_v51 = vld [vmem:[%s13414_s2 + $0x5e8] sm:$0xff] }
  0x89   :  { %v10323_v59 = vcombine.high %v1311_v54, %v1315_v55  ;;  %v1175_v60 = vld [vmem:[%s13414_s2 + $0xb00] sm:$0xff]  ;;  %4097 = vmatprep.subr.bf16.mxu0 %v10195_v58  ;;  %v10322_v1 = vcombine.low %v1311_v54, %v1315_v55  ;;  %v1414_v54 = vrot.slane %v1412_v40, 1  ;;  %v10021_v57 = vcombine.high %v1008_v50, %v1012_v51  ;;  %v872_v58 = vld [vmem:[%s13414_s2 + $0x188] sm:$0xff] }
  0x8a   :  { %v1179_v61 = vld [vmem:[%s13414_s2 + $0xb20] sm:$0xff]  ;;  %4098 = vmatpush2.bf16.msra.mxu0 %v10194_v0  ;;  %v9892_v0 = vcombine.low %v880_v44, %v884_v45  ;;  %v832_v40 = vld [vmem:[%s13414_s2 + $0x48] sm:$0xff] }
  0x8b   :  { %v1303_v62 = vld [vmem:[%s13414_s2 + $0xf00] sm:$0xff]  ;;  %v10187_v2 = vcombine.high %v1175_v60, %v1179_v61  ;;  %4140 = vmatprep.subr.bf16.mxu1 %v10323_v59  ;;  %v10186_v8 = vcombine.low %v1175_v60, %v1179_v61  ;;  %v876_v59 = vld [vmem:[%s13414_s2 + $0x1a8] sm:$0xff] }
  0x8c   :  { %v1307_v63 = vld [vmem:[%s13414_s2 + $0xf20] sm:$0xff]  ;;  %4141 = vmatpush2.bf16.msra.mxu1 %v10322_v1  ;;  %v1000_v61 = vld [vmem:[%s13414_s2 + $0x588] sm:$0xff]  ;;  %v10020_v1 = vcombine.low %v1008_v50, %v1012_v51 }
  0x8d   :  { %v10315_v3 = vcombine.high %v1303_v62, %v1307_v63  ;;  %v1167_v4 = vld [vmem:[%s13414_s2 + $0xac0] sm:$0xff]  ;;  %4099 = vmatprep.subr.bf16.mxu0 %v10187_v2  ;;  %v10314_v9 = vcombine.low %v1303_v62, %v1307_v63  ;;  %v1004_v62 = vld [vmem:[%s13414_s2 + $0x5a8] sm:$0xff]  ;;  %v11813_v63 = vor.u32 %v1414_v54, %v1410_v53  ;;  %v9885_v2 = vcombine.high %v872_v58, %v876_v59 }
  0x8e   :  { %v1171_v5 = vld [vmem:[%s13414_s2 + $0xae0] sm:$0xff]  ;;  %4100 = vmatpush2.bf16.msra.mxu0 %v10186_v8  ;;  %v9884_v8 = vcombine.low %v872_v58, %v876_v59  ;;  %v824_v50 = vld [vmem:[%s13414_s2 + $0x8] sm:$0xff] }
  0x8f   :  { %v1295_v6 = vld [vmem:[%s13414_s2 + $0xec0] sm:$0xff]  ;;  %v10179_v10 = vcombine.high %v1167_v4, %v1171_v5  ;;  %4142 = vmatprep.subr.bf16.mxu1 %v10315_v3  ;;  %v10178_v18 = vcombine.low %v1167_v4, %v1171_v5  ;;  %v10013_v3 = vcombine.high %v1000_v61, %v1004_v62  ;;  %v864_v4 = vld [vmem:[%s13414_s2 + $0x148] sm:$0xff] }
  0x90   :  { %v1299_v7 = vld [vmem:[%s13414_s2 + $0xee0] sm:$0xff]  ;;  %4143 = vmatpush2.bf16.msra.mxu1 %v10314_v9  ;;  %v868_v5 = vld [vmem:[%s13414_s2 + $0x168] sm:$0xff]  ;;  %v10012_v9 = vcombine.low %v1000_v61, %v1004_v62 }
  0x91   :  { %v10307_v12 = vcombine.high %v1295_v6, %v1299_v7  ;;  %v1159_v13 = vld [vmem:[%s13414_s2 + $0xa80] sm:$0xff]  ;;  %4101 = vmatprep.subr.bf16.mxu0 %v10179_v10  ;;  %v10306_v19 = vcombine.low %v1295_v6, %v1299_v7  ;;  %v992_v6 = vld [vmem:[%s13414_s2 + $0x548] sm:$0xff]  ;;  %v9877_v10 = vcombine.high %v864_v4, %v868_v5 }
  0x92   :  { %v1163_v15 = vld [vmem:[%s13414_s2 + $0xaa0] sm:$0xff]  ;;  %4102 = vmatpush2.bf16.msra.mxu0 %v10178_v18  ;;  %v996_v7 = vld [vmem:[%s13414_s2 + $0x568] sm:$0xff]  ;;  %v9876_v18 = vcombine.low %v864_v4, %v868_v5 }
  0x93   :  { %v1287_v16 = vld [vmem:[%s13414_s2 + $0xe80] sm:$0xff]  ;;  %v10171_v20 = vcombine.high %v1159_v13, %v1163_v15  ;;  %4144 = vmatprep.subr.bf16.mxu1 %v10307_v12  ;;  %v10170_v27 = vcombine.low %v1159_v13, %v1163_v15  ;;  %v10005_v12 = vcombine.high %v992_v6, %v996_v7  ;;  %v856_v13 = vld [vmem:[%s13414_s2 + $0x108] sm:$0xff] }
  0x94   :  { %v1291_v17 = vld [vmem:[%s13414_s2 + $0xea0] sm:$0xff]  ;;  %4145 = vmatpush2.bf16.msra.mxu1 %v10306_v19  ;;  %v860_v15 = vld [vmem:[%s13414_s2 + $0x128] sm:$0xff]  ;;  %v10004_v19 = vcombine.low %v992_v6, %v996_v7 }
  0x95   :  { %v10299_v21 = vcombine.high %v1287_v16, %v1291_v17  ;;  %v1151_v22 = vld [vmem:[%s13414_s2 + $0xa40] sm:$0xff]  ;;  %4103 = vmatprep.subr.bf16.mxu0 %v10171_v20  ;;  %v10298_v29 = vcombine.low %v1287_v16, %v1291_v17  ;;  %v984_v16 = vld [vmem:[%s13414_s2 + $0x508] sm:$0xff]  ;;  %v9869_v20 = vcombine.high %v856_v13, %v860_v15 }
  0x96   :  { %v1155_v23 = vld [vmem:[%s13414_s2 + $0xa60] sm:$0xff]  ;;  %4104 = vmatpush2.bf16.msra.mxu0 %v10170_v27  ;;  %v988_v17 = vld [vmem:[%s13414_s2 + $0x528] sm:$0xff] }
  0x97   :  { %v1279_v24 = vld [vmem:[%s13414_s2 + $0xe40] sm:$0xff]  ;;  %v10163_v30 = vcombine.high %v1151_v22, %v1155_v23  ;;  %4146 = vmatprep.subr.bf16.mxu1 %v10299_v21  ;;  %v10162_v38 = vcombine.low %v1151_v22, %v1155_v23  ;;  %v9997_v21 = vcombine.high %v984_v16, %v988_v17  ;;  %v848_v22 = vld [vmem:[%s13414_s2 + $0xc8] sm:$0xff]  ;;  %v9996_v27 = vcombine.low %v984_v16, %v988_v17 }
  0x98   :  { %v1283_v25 = vld [vmem:[%s13414_s2 + $0xe60] sm:$0xff]  ;;  %4147 = vmatpush2.bf16.msra.mxu1 %v10298_v29  ;;  %v852_v23 = vld [vmem:[%s13414_s2 + $0xe8] sm:$0xff] }
  0x99   :  { %v11164_v26 = vld [vmem:[%s13412_s0 + $0x10] ss:$48 sps:$4 sm:$0x3f]   ;;  %v10291_v31 = vcombine.high %v1279_v24, %v1283_v25  ;;  %4105 = vmatprep.subr.bf16.mxu0 %v10163_v30  ;;  %v10290_v41 = vcombine.low %v1279_v24, %v1283_v25  ;;  %v976_v24 = vld [vmem:[%s13414_s2 + $0x4c8] sm:$0xff]  ;;  %v9861_v28 = vcombine.high %v848_v22, %v852_v23 }
  0x9a   :  { %v1143_v32 = vld [vmem:[%s13414_s2 + $0xa00] sm:$0xff]  ;;  %v1398_v37 = vshll.u32 %v11164_v26, 16  ;;  %v1396_v47 = vshrl.u32 %v11164_v26, 16  ;;  %4106 = vmatpush2.bf16.msra.mxu0 %v10162_v38  ;;  %v980_v25 = vld [vmem:[%s13414_s2 + $0x4e8] sm:$0xff]  ;;  %v9868_v26 = vcombine.low %v856_v13, %v860_v15 }
  0x9b   :  { %v1147_v33 = vld [vmem:[%s13414_s2 + $0xa20] sm:$0xff]  ;;  %4148 = vmatprep.subr.bf16.mxu1 %v10291_v31  ;;  %v9989_v29 = vcombine.high %v976_v24, %v980_v25  ;;  %v840_v30 = vld [vmem:[%s13414_s2 + $0x88] sm:$0xff] }
  0x9c   :  { %v1271_v35 = vld [vmem:[%s13414_s2 + $0xe00] sm:$0xff]  ;;  %v10155_v42 = vcombine.high %v1143_v32, %v1147_v33  ;;  %v1400_v48 = vrot.slane %v1398_v37, 1  ;;  %v10154_v52 = vcombine.low %v1143_v32, %v1147_v33  ;;  %4149 = vmatpush2.bf16.msra.mxu1 %v10290_v41  ;;  %v844_v31 = vld [vmem:[%s13414_s2 + $0xa8] sm:$0xff] }
  0x9d   :  { %v1275_v36 = vld [vmem:[%s13414_s2 + $0xe20] sm:$0xff]  ;;  %v968_v32 = vld [vmem:[%s13414_s2 + $0x488] sm:$0xff]  ;;  %v9853_v37 = vcombine.high %v840_v30, %v844_v31  ;;  %v9852_v44 = vcombine.low %v840_v30, %v844_v31 }
  0x9e   :  { %v10283_v43 = vcombine.high %v1271_v35, %v1275_v36  ;;  %4107 = vmatprep.subr.bf16.mxu0 %v10155_v42  ;;  %v10282_v55 = vcombine.low %v1271_v35, %v1275_v36  ;;  %v11805_v60 = vor.u32 %v1400_v48, %v1396_v47  ;;  %v972_v33 = vld [vmem:[%s13414_s2 + $0x4a8] sm:$0xff]  ;;  %v9860_v35 = vcombine.low %v848_v22, %v852_v23 }
  0x9f   :  { %4108 = vmatpush2.bf16.msra.mxu0 %v10154_v52  ;;  %v9988_v36 = vcombine.low %v976_v24, %v980_v25  ;;  %v9981_v38 = vcombine.high %v968_v32, %v972_v33  ;;  %v836_v41 = vld [vmem:[%s13414_s2 + $0x68] sm:$0xff]  ;;  %v9980_v45 = vcombine.low %v968_v32, %v972_v33 }
  0xa0   :  { %4150 = vmatprep.subr.bf16.mxu1 %v10283_v43  ;;  %4163 = vmatprep.subr.bf16.mxu0 %v9893_v56  ;;  %v960_v42 = vld [vmem:[%s13414_s2 + $0x448] sm:$0xff]  ;;  %v9845_v47 = vcombine.high %v832_v40, %v836_v41  ;;  %v9844_v54 = vcombine.low %v832_v40, %v836_v41 }
  0xa1   :  { %4151 = vmatpush2.bf16.msra.mxu1 %v10282_v55  ;;  %v964_v43 = vld [vmem:[%s13414_s2 + $0x468] sm:$0xff] }
  0xa2   :  { %4206 = vmatprep.subr.bf16.mxu1 %v10021_v57  ;;  %4110 = vmatmul.mubr.bf16.vlgmr.msra.gmra.mxu0 %v11805_v60  ;;  %v9973_v48 = vcombine.high %v960_v42, %v964_v43  ;;  %v828_v51 = vld [vmem:[%s13414_s2 + $0x28] sm:$0xff]  ;;  %v9972_v55 = vcombine.low %v960_v42, %v964_v43 }
  0xa3   :  { %4164 = vmatpush1.bf16.msra.mxu0 %v9892_v0  ;;  %4195 = vmatprep.mubr.bf16.mxu0 %v11475_v11  ;;  %v952_v52 = vld [vmem:[%s13414_s2 + $0x408] sm:$0xff]  ;;  %v9837_v56 = vcombine.high %v824_v50, %v828_v51  ;;  %v9836_v0 = vcombine.low %v824_v50, %v828_v51 }
  0xa4   :  { %4153 = vmatmul.mubr.bf16.vlgmr.msra.gmra.mxu1 %v11813_v63  ;;  %4165 = vmatprep.subr.bf16.mxu0 %v9885_v2  ;;  %v956_v53 = vld [vmem:[%s13414_s2 + $0x428] sm:$0xff] }
  0xa5   :  { %4207 = vmatpush1.bf16.msra.mxu1 %v10020_v1  ;;  %4238 = vmatprep.mubr.bf16.mxu1 %v11477_v14  ;;  %v9965_v57 = vcombine.high %v952_v52, %v956_v53  ;;  %v944_v58 = vld [vmem:[%s13414_s2 + $0x3c8] sm:$0xff]  ;;  %v9964_v1 = vcombine.low %v952_v52, %v956_v53 }
  0xa6   :  { %4208 = vmatprep.subr.bf16.mxu1 %v10013_v3  ;;  %v948_v59 = vld [vmem:[%s13414_s2 + $0x3e8] sm:$0xff] }
  0xa7   :  { %4166 = vmatpush1.bf16.msra.mxu0 %v9884_v8  ;;  %v1072_v61 = vld [vmem:[%s13414_s2 + $0x7c8] sm:$0xff]  ;;  %v9957_v2 = vcombine.high %v944_v58, %v948_v59  ;;  %v9956_v8 = vcombine.low %v944_v58, %v948_v59 }
  0xa8   :  { %4167 = vmatprep.subr.bf16.mxu0 %v9877_v10  ;;  %v1076_v62 = vld [vmem:[%s13414_s2 + $0x7e8] sm:$0xff] }
  0xa9   :  { %4209 = vmatpush1.bf16.msra.mxu1 %v10012_v9  ;;  %v10085_v3 = vcombine.high %v1072_v61, %v1076_v62  ;;  %v936_v4 = vld [vmem:[%s13414_s2 + $0x388] sm:$0xff]  ;;  %v10084_v9 = vcombine.low %v1072_v61, %v1076_v62 }
  0xaa   :  { %4210 = vmatprep.subr.bf16.mxu1 %v10005_v12  ;;  %v940_v5 = vld [vmem:[%s13414_s2 + $0x3a8] sm:$0xff] }
  0xab   :  { %4168 = vmatpush1.bf16.msra.mxu0 %v9876_v18  ;;  %v1064_v6 = vld [vmem:[%s13414_s2 + $0x788] sm:$0xff]  ;;  %v9949_v10 = vcombine.high %v936_v4, %v940_v5  ;;  %v9948_v18 = vcombine.low %v936_v4, %v940_v5 }
  0xac   :  { %4169 = vmatprep.subr.bf16.mxu0 %v9869_v20  ;;  %v1068_v7 = vld [vmem:[%s13414_s2 + $0x7a8] sm:$0xff] }
  0xad   :  { %4211 = vmatpush1.bf16.msra.mxu1 %v10004_v19  ;;  %v10077_v12 = vcombine.high %v1064_v6, %v1068_v7  ;;  %v928_v13 = vld [vmem:[%s13414_s2 + $0x348] sm:$0xff]  ;;  %v10076_v19 = vcombine.low %v1064_v6, %v1068_v7 }
  0xae   :  { %4212 = vmatprep.subr.bf16.mxu1 %v9997_v21  ;;  %v932_v15 = vld [vmem:[%s13414_s2 + $0x368] sm:$0xff] }
  0xaf   :  { %4170 = vmatpush1.bf16.msra.mxu0 %v9868_v26  ;;  %v1056_v16 = vld [vmem:[%s13414_s2 + $0x748] sm:$0xff]  ;;  %v9941_v20 = vcombine.high %v928_v13, %v932_v15  ;;  %v9940_v26 = vcombine.low %v928_v13, %v932_v15 }
  0xb0   :  { %4171 = vmatprep.subr.bf16.mxu0 %v9861_v28  ;;  %v1060_v17 = vld [vmem:[%s13414_s2 + $0x768] sm:$0xff] }
  0xb1   :  { %4213 = vmatpush1.bf16.msra.mxu1 %v9996_v27  ;;  %v10069_v21 = vcombine.high %v1056_v16, %v1060_v17  ;;  %v920_v22 = vld [vmem:[%s13414_s2 + $0x308] sm:$0xff]  ;;  %v10068_v27 = vcombine.low %v1056_v16, %v1060_v17 }
  0xb2   :  { %4214 = vmatprep.subr.bf16.mxu1 %v9989_v29  ;;  %v924_v23 = vld [vmem:[%s13414_s2 + $0x328] sm:$0xff] }
  0xb3   :  { %4172 = vmatpush1.bf16.msra.mxu0 %v9860_v35  ;;  %v1048_v24 = vld [vmem:[%s13414_s2 + $0x708] sm:$0xff]  ;;  %v9933_v28 = vcombine.high %v920_v22, %v924_v23  ;;  %v9932_v35 = vcombine.low %v920_v22, %v924_v23 }
  0xb4   :  { %4173 = vmatprep.subr.bf16.mxu0 %v9853_v37  ;;  %v1052_v25 = vld [vmem:[%s13414_s2 + $0x728] sm:$0xff] }
  0xb5   :  { %4215 = vmatpush1.bf16.msra.mxu1 %v9988_v36  ;;  %v10061_v29 = vcombine.high %v1048_v24, %v1052_v25  ;;  %v912_v30 = vld [vmem:[%s13414_s2 + $0x2c8] sm:$0xff]  ;;  %v10060_v36 = vcombine.low %v1048_v24, %v1052_v25 }
  0xb6   :  { %4216 = vmatprep.subr.bf16.mxu1 %v9981_v38  ;;  %v916_v31 = vld [vmem:[%s13414_s2 + $0x2e8] sm:$0xff] }
  0xb7   :  { %4174 = vmatpush1.bf16.msra.mxu0 %v9852_v44  ;;  %v1040_v32 = vld [vmem:[%s13414_s2 + $0x6c8] sm:$0xff]  ;;  %v9925_v37 = vcombine.high %v912_v30, %v916_v31  ;;  %v9924_v44 = vcombine.low %v912_v30, %v916_v31 }
  0xb8   :  { %4175 = vmatprep.subr.bf16.mxu0 %v9845_v47  ;;  %v1044_v33 = vld [vmem:[%s13414_s2 + $0x6e8] sm:$0xff] }
  0xb9   :  { %4217 = vmatpush1.bf16.msra.mxu1 %v9980_v45  ;;  %v10053_v38 = vcombine.high %v1040_v32, %v1044_v33  ;;  %v904_v40 = vld [vmem:[%s13414_s2 + $0x288] sm:$0xff]  ;;  %v10052_v45 = vcombine.low %v1040_v32, %v1044_v33 }
  0xba   :  { %4218 = vmatprep.subr.bf16.mxu1 %v9973_v48  ;;  %v908_v41 = vld [vmem:[%s13414_s2 + $0x2a8] sm:$0xff] }
  0xbb   :  { %4176 = vmatpush1.bf16.msra.mxu0 %v9844_v54  ;;  %v1032_v42 = vld [vmem:[%s13414_s2 + $0x688] sm:$0xff]  ;;  %v9917_v47 = vcombine.high %v904_v40, %v908_v41  ;;  %v9916_v54 = vcombine.low %v904_v40, %v908_v41 }
  0xbc   :  { %4177 = vmatprep.subr.bf16.mxu0 %v9837_v56  ;;  %v1036_v43 = vld [vmem:[%s13414_s2 + $0x6a8] sm:$0xff] }
  0xbd   :  { %4219 = vmatpush1.bf16.msra.mxu1 %v9972_v55  ;;  %v10045_v48 = vcombine.high %v1032_v42, %v1036_v43  ;;  %v896_v50 = vld [vmem:[%s13414_s2 + $0x248] sm:$0xff]  ;;  %v10044_v55 = vcombine.low %v1032_v42, %v1036_v43 }
  0xbe   :  { %4220 = vmatprep.subr.bf16.mxu1 %v9965_v57  ;;  %v900_v51 = vld [vmem:[%s13414_s2 + $0x268] sm:$0xff] }
  0xbf   :  { %4178 = vmatpush1.bf16.msra.mxu0 %v9836_v0  ;;  %v1024_v52 = vld [vmem:[%s13414_s2 + $0x648] sm:$0xff]  ;;  %v9909_v56 = vcombine.high %v896_v50, %v900_v51  ;;  %v9908_v0 = vcombine.low %v896_v50, %v900_v51 }
  0xc0   :  { %4179 = vmatprep.subr.bf16.mxu0 %v9957_v2  ;;  %v1028_v53 = vld [vmem:[%s13414_s2 + $0x668] sm:$0xff] }
  0xc1   :  { %4221 = vmatpush1.bf16.msra.mxu1 %v9964_v1  ;;  %v10037_v57 = vcombine.high %v1024_v52, %v1028_v53  ;;  %v888_v58 = vld [vmem:[%s13414_s2 + $0x208] sm:$0xff]  ;;  %v10036_v1 = vcombine.low %v1024_v52, %v1028_v53 }
  0xc2   :  { %4222 = vmatprep.subr.bf16.mxu1 %v10085_v3  ;;  %v892_v59 = vld [vmem:[%s13414_s2 + $0x228] sm:$0xff] }
  0xc3   :  { %4180 = vmatpush2.bf16.msra.mxu0 %v9956_v8  ;;  %v1016_v61 = vld [vmem:[%s13414_s2 + $0x608] sm:$0xff]  ;;  %v9901_v2 = vcombine.high %v888_v58, %v892_v59  ;;  %v9900_v8 = vcombine.low %v888_v58, %v892_v59 }
  0xc4   :  { %4181 = vmatprep.subr.bf16.mxu0 %v9949_v10  ;;  %v1020_v62 = vld [vmem:[%s13414_s2 + $0x628] sm:$0xff] }
  0xc5   :  { %4223 = vmatpush2.bf16.msra.mxu1 %v10084_v9  ;;  %v10029_v3 = vcombine.high %v1016_v61, %v1020_v62  ;;  %v1136_v4 = vld [vmem:[%s13414_s2 + $0x9c8] sm:$0xff]  ;;  %v10028_v9 = vcombine.low %v1016_v61, %v1020_v62 }
  0xc6   :  { %4224 = vmatprep.subr.bf16.mxu1 %v10077_v12  ;;  %v1140_v5 = vld [vmem:[%s13414_s2 + $0x9e8] sm:$0xff] }
  0xc7   :  { %4182 = vmatpush2.bf16.msra.mxu0 %v9948_v18  ;;  %v1264_v6 = vld [vmem:[%s13414_s2 + $0xdc8] sm:$0xff]  ;;  %v10149_v10 = vcombine.high %v1136_v4, %v1140_v5  ;;  %v10148_v18 = vcombine.low %v1136_v4, %v1140_v5 }
  0xc8   :  { %4183 = vmatprep.subr.bf16.mxu0 %v9941_v20  ;;  %v1268_v7 = vld [vmem:[%s13414_s2 + $0xde8] sm:$0xff] }
  0xc9   :  { %4225 = vmatpush2.bf16.msra.mxu1 %v10076_v19  ;;  %v10277_v12 = vcombine.high %v1264_v6, %v1268_v7  ;;  %v1128_v13 = vld [vmem:[%s13414_s2 + $0x988] sm:$0xff]  ;;  %v10276_v19 = vcombine.low %v1264_v6, %v1268_v7 }
  0xca   :  { %4226 = vmatprep.subr.bf16.mxu1 %v10069_v21  ;;  %v1132_v15 = vld [vmem:[%s13414_s2 + $0x9a8] sm:$0xff] }
  0xcb   :  { %4184 = vmatpush2.bf16.msra.mxu0 %v9940_v26  ;;  %v1256_v16 = vld [vmem:[%s13414_s2 + $0xd88] sm:$0xff]  ;;  %v10141_v20 = vcombine.high %v1128_v13, %v1132_v15  ;;  %v10140_v26 = vcombine.low %v1128_v13, %v1132_v15 }
  0xcc   :  { %4185 = vmatprep.subr.bf16.mxu0 %v9933_v28  ;;  %v1260_v17 = vld [vmem:[%s13414_s2 + $0xda8] sm:$0xff] }
  0xcd   :  { %4227 = vmatpush2.bf16.msra.mxu1 %v10068_v27  ;;  %v10269_v21 = vcombine.high %v1256_v16, %v1260_v17  ;;  %v1120_v22 = vld [vmem:[%s13414_s2 + $0x948] sm:$0xff]  ;;  %v10268_v27 = vcombine.low %v1256_v16, %v1260_v17 }
  0xce   :  { %4228 = vmatprep.subr.bf16.mxu1 %v10061_v29  ;;  %v1124_v23 = vld [vmem:[%s13414_s2 + $0x968] sm:$0xff] }
  0xcf   :  { %4186 = vmatpush2.bf16.msra.mxu0 %v9932_v35  ;;  %v1248_v24 = vld [vmem:[%s13414_s2 + $0xd48] sm:$0xff]  ;;  %v10133_v28 = vcombine.high %v1120_v22, %v1124_v23  ;;  %v10132_v35 = vcombine.low %v1120_v22, %v1124_v23 }
  0xd0   :  { %4187 = vmatprep.subr.bf16.mxu0 %v9925_v37  ;;  %v1252_v25 = vld [vmem:[%s13414_s2 + $0xd68] sm:$0xff] }
  0xd1   :  { %4229 = vmatpush2.bf16.msra.mxu1 %v10060_v36  ;;  %v10261_v29 = vcombine.high %v1248_v24, %v1252_v25  ;;  %v1112_v30 = vld [vmem:[%s13414_s2 + $0x908] sm:$0xff]  ;;  %v10260_v36 = vcombine.low %v1248_v24, %v1252_v25 }
  0xd2   :  { %4230 = vmatprep.subr.bf16.mxu1 %v10053_v38  ;;  %v1116_v31 = vld [vmem:[%s13414_s2 + $0x928] sm:$0xff] }
  0xd3   :  { %4188 = vmatpush2.bf16.msra.mxu0 %v9924_v44  ;;  %v1240_v32 = vld [vmem:[%s13414_s2 + $0xd08] sm:$0xff]  ;;  %v10125_v37 = vcombine.high %v1112_v30, %v1116_v31  ;;  %v10124_v44 = vcombine.low %v1112_v30, %v1116_v31 }
  0xd4   :  { %4189 = vmatprep.subr.bf16.mxu0 %v9917_v47  ;;  %v1244_v33 = vld [vmem:[%s13414_s2 + $0xd28] sm:$0xff] }
  0xd5   :  { %4231 = vmatpush2.bf16.msra.mxu1 %v10052_v45  ;;  %v10253_v38 = vcombine.high %v1240_v32, %v1244_v33  ;;  %v1104_v40 = vld [vmem:[%s13414_s2 + $0x8c8] sm:$0xff]  ;;  %v10252_v45 = vcombine.low %v1240_v32, %v1244_v33 }
  0xd6   :  { %4232 = vmatprep.subr.bf16.mxu1 %v10045_v48  ;;  %v1108_v41 = vld [vmem:[%s13414_s2 + $0x8e8] sm:$0xff] }
  0xd7   :  { %4190 = vmatpush2.bf16.msra.mxu0 %v9916_v54  ;;  %v1232_v42 = vld [vmem:[%s13414_s2 + $0xcc8] sm:$0xff]  ;;  %v10117_v47 = vcombine.high %v1104_v40, %v1108_v41  ;;  %v10116_v54 = vcombine.low %v1104_v40, %v1108_v41 }
  0xd8   :  { %4191 = vmatprep.subr.bf16.mxu0 %v9909_v56  ;;  %v1236_v43 = vld [vmem:[%s13414_s2 + $0xce8] sm:$0xff] }
  0xd9   :  { %4233 = vmatpush2.bf16.msra.mxu1 %v10044_v55  ;;  %v10245_v48 = vcombine.high %v1232_v42, %v1236_v43  ;;  %v1096_v50 = vld [vmem:[%s13414_s2 + $0x888] sm:$0xff]  ;;  %v10244_v55 = vcombine.low %v1232_v42, %v1236_v43 }
  0xda   :  { %4234 = vmatprep.subr.bf16.mxu1 %v10037_v57  ;;  %v1100_v51 = vld [vmem:[%s13414_s2 + $0x8a8] sm:$0xff] }
  0xdb   :  { %4192 = vmatpush2.bf16.msra.mxu0 %v9908_v0  ;;  %v1224_v52 = vld [vmem:[%s13414_s2 + $0xc88] sm:$0xff]  ;;  %v10109_v56 = vcombine.high %v1096_v50, %v1100_v51  ;;  %v10108_v0 = vcombine.low %v1096_v50, %v1100_v51 }
  0xdc   :  { %4193 = vmatprep.subr.bf16.mxu0 %v9901_v2  ;;  %v1228_v53 = vld [vmem:[%s13414_s2 + $0xca8] sm:$0xff] }
  0xdd   :  { %4235 = vmatpush2.bf16.msra.mxu1 %v10036_v1  ;;  %v10237_v57 = vcombine.high %v1224_v52, %v1228_v53  ;;  %v1088_v58 = vld [vmem:[%s13414_s2 + $0x848] sm:$0xff]  ;;  %v10236_v1 = vcombine.low %v1224_v52, %v1228_v53 }
  0xde   :  { %4236 = vmatprep.subr.bf16.mxu1 %v10029_v3  ;;  %v1092_v59 = vld [vmem:[%s13414_s2 + $0x868] sm:$0xff] }
  0xdf   :  { %4194 = vmatpush2.bf16.msra.mxu0 %v9900_v8  ;;  %v1216_v61 = vld [vmem:[%s13414_s2 + $0xc48] sm:$0xff]  ;;  %v10101_v2 = vcombine.high %v1088_v58, %v1092_v59  ;;  %v10100_v8 = vcombine.low %v1088_v58, %v1092_v59 }
  0xe0   :  { %4249 = vmatprep.subr.bf16.mxu0 %v10149_v10  ;;  %v1220_v62 = vld [vmem:[%s13414_s2 + $0xc68] sm:$0xff] }
  0xe1   :  { %4237 = vmatpush2.bf16.msra.mxu1 %v10028_v9  ;;  %v10229_v3 = vcombine.high %v1216_v61, %v1220_v62  ;;  %v1080_v4 = vld [vmem:[%s13414_s2 + $0x808] sm:$0xff]  ;;  %v10228_v9 = vcombine.low %v1216_v61, %v1220_v62 }
  0xe2   :  { %4292 = vmatprep.subr.bf16.mxu1 %v10277_v12  ;;  %4196 = vmatmul.mubr.bf16.vlgmr.msra.gmra.mxu0 %v11595_v34  ;;  %v1084_v5 = vld [vmem:[%s13414_s2 + $0x828] sm:$0xff] }
  0xe3   :  { %4250 = vmatpush1.bf16.msra.mxu0 %v10148_v18  ;;  %4281 = vmatprep.mubr.bf16.mxu0 %v11611_v46  ;;  %v1208_v6 = vld [vmem:[%s13414_s2 + $0xc08] sm:$0xff]  ;;  %v10093_v10 = vcombine.high %v1080_v4, %v1084_v5  ;;  %v10092_v18 = vcombine.low %v1080_v4, %v1084_v5 }
  0xe4   :  { %4239 = vmatmul.mubr.bf16.vlgmr.msra.gmra.mxu1 %v11603_v39  ;;  %4251 = vmatprep.subr.bf16.mxu0 %v10141_v20  ;;  %v1212_v7 = vld [vmem:[%s13414_s2 + $0xc28] sm:$0xff] }
  0xe5   :  { %4293 = vmatpush1.bf16.msra.mxu1 %v10276_v19  ;;  %4324 = vmatprep.mubr.bf16.mxu1 %v11620_v49  ;;  %v10221_v12 = vcombine.high %v1208_v6, %v1212_v7  ;;  %v1200_v13 = vld [vmem:[%s13414_s2 + $0xbc8] sm:$0xff]  ;;  %v10220_v19 = vcombine.low %v1208_v6, %v1212_v7 }
  0xe6   :  { %4294 = vmatprep.subr.bf16.mxu1 %v10269_v21  ;;  %v1204_v15 = vld [vmem:[%s13414_s2 + $0xbe8] sm:$0xff] }
  0xe7   :  { %4252 = vmatpush1.bf16.msra.mxu0 %v10140_v26  ;;  %v1328_v16 = vld [vmem:[%s13414_s2 + $0xfc8] sm:$0xff]  ;;  %v10213_v20 = vcombine.high %v1200_v13, %v1204_v15  ;;  %v10212_v26 = vcombine.low %v1200_v13, %v1204_v15 }
  0xe8   :  { %4253 = vmatprep.subr.bf16.mxu0 %v10133_v28  ;;  %v1332_v17 = vld [vmem:[%s13414_s2 + $0xfe8] sm:$0xff] }
  0xe9   :  { %4295 = vmatpush1.bf16.msra.mxu1 %v10268_v27  ;;  %v10341_v21 = vcombine.high %v1328_v16, %v1332_v17  ;;  %v1192_v22 = vld [vmem:[%s13414_s2 + $0xb88] sm:$0xff]  ;;  %v10340_v27 = vcombine.low %v1328_v16, %v1332_v17 }
  0xea   :  { %4296 = vmatprep.subr.bf16.mxu1 %v10261_v29  ;;  %v1196_v23 = vld [vmem:[%s13414_s2 + $0xba8] sm:$0xff] }
  0xeb   :  { %4254 = vmatpush1.bf16.msra.mxu0 %v10132_v35  ;;  %v1320_v24 = vld [vmem:[%s13414_s2 + $0xf88] sm:$0xff]  ;;  %v10205_v28 = vcombine.high %v1192_v22, %v1196_v23  ;;  %v10204_v35 = vcombine.low %v1192_v22, %v1196_v23  ;;  %v881_v22 = vld [vmem:[%s13414_s2 + $0x1d0] sm:$0xff] }
  0xec   :  { %4255 = vmatprep.subr.bf16.mxu0 %v10125_v37  ;;  %v1324_v25 = vld [vmem:[%s13414_s2 + $0xfa8] sm:$0xff]  ;;  %v885_v23 = vld [vmem:[%s13414_s2 + $0x1f0] sm:$0xff] }
  0xed   :  { %4297 = vmatpush1.bf16.msra.mxu1 %v10260_v36  ;;  %v10333_v29 = vcombine.high %v1320_v24, %v1324_v25  ;;  %v1184_v30 = vld [vmem:[%s13414_s2 + $0xb48] sm:$0xff]  ;;  %v10332_v36 = vcombine.low %v1320_v24, %v1324_v25  ;;  %v1009_v24 = vld [vmem:[%s13414_s2 + $0x5d0] sm:$0xff] }
  0xee   :  { %4298 = vmatprep.subr.bf16.mxu1 %v10253_v38  ;;  %v1188_v31 = vld [vmem:[%s13414_s2 + $0xb68] sm:$0xff]  ;;  %v1013_v25 = vld [vmem:[%s13414_s2 + $0x5f0] sm:$0xff] }
  0xef   :  { %4256 = vmatpush1.bf16.msra.mxu0 %v10124_v44  ;;  %v1312_v32 = vld [vmem:[%s13414_s2 + $0xf48] sm:$0xff]  ;;  %v10197_v37 = vcombine.high %v1184_v30, %v1188_v31  ;;  %v10196_v44 = vcombine.low %v1184_v30, %v1188_v31  ;;  %v873_v30 = vld [vmem:[%s13414_s2 + $0x190] sm:$0xff] }
  0xf0   :  { %4257 = vmatprep.subr.bf16.mxu0 %v10117_v47  ;;  %v1316_v33 = vld [vmem:[%s13414_s2 + $0xf68] sm:$0xff]  ;;  %v877_v31 = vld [vmem:[%s13414_s2 + $0x1b0] sm:$0xff] }
  0xf1   :  { %4299 = vmatpush1.bf16.msra.mxu1 %v10252_v45  ;;  %v10325_v38 = vcombine.high %v1312_v32, %v1316_v33  ;;  %v1176_v40 = vld [vmem:[%s13414_s2 + $0xb08] sm:$0xff]  ;;  %v10324_v45 = vcombine.low %v1312_v32, %v1316_v33  ;;  %v1001_v32 = vld [vmem:[%s13414_s2 + $0x590] sm:$0xff] }
  0xf2   :  { %4300 = vmatprep.subr.bf16.mxu1 %v10245_v48  ;;  %v1180_v41 = vld [vmem:[%s13414_s2 + $0xb28] sm:$0xff]  ;;  %v1005_v33 = vld [vmem:[%s13414_s2 + $0x5b0] sm:$0xff] }
  0xf3   :  { %4258 = vmatpush1.bf16.msra.mxu0 %v10116_v54  ;;  %v1304_v42 = vld [vmem:[%s13414_s2 + $0xf08] sm:$0xff]  ;;  %v10189_v47 = vcombine.high %v1176_v40, %v1180_v41  ;;  %v10188_v54 = vcombine.low %v1176_v40, %v1180_v41  ;;  %v865_v40 = vld [vmem:[%s13414_s2 + $0x150] sm:$0xff] }
  0xf4   :  { %4259 = vmatprep.subr.bf16.mxu0 %v10109_v56  ;;  %v1308_v43 = vld [vmem:[%s13414_s2 + $0xf28] sm:$0xff]  ;;  %v869_v41 = vld [vmem:[%s13414_s2 + $0x170] sm:$0xff] }
  0xf5   :  { %4301 = vmatpush1.bf16.msra.mxu1 %v10244_v55  ;;  %v10317_v48 = vcombine.high %v1304_v42, %v1308_v43  ;;  %v1168_v50 = vld [vmem:[%s13414_s2 + $0xac8] sm:$0xff]  ;;  %v10316_v55 = vcombine.low %v1304_v42, %v1308_v43  ;;  %v993_v43 = vld [vmem:[%s13414_s2 + $0x550] sm:$0xff] }
  0xf6   :  { %4302 = vmatprep.subr.bf16.mxu1 %v10237_v57  ;;  %v1172_v51 = vld [vmem:[%s13414_s2 + $0xae8] sm:$0xff] }
  0xf7   :  { %4260 = vmatpush1.bf16.msra.mxu0 %v10108_v0  ;;  %v1296_v52 = vld [vmem:[%s13414_s2 + $0xec8] sm:$0xff]  ;;  %v10181_v56 = vcombine.high %v1168_v50, %v1172_v51  ;;  %v10180_v0 = vcombine.low %v1168_v50, %v1172_v51  ;;  %v10014_v51 = vcombine.low %v1001_v32, %v1005_v33 }
  0xf8   :  { %4261 = vmatprep.subr.bf16.mxu0 %v10101_v2  ;;  %v1300_v53 = vld [vmem:[%s13414_s2 + $0xee8] sm:$0xff] }
  0xf9   :  { %4303 = vmatpush1.bf16.msra.mxu1 %v10236_v1  ;;  %v10309_v57 = vcombine.high %v1296_v52, %v1300_v53  ;;  %v1160_v58 = vld [vmem:[%s13414_s2 + $0xa88] sm:$0xff]  ;;  %v10308_v1 = vcombine.low %v1296_v52, %v1300_v53  ;;  %v9879_v52 = vcombine.high %v865_v40, %v869_v41 }
  0xfa   :  { %4304 = vmatprep.subr.bf16.mxu1 %v10229_v3  ;;  %v1164_v59 = vld [vmem:[%s13414_s2 + $0xaa8] sm:$0xff] }
  0xfb   :  { %4262 = vmatpush1.bf16.msra.mxu0 %v10100_v8  ;;  %v1288_v61 = vld [vmem:[%s13414_s2 + $0xe88] sm:$0xff]  ;;  %v10173_v2 = vcombine.high %v1160_v58, %v1164_v59  ;;  %v10172_v8 = vcombine.low %v1160_v58, %v1164_v59  ;;  %v985_v59 = vld [vmem:[%s13414_s2 + $0x510] sm:$0xff] }
  0xfc   :  { %4263 = vmatprep.subr.bf16.mxu0 %v10093_v10  ;;  %v1292_v62 = vld [vmem:[%s13414_s2 + $0xea8] sm:$0xff] }
  0xfd   :  { %4305 = vmatpush1.bf16.msra.mxu1 %v10228_v9  ;;  %v10301_v3 = vcombine.high %v1288_v61, %v1292_v62  ;;  %v1152_v4 = vld [vmem:[%s13414_s2 + $0xa48] sm:$0xff]  ;;  %v10300_v9 = vcombine.low %v1288_v61, %v1292_v62  ;;  %v989_v61 = vld [vmem:[%s13414_s2 + $0x530] sm:$0xff] }
  0xfe   :  { %4306 = vmatprep.subr.bf16.mxu1 %v10221_v12  ;;  %v1156_v5 = vld [vmem:[%s13414_s2 + $0xa68] sm:$0xff] }
  0xff   :  { %4264 = vmatpush1.bf16.msra.mxu0 %v10092_v18  ;;  %v1280_v6 = vld [vmem:[%s13414_s2 + $0xe48] sm:$0xff]  ;;  %v10165_v10 = vcombine.high %v1152_v4, %v1156_v5  ;;  %v10164_v18 = vcombine.low %v1152_v4, %v1156_v5 }
 0x100   :  { %4265 = vmatprep.subr.bf16.mxu0 %v10213_v20  ;;  %v1284_v7 = vld [vmem:[%s13414_s2 + $0xe68] sm:$0xff] }
 0x101   :  { %4307 = vmatpush1.bf16.msra.mxu1 %v10220_v19  ;;  %v10293_v12 = vcombine.high %v1280_v6, %v1284_v7  ;;  %v1144_v13 = vld [vmem:[%s13414_s2 + $0xa08] sm:$0xff]  ;;  %v10292_v19 = vcombine.low %v1280_v6, %v1284_v7  ;;  %v9999_v6 = vcombine.high %v985_v59, %v989_v61  ;;  %v849_v7 = vld [vmem:[%s13414_s2 + $0xd0] sm:$0xff] }
 0x102   :  { %4308 = vmatprep.subr.bf16.mxu1 %v10341_v21  ;;  %v1148_v15 = vld [vmem:[%s13414_s2 + $0xa28] sm:$0xff] }
 0x103   :  { %4266 = vmatpush2.bf16.msra.mxu0 %v10212_v26  ;;  %v1272_v16 = vld [vmem:[%s13414_s2 + $0xe08] sm:$0xff]  ;;  %v10157_v20 = vcombine.high %v1144_v13, %v1148_v15  ;;  %v10156_v26 = vcombine.low %v1144_v13, %v1148_v15  ;;  %v9998_v15 = vcombine.low %v985_v59, %v989_v61  ;;  %v1069_v59 = vld [vmem:[%s13414_s2 + $0x7b0] sm:$0xff] }
 0x104   :  { %4267 = vmatprep.subr.bf16.mxu0 %v10205_v28  ;;  %v1276_v17 = vld [vmem:[%s13414_s2 + $0xe28] sm:$0xff]  ;;  %v9895_v28 = vcombine.high %v881_v22, %v885_v23 }
 0x105   :  { %4309 = vmatpush2.bf16.msra.mxu1 %v10340_v27  ;;  %v10285_v21 = vcombine.high %v1272_v16, %v1276_v17  ;;  %v10284_v27 = vcombine.low %v1272_v16, %v1276_v17 }
 0x106   :  { %4310 = vmatprep.subr.bf16.mxu1 %v10333_v29  ;;  %v10023_v29 = vcombine.high %v1009_v24, %v1013_v25 }
 0x107   :  { %4268 = vmatpush2.bf16.msra.mxu0 %v10204_v35  ;;  %v9894_v35 = vcombine.low %v881_v22, %v885_v23 }
 0x108   :  { %4269 = vmatprep.subr.bf16.mxu0 %v10197_v37  ;;  %v9887_v37 = vcombine.high %v873_v30, %v877_v31 }
 0x109   :  { %4311 = vmatpush2.bf16.msra.mxu1 %v10332_v36  ;;  %v10022_v36 = vcombine.low %v1009_v24, %v1013_v25 }
 0x10a   :  { %4312 = vmatprep.subr.bf16.mxu1 %v10325_v38  ;;  %v10015_v38 = vcombine.high %v1001_v32, %v1005_v33 }
 0x10b   :  { %4270 = vmatpush2.bf16.msra.mxu0 %v10196_v44  ;;  %v997_v44 = vld [vmem:[%s13414_s2 + $0x570] sm:$0xff] }
 0x10c   :  { %4271 = vmatprep.subr.bf16.mxu0 %v10189_v47  ;;  %v9886_v47 = vcombine.low %v873_v30, %v877_v31 }
 0x10d   :  { %4313 = vmatpush2.bf16.msra.mxu1 %v10324_v45 }
 0x10e   :  { %4314 = vmatprep.subr.bf16.mxu1 %v10317_v48 }
 0x10f   :  { %4272 = vmatpush2.bf16.msra.mxu0 %v10188_v54  ;;  %v10007_v54 = vcombine.high %v993_v43, %v997_v44 }
 0x110   :  { %4273 = vmatprep.subr.bf16.mxu0 %v10181_v56  ;;  %v861_v56 = vld [vmem:[%s13414_s2 + $0x130] sm:$0xff] }
 0x111   :  { %4315 = vmatpush2.bf16.msra.mxu1 %v10316_v55  ;;  %v857_v55 = vld [vmem:[%s13414_s2 + $0x110] sm:$0xff] }
 0x112   :  { %4316 = vmatprep.subr.bf16.mxu1 %v10309_v57  ;;  %v9871_v4 = vcombine.high %v857_v55, %v861_v56  ;;  %v9870_v13 = vcombine.low %v857_v55, %v861_v56  ;;  %v937_v55 = vld [vmem:[%s13414_s2 + $0x390] sm:$0xff] }
 0x113   :  { %4274 = vmatpush2.bf16.msra.mxu0 %v10180_v0  ;;  %v9878_v0 = vcombine.low %v865_v40, %v869_v41  ;;  %v941_v56 = vld [vmem:[%s13414_s2 + $0x3b0] sm:$0xff] }
 0x114   :  { %4275 = vmatprep.subr.bf16.mxu0 %v10173_v2 }
 0x115   :  { %4317 = vmatpush2.bf16.msra.mxu1 %v10308_v1 }
 0x116   :  { %4318 = vmatprep.subr.bf16.mxu1 %v10301_v3  ;;  %v10006_v3 = vcombine.low %v993_v43, %v997_v44  ;;  %v945_v44 = vld [vmem:[%s13414_s2 + $0x3d0] sm:$0xff] }
 0x117   :  { %4276 = vmatpush2.bf16.msra.mxu0 %v10172_v8  ;;  %v853_v8 = vld [vmem:[%s13414_s2 + $0xf0] sm:$0xff] }
 0x118   :  { %4277 = vmatprep.subr.bf16.mxu0 %v10165_v10  ;;  %v977_v10 = vld [vmem:[%s13414_s2 + $0x4d0] sm:$0xff]  ;;  %v9863_v16 = vcombine.high %v849_v7, %v853_v8  ;;  %v9862_v22 = vcombine.low %v849_v7, %v853_v8  ;;  %v9950_v7 = vcombine.low %v937_v55, %v941_v56 }
 0x119   :  { %4319 = vmatpush2.bf16.msra.mxu1 %v10300_v9 }
 0x11a   :  { %4320 = vmatprep.subr.bf16.mxu1 %v10293_v12  ;;  %v981_v12 = vld [vmem:[%s13414_s2 + $0x4f0] sm:$0xff] }
 0x11b   :  { %4278 = vmatpush2.bf16.msra.mxu0 %v10164_v18  ;;  %v9991_v17 = vcombine.high %v977_v10, %v981_v12  ;;  %v841_v18 = vld [vmem:[%s13414_s2 + $0x90] sm:$0xff]  ;;  %v9990_v23 = vcombine.low %v977_v10, %v981_v12 }
 0x11c   :  { %4279 = vmatprep.subr.bf16.mxu0 %v10157_v20  ;;  %v969_v20 = vld [vmem:[%s13414_s2 + $0x490] sm:$0xff] }
 0x11d   :  { %4321 = vmatpush2.bf16.msra.mxu1 %v10292_v19  ;;  %v845_v19 = vld [vmem:[%s13414_s2 + $0xb0] sm:$0xff] }
 0x11e   :  { %4322 = vmatprep.subr.bf16.mxu1 %v10285_v21  ;;  %v973_v21 = vld [vmem:[%s13414_s2 + $0x4b0] sm:$0xff]  ;;  %v9855_v24 = vcombine.high %v841_v18, %v845_v19  ;;  %v9854_v30 = vcombine.low %v841_v18, %v845_v19 }
 0x11f   :  { %4280 = vmatpush2.bf16.msra.mxu0 %v10156_v26  ;;  %v9983_v25 = vcombine.high %v969_v20, %v973_v21  ;;  %v833_v26 = vld [vmem:[%s13414_s2 + $0x50] sm:$0xff]  ;;  %v9982_v31 = vcombine.low %v969_v20, %v973_v21 }
 0x120   :  { %4335 = vmatprep.subr.bf16.mxu0 %v9895_v28  ;;  %v4025_v42 = vpop.f32.mrf.mxu0  ;;  %v961_v28 = vld [vmem:[%s13414_s2 + $0x450] sm:$0xff] }
 0x121   :  { %4323 = vmatpush2.bf16.msra.mxu1 %v10284_v27  ;;  %v837_v27 = vld [vmem:[%s13414_s2 + $0x70] sm:$0xff] }
 0x122   :  { %4378 = vmatprep.subr.bf16.mxu1 %v10023_v29  ;;  %4282 = vmatmul.mubr.bf16.vlgmr.msra.gmra.mxu0 %v11805_v60  ;;  %v4027_v50 = vpop.f32.mrf.mxu0  ;;  %v965_v29 = vld [vmem:[%s13414_s2 + $0x470] sm:$0xff]  ;;  %v9847_v32 = vcombine.high %v833_v26, %v837_v27  ;;  %v9846_v40 = vcombine.low %v833_v26, %v837_v27 }
 0x123   :  { %v4068_v45 = vpop.f32.mrf.mxu1  ;;  %4336 = vmatpush1.bf16.msra.mxu0 %v9894_v35  ;;  %4367 = vmatprep.mubr.bf16.mxu0 %v11475_v11  ;;  %v9975_v33 = vcombine.high %v961_v28, %v965_v29  ;;  %v825_v35 = vld [vmem:[%s13414_s2 + $0x10] sm:$0xff]  ;;  %v9974_v41 = vcombine.low %v961_v28, %v965_v29 }
 0x124   :  { %4325 = vmatmul.mubr.bf16.vlgmr.msra.gmra.mxu1 %v11813_v63  ;;  %v12221_v48 = vadd.f32 %v4068_v45, %v4025_v42  ;;  %4337 = vmatprep.subr.bf16.mxu0 %v9887_v37  ;;  %v4029_v58 = vpop.f32.mrf.mxu0  ;;  %v953_v37 = vld [vmem:[%s13414_s2 + $0x410] sm:$0xff] }
 0x125   :  { %4379 = vmatpush1.bf16.msra.mxu1 %v10022_v36  ;;  %v4070_v53 = vpop.f32.mrf.mxu1  ;;  %4410 = vmatprep.mubr.bf16.mxu1 %v11477_v14  ;;  %v829_v36 = vld [vmem:[%s13414_s2 + $0x30] sm:$0xff] }
 0x126   :  { %4380 = vmatprep.subr.bf16.mxu1 %v10015_v38  ;;  %v12230_v57 = vadd.f32 %v4070_v53, %v4027_v50  ;;  %v4031_v2 = vpop.f32.mrf.mxu0  ;;  %v957_v38 = vld [vmem:[%s13414_s2 + $0x430] sm:$0xff]  ;;  %v9839_v42 = vcombine.high %v825_v35, %v829_v36 }
 0x127   :  { %v4072_v62 = vpop.f32.mrf.mxu1  ;;  %4338 = vmatpush1.bf16.msra.mxu0 %v9886_v47  ;;  %v9967_v43 = vcombine.high %v953_v37, %v957_v38  ;;  %v949_v45 = vld [vmem:[%s13414_s2 + $0x3f0] sm:$0xff] }
 0x128   :  { %v12239_v1 = vadd.f32 %v4072_v62, %v4029_v58  ;;  %4339 = vmatprep.subr.bf16.mxu0 %v9879_v52  ;;  %v1073_v47 = vld [vmem:[%s13414_s2 + $0x7d0] sm:$0xff]  ;;  %v9966_v52 = vcombine.low %v953_v37, %v957_v38  ;;  %v9959_v53 = vcombine.high %v945_v44, %v949_v45  ;;  %v9958_v61 = vcombine.low %v945_v44, %v949_v45 }
 0x129   :  { %4381 = vmatpush1.bf16.msra.mxu1 %v10014_v51  ;;  %v4074_v5 = vpop.f32.mrf.mxu1  ;;  %v1077_v50 = vld [vmem:[%s13414_s2 + $0x7f0] sm:$0xff]  ;;  %v9838_v51 = vcombine.low %v825_v35, %v829_v36 }
 0x12a   :  { %4382 = vmatprep.subr.bf16.mxu1 %v10007_v54  ;;  %v12247_v9 = vadd.f32 %v4074_v5, %v4031_v2  ;;  %v10087_v54 = vcombine.high %v1073_v47, %v1077_v50  ;;  %v1065_v58 = vld [vmem:[%s13414_s2 + $0x790] sm:$0xff]  ;;  %v10086_v62 = vcombine.low %v1073_v47, %v1077_v50 }
 0x12b   :  { %4340 = vmatpush1.bf16.msra.mxu0 %v9878_v0  ;;  %v9951_v0 = vcombine.high %v937_v55, %v941_v56  ;;  %v10079_v2 = vcombine.high %v1065_v58, %v1069_v59  ;;  %v1057_v5 = vld [vmem:[%s13414_s2 + $0x750] sm:$0xff]  ;;  %v10078_v8 = vcombine.low %v1065_v58, %v1069_v59 }
 0x12c   :  { %4341 = vmatprep.subr.bf16.mxu0 %v9871_v4  ;;  %v933_v4 = vld [vmem:[%s13414_s2 + $0x370] sm:$0xff] }
 0x12d   :  { %4383 = vmatpush1.bf16.msra.mxu1 %v10006_v3  ;;  %v929_v3 = vld [vmem:[%s13414_s2 + $0x350] sm:$0xff] }
 0x12e   :  { %4384 = vmatprep.subr.bf16.mxu1 %v9999_v6  ;;  %v1061_v6 = vld [vmem:[%s13414_s2 + $0x770] sm:$0xff]  ;;  %v9943_v10 = vcombine.high %v929_v3, %v933_v4  ;;  %v9942_v18 = vcombine.low %v929_v3, %v933_v4 }
 0x12f   :  { %4342 = vmatpush1.bf16.msra.mxu0 %v9870_v13  ;;  %v10071_v12 = vcombine.high %v1057_v5, %v1061_v6  ;;  %v921_v13 = vld [vmem:[%s13414_s2 + $0x310] sm:$0xff]  ;;  %v10070_v19 = vcombine.low %v1057_v5, %v1061_v6 }
 0x130   :  { %4343 = vmatprep.subr.bf16.mxu0 %v9863_v16  ;;  %v1049_v16 = vld [vmem:[%s13414_s2 + $0x710] sm:$0xff] }
 0x131   :  { %4385 = vmatpush1.bf16.msra.mxu1 %v9998_v15  ;;  %v925_v15 = vld [vmem:[%s13414_s2 + $0x330] sm:$0xff] }
 0x132   :  { %4386 = vmatprep.subr.bf16.mxu1 %v9991_v17  ;;  %v1053_v17 = vld [vmem:[%s13414_s2 + $0x730] sm:$0xff]  ;;  %v9935_v20 = vcombine.high %v921_v13, %v925_v15  ;;  %v9934_v26 = vcombine.low %v921_v13, %v925_v15 }
 0x133   :  { %4344 = vmatpush1.bf16.msra.mxu0 %v9862_v22  ;;  %v10063_v21 = vcombine.high %v1049_v16, %v1053_v17  ;;  %v913_v22 = vld [vmem:[%s13414_s2 + $0x2d0] sm:$0xff]  ;;  %v10062_v27 = vcombine.low %v1049_v16, %v1053_v17 }
 0x134   :  { %4345 = vmatprep.subr.bf16.mxu0 %v9855_v24  ;;  %v1041_v24 = vld [vmem:[%s13414_s2 + $0x6d0] sm:$0xff] }
 0x135   :  { %4387 = vmatpush1.bf16.msra.mxu1 %v9990_v23  ;;  %v917_v23 = vld [vmem:[%s13414_s2 + $0x2f0] sm:$0xff] }
 0x136   :  { %4388 = vmatprep.subr.bf16.mxu1 %v9983_v25  ;;  %v1045_v25 = vld [vmem:[%s13414_s2 + $0x6f0] sm:$0xff]  ;;  %v9927_v28 = vcombine.high %v913_v22, %v917_v23  ;;  %v9926_v35 = vcombine.low %v913_v22, %v917_v23 }
 0x137   :  { %4346 = vmatpush1.bf16.msra.mxu0 %v9854_v30  ;;  %v10055_v29 = vcombine.high %v1041_v24, %v1045_v25  ;;  %v905_v30 = vld [vmem:[%s13414_s2 + $0x290] sm:$0xff]  ;;  %v10054_v36 = vcombine.low %v1041_v24, %v1045_v25 }
 0x138   :  { %4347 = vmatprep.subr.bf16.mxu0 %v9847_v32  ;;  %v1033_v32 = vld [vmem:[%s13414_s2 + $0x690] sm:$0xff] }
 0x139   :  { %4389 = vmatpush1.bf16.msra.mxu1 %v9982_v31  ;;  %v909_v31 = vld [vmem:[%s13414_s2 + $0x2b0] sm:$0xff] }
 0x13a   :  { %4390 = vmatprep.subr.bf16.mxu1 %v9975_v33  ;;  %v1037_v33 = vld [vmem:[%s13414_s2 + $0x6b0] sm:$0xff]  ;;  %v9919_v37 = vcombine.high %v905_v30, %v909_v31  ;;  %v9918_v44 = vcombine.low %v905_v30, %v909_v31 }
 0x13b   :  { %4348 = vmatpush1.bf16.msra.mxu0 %v9846_v40  ;;  %v10047_v38 = vcombine.high %v1033_v32, %v1037_v33  ;;  %v897_v40 = vld [vmem:[%s13414_s2 + $0x250] sm:$0xff]  ;;  %v10046_v45 = vcombine.low %v1033_v32, %v1037_v33 }
 0x13c   :  { %4349 = vmatprep.subr.bf16.mxu0 %v9839_v42  ;;  %v1025_v42 = vld [vmem:[%s13414_s2 + $0x650] sm:$0xff] }
 0x13d   :  { %4391 = vmatpush1.bf16.msra.mxu1 %v9974_v41  ;;  %v901_v41 = vld [vmem:[%s13414_s2 + $0x270] sm:$0xff] }
 0x13e   :  { %4392 = vmatprep.subr.bf16.mxu1 %v9967_v43  ;;  %v1029_v43 = vld [vmem:[%s13414_s2 + $0x670] sm:$0xff]  ;;  %v9911_v47 = vcombine.high %v897_v40, %v901_v41  ;;  %v9910_v55 = vcombine.low %v897_v40, %v901_v41 }
 0x13f   :  { %4350 = vmatpush1.bf16.msra.mxu0 %v9838_v51  ;;  %v10039_v50 = vcombine.high %v1025_v42, %v1029_v43  ;;  %v889_v51 = vld [vmem:[%s13414_s2 + $0x210] sm:$0xff]  ;;  %v10038_v56 = vcombine.low %v1025_v42, %v1029_v43 }
 0x140   :  { %4351 = vmatprep.subr.bf16.mxu0 %v9959_v53  ;;  %v1017_v53 = vld [vmem:[%s13414_s2 + $0x610] sm:$0xff] }
 0x141   :  { %4393 = vmatpush1.bf16.msra.mxu1 %v9966_v52  ;;  %v893_v52 = vld [vmem:[%s13414_s2 + $0x230] sm:$0xff] }
 0x142   :  { %4394 = vmatprep.subr.bf16.mxu1 %v10087_v54  ;;  %v1021_v54 = vld [vmem:[%s13414_s2 + $0x630] sm:$0xff]  ;;  %v9903_v58 = vcombine.high %v889_v51, %v893_v52  ;;  %v9902_v3 = vcombine.low %v889_v51, %v893_v52 }
 0x143   :  { %4352 = vmatpush2.bf16.msra.mxu0 %v9958_v61  ;;  %v10031_v59 = vcombine.high %v1017_v53, %v1021_v54  ;;  %v1137_v61 = vld [vmem:[%s13414_s2 + $0x9d0] sm:$0xff]  ;;  %v10030_v4 = vcombine.low %v1017_v53, %v1021_v54 }
 0x144   :  { %4353 = vmatprep.subr.bf16.mxu0 %v9951_v0  ;;  %v1265_v0 = vld [vmem:[%s13414_s2 + $0xdd0] sm:$0xff] }
 0x145   :  { %4395 = vmatpush2.bf16.msra.mxu1 %v10086_v62  ;;  %v1141_v62 = vld [vmem:[%s13414_s2 + $0x9f0] sm:$0xff] }
 0x146   :  { %4396 = vmatprep.subr.bf16.mxu1 %v10079_v2  ;;  %v1269_v2 = vld [vmem:[%s13414_s2 + $0xdf0] sm:$0xff]  ;;  %v10151_v5 = vcombine.high %v1137_v61, %v1141_v62  ;;  %v10150_v13 = vcombine.low %v1137_v61, %v1141_v62 }
 0x147   :  { %4354 = vmatpush2.bf16.msra.mxu0 %v9950_v7  ;;  %v10279_v6 = vcombine.high %v1265_v0, %v1269_v2  ;;  %v1129_v7 = vld [vmem:[%s13414_s2 + $0x990] sm:$0xff]  ;;  %v10278_v15 = vcombine.low %v1265_v0, %v1269_v2 }
 0x148   :  { %4355 = vmatprep.subr.bf16.mxu0 %v9943_v10  ;;  %v1257_v10 = vld [vmem:[%s13414_s2 + $0xd90] sm:$0xff] }
 0x149   :  { %4397 = vmatpush2.bf16.msra.mxu1 %v10078_v8  ;;  %v1133_v8 = vld [vmem:[%s13414_s2 + $0x9b0] sm:$0xff] }
 0x14a   :  { %4398 = vmatprep.subr.bf16.mxu1 %v10071_v12  ;;  %v1261_v12 = vld [vmem:[%s13414_s2 + $0xdb0] sm:$0xff]  ;;  %v10143_v16 = vcombine.high %v1129_v7, %v1133_v8  ;;  %v10142_v22 = vcombine.low %v1129_v7, %v1133_v8 }
 0x14b   :  { %4356 = vmatpush2.bf16.msra.mxu0 %v9942_v18  ;;  %v10271_v17 = vcombine.high %v1257_v10, %v1261_v12  ;;  %v1121_v18 = vld [vmem:[%s13414_s2 + $0x950] sm:$0xff]  ;;  %v10270_v23 = vcombine.low %v1257_v10, %v1261_v12 }
 0x14c   :  { %4357 = vmatprep.subr.bf16.mxu0 %v9935_v20  ;;  %v1249_v20 = vld [vmem:[%s13414_s2 + $0xd50] sm:$0xff] }
 0x14d   :  { %4399 = vmatpush2.bf16.msra.mxu1 %v10070_v19  ;;  %v1125_v19 = vld [vmem:[%s13414_s2 + $0x970] sm:$0xff] }
 0x14e   :  { %4400 = vmatprep.subr.bf16.mxu1 %v10063_v21  ;;  %v1253_v21 = vld [vmem:[%s13414_s2 + $0xd70] sm:$0xff]  ;;  %v10135_v24 = vcombine.high %v1121_v18, %v1125_v19  ;;  %v10134_v30 = vcombine.low %v1121_v18, %v1125_v19 }
 0x14f   :  { %4358 = vmatpush2.bf16.msra.mxu0 %v9934_v26  ;;  %v10263_v25 = vcombine.high %v1249_v20, %v1253_v21  ;;  %v1113_v26 = vld [vmem:[%s13414_s2 + $0x910] sm:$0xff]  ;;  %v10262_v31 = vcombine.low %v1249_v20, %v1253_v21 }
 0x150   :  { %4359 = vmatprep.subr.bf16.mxu0 %v9927_v28  ;;  %v1241_v28 = vld [vmem:[%s13414_s2 + $0xd10] sm:$0xff] }
 0x151   :  { %4401 = vmatpush2.bf16.msra.mxu1 %v10062_v27  ;;  %v1117_v27 = vld [vmem:[%s13414_s2 + $0x930] sm:$0xff] }
 0x152   :  { %4402 = vmatprep.subr.bf16.mxu1 %v10055_v29  ;;  %v1245_v29 = vld [vmem:[%s13414_s2 + $0xd30] sm:$0xff]  ;;  %v10127_v32 = vcombine.high %v1113_v26, %v1117_v27  ;;  %v10126_v40 = vcombine.low %v1113_v26, %v1117_v27 }
 0x153   :  { %4360 = vmatpush2.bf16.msra.mxu0 %v9926_v35  ;;  %v10255_v33 = vcombine.high %v1241_v28, %v1245_v29  ;;  %v1105_v35 = vld [vmem:[%s13414_s2 + $0x8d0] sm:$0xff]  ;;  %v10254_v41 = vcombine.low %v1241_v28, %v1245_v29 }
 0x154   :  { %4361 = vmatprep.subr.bf16.mxu0 %v9919_v37  ;;  %v1233_v37 = vld [vmem:[%s13414_s2 + $0xcd0] sm:$0xff] }
 0x155   :  { %4403 = vmatpush2.bf16.msra.mxu1 %v10054_v36  ;;  %v1109_v36 = vld [vmem:[%s13414_s2 + $0x8f0] sm:$0xff] }
 0x156   :  { %4404 = vmatprep.subr.bf16.mxu1 %v10047_v38  ;;  %v1237_v38 = vld [vmem:[%s13414_s2 + $0xcf0] sm:$0xff]  ;;  %v10119_v42 = vcombine.high %v1105_v35, %v1109_v36  ;;  %v10118_v51 = vcombine.low %v1105_v35, %v1109_v36 }
 0x157   :  { %4362 = vmatpush2.bf16.msra.mxu0 %v9918_v44  ;;  %v10247_v43 = vcombine.high %v1233_v37, %v1237_v38  ;;  %v1097_v44 = vld [vmem:[%s13414_s2 + $0x890] sm:$0xff]  ;;  %v10246_v52 = vcombine.low %v1233_v37, %v1237_v38 }
 0x158   :  { %4363 = vmatprep.subr.bf16.mxu0 %v9911_v47  ;;  %v1225_v47 = vld [vmem:[%s13414_s2 + $0xc90] sm:$0xff] }
 0x159   :  { %4405 = vmatpush2.bf16.msra.mxu1 %v10046_v45  ;;  %v1101_v45 = vld [vmem:[%s13414_s2 + $0x8b0] sm:$0xff] }
 0x15a   :  { %4406 = vmatprep.subr.bf16.mxu1 %v10039_v50  ;;  %v1229_v50 = vld [vmem:[%s13414_s2 + $0xcb0] sm:$0xff]  ;;  %v10111_v53 = vcombine.high %v1097_v44, %v1101_v45  ;;  %v10110_v61 = vcombine.low %v1097_v44, %v1101_v45 }
 0x15b   :  { %4364 = vmatpush2.bf16.msra.mxu0 %v9910_v55  ;;  %v10239_v54 = vcombine.high %v1225_v47, %v1229_v50  ;;  %v1089_v55 = vld [vmem:[%s13414_s2 + $0x850] sm:$0xff]  ;;  %v10238_v62 = vcombine.low %v1225_v47, %v1229_v50 }
 0x15c   :  { %4365 = vmatprep.subr.bf16.mxu0 %v9903_v58  ;;  %v1217_v58 = vld [vmem:[%s13414_s2 + $0xc50] sm:$0xff] }
 0x15d   :  { %4407 = vmatpush2.bf16.msra.mxu1 %v10038_v56  ;;  %v1093_v56 = vld [vmem:[%s13414_s2 + $0x870] sm:$0xff] }
 0x15e   :  { %4408 = vmatprep.subr.bf16.mxu1 %v10031_v59  ;;  %v1221_v59 = vld [vmem:[%s13414_s2 + $0xc70] sm:$0xff]  ;;  %v10103_v0 = vcombine.high %v1089_v55, %v1093_v56  ;;  %v10102_v7 = vcombine.low %v1089_v55, %v1093_v56 }
 0x15f   :  { %4366 = vmatpush2.bf16.msra.mxu0 %v9902_v3  ;;  %v10231_v2 = vcombine.high %v1217_v58, %v1221_v59  ;;  %v1081_v3 = vld [vmem:[%s13414_s2 + $0x810] sm:$0xff]  ;;  %v10230_v8 = vcombine.low %v1217_v58, %v1221_v59 }
 0x160   :  { %4421 = vmatprep.subr.bf16.mxu0 %v10151_v5  ;;  %v1209_v5 = vld [vmem:[%s13414_s2 + $0xc10] sm:$0xff] }
 0x161   :  { %4409 = vmatpush2.bf16.msra.mxu1 %v10030_v4  ;;  %v1085_v4 = vld [vmem:[%s13414_s2 + $0x830] sm:$0xff] }
 0x162   :  { %4464 = vmatprep.subr.bf16.mxu1 %v10279_v6  ;;  %4368 = vmatmul.mubr.bf16.vlgmr.msra.gmra.mxu0 %v11595_v34  ;;  %v1213_v6 = vld [vmem:[%s13414_s2 + $0xc30] sm:$0xff]  ;;  %v10095_v10 = vcombine.high %v1081_v3, %v1085_v4  ;;  %v10094_v18 = vcombine.low %v1081_v3, %v1085_v4 }
 0x163   :  { %4422 = vmatpush1.bf16.msra.mxu0 %v10150_v13  ;;  %4453 = vmatprep.mubr.bf16.mxu0 %v11611_v46  ;;  %v10223_v12 = vcombine.high %v1209_v5, %v1213_v6  ;;  %v1201_v13 = vld [vmem:[%s13414_s2 + $0xbd0] sm:$0xff]  ;;  %v10222_v19 = vcombine.low %v1209_v5, %v1213_v6 }
 0x164   :  { %4411 = vmatmul.mubr.bf16.vlgmr.msra.gmra.mxu1 %v11603_v39  ;;  %4423 = vmatprep.subr.bf16.mxu0 %v10143_v16  ;;  %v1329_v16 = vld [vmem:[%s13414_s2 + $0xfd0] sm:$0xff] }
 0x165   :  { %4465 = vmatpush1.bf16.msra.mxu1 %v10278_v15  ;;  %4496 = vmatprep.mubr.bf16.mxu1 %v11620_v49  ;;  %v1205_v15 = vld [vmem:[%s13414_s2 + $0xbf0] sm:$0xff] }
 0x166   :  { %4466 = vmatprep.subr.bf16.mxu1 %v10271_v17  ;;  %v1333_v17 = vld [vmem:[%s13414_s2 + $0xff0] sm:$0xff]  ;;  %v10215_v20 = vcombine.high %v1201_v13, %v1205_v15  ;;  %v10214_v26 = vcombine.low %v1201_v13, %v1205_v15  ;;  %v12571_v15 = vpop.f32.mrf.mxu0 }
 0x167   :  { %4424 = vmatpush1.bf16.msra.mxu0 %v10142_v22  ;;  %v10343_v21 = vcombine.high %v1329_v16, %v1333_v17  ;;  %v1193_v22 = vld [vmem:[%s13414_s2 + $0xb90] sm:$0xff]  ;;  %v10342_v27 = vcombine.low %v1329_v16, %v1333_v17 }
 0x168   :  { %4425 = vmatprep.subr.bf16.mxu0 %v10135_v24  ;;  %v1321_v24 = vld [vmem:[%s13414_s2 + $0xf90] sm:$0xff] }
 0x169   :  { %4467 = vmatpush1.bf16.msra.mxu1 %v10270_v23  ;;  %v1197_v23 = vld [vmem:[%s13414_s2 + $0xbb0] sm:$0xff] }
 0x16a   :  { %4468 = vmatprep.subr.bf16.mxu1 %v10263_v25  ;;  %v1325_v25 = vld [vmem:[%s13414_s2 + $0xfb0] sm:$0xff]  ;;  %v10207_v28 = vcombine.high %v1193_v22, %v1197_v23  ;;  %v10206_v35 = vcombine.low %v1193_v22, %v1197_v23 }
 0x16b   :  { %4426 = vmatpush1.bf16.msra.mxu0 %v10134_v30  ;;  %v10335_v29 = vcombine.high %v1321_v24, %v1325_v25  ;;  %v1185_v30 = vld [vmem:[%s13414_s2 + $0xb50] sm:$0xff]  ;;  %v10334_v36 = vcombine.low %v1321_v24, %v1325_v25  ;;  %v12587_v25 = vpop.f32.mrf.mxu0 }
 0x16c   :  { %4427 = vmatprep.subr.bf16.mxu0 %v10127_v32  ;;  %v1313_v32 = vld [vmem:[%s13414_s2 + $0xf50] sm:$0xff] }
 0x16d   :  { %4469 = vmatpush1.bf16.msra.mxu1 %v10262_v31  ;;  %v1189_v31 = vld [vmem:[%s13414_s2 + $0xb70] sm:$0xff] }
 0x16e   :  { %4470 = vmatprep.subr.bf16.mxu1 %v10255_v33  ;;  %v1317_v33 = vld [vmem:[%s13414_s2 + $0xf70] sm:$0xff]  ;;  %v10199_v37 = vcombine.high %v1185_v30, %v1189_v31  ;;  %v10198_v44 = vcombine.low %v1185_v30, %v1189_v31  ;;  %v882_v30 = vld [vmem:[%s13414_s2 + $0x1d8] sm:$0xff] }
 0x16f   :  { %4428 = vmatpush1.bf16.msra.mxu0 %v10126_v40  ;;  %v10327_v38 = vcombine.high %v1313_v32, %v1317_v33  ;;  %v1177_v40 = vld [vmem:[%s13414_s2 + $0xb10] sm:$0xff]  ;;  %v10326_v45 = vcombine.low %v1313_v32, %v1317_v33  ;;  %v886_v31 = vld [vmem:[%s13414_s2 + $0x1f8] sm:$0xff] }
 0x170   :  { %4429 = vmatprep.subr.bf16.mxu0 %v10119_v42  ;;  %v1305_v42 = vld [vmem:[%s13414_s2 + $0xf10] sm:$0xff]  ;;  %v1010_v32 = vld [vmem:[%s13414_s2 + $0x5d8] sm:$0xff] }
 0x171   :  { %4471 = vmatpush1.bf16.msra.mxu1 %v10254_v41  ;;  %v1181_v41 = vld [vmem:[%s13414_s2 + $0xb30] sm:$0xff]  ;;  %v1014_v33 = vld [vmem:[%s13414_s2 + $0x5f8] sm:$0xff] }
 0x172   :  { %4472 = vmatprep.subr.bf16.mxu1 %v10247_v43  ;;  %v1309_v43 = vld [vmem:[%s13414_s2 + $0xf30] sm:$0xff]  ;;  %v10191_v47 = vcombine.high %v1177_v40, %v1181_v41  ;;  %v10190_v55 = vcombine.low %v1177_v40, %v1181_v41  ;;  %v10025_v41 = vcombine.high %v1010_v32, %v1014_v33 }
 0x173   :  { %4430 = vmatpush1.bf16.msra.mxu0 %v10118_v51  ;;  %v10319_v50 = vcombine.high %v1305_v42, %v1309_v43  ;;  %v1169_v51 = vld [vmem:[%s13414_s2 + $0xad0] sm:$0xff]  ;;  %v10318_v56 = vcombine.low %v1305_v42, %v1309_v43  ;;  %v874_v42 = vld [vmem:[%s13414_s2 + $0x198] sm:$0xff] }
 0x174   :  { %4431 = vmatprep.subr.bf16.mxu0 %v10111_v53  ;;  %v1297_v53 = vld [vmem:[%s13414_s2 + $0xed0] sm:$0xff]  ;;  %v878_v43 = vld [vmem:[%s13414_s2 + $0x1b8] sm:$0xff] }
 0x175   :  { %4473 = vmatpush1.bf16.msra.mxu1 %v10246_v52  ;;  %v1173_v52 = vld [vmem:[%s13414_s2 + $0xaf0] sm:$0xff] }
 0x176   :  { %4474 = vmatprep.subr.bf16.mxu1 %v10239_v54  ;;  %v1301_v54 = vld [vmem:[%s13414_s2 + $0xef0] sm:$0xff]  ;;  %v10183_v58 = vcombine.high %v1169_v51, %v1173_v52  ;;  %v10182_v3 = vcombine.low %v1169_v51, %v1173_v52  ;;  %v10024_v51 = vcombine.low %v1010_v32, %v1014_v33  ;;  %v9889_v52 = vcombine.high %v874_v42, %v878_v43 }
 0x177   :  { %4432 = vmatpush1.bf16.msra.mxu0 %v10110_v61  ;;  %v10311_v59 = vcombine.high %v1297_v53, %v1301_v54  ;;  %v1161_v61 = vld [vmem:[%s13414_s2 + $0xa90] sm:$0xff]  ;;  %v10310_v4 = vcombine.low %v1297_v53, %v1301_v54 }
 0x178   :  { %4433 = vmatprep.subr.bf16.mxu0 %v10103_v0  ;;  %v1289_v0 = vld [vmem:[%s13414_s2 + $0xe90] sm:$0xff] }
 0x179   :  { %4475 = vmatpush1.bf16.msra.mxu1 %v10238_v62  ;;  %v1165_v62 = vld [vmem:[%s13414_s2 + $0xab0] sm:$0xff] }
 0x17a   :  { %4476 = vmatprep.subr.bf16.mxu1 %v10231_v2  ;;  %v1293_v2 = vld [vmem:[%s13414_s2 + $0xeb0] sm:$0xff]  ;;  %v10175_v5 = vcombine.high %v1161_v61, %v1165_v62  ;;  %v10174_v13 = vcombine.low %v1161_v61, %v1165_v62  ;;  %v998_v61 = vld [vmem:[%s13414_s2 + $0x578] sm:$0xff] }
 0x17b   :  { %4434 = vmatpush1.bf16.msra.mxu0 %v10102_v7  ;;  %v10303_v6 = vcombine.high %v1289_v0, %v1293_v2  ;;  %v1153_v7 = vld [vmem:[%s13414_s2 + $0xa50] sm:$0xff]  ;;  %v10302_v16 = vcombine.low %v1289_v0, %v1293_v2  ;;  %v9888_v0 = vcombine.low %v874_v42, %v878_v43  ;;  %v970_v42 = vld [vmem:[%s13414_s2 + $0x498] sm:$0xff] }
 0x17c   :  { %4435 = vmatprep.subr.bf16.mxu0 %v10095_v10  ;;  %v1281_v10 = vld [vmem:[%s13414_s2 + $0xe50] sm:$0xff]  ;;  %v974_v43 = vld [vmem:[%s13414_s2 + $0x4b8] sm:$0xff] }
 0x17d   :  { %4477 = vmatpush1.bf16.msra.mxu1 %v10230_v8  ;;  %v1157_v8 = vld [vmem:[%s13414_s2 + $0xa70] sm:$0xff] }
 0x17e   :  { %4478 = vmatprep.subr.bf16.mxu1 %v10223_v12  ;;  %v1285_v12 = vld [vmem:[%s13414_s2 + $0xe70] sm:$0xff]  ;;  %v10167_v17 = vcombine.high %v1153_v7, %v1157_v8  ;;  %v10166_v24 = vcombine.low %v1153_v7, %v1157_v8  ;;  %v858_v8 = vld [vmem:[%s13414_s2 + $0x118] sm:$0xff] }
 0x17f   :  { %4436 = vmatpush1.bf16.msra.mxu0 %v10094_v18  ;;  %v12573_v18 = vpop.f32.mrf.mxu1  ;;  %v1273_v22 = vld [vmem:[%s13414_s2 + $0xe10] sm:$0xff] }
 0x180   :  { %4437 = vmatprep.subr.bf16.mxu0 %v10215_v20  ;;  %v1145_v20 = vld [vmem:[%s13414_s2 + $0xa10] sm:$0xff] }
 0x181   :  { %4479 = vmatpush1.bf16.msra.mxu1 %v10222_v19  ;;  %v10295_v19 = vcombine.high %v1281_v10, %v1285_v12  ;;  %v1277_v23 = vld [vmem:[%s13414_s2 + $0xe30] sm:$0xff] }
 0x182   :  { %4480 = vmatprep.subr.bf16.mxu1 %v10343_v21  ;;  %v1149_v21 = vld [vmem:[%s13414_s2 + $0xa30] sm:$0xff] }
 0x183   :  { %4438 = vmatpush2.bf16.msra.mxu0 %v10214_v26  ;;  %v10294_v26 = vcombine.low %v1281_v10, %v1285_v12  ;;  %v862_v10 = vld [vmem:[%s13414_s2 + $0x138] sm:$0xff] }
 0x184   :  { %4439 = vmatprep.subr.bf16.mxu0 %v10207_v28  ;;  %v12589_v28 = vpop.f32.mrf.mxu1  ;;  %v9872_v32 = vcombine.low %v858_v8, %v862_v10 }
 0x185   :  { %4481 = vmatpush2.bf16.msra.mxu1 %v10342_v27  ;;  %v10159_v27 = vcombine.high %v1145_v20, %v1149_v21 }
 0x186   :  { %4482 = vmatprep.subr.bf16.mxu1 %v10335_v29  ;;  %v10287_v29 = vcombine.high %v1273_v22, %v1277_v23  ;;  %v12605_v40 = vpop.f32.mrf.mxu1 }
 0x187   :  { %4440 = vmatpush2.bf16.msra.mxu0 %v10206_v35  ;;  %v10158_v35 = vcombine.low %v1145_v20, %v1149_v21 }
 0x188   :  { %4441 = vmatprep.subr.bf16.mxu0 %v10199_v37  ;;  %v10286_v37 = vcombine.low %v1273_v22, %v1277_v23  ;;  %v12621_v53 = vpop.f32.mrf.mxu1  ;;  %v9873_v23 = vcombine.high %v858_v8, %v862_v10 }
 0x189   :  { %4483 = vmatpush2.bf16.msra.mxu1 %v10334_v36  ;;  %v12603_v36 = vpop.f32.mrf.mxu0 }
 0x18a   :  { %4484 = vmatprep.subr.bf16.mxu1 %v10327_v38  ;;  %v9897_v38 = vcombine.high %v882_v30, %v886_v31 }
 0x18b   :  { %4442 = vmatpush2.bf16.msra.mxu0 %v10198_v44  ;;  %v1002_v44 = vld [vmem:[%s13414_s2 + $0x598] sm:$0xff] }
 0x18c   :  { %4443 = vmatprep.subr.bf16.mxu0 %v10191_v47  ;;  %v9896_v47 = vcombine.low %v882_v30, %v886_v31  ;;  %v978_v30 = vld [vmem:[%s13414_s2 + $0x4d8] sm:$0xff] }
 0x18d   :  { %4485 = vmatpush2.bf16.msra.mxu1 %v10326_v45  ;;  %v1006_v45 = vld [vmem:[%s13414_s2 + $0x5b8] sm:$0xff] }
 0x18e   :  { %4486 = vmatprep.subr.bf16.mxu1 %v10319_v50  ;;  %v12619_v50 = vpop.f32.mrf.mxu0  ;;  %v10017_v54 = vcombine.high %v1002_v44, %v1006_v45  ;;  %v982_v31 = vld [vmem:[%s13414_s2 + $0x4f8] sm:$0xff] }
 0x18f   :  { %4444 = vmatpush2.bf16.msra.mxu0 %v10190_v55  ;;  %v866_v55 = vld [vmem:[%s13414_s2 + $0x158] sm:$0xff] }
 0x190   :  { %4445 = vmatprep.subr.bf16.mxu0 %v10183_v58 }
 0x191   :  { %4487 = vmatpush2.bf16.msra.mxu1 %v10318_v56  ;;  %v870_v56 = vld [vmem:[%s13414_s2 + $0x178] sm:$0xff] }
 0x192   :  { %4488 = vmatprep.subr.bf16.mxu1 %v10311_v59  ;;  %v994_v59 = vld [vmem:[%s13414_s2 + $0x558] sm:$0xff]  ;;  %v9880_v20 = vcombine.low %v866_v55, %v870_v56 }
 0x193   :  { %4446 = vmatpush2.bf16.msra.mxu0 %v10182_v3  ;;  %v10009_v7 = vcombine.high %v994_v59, %v998_v61  ;;  %v10008_v22 = vcombine.low %v994_v59, %v998_v61  ;;  %v9984_v59 = vcombine.low %v970_v42, %v974_v43 }
 0x194   :  { %4447 = vmatprep.subr.bf16.mxu0 %v10175_v5  ;;  %v9881_v5 = vcombine.high %v866_v55, %v870_v56  ;;  %v962_v55 = vld [vmem:[%s13414_s2 + $0x458] sm:$0xff] }
 0x195   :  { %4489 = vmatpush2.bf16.msra.mxu1 %v10310_v4  ;;  %v10016_v4 = vcombine.low %v1002_v44, %v1006_v45  ;;  %v9992_v45 = vcombine.low %v978_v30, %v982_v31  ;;  %v966_v56 = vld [vmem:[%s13414_s2 + $0x478] sm:$0xff] }
 0x196   :  { %4490 = vmatprep.subr.bf16.mxu1 %v10303_v6 }
 0x197   :  { %4448 = vmatpush2.bf16.msra.mxu0 %v10174_v13 }
 0x198   :  { %4449 = vmatprep.subr.bf16.mxu0 %v10167_v17  ;;  %v990_v17 = vld [vmem:[%s13414_s2 + $0x538] sm:$0xff] }
 0x199   :  { %4491 = vmatpush2.bf16.msra.mxu1 %v10302_v16  ;;  %v986_v16 = vld [vmem:[%s13414_s2 + $0x518] sm:$0xff] }
 0x19a   :  { %4492 = vmatprep.subr.bf16.mxu1 %v10295_v19  ;;  %v10000_v33 = vcombine.low %v986_v16, %v990_v17 }
 0x19b   :  { %4450 = vmatpush2.bf16.msra.mxu0 %v10166_v24 }
 0x19c   :  { %4451 = vmatprep.subr.bf16.mxu0 %v10159_v27  ;;  %v850_v27 = vld [vmem:[%s13414_s2 + $0xd8] sm:$0xff] }
 0x19d   :  { %4493 = vmatpush2.bf16.msra.mxu1 %v10294_v26  ;;  %v10001_v26 = vcombine.high %v986_v16, %v990_v17  ;;  %v950_v16 = vld [vmem:[%s13414_s2 + $0x3f8] sm:$0xff] }
 0x19e   :  { %4494 = vmatprep.subr.bf16.mxu1 %v10287_v29  ;;  %v1074_v17 = vld [vmem:[%s13414_s2 + $0x7d8] sm:$0xff] }
 0x19f   :  { %4452 = vmatpush2.bf16.msra.mxu0 %v10158_v35 }
 0x1a0   :  { %4507 = vmatprep.subr.bf16.mxu0 %v9897_v38  ;;  %v842_v38 = vld [vmem:[%s13414_s2 + $0x98] sm:$0xff] }
 0x1a1   :  { %4495 = vmatpush2.bf16.msra.mxu1 %v10286_v37  ;;  %v9993_v37 = vcombine.high %v978_v30, %v982_v31 }
 0x1a2   :  { %4550 = vmatprep.subr.bf16.mxu1 %v10025_v41  ;;  %v4197_v58 = vpop.f32.mrf.mxu0  ;;  %4454 = vmatmul.mubr.bf16.vlgmr.msra.gmra.mxu0 %v11805_v60  ;;  %v846_v41 = vld [vmem:[%s13414_s2 + $0xb8] sm:$0xff] }
 0x1a3   :  { %4508 = vmatpush1.bf16.msra.mxu0 %v9896_v47  ;;  %4539 = vmatprep.mubr.bf16.mxu0 %v11475_v11  ;;  %v9857_v47 = vcombine.high %v842_v38, %v846_v41 }
 0x1a4   :  { %v4240_v62 = vpop.f32.mrf.mxu1  ;;  %4497 = vmatmul.mubr.bf16.vlgmr.msra.gmra.mxu1 %v11813_v63  ;;  %v4199_v3 = vpop.f32.mrf.mxu0  ;;  %4509 = vmatprep.subr.bf16.mxu0 %v9889_v52  ;;  %v834_v52 = vld [vmem:[%s13414_s2 + $0x58] sm:$0xff] }
 0x1a5   :  { %v12637_v2 = vadd.f32 %v4240_v62, %v4197_v58  ;;  %4551 = vmatpush1.bf16.msra.mxu1 %v10024_v51  ;;  %4582 = vmatprep.mubr.bf16.mxu1 %v11477_v14  ;;  %v854_v14 = vld [vmem:[%s13414_s2 + $0xf8] sm:$0xff]  ;;  %v9985_v51 = vcombine.high %v970_v42, %v974_v43  ;;  %v9856_v58 = vcombine.low %v842_v38, %v846_v41 }
 0x1a6   :  { %v4242_v6 = vpop.f32.mrf.mxu1  ;;  %4552 = vmatprep.subr.bf16.mxu1 %v10017_v54  ;;  %v4201_v13 = vpop.f32.mrf.mxu0  ;;  %v9865_v35 = vcombine.high %v850_v27, %v854_v14  ;;  %v9864_v44 = vcombine.low %v850_v27, %v854_v14  ;;  %v838_v54 = vld [vmem:[%s13414_s2 + $0x78] sm:$0xff]  ;;  %v9977_v62 = vcombine.high %v962_v55, %v966_v56 }
 0x1a7   :  { %v12646_v12 = vadd.f32 %v4242_v6, %v4199_v3  ;;  %4510 = vmatpush1.bf16.msra.mxu0 %v9888_v0  ;;  %v9849_v61 = vcombine.high %v834_v52, %v838_v54  ;;  %v826_v0 = vld [vmem:[%s13414_s2 + $0x18] sm:$0xff]  ;;  %v9848_v6 = vcombine.low %v834_v52, %v838_v54 }
 0x1a8   :  { %v4244_v19 = vpop.f32.mrf.mxu1  ;;  %v4203_v11 = vpop.f32.mrf.mxu0  ;;  %4511 = vmatprep.subr.bf16.mxu0 %v9881_v5  ;;  %v830_v3 = vld [vmem:[%s13414_s2 + $0x38] sm:$0xff] }
 0x1a9   :  { %v12655_v21 = vadd.f32 %v4244_v19, %v4201_v13  ;;  %4553 = vmatpush1.bf16.msra.mxu1 %v10016_v4  ;;  %v954_v4 = vld [vmem:[%s13414_s2 + $0x418] sm:$0xff]  ;;  %v9841_v8 = vcombine.high %v826_v0, %v830_v3 }
 0x1aa   :  { %v4246_v24 = vpop.f32.mrf.mxu1  ;;  %4554 = vmatprep.subr.bf16.mxu1 %v10009_v7  ;;  %v958_v5 = vld [vmem:[%s13414_s2 + $0x438] sm:$0xff]  ;;  %v9976_v7 = vcombine.low %v962_v55, %v966_v56 }
 0x1ab   :  { %v12663_v29 = vadd.f32 %v4246_v24, %v4203_v11  ;;  %4512 = vmatpush1.bf16.msra.mxu0 %v9880_v20  ;;  %v9969_v10 = vcombine.high %v954_v4, %v958_v5  ;;  %v946_v13 = vld [vmem:[%s13414_s2 + $0x3d8] sm:$0xff]  ;;  %v9840_v20 = vcombine.low %v826_v0, %v830_v3  ;;  %v9968_v11 = vcombine.low %v954_v4, %v958_v5 }
 0x1ac   :  { %4513 = vmatprep.subr.bf16.mxu0 %v9873_v23  ;;  %v1078_v19 = vld [vmem:[%s13414_s2 + $0x7f8] sm:$0xff]  ;;  %v9960_v30 = vcombine.low %v946_v13, %v950_v16 }
 0x1ad   :  { %4555 = vmatpush1.bf16.msra.mxu1 %v10008_v22  ;;  %v9961_v22 = vcombine.high %v946_v13, %v950_v16  ;;  %v10089_v23 = vcombine.high %v1074_v17, %v1078_v19  ;;  %v938_v24 = vld [vmem:[%s13414_s2 + $0x398] sm:$0xff]  ;;  %v10088_v31 = vcombine.low %v1074_v17, %v1078_v19 }
 0x1ae   :  { %4556 = vmatprep.subr.bf16.mxu1 %v10001_v26  ;;  %v942_v26 = vld [vmem:[%s13414_s2 + $0x3b8] sm:$0xff] }
 0x1af   :  { %4514 = vmatpush1.bf16.msra.mxu0 %v9872_v32  ;;  %v1066_v27 = vld [vmem:[%s13414_s2 + $0x798] sm:$0xff]  ;;  %v9953_v32 = vcombine.high %v938_v24, %v942_v26  ;;  %v9952_v42 = vcombine.low %v938_v24, %v942_v26 }
 0x1b0   :  { %4515 = vmatprep.subr.bf16.mxu0 %v9865_v35  ;;  %v1070_v14 = vld [vmem:[%s13414_s2 + $0x7b8] sm:$0xff] }
 0x1b1   :  { %4557 = vmatpush1.bf16.msra.mxu1 %v10000_v33  ;;  %v10081_v33 = vcombine.high %v1066_v27, %v1070_v14  ;;  %v930_v35 = vld [vmem:[%s13414_s2 + $0x358] sm:$0xff]  ;;  %v10080_v43 = vcombine.low %v1066_v27, %v1070_v14 }
 0x1b2   :  { %4558 = vmatprep.subr.bf16.mxu1 %v9993_v37  ;;  %v934_v37 = vld [vmem:[%s13414_s2 + $0x378] sm:$0xff] }
 0x1b3   :  { %4516 = vmatpush1.bf16.msra.mxu0 %v9864_v44  ;;  %v1058_v38 = vld [vmem:[%s13414_s2 + $0x758] sm:$0xff]  ;;  %v9945_v44 = vcombine.high %v930_v35, %v934_v37  ;;  %v9944_v55 = vcombine.low %v930_v35, %v934_v37 }
 0x1b4   :  { %4517 = vmatprep.subr.bf16.mxu0 %v9857_v47  ;;  %v1062_v41 = vld [vmem:[%s13414_s2 + $0x778] sm:$0xff] }
 0x1b5   :  { %4559 = vmatpush1.bf16.msra.mxu1 %v9992_v45  ;;  %v10073_v45 = vcombine.high %v1058_v38, %v1062_v41  ;;  %v922_v47 = vld [vmem:[%s13414_s2 + $0x318] sm:$0xff]  ;;  %v10072_v56 = vcombine.low %v1058_v38, %v1062_v41 }
 0x1b6   :  { %4560 = vmatprep.subr.bf16.mxu1 %v9985_v51  ;;  %v926_v51 = vld [vmem:[%s13414_s2 + $0x338] sm:$0xff] }
 0x1b7   :  { %4518 = vmatpush1.bf16.msra.mxu0 %v9856_v58  ;;  %v1050_v52 = vld [vmem:[%s13414_s2 + $0x718] sm:$0xff]  ;;  %v9937_v58 = vcombine.high %v922_v47, %v926_v51  ;;  %v9936_v4 = vcombine.low %v922_v47, %v926_v51 }
 0x1b8   :  { %4519 = vmatprep.subr.bf16.mxu0 %v9849_v61  ;;  %v1054_v54 = vld [vmem:[%s13414_s2 + $0x738] sm:$0xff] }
 0x1b9   :  { %4561 = vmatpush1.bf16.msra.mxu1 %v9984_v59  ;;  %v10065_v59 = vcombine.high %v1050_v52, %v1054_v54  ;;  %v914_v61 = vld [vmem:[%s13414_s2 + $0x2d8] sm:$0xff]  ;;  %v10064_v5 = vcombine.low %v1050_v52, %v1054_v54 }
 0x1ba   :  { %4562 = vmatprep.subr.bf16.mxu1 %v9977_v62  ;;  %v918_v62 = vld [vmem:[%s13414_s2 + $0x2f8] sm:$0xff] }
 0x1bb   :  { %4520 = vmatpush1.bf16.msra.mxu0 %v9848_v6  ;;  %v1042_v0 = vld [vmem:[%s13414_s2 + $0x6d8] sm:$0xff]  ;;  %v9929_v6 = vcombine.high %v914_v61, %v918_v62  ;;  %v9928_v17 = vcombine.low %v914_v61, %v918_v62 }
 0x1bc   :  { %4521 = vmatprep.subr.bf16.mxu0 %v9841_v8  ;;  %v1046_v3 = vld [vmem:[%s13414_s2 + $0x6f8] sm:$0xff] }
 0x1bd   :  { %4563 = vmatpush1.bf16.msra.mxu1 %v9976_v7  ;;  %v10057_v7 = vcombine.high %v1042_v0, %v1046_v3  ;;  %v906_v8 = vld [vmem:[%s13414_s2 + $0x298] sm:$0xff]  ;;  %v10056_v19 = vcombine.low %v1042_v0, %v1046_v3 }
 0x1be   :  { %4564 = vmatprep.subr.bf16.mxu1 %v9969_v10  ;;  %v910_v10 = vld [vmem:[%s13414_s2 + $0x2b8] sm:$0xff] }
 0x1bf   :  { %4522 = vmatpush1.bf16.msra.mxu0 %v9840_v20  ;;  %v1034_v13 = vld [vmem:[%s13414_s2 + $0x698] sm:$0xff]  ;;  %v9921_v20 = vcombine.high %v906_v8, %v910_v10  ;;  %v9920_v27 = vcombine.low %v906_v8, %v910_v10 }
 0x1c0   :  { %4523 = vmatprep.subr.bf16.mxu0 %v9961_v22  ;;  %v1038_v16 = vld [vmem:[%s13414_s2 + $0x6b8] sm:$0xff] }
 0x1c1   :  { %4565 = vmatpush1.bf16.msra.mxu1 %v9968_v11  ;;  %v10049_v11 = vcombine.high %v1034_v13, %v1038_v16  ;;  %v898_v22 = vld [vmem:[%s13414_s2 + $0x258] sm:$0xff]  ;;  %v10048_v14 = vcombine.low %v1034_v13, %v1038_v16 }
 0x1c2   :  { %4566 = vmatprep.subr.bf16.mxu1 %v10089_v23  ;;  %v902_v23 = vld [vmem:[%s13414_s2 + $0x278] sm:$0xff] }
 0x1c3   :  { %4524 = vmatpush2.bf16.msra.mxu0 %v9960_v30  ;;  %v1026_v24 = vld [vmem:[%s13414_s2 + $0x658] sm:$0xff]  ;;  %v9913_v30 = vcombine.high %v898_v22, %v902_v23  ;;  %v9912_v38 = vcombine.low %v898_v22, %v902_v23 }
 0x1c4   :  { %4525 = vmatprep.subr.bf16.mxu0 %v9953_v32  ;;  %v1030_v26 = vld [vmem:[%s13414_s2 + $0x678] sm:$0xff] }
 0x1c5   :  { %4567 = vmatpush2.bf16.msra.mxu1 %v10088_v31  ;;  %v10041_v31 = vcombine.high %v1026_v24, %v1030_v26  ;;  %v890_v32 = vld [vmem:[%s13414_s2 + $0x218] sm:$0xff]  ;;  %v10040_v41 = vcombine.low %v1026_v24, %v1030_v26 }
 0x1c6   :  { %4568 = vmatprep.subr.bf16.mxu1 %v10081_v33  ;;  %v894_v33 = vld [vmem:[%s13414_s2 + $0x238] sm:$0xff] }
 0x1c7   :  { %4526 = vmatpush2.bf16.msra.mxu0 %v9952_v42  ;;  %v1018_v35 = vld [vmem:[%s13414_s2 + $0x618] sm:$0xff]  ;;  %v9905_v42 = vcombine.high %v890_v32, %v894_v33  ;;  %v9904_v52 = vcombine.low %v890_v32, %v894_v33 }
 0x1c8   :  { %4527 = vmatprep.subr.bf16.mxu0 %v9945_v44  ;;  %v1022_v37 = vld [vmem:[%s13414_s2 + $0x638] sm:$0xff] }
 0x1c9   :  { %4569 = vmatpush2.bf16.msra.mxu1 %v10080_v43  ;;  %v10033_v43 = vcombine.high %v1018_v35, %v1022_v37  ;;  %v1138_v44 = vld [vmem:[%s13414_s2 + $0x9d8] sm:$0xff]  ;;  %v10032_v54 = vcombine.low %v1018_v35, %v1022_v37 }
 0x1ca   :  { %4570 = vmatprep.subr.bf16.mxu1 %v10073_v45  ;;  %v1142_v45 = vld [vmem:[%s13414_s2 + $0x9f8] sm:$0xff] }
 0x1cb   :  { %4528 = vmatpush2.bf16.msra.mxu0 %v9944_v55  ;;  %v1266_v47 = vld [vmem:[%s13414_s2 + $0xdd8] sm:$0xff]  ;;  %v10153_v55 = vcombine.high %v1138_v44, %v1142_v45  ;;  %v10152_v0 = vcombine.low %v1138_v44, %v1142_v45 }
 0x1cc   :  { %4529 = vmatprep.subr.bf16.mxu0 %v9937_v58  ;;  %v1270_v51 = vld [vmem:[%s13414_s2 + $0xdf8] sm:$0xff] }
 0x1cd   :  { %4571 = vmatpush2.bf16.msra.mxu1 %v10072_v56  ;;  %v10281_v56 = vcombine.high %v1266_v47, %v1270_v51  ;;  %v1130_v58 = vld [vmem:[%s13414_s2 + $0x998] sm:$0xff]  ;;  %v10280_v3 = vcombine.low %v1266_v47, %v1270_v51 }
 0x1ce   :  { %4572 = vmatprep.subr.bf16.mxu1 %v10065_v59  ;;  %v1134_v59 = vld [vmem:[%s13414_s2 + $0x9b8] sm:$0xff] }
 0x1cf   :  { %4530 = vmatpush2.bf16.msra.mxu0 %v9936_v4  ;;  %v1258_v61 = vld [vmem:[%s13414_s2 + $0xd98] sm:$0xff]  ;;  %v10145_v4 = vcombine.high %v1130_v58, %v1134_v59 }
 0x1d0   :  { %4531 = vmatprep.subr.bf16.mxu0 %v9929_v6  ;;  %v1262_v62 = vld [vmem:[%s13414_s2 + $0xdb8] sm:$0xff] }
 0x1d1   :  { %4573 = vmatpush2.bf16.msra.mxu1 %v10064_v5  ;;  %v10273_v5 = vcombine.high %v1258_v61, %v1262_v62  ;;  %v1122_v6 = vld [vmem:[%s13414_s2 + $0x958] sm:$0xff] }
 0x1d2   :  { %4574 = vmatprep.subr.bf16.mxu1 %v10057_v7  ;;  %v1126_v7 = vld [vmem:[%s13414_s2 + $0x978] sm:$0xff] }
 0x1d3   :  { %4532 = vmatpush2.bf16.msra.mxu0 %v9928_v17  ;;  %v1250_v10 = vld [vmem:[%s13414_s2 + $0xd58] sm:$0xff]  ;;  %v10136_v33 = vcombine.low %v1122_v6, %v1126_v7 }
 0x1d4   :  { %4533 = vmatprep.subr.bf16.mxu0 %v9921_v20  ;;  %v1254_v13 = vld [vmem:[%s13414_s2 + $0xd78] sm:$0xff] }
 0x1d5   :  { %4575 = vmatpush2.bf16.msra.mxu1 %v10056_v19  ;;  %v10144_v19 = vcombine.low %v1130_v58, %v1134_v59  ;;  %v10265_v26 = vcombine.high %v1250_v10, %v1254_v13  ;;  %v10264_v35 = vcombine.low %v1250_v10, %v1254_v13  ;;  %v1234_v44 = vld [vmem:[%s13414_s2 + $0xcd8] sm:$0xff] }
 0x1d6   :  { %4576 = vmatprep.subr.bf16.mxu1 %v10049_v11  ;;  %v10272_v11 = vcombine.low %v1258_v61, %v1262_v62  ;;  %v1238_v45 = vld [vmem:[%s13414_s2 + $0xcf8] sm:$0xff] }
 0x1d7   :  { %4534 = vmatpush2.bf16.msra.mxu0 %v9920_v27  ;;  %v1226_v58 = vld [vmem:[%s13414_s2 + $0xc98] sm:$0xff]  ;;  %v10248_v62 = vcombine.low %v1234_v44, %v1238_v45 }
 0x1d8   :  { %4535 = vmatprep.subr.bf16.mxu0 %v9913_v30  ;;  %v1230_v59 = vld [vmem:[%s13414_s2 + $0xcb8] sm:$0xff] }
 0x1d9   :  { %4577 = vmatpush2.bf16.msra.mxu1 %v10048_v14  ;;  %v1242_v14 = vld [vmem:[%s13414_s2 + $0xd18] sm:$0xff]  ;;  %v10240_v10 = vcombine.low %v1226_v58, %v1230_v59 }
 0x1da   :  { %4578 = vmatprep.subr.bf16.mxu1 %v10041_v31 }
 0x1db   :  { %4536 = vmatpush2.bf16.msra.mxu0 %v9912_v38 }
 0x1dc   :  { %4537 = vmatprep.subr.bf16.mxu0 %v9905_v42 }
 0x1dd   :  { %4579 = vmatpush2.bf16.msra.mxu1 %v10040_v41 }
 0x1de   :  { %4580 = vmatprep.subr.bf16.mxu1 %v10033_v43 }
 0x1df   :  { %4538 = vmatpush2.bf16.msra.mxu0 %v9904_v52 }
 0x1e0   :  { %4593 = vmatprep.subr.bf16.mxu0 %v10153_v55  ;;  %v1098_v55 = vld [vmem:[%s13414_s2 + $0x898] sm:$0xff] }
 0x1e1   :  { %4581 = vmatpush2.bf16.msra.mxu1 %v10032_v54  ;;  %v10249_v54 = vcombine.high %v1234_v44, %v1238_v45  ;;  %v1186_v44 = vld [vmem:[%s13414_s2 + $0xb58] sm:$0xff] }
 0x1e2   :  { %4636 = vmatprep.subr.bf16.mxu1 %v10281_v56  ;;  %v4283_v8 = vpop.f32.mrf.mxu0  ;;  %4540 = vmatmul.mubr.bf16.vlgmr.msra.gmra.mxu0 %v11595_v34  ;;  %v10137_v34 = vcombine.high %v1122_v6, %v1126_v7  ;;  %v1102_v56 = vld [vmem:[%s13414_s2 + $0x8b8] sm:$0xff] }
 0x1e3   :  { %v4284_v16 = vadd.f32 %v4283_v8, %v12637_v2  ;;  %4594 = vmatpush1.bf16.msra.mxu0 %v10152_v0  ;;  %v1114_v2 = vld [vmem:[%s13414_s2 + $0x918] sm:$0xff]  ;;  %4625 = vmatprep.mubr.bf16.mxu0 %v11611_v46  ;;  %v10113_v0 = vcombine.high %v1098_v55, %v1102_v56  ;;  %v10112_v8 = vcombine.low %v1098_v55, %v1102_v56 }
 0x1e4   :  { %v4326_v17 = vpop.f32.mrf.mxu1  ;;  %4583 = vmatmul.mubr.bf16.vlgmr.msra.gmra.mxu1 %v11603_v39  ;;  %v4285_v20 = vpop.f32.mrf.mxu0  ;;  %4595 = vmatprep.subr.bf16.mxu0 %v10145_v4  ;;  %v1118_v39 = vld [vmem:[%s13414_s2 + $0x938] sm:$0xff] }
 0x1e5   :  { %4637 = vmatpush1.bf16.msra.mxu1 %v10280_v3  ;;  %v12842_v22 = vadd.f32 %v4326_v17, %v4284_v16  ;;  %v4286_v23 = vadd.f32 %v4285_v20, %v12646_v12  ;;  %v1246_v12 = vld [vmem:[%s13414_s2 + $0xd38] sm:$0xff]  ;;  %4668 = vmatprep.mubr.bf16.mxu1 %v11620_v49  ;;  %v10129_v37 = vcombine.high %v1114_v2, %v1118_v39 }
 0x1e6   :  { %v4328_v24 = vpop.f32.mrf.mxu1  ;;  %4638 = vmatprep.subr.bf16.mxu1 %v10273_v5  ;;  %v4287_v27 = vpop.f32.mrf.mxu0  ;;  %v10257_v42 = vcombine.high %v1242_v14, %v1246_v12  ;;  %v1106_v49 = vld [vmem:[%s13414_s2 + $0x8d8] sm:$0xff]  ;;  %v10128_v47 = vcombine.low %v1114_v2, %v1118_v39  ;;  %v10256_v51 = vcombine.low %v1242_v14, %v1246_v12  ;;  %v10241_v3 = vcombine.high %v1226_v58, %v1230_v59 }
 0x1e7   :  { %v12859_v30 = vadd.f32 %v4328_v24, %v4286_v23  ;;  %v4288_v31 = vadd.f32 %v4287_v27, %v12655_v21  ;;  %4596 = vmatpush1.bf16.msra.mxu0 %v10144_v19  ;;  %v1110_v21 = vld [vmem:[%s13414_s2 + $0x8f8] sm:$0xff] }
 0x1e8   :  { %v4330_v32 = vpop.f32.mrf.mxu1  ;;  %v4289_v46 = vpop.f32.mrf.mxu0  ;;  %4597 = vmatprep.subr.bf16.mxu0 %v10137_v34  ;;  %v10121_v52 = vcombine.high %v1106_v49, %v1110_v21  ;;  %v10120_v61 = vcombine.low %v1106_v49, %v1110_v21  ;;  %v1090_v4 = vld [vmem:[%s13414_s2 + $0x858] sm:$0xff] }
 0x1e9   :  { %4639 = vmatpush1.bf16.msra.mxu1 %v10272_v11  ;;  %v12862_v38 = vadd.f32 %v4330_v32, %v4288_v31  ;;  %v4290_v41 = vadd.f32 %v4289_v46, %v12663_v29  ;;  %v1094_v5 = vld [vmem:[%s13414_s2 + $0x878] sm:$0xff] }
 0x1ea   :  { %4640 = vmatprep.subr.bf16.mxu1 %v10265_v26  ;;  %v4332_v43 = vpop.f32.mrf.mxu1  ;;  %v1218_v6 = vld [vmem:[%s13414_s2 + $0xc58] sm:$0xff]  ;;  %v10105_v13 = vcombine.high %v1090_v4, %v1094_v5  ;;  %v10104_v34 = vcombine.low %v1090_v4, %v1094_v5 }
 0x1eb   :  { %v12877_v29 = vadd.f32 %v4332_v43, %v4290_v41  ;;  %4598 = vmatpush1.bf16.msra.mxu0 %v10136_v33  ;;  %v1222_v7 = vld [vmem:[%s13414_s2 + $0xc78] sm:$0xff] }
 0x1ec   :  { %4599 = vmatprep.subr.bf16.mxu0 %v10129_v37  ;;  %v10233_v16 = vcombine.high %v1218_v6, %v1222_v7  ;;  %v1082_v17 = vld [vmem:[%s13414_s2 + $0x818] sm:$0xff]  ;;  %v10232_v23 = vcombine.low %v1218_v6, %v1222_v7 }
 0x1ed   :  { %4641 = vmatpush1.bf16.msra.mxu1 %v10264_v35  ;;  %v1086_v19 = vld [vmem:[%s13414_s2 + $0x838] sm:$0xff] }
 0x1ee   :  { %4642 = vmatprep.subr.bf16.mxu1 %v10257_v42  ;;  %v1210_v20 = vld [vmem:[%s13414_s2 + $0xc18] sm:$0xff]  ;;  %v10097_v24 = vcombine.high %v1082_v17, %v1086_v19  ;;  %v10096_v12 = vcombine.low %v1082_v17, %v1086_v19 }
 0x1ef   :  { %4600 = vmatpush1.bf16.msra.mxu0 %v10128_v47  ;;  %v1214_v11 = vld [vmem:[%s13414_s2 + $0xc38] sm:$0xff] }
 0x1f0   :  { %4601 = vmatprep.subr.bf16.mxu0 %v10121_v52  ;;  %v10225_v26 = vcombine.high %v1210_v20, %v1214_v11  ;;  %v1202_v2 = vld [vmem:[%s13414_s2 + $0xbd8] sm:$0xff]  ;;  %v10224_v31 = vcombine.low %v1210_v20, %v1214_v11 }
 0x1f1   :  { %4643 = vmatpush1.bf16.msra.mxu1 %v10256_v51  ;;  %v1206_v39 = vld [vmem:[%s13414_s2 + $0xbf8] sm:$0xff] }
 0x1f2   :  { %4644 = vmatprep.subr.bf16.mxu1 %v10249_v54  ;;  %v1330_v27 = vld [vmem:[%s13414_s2 + $0xfd8] sm:$0xff]  ;;  %v10217_v32 = vcombine.high %v1202_v2, %v1206_v39  ;;  %v10216_v42 = vcombine.low %v1202_v2, %v1206_v39 }
 0x1f3   :  { %4602 = vmatpush1.bf16.msra.mxu0 %v10120_v61  ;;  %v1334_v14 = vld [vmem:[%s13414_s2 + $0xff8] sm:$0xff] }
 0x1f4   :  { %4603 = vmatprep.subr.bf16.mxu0 %v10113_v0  ;;  %v10345_v33 = vcombine.high %v1330_v27, %v1334_v14  ;;  %v1194_v46 = vld [vmem:[%s13414_s2 + $0xb98] sm:$0xff]  ;;  %v10344_v49 = vcombine.low %v1330_v27, %v1334_v14 }
 0x1f5   :  { %4645 = vmatpush1.bf16.msra.mxu1 %v10248_v62  ;;  %v1198_v35 = vld [vmem:[%s13414_s2 + $0xbb8] sm:$0xff] }
 0x1f6   :  { %4646 = vmatprep.subr.bf16.mxu1 %v10241_v3  ;;  %v1322_v37 = vld [vmem:[%s13414_s2 + $0xf98] sm:$0xff]  ;;  %v10209_v21 = vcombine.high %v1194_v46, %v1198_v35  ;;  %v10208_v52 = vcombine.low %v1194_v46, %v1198_v35 }
 0x1f7   :  { %4604 = vmatpush1.bf16.msra.mxu0 %v10112_v8  ;;  %v1326_v41 = vld [vmem:[%s13414_s2 + $0xfb8] sm:$0xff] }
 0x1f8   :  { %4605 = vmatprep.subr.bf16.mxu0 %v10105_v13  ;;  %v10337_v43 = vcombine.high %v1322_v37, %v1326_v41  ;;  %v1190_v45 = vld [vmem:[%s13414_s2 + $0xb78] sm:$0xff]  ;;  %v10336_v54 = vcombine.low %v1322_v37, %v1326_v41 }
 0x1f9   :  { %4647 = vmatpush1.bf16.msra.mxu1 %v10240_v10  ;;  %v1314_v47 = vld [vmem:[%s13414_s2 + $0xf58] sm:$0xff]  ;;  %v10201_v55 = vcombine.high %v1186_v44, %v1190_v45  ;;  %v10200_v0 = vcombine.low %v1186_v44, %v1190_v45 }
 0x1fa   :  { %4648 = vmatprep.subr.bf16.mxu1 %v10233_v16  ;;  %v1318_v51 = vld [vmem:[%s13414_s2 + $0xf78] sm:$0xff] }
 0x1fb   :  { %4606 = vmatpush1.bf16.msra.mxu0 %v10104_v34  ;;  %v10329_v56 = vcombine.high %v1314_v47, %v1318_v51  ;;  %v1178_v58 = vld [vmem:[%s13414_s2 + $0xb18] sm:$0xff]  ;;  %v10328_v3 = vcombine.low %v1314_v47, %v1318_v51  ;;  %v111_v47 = vld [vmem:[#allocation2 + $0x1c0] sm:$0xff] }
 0x1fc   :  { %4607 = vmatprep.subr.bf16.mxu0 %v10097_v24  ;;  %v1182_v59 = vld [vmem:[%s13414_s2 + $0xb38] sm:$0xff]  ;;  %v115_v51 = vld [vmem:[#allocation2 + $0x1e0] sm:$0xff] }
 0x1fd   :  { %4649 = vmatpush1.bf16.msra.mxu1 %v10232_v23  ;;  %v1306_v61 = vld [vmem:[%s13414_s2 + $0xf18] sm:$0xff]  ;;  %v10193_v4 = vcombine.high %v1178_v58, %v1182_v59  ;;  %v10192_v13 = vcombine.low %v1178_v58, %v1182_v59  ;;  %v10407_v58 = vcombine.high %v111_v47, %v115_v51 }
 0x1fe   :  { %4650 = vmatprep.subr.bf16.mxu1 %v10225_v26  ;;  %v1310_v62 = vld [vmem:[%s13414_s2 + $0xf38] sm:$0xff] }
 0x1ff   :  { %4608 = vmatpush1.bf16.msra.mxu0 %v10096_v12  ;;  %v10321_v5 = vcombine.high %v1306_v61, %v1310_v62  ;;  %v1170_v6 = vld [vmem:[%s13414_s2 + $0xad8] sm:$0xff]  ;;  %v10320_v16 = vcombine.low %v1306_v61, %v1310_v62  ;;  %v103_v61 = vld [vmem:[#allocation2 + $0x180] sm:$0xff] }
 0x200   :  { %4609 = vmatprep.subr.bf16.mxu0 %v10217_v32  ;;  %v1174_v7 = vld [vmem:[%s13414_s2 + $0xaf8] sm:$0xff]  ;;  %v107_v62 = vld [vmem:[#allocation2 + $0x1a0] sm:$0xff] }
 0x201   :  { %4651 = vmatpush1.bf16.msra.mxu1 %v10224_v31  ;;  %v1298_v8 = vld [vmem:[%s13414_s2 + $0xed8] sm:$0xff]  ;;  %v10185_v17 = vcombine.high %v1170_v6, %v1174_v7  ;;  %v10184_v24 = vcombine.low %v1170_v6, %v1174_v7  ;;  %v10399_v6 = vcombine.high %v103_v61, %v107_v62 }
 0x202   :  { %4652 = vmatprep.subr.bf16.mxu1 %v10345_v33  ;;  %v1302_v10 = vld [vmem:[%s13414_s2 + $0xef8] sm:$0xff] }
 0x203   :  { %4610 = vmatpush2.bf16.msra.mxu0 %v10216_v42  ;;  %v10313_v19 = vcombine.high %v1298_v8, %v1302_v10  ;;  %v1162_v20 = vld [vmem:[%s13414_s2 + $0xa98] sm:$0xff]  ;;  %v10312_v26 = vcombine.low %v1298_v8, %v1302_v10  ;;  %v95_v8 = vld [vmem:[#allocation2 + $0x140] sm:$0xff] }
 0x204   :  { %4611 = vmatprep.subr.bf16.mxu0 %v10209_v21  ;;  %v1166_v11 = vld [vmem:[%s13414_s2 + $0xab8] sm:$0xff]  ;;  %v99_v10 = vld [vmem:[#allocation2 + $0x160] sm:$0xff] }
 0x205   :  { %4653 = vmatpush2.bf16.msra.mxu1 %v10344_v49  ;;  %v1290_v34 = vld [vmem:[%s13414_s2 + $0xe98] sm:$0xff]  ;;  %v10177_v2 = vcombine.high %v1162_v20, %v1166_v11  ;;  %v10176_v32 = vcombine.low %v1162_v20, %v1166_v11  ;;  %v10398_v20 = vcombine.low %v103_v61, %v107_v62  ;;  %v199_v61 = vld [vmem:[#allocation2 + $0x480] sm:$0xff] }
 0x206   :  { %4654 = vmatprep.subr.bf16.mxu1 %v10337_v43  ;;  %v1294_v23 = vld [vmem:[%s13414_s2 + $0xeb8] sm:$0xff]  ;;  %v203_v62 = vld [vmem:[#allocation2 + $0x4a0] sm:$0xff] }
 0x207   :  { %4612 = vmatpush2.bf16.msra.mxu0 %v10208_v52  ;;  %v10305_v39 = vcombine.high %v1290_v34, %v1294_v23  ;;  %v1154_v27 = vld [vmem:[%s13414_s2 + $0xa58] sm:$0xff]  ;;  %v10304_v33 = vcombine.low %v1290_v34, %v1294_v23  ;;  %v239_v52 = vld [vmem:[#allocation2 + $0x5c0] sm:$0xff] }
 0x208   :  { %4613 = vmatprep.subr.bf16.mxu0 %v10201_v55  ;;  %v1158_v14 = vld [vmem:[%s13414_s2 + $0xa78] sm:$0xff] }
 0x209   :  { %4655 = vmatpush2.bf16.msra.mxu1 %v10336_v54  ;;  %v1282_v12 = vld [vmem:[%s13414_s2 + $0xe58] sm:$0xff]  ;;  %v10169_v46 = vcombine.high %v1154_v27, %v1158_v14  ;;  %v10168_v21 = vcombine.low %v1154_v27, %v1158_v14  ;;  %v243_v54 = vld [vmem:[#allocation2 + $0x5e0] sm:$0xff] }
 0x20a   :  { %4656 = vmatprep.subr.bf16.mxu1 %v10329_v56  ;;  %v1286_v31 = vld [vmem:[%s13414_s2 + $0xe78] sm:$0xff]  ;;  %v10535_v59 = vcombine.high %v239_v52, %v243_v54  ;;  %v91_v27 = vld [vmem:[#allocation2 + $0x120] sm:$0xff] }
 0x20b   :  { %4614 = vmatpush2.bf16.msra.mxu0 %v10200_v0  ;;  %v10297_v35 = vcombine.high %v1282_v12, %v1286_v31  ;;  %v1146_v37 = vld [vmem:[%s13414_s2 + $0xa18] sm:$0xff]  ;;  %v10296_v43 = vcombine.low %v1282_v12, %v1286_v31  ;;  %v231_v0 = vld [vmem:[#allocation2 + $0x580] sm:$0xff] }
 0x20c   :  { %4615 = vmatprep.subr.bf16.mxu0 %v10193_v4  ;;  %v1150_v41 = vld [vmem:[%s13414_s2 + $0xa38] sm:$0xff]  ;;  %v10406_v4 = vcombine.low %v111_v47, %v115_v51  ;;  %v215_v12 = vld [vmem:[#allocation2 + $0x500] sm:$0xff] }
 0x20d   :  { %4657 = vmatpush2.bf16.msra.mxu1 %v10328_v3  ;;  %v1274_v42 = vld [vmem:[%s13414_s2 + $0xe18] sm:$0xff]  ;;  %v10161_v44 = vcombine.high %v1146_v37, %v1150_v41  ;;  %v10160_v55 = vcombine.low %v1146_v37, %v1150_v41  ;;  %v235_v3 = vld [vmem:[#allocation2 + $0x5a0] sm:$0xff] }
 0x20e   :  { %4658 = vmatprep.subr.bf16.mxu1 %v10321_v5  ;;  %v1278_v49 = vld [vmem:[%s13414_s2 + $0xe38] sm:$0xff]  ;;  %v10534_v5 = vcombine.low %v239_v52, %v243_v54  ;;  %v10527_v7 = vcombine.high %v231_v0, %v235_v3  ;;  %v10526_v23 = vcombine.low %v231_v0, %v235_v3  ;;  %v219_v31 = vld [vmem:[#allocation2 + $0x520] sm:$0xff] }
 0x20f   :  { %4616 = vmatpush2.bf16.msra.mxu0 %v10192_v13  ;;  %v10289_v45 = vcombine.high %v1274_v42, %v1278_v49  ;;  %v10288_v56 = vcombine.low %v1274_v42, %v1278_v49  ;;  %v207_v47 = vld [vmem:[#allocation2 + $0x4c0] sm:$0xff]  ;;  %v10510_v54 = vcombine.low %v215_v12, %v219_v31 }
 0x210   :  { %4617 = vmatprep.subr.bf16.mxu0 %v10185_v17  ;;  %v227_v17 = vld [vmem:[#allocation2 + $0x560] sm:$0xff] }
 0x211   :  { %4659 = vmatpush2.bf16.msra.mxu1 %v10320_v16  ;;  %v223_v16 = vld [vmem:[#allocation2 + $0x540] sm:$0xff] }
 0x212   :  { %4660 = vmatprep.subr.bf16.mxu1 %v10313_v19  ;;  %v10518_v41 = vcombine.low %v223_v16, %v227_v17  ;;  %v211_v51 = vld [vmem:[#allocation2 + $0x4e0] sm:$0xff] }
 0x213   :  { %4618 = vmatpush2.bf16.msra.mxu0 %v10184_v24  ;;  %v10391_v24 = vcombine.high %v95_v8, %v99_v10  ;;  %v10502_v3 = vcombine.low %v207_v47, %v211_v51 }
 0x214   :  { %4619 = vmatprep.subr.bf16.mxu0 %v10177_v2  ;;  %v10519_v2 = vcombine.high %v223_v16, %v227_v17  ;;  %v10494_v16 = vcombine.low %v199_v61, %v203_v62 }
 0x215   :  { %4661 = vmatpush2.bf16.msra.mxu1 %v10312_v26 }
 0x216   :  { %4662 = vmatprep.subr.bf16.mxu1 %v10305_v39  ;;  %v87_v39 = vld [vmem:[#allocation2 + $0x100] sm:$0xff] }
 0x217   :  { %4620 = vmatpush2.bf16.msra.mxu0 %v10176_v32  ;;  %v11237_v32 = vld [vmem:[%s13412_s0 + $0xc] ss:$48 sps:$4 sm:$0x3f]   ;;  %v10383_v42 = vcombine.high %v87_v39, %v91_v27  ;;  %v10382_v52 = vcombine.low %v87_v39, %v91_v27 }
 0x218   :  { %4621 = vmatprep.subr.bf16.mxu0 %v10169_v46  ;;  %v10390_v46 = vcombine.low %v95_v8, %v99_v10  ;;  %v191_v8 = vld [vmem:[#allocation2 + $0x440] sm:$0xff] }
 0x219   :  { %4663 = vmatpush2.bf16.msra.mxu1 %v10304_v33  ;;  %v195_v10 = vld [vmem:[#allocation2 + $0x460] sm:$0xff] }
 0x21a   :  { %4664 = vmatprep.subr.bf16.mxu1 %v10297_v35 }
 0x21b   :  { %4622 = vmatpush2.bf16.msra.mxu0 %v10168_v21  ;;  %v10511_v21 = vcombine.high %v215_v12, %v219_v31  ;;  %v303_v12 = vld [vmem:[#allocation2 + $0x7c0] sm:$0xff] }
 0x21c   :  { %4623 = vmatprep.subr.bf16.mxu0 %v10161_v44  ;;  %v83_v44 = vld [vmem:[#allocation2 + $0xe0] sm:$0xff] }
 0x21d   :  { %4665 = vmatpush2.bf16.msra.mxu1 %v10296_v43  ;;  %v79_v43 = vld [vmem:[#allocation2 + $0xc0] sm:$0xff] }
 0x21e   :  { %4666 = vmatprep.subr.bf16.mxu1 %v10289_v45  ;;  %v10374_v0 = vcombine.low %v79_v43, %v83_v44  ;;  %v307_v31 = vld [vmem:[#allocation2 + $0x7e0] sm:$0xff] }
 0x21f   :  { %4624 = vmatpush2.bf16.msra.mxu0 %v10160_v55  ;;  %v10375_v55 = vcombine.high %v79_v43, %v83_v44  ;;  %v10598_v44 = vcombine.low %v303_v12, %v307_v31 }
 0x220   :  { %8547 = vmatprep.subr.bf16.mxu0 %v10407_v58  ;;  %v71_v58 = vld [vmem:[#allocation2 + $0x80] sm:$0xff] }
 0x221   :  { %4667 = vmatpush2.bf16.msra.mxu1 %v10288_v56  ;;  %v10503_v56 = vcombine.high %v207_v47, %v211_v51 }
 0x222   :  { %8590 = vmatprep.subr.bf16.mxu1 %v10535_v59  ;;  %v4369_v13 = vpop.f32.mrf.mxu0  ;;  %4626 = vmatmul.mubr.bf16.vlgmr.msra.gmra.mxu0 %v11805_v60  ;;  %v11236_v60 = vld [vmem:[%s13412_s0 + $0x4] ss:$48 sps:$4 sm:$0x3f]  }
 0x223   :  { %8548 = vmatpush1.bf16.msra.mxu0 %v10406_v4  ;;  %8579 = vmatprep.mubr.bf16.mxu0 %v11236_v60  ;;  %v75_v59 = vld [vmem:[#allocation2 + $0xa0] sm:$0xff] }
 0x224   :  { %v4412_v19 = vpop.f32.mrf.mxu1  ;;  %4669 = vmatmul.mubr.bf16.vlgmr.msra.gmra.mxu1 %v11813_v63  ;;  %v4371_v34 = vpop.f32.mrf.mxu0  ;;  %8549 = vmatprep.subr.bf16.mxu0 %v10399_v6  ;;  %v10367_v4 = vcombine.high %v71_v58, %v75_v59  ;;  %v63_v6 = vld [vmem:[#allocation2 + $0x40] sm:$0xff] }
 0x225   :  { %v13013_v11 = vadd.f32 %v4412_v19, %v4369_v13  ;;  %8591 = vmatpush1.bf16.msra.mxu1 %v10534_v5  ;;  %8622 = vmatprep.mubr.bf16.mxu1 %v11237_v32  ;;  %v10495_v5 = vcombine.high %v199_v61, %v203_v62  ;;  %v10366_v13 = vcombine.low %v71_v58, %v75_v59  ;;  %v175_v60 = vld [vmem:[#allocation2 + $0x3c0] sm:$0xff] }
 0x226   :  { %v4414_v26 = vpop.f32.mrf.mxu1  ;;  %8592 = vmatprep.subr.bf16.mxu1 %v10527_v7  ;;  %v4373_v14 = vpop.f32.mrf.mxu0  ;;  %v67_v7 = vld [vmem:[#allocation2 + $0x60] sm:$0xff]  ;;  %v10487_v19 = vcombine.high %v191_v8, %v195_v10 }
 0x227   :  { %v13018_v63 = vadd.f32 %v4414_v26, %v4371_v34  ;;  %8550 = vmatpush1.bf16.msra.mxu0 %v10398_v20  ;;  %v10359_v17 = vcombine.high %v63_v6, %v67_v7  ;;  %v55_v20 = vld [vmem:[#allocation2] sm:$0xff]  ;;  %v10358_v26 = vcombine.low %v63_v6, %v67_v7 }
 0x228   :  { %v4416_v33 = vpop.f32.mrf.mxu1  ;;  %v4375_v37 = vpop.f32.mrf.mxu0  ;;  %8551 = vmatprep.subr.bf16.mxu0 %v10391_v24  ;;  %v59_v34 = vld [vmem:[#allocation2 + $0x20] sm:$0xff] }
 0x229   :  { %v13023_v35 = vadd.f32 %v4416_v33, %v4373_v14  ;;  %8593 = vmatpush1.bf16.msra.mxu1 %v10526_v23  ;;  %v183_v23 = vld [vmem:[#allocation2 + $0x400] sm:$0xff]  ;;  %v10351_v39 = vcombine.high %v55_v20, %v59_v34  ;;  %v10350_v32 = vcombine.low %v55_v20, %v59_v34 }
 0x22a   :  { %v4418_v49 = vpop.f32.mrf.mxu1  ;;  %8594 = vmatprep.subr.bf16.mxu1 %v10519_v2  ;;  %v187_v24 = vld [vmem:[#allocation2 + $0x420] sm:$0xff]  ;;  %v10486_v2 = vcombine.low %v191_v8, %v195_v10 }
 0x22b   :  { %v13025_v45 = vadd.f32 %v4418_v49, %v4375_v37  ;;  %8552 = vmatpush1.bf16.msra.mxu0 %v10390_v46  ;;  %v10479_v27 = vcombine.high %v183_v23, %v187_v24  ;;  %v179_v14 = vld [vmem:[#allocation2 + $0x3e0] sm:$0xff]  ;;  %v10478_v33 = vcombine.low %v183_v23, %v187_v24  ;;  %v10599_v37 = vcombine.high %v303_v12, %v307_v31 }
 0x22c   :  { %8553 = vmatprep.subr.bf16.mxu0 %v10383_v42  ;;  %v10471_v46 = vcombine.high %v175_v60, %v179_v14  ;;  %v171_v42 = vld [vmem:[#allocation2 + $0x3a0] sm:$0xff]  ;;  %v10470_v43 = vcombine.low %v175_v60, %v179_v14 }
 0x22d   :  { %8595 = vmatpush1.bf16.msra.mxu1 %v10518_v41  ;;  %v167_v41 = vld [vmem:[#allocation2 + $0x380] sm:$0xff] }
 0x22e   :  { %8596 = vmatprep.subr.bf16.mxu1 %v10511_v21  ;;  %v295_v49 = vld [vmem:[#allocation2 + $0x780] sm:$0xff]  ;;  %v10463_v47 = vcombine.high %v167_v41, %v171_v42  ;;  %v10462_v58 = vcombine.low %v167_v41, %v171_v42 }
 0x22f   :  { %8554 = vmatpush1.bf16.msra.mxu0 %v10382_v52  ;;  %v299_v21 = vld [vmem:[#allocation2 + $0x7a0] sm:$0xff] }
 0x230   :  { %8555 = vmatprep.subr.bf16.mxu0 %v10375_v55  ;;  %v10591_v51 = vcombine.high %v295_v49, %v299_v21  ;;  %v159_v52 = vld [vmem:[#allocation2 + $0x340] sm:$0xff]  ;;  %v10590_v59 = vcombine.low %v295_v49, %v299_v21 }
 0x231   :  { %8597 = vmatpush1.bf16.msra.mxu1 %v10510_v54  ;;  %v163_v54 = vld [vmem:[#allocation2 + $0x360] sm:$0xff] }
 0x232   :  { %8598 = vmatprep.subr.bf16.mxu1 %v10503_v56  ;;  %v287_v55 = vld [vmem:[#allocation2 + $0x740] sm:$0xff]  ;;  %v10455_v61 = vcombine.high %v159_v52, %v163_v54  ;;  %v10454_v6 = vcombine.low %v159_v52, %v163_v54 }
 0x233   :  { %8556 = vmatpush1.bf16.msra.mxu0 %v10374_v0  ;;  %v291_v56 = vld [vmem:[#allocation2 + $0x760] sm:$0xff] }
 0x234   :  { %8557 = vmatprep.subr.bf16.mxu0 %v10367_v4  ;;  %v10583_v62 = vcombine.high %v287_v55, %v291_v56  ;;  %v151_v0 = vld [vmem:[#allocation2 + $0x300] sm:$0xff]  ;;  %v10582_v7 = vcombine.low %v287_v55, %v291_v56 }
 0x235   :  { %8599 = vmatpush1.bf16.msra.mxu1 %v10502_v3  ;;  %v155_v3 = vld [vmem:[#allocation2 + $0x320] sm:$0xff] }
 0x236   :  { %8600 = vmatprep.subr.bf16.mxu1 %v10495_v5  ;;  %v279_v4 = vld [vmem:[#allocation2 + $0x700] sm:$0xff]  ;;  %v10447_v8 = vcombine.high %v151_v0, %v155_v3  ;;  %v10446_v20 = vcombine.low %v151_v0, %v155_v3 }
 0x237   :  { %8558 = vmatpush1.bf16.msra.mxu0 %v10366_v13  ;;  %v283_v5 = vld [vmem:[#allocation2 + $0x720] sm:$0xff] }
 0x238   :  { %8559 = vmatprep.subr.bf16.mxu0 %v10359_v17  ;;  %v10575_v10 = vcombine.high %v279_v4, %v283_v5  ;;  %v143_v13 = vld [vmem:[#allocation2 + $0x2c0] sm:$0xff]  ;;  %v10574_v34 = vcombine.low %v279_v4, %v283_v5 }
 0x239   :  { %8601 = vmatpush1.bf16.msra.mxu1 %v10494_v16  ;;  %v147_v16 = vld [vmem:[#allocation2 + $0x2e0] sm:$0xff] }
 0x23a   :  { %8602 = vmatprep.subr.bf16.mxu1 %v10487_v19  ;;  %v271_v17 = vld [vmem:[#allocation2 + $0x6c0] sm:$0xff]  ;;  %v10439_v23 = vcombine.high %v143_v13, %v147_v16  ;;  %v10438_v60 = vcombine.low %v143_v13, %v147_v16 }
 0x23b   :  { %8560 = vmatpush1.bf16.msra.mxu0 %v10358_v26  ;;  %v275_v19 = vld [vmem:[#allocation2 + $0x6e0] sm:$0xff] }
 0x23c   :  { %8561 = vmatprep.subr.bf16.mxu0 %v10351_v39  ;;  %v10567_v24 = vcombine.high %v271_v17, %v275_v19  ;;  %v135_v26 = vld [vmem:[#allocation2 + $0x280] sm:$0xff]  ;;  %v10566_v14 = vcombine.low %v271_v17, %v275_v19 }
 0x23d   :  { %8603 = vmatpush1.bf16.msra.mxu1 %v10486_v2  ;;  %v139_v2 = vld [vmem:[#allocation2 + $0x2a0] sm:$0xff] }
 0x23e   :  { %8604 = vmatprep.subr.bf16.mxu1 %v10479_v27  ;;  %v263_v39 = vld [vmem:[#allocation2 + $0x680] sm:$0xff]  ;;  %v10431_v12 = vcombine.high %v135_v26, %v139_v2  ;;  %v10430_v41 = vcombine.low %v135_v26, %v139_v2 }
 0x23f   :  { %8562 = vmatpush1.bf16.msra.mxu0 %v10350_v32  ;;  %v267_v27 = vld [vmem:[#allocation2 + $0x6a0] sm:$0xff] }
 0x240   :  { %8563 = vmatprep.subr.bf16.mxu0 %v10471_v46  ;;  %v10559_v31 = vcombine.high %v263_v39, %v267_v27  ;;  %v127_v32 = vld [vmem:[#allocation2 + $0x240] sm:$0xff]  ;;  %v10558_v42 = vcombine.low %v263_v39, %v267_v27 }
 0x241   :  { %8605 = vmatpush1.bf16.msra.mxu1 %v10478_v33  ;;  %v131_v33 = vld [vmem:[#allocation2 + $0x260] sm:$0xff] }
 0x242   :  { %8606 = vmatprep.subr.bf16.mxu1 %v10599_v37  ;;  %v255_v46 = vld [vmem:[#allocation2 + $0x640] sm:$0xff]  ;;  %v10423_v49 = vcombine.high %v127_v32, %v131_v33  ;;  %v10422_v52 = vcombine.low %v127_v32, %v131_v33 }
 0x243   :  { %8564 = vmatpush2.bf16.msra.mxu0 %v10470_v43  ;;  %v259_v37 = vld [vmem:[#allocation2 + $0x660] sm:$0xff] }
 0x244   :  { %8565 = vmatprep.subr.bf16.mxu0 %v10463_v47  ;;  %v10551_v21 = vcombine.high %v255_v46, %v259_v37  ;;  %v119_v43 = vld [vmem:[#allocation2 + $0x200] sm:$0xff]  ;;  %v10550_v54 = vcombine.low %v255_v46, %v259_v37 }
 0x245   :  { %8607 = vmatpush2.bf16.msra.mxu1 %v10598_v44  ;;  %v123_v44 = vld [vmem:[#allocation2 + $0x220] sm:$0xff] }
 0x246   :  { %8608 = vmatprep.subr.bf16.mxu1 %v10591_v51  ;;  %v247_v47 = vld [vmem:[#allocation2 + $0x600] sm:$0xff]  ;;  %v10415_v55 = vcombine.high %v119_v43, %v123_v44  ;;  %v10414_v0 = vcombine.low %v119_v43, %v123_v44 }
 0x247   :  { %8566 = vmatpush2.bf16.msra.mxu0 %v10462_v58  ;;  %v251_v51 = vld [vmem:[#allocation2 + $0x620] sm:$0xff] }
 0x248   :  { %8567 = vmatprep.subr.bf16.mxu0 %v10455_v61  ;;  %v10543_v56 = vcombine.high %v247_v47, %v251_v51  ;;  %v367_v58 = vld [vmem:[#allocation2 + $0x9c0] sm:$0xff]  ;;  %v10542_v3 = vcombine.low %v247_v47, %v251_v51  ;;  %v11241_v47 = vld [vmem:[%s13412_s0 + $0x1c] ss:$48 sps:$4 sm:$0x3f]  }
 0x249   :  { %8609 = vmatpush2.bf16.msra.mxu1 %v10590_v59  ;;  %v371_v59 = vld [vmem:[#allocation2 + $0x9e0] sm:$0xff] }
 0x24a   :  { %8610 = vmatprep.subr.bf16.mxu1 %v10583_v62  ;;  %v495_v61 = vld [vmem:[#allocation2 + $0xdc0] sm:$0xff]  ;;  %v10663_v4 = vcombine.high %v367_v58, %v371_v59  ;;  %v10662_v13 = vcombine.low %v367_v58, %v371_v59 }
 0x24b   :  { %8568 = vmatpush2.bf16.msra.mxu0 %v10454_v6  ;;  %v499_v62 = vld [vmem:[#allocation2 + $0xde0] sm:$0xff] }
 0x24c   :  { %8569 = vmatprep.subr.bf16.mxu0 %v10447_v8  ;;  %v10791_v5 = vcombine.high %v495_v61, %v499_v62  ;;  %v359_v6 = vld [vmem:[#allocation2 + $0x980] sm:$0xff]  ;;  %v10790_v16 = vcombine.low %v495_v61, %v499_v62 }
 0x24d   :  { %8611 = vmatpush2.bf16.msra.mxu1 %v10582_v7  ;;  %v363_v7 = vld [vmem:[#allocation2 + $0x9a0] sm:$0xff] }
 0x24e   :  { %8612 = vmatprep.subr.bf16.mxu1 %v10575_v10  ;;  %v487_v8 = vld [vmem:[#allocation2 + $0xd80] sm:$0xff]  ;;  %v10655_v17 = vcombine.high %v359_v6, %v363_v7 }
 0x24f   :  { %8570 = vmatpush2.bf16.msra.mxu0 %v10446_v20  ;;  %v491_v10 = vld [vmem:[#allocation2 + $0xda0] sm:$0xff] }
 0x250   :  { %8571 = vmatprep.subr.bf16.mxu0 %v10439_v23  ;;  %v10783_v19 = vcombine.high %v487_v8, %v491_v10  ;;  %v351_v20 = vld [vmem:[#allocation2 + $0x940] sm:$0xff] }
 0x251   :  { %8613 = vmatpush2.bf16.msra.mxu1 %v10574_v34  ;;  %v355_v34 = vld [vmem:[#allocation2 + $0x960] sm:$0xff] }
 0x252   :  { %8614 = vmatprep.subr.bf16.mxu1 %v10567_v24  ;;  %v11238_v24 = vld [vmem:[%s13412_s0] ss:$48 sps:$4 sm:$0x3f]   ;;  %v10647_v32 = vcombine.high %v351_v20, %v355_v34 }
 0x253   :  { %8572 = vmatpush2.bf16.msra.mxu0 %v10438_v60  ;;  %v479_v26 = vld [vmem:[#allocation2 + $0xd40] sm:$0xff]  ;;  %v11239_v60 = vld [vmem:[%s13412_s0 + $0x8] ss:$48 sps:$4 sm:$0x3f]  }
 0x254   :  { %8573 = vmatprep.subr.bf16.mxu0 %v10431_v12  ;;  %v483_v2 = vld [vmem:[#allocation2 + $0xd60] sm:$0xff] }
 0x255   :  { %8615 = vmatpush2.bf16.msra.mxu1 %v10566_v14  ;;  %v10654_v14 = vcombine.low %v359_v6, %v363_v7  ;;  %v471_v43 = vld [vmem:[#allocation2 + $0xd00] sm:$0xff] }
 0x256   :  { %8616 = vmatprep.subr.bf16.mxu1 %v10559_v31  ;;  %v10782_v31 = vcombine.low %v487_v8, %v491_v10  ;;  %v475_v44 = vld [vmem:[#allocation2 + $0xd20] sm:$0xff] }
 0x257   :  { %8574 = vmatpush2.bf16.msra.mxu0 %v10430_v41  ;;  %v343_v41 = vld [vmem:[#allocation2 + $0x900] sm:$0xff]  ;;  %v10767_v62 = vcombine.high %v471_v43, %v475_v44  ;;  %v10766_v8 = vcombine.low %v471_v43, %v475_v44 }
 0x258   :  { %8575 = vmatprep.subr.bf16.mxu0 %v10423_v49  ;;  %v11240_v49 = vld [vmem:[%s13412_s0 + $0x14] ss:$48 sps:$4 sm:$0x3f]  }
 0x259   :  { %8617 = vmatpush2.bf16.msra.mxu1 %v10558_v42  ;;  %v347_v42 = vld [vmem:[#allocation2 + $0x920] sm:$0xff] }
 0x25a   :  { %8618 = vmatprep.subr.bf16.mxu1 %v10551_v21  ;;  %v10639_v58 = vcombine.high %v343_v41, %v347_v42  ;;  %v467_v6 = vld [vmem:[#allocation2 + $0xce0] sm:$0xff]  ;;  %v10638_v7 = vcombine.low %v343_v41, %v347_v42 }
 0x25b   :  { %8576 = vmatpush2.bf16.msra.mxu0 %v10422_v52  ;;  %v431_v43 = vld [vmem:[#allocation2 + $0xbc0] sm:$0xff] }
 0x25c   :  { %8577 = vmatprep.subr.bf16.mxu0 %v10415_v55  ;;  %v435_v44 = vld [vmem:[#allocation2 + $0xbe0] sm:$0xff] }
 0x25d   :  { %8619 = vmatpush2.bf16.msra.mxu1 %v10550_v54  ;;  %v10646_v54 = vcombine.low %v351_v20, %v355_v34 }
 0x25e   :  { %8620 = vmatprep.subr.bf16.mxu1 %v10543_v56  ;;  %v10774_v56 = vcombine.low %v479_v26, %v483_v2 }
 0x25f   :  { %8578 = vmatpush2.bf16.msra.mxu0 %v10414_v0  ;;  %v335_v0 = vld [vmem:[#allocation2 + $0x8c0] sm:$0xff] }
 0x260   :  { %8633 = vmatprep.subr.bf16.mxu0 %v10663_v4 }
 0x261   :  { %8621 = vmatpush2.bf16.msra.mxu1 %v10542_v3  ;;  %v339_v3 = vld [vmem:[#allocation2 + $0x8e0] sm:$0xff] }
 0x262   :  { %8676 = vmatprep.subr.bf16.mxu1 %v10791_v5  ;;  %v4455_v23 = vpop.f32.mrf.mxu0  ;;  %8580 = vmatmul.mubr.bf16.vlgmr.msra.gmra.mxu0 %v11238_v24  ;;  %v463_v5 = vld [vmem:[#allocation2 + $0xcc0] sm:$0xff]  ;;  %v10631_v10 = vcombine.high %v335_v0, %v339_v3  ;;  %v10630_v20 = vcombine.low %v335_v0, %v339_v3  ;;  %v10726_v3 = vcombine.low %v431_v43, %v435_v44 }
 0x263   :  { %v4456_v39 = vadd.f32 %v4455_v23, %v13013_v11  ;;  %8634 = vmatpush1.bf16.msra.mxu0 %v10662_v13  ;;  %v10775_v11 = vcombine.high %v479_v26, %v483_v2  ;;  %8665 = vmatprep.mubr.bf16.mxu0 %v11240_v49  ;;  %v10759_v13 = vcombine.high %v463_v5, %v467_v6  ;;  %v319_v26 = vld [vmem:[#allocation2 + $0x840] sm:$0xff] }
 0x264   :  { %v4498_v27 = vpop.f32.mrf.mxu1  ;;  %8623 = vmatmul.mubr.bf16.vlgmr.msra.gmra.mxu1 %v11239_v60  ;;  %v4457_v12 = vpop.f32.mrf.mxu0  ;;  %8635 = vmatprep.subr.bf16.mxu0 %v10655_v17  ;;  %v331_v17 = vld [vmem:[#allocation2 + $0x8a0] sm:$0xff]  ;;  %v10758_v34 = vcombine.low %v463_v5, %v467_v6 }
 0x265   :  { %8677 = vmatpush1.bf16.msra.mxu1 %v10790_v16  ;;  %v13034_v33 = vadd.f32 %v4498_v27, %v4456_v39  ;;  %v4458_v46 = vadd.f32 %v4457_v12, %v13018_v63  ;;  %8708 = vmatprep.mubr.bf16.mxu1 %v11241_v47  ;;  %v327_v16 = vld [vmem:[#allocation2 + $0x880] sm:$0xff] }
 0x266   :  { %v4500_v37 = vpop.f32.mrf.mxu1  ;;  %8678 = vmatprep.subr.bf16.mxu1 %v10783_v19  ;;  %v4459_v21 = vpop.f32.mrf.mxu0  ;;  %v459_v19 = vld [vmem:[#allocation2 + $0xca0] sm:$0xff]  ;;  %v10623_v23 = vcombine.high %v327_v16, %v331_v17  ;;  %v10622_v60 = vcombine.low %v327_v16, %v331_v17 }
 0x267   :  { %v13043_v51 = vadd.f32 %v4500_v37, %v4458_v46  ;;  %v4460_v63 = vadd.f32 %v4459_v21, %v13023_v35  ;;  %8636 = vmatpush1.bf16.msra.mxu0 %v10654_v14  ;;  %v323_v2 = vld [vmem:[#allocation2 + $0x860] sm:$0xff] }
 0x268   :  { %v4502_v52 = vpop.f32.mrf.mxu1  ;;  %v4461_v55 = vpop.f32.mrf.mxu0  ;;  %8637 = vmatprep.subr.bf16.mxu0 %v10647_v32  ;;  %v447_v39 = vld [vmem:[#allocation2 + $0xc40] sm:$0xff]  ;;  %v10615_v12 = vcombine.high %v319_v26, %v323_v2  ;;  %v10614_v41 = vcombine.low %v319_v26, %v323_v2 }
 0x269   :  { %8679 = vmatpush1.bf16.msra.mxu1 %v10782_v31  ;;  %v13046_v59 = vadd.f32 %v4502_v52, %v4460_v63  ;;  %v4462_v61 = vadd.f32 %v4461_v55, %v13025_v45  ;;  %v455_v45 = vld [vmem:[#allocation2 + $0xc80] sm:$0xff]  ;;  %v10727_v55 = vcombine.high %v431_v43, %v435_v44 }
 0x26a   :  { %8680 = vmatprep.subr.bf16.mxu1 %v10775_v11  ;;  %v4504_v4 = vpop.f32.mrf.mxu1  ;;  %v10751_v24 = vcombine.high %v455_v45, %v459_v19  ;;  %v451_v27 = vld [vmem:[#allocation2 + $0xc60] sm:$0xff]  ;;  %v10750_v14 = vcombine.low %v455_v45, %v459_v19 }
 0x26b   :  { %v13049_v35 = vadd.f32 %v4504_v4, %v4462_v61  ;;  %8638 = vmatpush1.bf16.msra.mxu0 %v10646_v54  ;;  %v10743_v31 = vcombine.high %v447_v39, %v451_v27  ;;  %v311_v32 = vld [vmem:[#allocation2 + $0x800] sm:$0xff]  ;;  %v10742_v42 = vcombine.low %v447_v39, %v451_v27 }
 0x26c   :  { %8639 = vmatprep.subr.bf16.mxu0 %v10639_v58  ;;  %v315_v46 = vld [vmem:[#allocation2 + $0x820] sm:$0xff] }
 0x26d   :  { %8681 = vmatpush1.bf16.msra.mxu1 %v10774_v56  ;;  %v439_v37 = vld [vmem:[#allocation2 + $0xc00] sm:$0xff]  ;;  %v10607_v49 = vcombine.high %v311_v32, %v315_v46  ;;  %v10606_v52 = vcombine.low %v311_v32, %v315_v46 }
 0x26e   :  { %8682 = vmatprep.subr.bf16.mxu1 %v10767_v62  ;;  %v443_v11 = vld [vmem:[#allocation2 + $0xc20] sm:$0xff] }
 0x26f   :  { %8640 = vmatpush1.bf16.msra.mxu0 %v10638_v7  ;;  %v10735_v21 = vcombine.high %v439_v37, %v443_v11  ;;  %v559_v47 = vld [vmem:[#allocation2 + $0xfc0] sm:$0xff]  ;;  %v10734_v54 = vcombine.low %v439_v37, %v443_v11 }
 0x270   :  { %8641 = vmatprep.subr.bf16.mxu0 %v10631_v10  ;;  %v563_v63 = vld [vmem:[#allocation2 + $0xfe0] sm:$0xff] }
 0x271   :  { %8683 = vmatpush1.bf16.msra.mxu1 %v10766_v8  ;;  %v10855_v56 = vcombine.high %v559_v47, %v563_v63  ;;  %v423_v58 = vld [vmem:[#allocation2 + $0xb80] sm:$0xff]  ;;  %v10854_v4 = vcombine.low %v559_v47, %v563_v63 }
 0x272   :  { %8684 = vmatprep.subr.bf16.mxu1 %v10759_v13  ;;  %v427_v61 = vld [vmem:[#allocation2 + $0xba0] sm:$0xff] }
 0x273   :  { %8642 = vmatpush1.bf16.msra.mxu0 %v10630_v20  ;;  %v551_v62 = vld [vmem:[#allocation2 + $0xf80] sm:$0xff]  ;;  %v10719_v5 = vcombine.high %v423_v58, %v427_v61  ;;  %v10718_v16 = vcombine.low %v423_v58, %v427_v61 }
 0x274   :  { %8643 = vmatprep.subr.bf16.mxu0 %v10623_v23  ;;  %v555_v0 = vld [vmem:[#allocation2 + $0xfa0] sm:$0xff] }
 0x275   :  { %8685 = vmatpush1.bf16.msra.mxu1 %v10758_v34  ;;  %v10847_v6 = vcombine.high %v551_v62, %v555_v0  ;;  %v415_v7 = vld [vmem:[#allocation2 + $0xb40] sm:$0xff]  ;;  %v10846_v17 = vcombine.low %v551_v62, %v555_v0 }
 0x276   :  { %8686 = vmatprep.subr.bf16.mxu1 %v10751_v24  ;;  %v419_v8 = vld [vmem:[#allocation2 + $0xb60] sm:$0xff] }
 0x277   :  { %8644 = vmatpush1.bf16.msra.mxu0 %v10622_v60  ;;  %v543_v10 = vld [vmem:[#allocation2 + $0xf40] sm:$0xff]  ;;  %v10711_v45 = vcombine.high %v415_v7, %v419_v8  ;;  %v10710_v26 = vcombine.low %v415_v7, %v419_v8 }
 0x278   :  { %8645 = vmatprep.subr.bf16.mxu0 %v10615_v12  ;;  %v547_v13 = vld [vmem:[#allocation2 + $0xf60] sm:$0xff] }
 0x279   :  { %8687 = vmatpush1.bf16.msra.mxu1 %v10750_v14  ;;  %v10839_v19 = vcombine.high %v543_v10, %v547_v13  ;;  %v407_v20 = vld [vmem:[#allocation2 + $0xb00] sm:$0xff]  ;;  %v10838_v2 = vcombine.low %v543_v10, %v547_v13 }
 0x27a   :  { %8688 = vmatprep.subr.bf16.mxu1 %v10743_v31  ;;  %v411_v34 = vld [vmem:[#allocation2 + $0xb20] sm:$0xff] }
 0x27b   :  { %8646 = vmatpush1.bf16.msra.mxu0 %v10614_v41  ;;  %v535_v23 = vld [vmem:[#allocation2 + $0xf00] sm:$0xff]  ;;  %v10703_v39 = vcombine.high %v407_v20, %v411_v34  ;;  %v10702_v32 = vcombine.low %v407_v20, %v411_v34 }
 0x27c   :  { %8647 = vmatprep.subr.bf16.mxu0 %v10607_v49  ;;  %v539_v24 = vld [vmem:[#allocation2 + $0xf20] sm:$0xff] }
 0x27d   :  { %8689 = vmatpush1.bf16.msra.mxu1 %v10742_v42  ;;  %v10831_v27 = vcombine.high %v535_v23, %v539_v24  ;;  %v399_v60 = vld [vmem:[#allocation2 + $0xac0] sm:$0xff]  ;;  %v10830_v46 = vcombine.low %v535_v23, %v539_v24 }
 0x27e   :  { %8690 = vmatprep.subr.bf16.mxu1 %v10735_v21  ;;  %v403_v14 = vld [vmem:[#allocation2 + $0xae0] sm:$0xff] }
 0x27f   :  { %8648 = vmatpush1.bf16.msra.mxu0 %v10606_v52  ;;  %v527_v12 = vld [vmem:[#allocation2 + $0xec0] sm:$0xff]  ;;  %v10695_v37 = vcombine.high %v399_v60, %v403_v14  ;;  %v10694_v43 = vcombine.low %v399_v60, %v403_v14 }
 0x280   :  { %8649 = vmatprep.subr.bf16.mxu0 %v10727_v55  ;;  %v531_v31 = vld [vmem:[#allocation2 + $0xee0] sm:$0xff] }
 0x281   :  { %8691 = vmatpush1.bf16.msra.mxu1 %v10734_v54  ;;  %v10823_v11 = vcombine.high %v527_v12, %v531_v31  ;;  %v391_v41 = vld [vmem:[#allocation2 + $0xa80] sm:$0xff]  ;;  %v10822_v44 = vcombine.low %v527_v12, %v531_v31 }
 0x282   :  { %8692 = vmatprep.subr.bf16.mxu1 %v10855_v56  ;;  %v395_v42 = vld [vmem:[#allocation2 + $0xaa0] sm:$0xff] }
 0x283   :  { %8650 = vmatpush2.bf16.msra.mxu0 %v10726_v3  ;;  %v519_v49 = vld [vmem:[#allocation2 + $0xe80] sm:$0xff]  ;;  %v10687_v47 = vcombine.high %v391_v41, %v395_v42  ;;  %v10686_v58 = vcombine.low %v391_v41, %v395_v42 }
 0x284   :  { %8651 = vmatprep.subr.bf16.mxu0 %v10719_v5  ;;  %v523_v21 = vld [vmem:[#allocation2 + $0xea0] sm:$0xff] }
 0x285   :  { %8693 = vmatpush2.bf16.msra.mxu1 %v10854_v4  ;;  %v10815_v63 = vcombine.high %v519_v49, %v523_v21  ;;  %v383_v52 = vld [vmem:[#allocation2 + $0xa40] sm:$0xff]  ;;  %v10814_v61 = vcombine.low %v519_v49, %v523_v21  ;;  %v11168_v21 = vld [vmem:[%s13412_s0 + $0x2c] ss:$48 sps:$4 sm:$0x3f]  }
 0x286   :  { %8694 = vmatprep.subr.bf16.mxu1 %v10847_v6  ;;  %v387_v54 = vld [vmem:[#allocation2 + $0xa60] sm:$0xff] }
 0x287   :  { %8652 = vmatpush2.bf16.msra.mxu0 %v10718_v16  ;;  %v511_v55 = vld [vmem:[#allocation2 + $0xe40] sm:$0xff]  ;;  %v10679_v62 = vcombine.high %v383_v52, %v387_v54  ;;  %v10678_v7 = vcombine.low %v383_v52, %v387_v54 }
 0x288   :  { %8653 = vmatprep.subr.bf16.mxu0 %v10711_v45  ;;  %v515_v56 = vld [vmem:[#allocation2 + $0xe60] sm:$0xff] }
 0x289   :  { %8695 = vmatpush2.bf16.msra.mxu1 %v10846_v17  ;;  %v10807_v0 = vcombine.high %v511_v55, %v515_v56  ;;  %v375_v3 = vld [vmem:[#allocation2 + $0xa00] sm:$0xff]  ;;  %v10806_v8 = vcombine.low %v511_v55, %v515_v56 }
 0x28a   :  { %8696 = vmatprep.subr.bf16.mxu1 %v10839_v19  ;;  %v379_v4 = vld [vmem:[#allocation2 + $0xa20] sm:$0xff] }
 0x28b   :  { %8654 = vmatpush2.bf16.msra.mxu0 %v10710_v26  ;;  %v503_v5 = vld [vmem:[#allocation2 + $0xe00] sm:$0xff]  ;;  %v10671_v10 = vcombine.high %v375_v3, %v379_v4  ;;  %v10670_v20 = vcombine.low %v375_v3, %v379_v4 }
 0x28c   :  { %8655 = vmatprep.subr.bf16.mxu0 %v10703_v39  ;;  %v507_v6 = vld [vmem:[#allocation2 + $0xe20] sm:$0xff] }
 0x28d   :  { %8697 = vmatpush2.bf16.msra.mxu1 %v10838_v2  ;;  %v10799_v13 = vcombine.high %v503_v5, %v507_v6  ;;  %v623_v16 = vld [vmem:[#allocation2 + $0x11c0] sm:$0xff]  ;;  %v10798_v34 = vcombine.low %v503_v5, %v507_v6 }
 0x28e   :  { %8698 = vmatprep.subr.bf16.mxu1 %v10831_v27  ;;  %v627_v17 = vld [vmem:[#allocation2 + $0x11e0] sm:$0xff] }
 0x28f   :  { %8656 = vmatpush2.bf16.msra.mxu0 %v10702_v32  ;;  %v751_v45 = vld [vmem:[#allocation2 + $0x15c0] sm:$0xff]  ;;  %v10919_v23 = vcombine.high %v623_v16, %v627_v17  ;;  %v10918_v60 = vcombine.low %v623_v16, %v627_v17 }
 0x290   :  { %8657 = vmatprep.subr.bf16.mxu0 %v10695_v37  ;;  %v755_v19 = vld [vmem:[#allocation2 + $0x15e0] sm:$0xff] }
 0x291   :  { %8699 = vmatpush2.bf16.msra.mxu1 %v10830_v46  ;;  %v11047_v24 = vcombine.high %v751_v45, %v755_v19  ;;  %v615_v26 = vld [vmem:[#allocation2 + $0x1180] sm:$0xff]  ;;  %v11046_v14 = vcombine.low %v751_v45, %v755_v19 }
 0x292   :  { %8700 = vmatprep.subr.bf16.mxu1 %v10823_v11  ;;  %v619_v2 = vld [vmem:[#allocation2 + $0x11a0] sm:$0xff] }
 0x293   :  { %8658 = vmatpush2.bf16.msra.mxu0 %v10694_v43  ;;  %v743_v39 = vld [vmem:[#allocation2 + $0x1580] sm:$0xff]  ;;  %v10911_v12 = vcombine.high %v615_v26, %v619_v2 }
 0x294   :  { %8659 = vmatprep.subr.bf16.mxu0 %v10687_v47  ;;  %v747_v27 = vld [vmem:[#allocation2 + $0x15a0] sm:$0xff]  ;;  %v10910_v47 = vcombine.low %v615_v26, %v619_v2 }
 0x295   :  { %8701 = vmatpush2.bf16.msra.mxu1 %v10822_v44  ;;  %v11039_v31 = vcombine.high %v743_v39, %v747_v27  ;;  %v607_v32 = vld [vmem:[#allocation2 + $0x1140] sm:$0xff]  ;;  %v11243_v44 = vld [vmem:[%s13412_s0 + $0x18] ss:$48 sps:$4 sm:$0x3f]   ;;  %v11038_v54 = vcombine.low %v743_v39, %v747_v27 }
 0x296   :  { %8702 = vmatprep.subr.bf16.mxu1 %v10815_v63  ;;  %v611_v46 = vld [vmem:[#allocation2 + $0x1160] sm:$0xff] }
 0x297   :  { %8660 = vmatpush2.bf16.msra.mxu0 %v10686_v58  ;;  %v11166_v37 = vld [vmem:[%s13412_s0 + $0x24] ss:$48 sps:$4 sm:$0x3f]   ;;  %v11242_v41 = vld [vmem:[%s13412_s0 + $0x10] ss:$48 sps:$4 sm:$0x3f]   ;;  %v10903_v55 = vcombine.high %v607_v32, %v611_v46 }
 0x298   :  { %8661 = vmatprep.subr.bf16.mxu0 %v10679_v62  ;;  %v735_v42 = vld [vmem:[#allocation2 + $0x1540] sm:$0xff] }
 0x299   :  { %8703 = vmatpush2.bf16.msra.mxu1 %v10814_v61  ;;  %v739_v49 = vld [vmem:[#allocation2 + $0x1560] sm:$0xff] }
 0x29a   :  { %8704 = vmatprep.subr.bf16.mxu1 %v10807_v0  ;;  %v11031_v58 = vcombine.high %v735_v42, %v739_v49  ;;  %v599_v61 = vld [vmem:[#allocation2 + $0x1100] sm:$0xff] }
 0x29b   :  { %8662 = vmatpush2.bf16.msra.mxu0 %v10678_v7  ;;  %v603_v62 = vld [vmem:[#allocation2 + $0x1120] sm:$0xff]  ;;  %v10902_v7 = vcombine.low %v607_v32, %v611_v46 }
 0x29c   :  { %8663 = vmatprep.subr.bf16.mxu0 %v10671_v10  ;;  %v727_v4 = vld [vmem:[#allocation2 + $0x1500] sm:$0xff]  ;;  %v10895_v16 = vcombine.high %v599_v61, %v603_v62  ;;  %v10894_v26 = vcombine.low %v599_v61, %v603_v62 }
 0x29d   :  { %8705 = vmatpush2.bf16.msra.mxu1 %v10806_v8  ;;  %v731_v5 = vld [vmem:[#allocation2 + $0x1520] sm:$0xff] }
 0x29e   :  { %8706 = vmatprep.subr.bf16.mxu1 %v10799_v13  ;;  %v11030_v13 = vcombine.low %v735_v42, %v739_v49  ;;  %v11023_v45 = vcombine.high %v727_v4, %v731_v5  ;;  %v591_v19 = vld [vmem:[#allocation2 + $0x10c0] sm:$0xff]  ;;  %v11022_v2 = vcombine.low %v727_v4, %v731_v5 }
 0x29f   :  { %8664 = vmatpush2.bf16.msra.mxu0 %v10670_v20  ;;  %v595_v20 = vld [vmem:[#allocation2 + $0x10e0] sm:$0xff] }
 0x2a0   :  { %8719 = vmatprep.subr.bf16.mxu0 %v10919_v23  ;;  %v719_v23 = vld [vmem:[#allocation2 + $0x14c0] sm:$0xff]  ;;  %v10887_v39 = vcombine.high %v591_v19, %v595_v20  ;;  %v10886_v32 = vcombine.low %v591_v19, %v595_v20 }
 0x2a1   :  { %8707 = vmatpush2.bf16.msra.mxu1 %v10798_v34  ;;  %v579_v42 = vld [vmem:[#allocation2 + $0x1060] sm:$0xff] }
 0x2a2   :  { %8762 = vmatprep.subr.bf16.mxu1 %v11047_v24  ;;  %v4541_v11 = vpop.f32.mrf.mxu0  ;;  %8666 = vmatmul.mubr.bf16.vlgmr.msra.gmra.mxu0 %v11242_v41  ;;  %v723_v24 = vld [vmem:[#allocation2 + $0x14e0] sm:$0xff] }
 0x2a3   :  { %8720 = vmatpush1.bf16.msra.mxu0 %v10918_v60  ;;  %8751 = vmatprep.mubr.bf16.mxu0 %v11166_v37  ;;  %v11015_v27 = vcombine.high %v719_v23, %v723_v24  ;;  %v583_v60 = vld [vmem:[#allocation2 + $0x1080] sm:$0xff]  ;;  %v11014_v46 = vcombine.low %v719_v23, %v723_v24 }
 0x2a4   :  { %v4584_v43 = vpop.f32.mrf.mxu1  ;;  %8709 = vmatmul.mubr.bf16.vlgmr.msra.gmra.mxu1 %v11243_v44  ;;  %v4543_v52 = vpop.f32.mrf.mxu0  ;;  %8721 = vmatprep.subr.bf16.mxu0 %v10911_v12  ;;  %v711_v12 = vld [vmem:[#allocation2 + $0x1480] sm:$0xff] }
 0x2a5   :  { %v13063_v63 = vadd.f32 %v4584_v43, %v4541_v11  ;;  %8763 = vmatpush1.bf16.msra.mxu1 %v11046_v14  ;;  %8794 = vmatprep.mubr.bf16.mxu1 %v11168_v21  ;;  %v587_v14 = vld [vmem:[#allocation2 + $0x10a0] sm:$0xff] }
 0x2a6   :  { %v4586_v56 = vpop.f32.mrf.mxu1  ;;  %8764 = vmatprep.subr.bf16.mxu1 %v11039_v31  ;;  %v4545_v3 = vpop.f32.mrf.mxu0  ;;  %v715_v31 = vld [vmem:[#allocation2 + $0x14a0] sm:$0xff]  ;;  %v10879_v37 = vcombine.high %v583_v60, %v587_v14  ;;  %v10878_v43 = vcombine.low %v583_v60, %v587_v14 }
 0x2a7   :  { %v13065_v0 = vadd.f32 %v4586_v56, %v4543_v52  ;;  %8722 = vmatpush1.bf16.msra.mxu0 %v10910_v47  ;;  %v11007_v11 = vcombine.high %v711_v12, %v715_v31  ;;  %v575_v41 = vld [vmem:[#allocation2 + $0x1040] sm:$0xff]  ;;  %v11006_v44 = vcombine.low %v711_v12, %v715_v31 }
 0x2a8   :  { %v4588_v6 = vpop.f32.mrf.mxu1  ;;  %v4547_v10 = vpop.f32.mrf.mxu0  ;;  %8723 = vmatprep.subr.bf16.mxu0 %v10903_v55  ;;  %v703_v49 = vld [vmem:[#allocation2 + $0x1440] sm:$0xff]  ;;  %v10871_v47 = vcombine.high %v575_v41, %v579_v42  ;;  %v10870_v61 = vcombine.low %v575_v41, %v579_v42 }
 0x2a9   :  { %v13067_v8 = vadd.f32 %v4588_v6, %v4545_v3  ;;  %8765 = vmatpush1.bf16.msra.mxu1 %v11038_v54  ;;  %v707_v21 = vld [vmem:[#allocation2 + $0x1460] sm:$0xff] }
 0x2aa   :  { %v4590_v17 = vpop.f32.mrf.mxu1  ;;  %8766 = vmatprep.subr.bf16.mxu1 %v11031_v58  ;;  %v10999_v52 = vcombine.high %v703_v49, %v707_v21  ;;  %v567_v54 = vld [vmem:[#allocation2 + $0x1000] sm:$0xff]  ;;  %v10998_v62 = vcombine.low %v703_v49, %v707_v21 }
 0x2ab   :  { %v13069_v34 = vadd.f32 %v4590_v17, %v4547_v10  ;;  %8724 = vmatpush1.bf16.msra.mxu0 %v10902_v7  ;;  %v571_v55 = vld [vmem:[#allocation2 + $0x1020] sm:$0xff] }
 0x2ac   :  { %8725 = vmatprep.subr.bf16.mxu0 %v10895_v16  ;;  %v695_v56 = vld [vmem:[#allocation2 + $0x1400] sm:$0xff]  ;;  %v10863_v3 = vcombine.high %v567_v54, %v571_v55 }
 0x2ad   :  { %8767 = vmatpush1.bf16.msra.mxu1 %v11030_v13  ;;  %v699_v58 = vld [vmem:[#allocation2 + $0x1420] sm:$0xff]  ;;  %v10862_v13 = vcombine.low %v567_v54, %v571_v55 }
 0x2ae   :  { %8768 = vmatprep.subr.bf16.mxu1 %v11023_v45  ;;  %v10991_v4 = vcombine.high %v695_v56, %v699_v58  ;;  %v687_v5 = vld [vmem:[#allocation2 + $0x13c0] sm:$0xff]  ;;  %v10990_v16 = vcombine.low %v695_v56, %v699_v58 }
 0x2af   :  { %8726 = vmatpush1.bf16.msra.mxu0 %v10894_v26  ;;  %v691_v6 = vld [vmem:[#allocation2 + $0x13e0] sm:$0xff] }
 0x2b0   :  { %8727 = vmatprep.subr.bf16.mxu0 %v10887_v39  ;;  %v815_v7 = vld [vmem:[#allocation2 + $0x17c0] sm:$0xff]  ;;  %v10983_v17 = vcombine.high %v687_v5, %v691_v6  ;;  %v10982_v26 = vcombine.low %v687_v5, %v691_v6 }
 0x2b1   :  { %8769 = vmatpush1.bf16.msra.mxu1 %v11022_v2  ;;  %v819_v10 = vld [vmem:[#allocation2 + $0x17e0] sm:$0xff] }
 0x2b2   :  { %8770 = vmatprep.subr.bf16.mxu1 %v11015_v27  ;;  %v11111_v45 = vcombine.high %v815_v7, %v819_v10  ;;  %v679_v19 = vld [vmem:[#allocation2 + $0x1380] sm:$0xff]  ;;  %v11110_v2 = vcombine.low %v815_v7, %v819_v10 }
 0x2b3   :  { %8728 = vmatpush1.bf16.msra.mxu0 %v10886_v32  ;;  %v683_v20 = vld [vmem:[#allocation2 + $0x13a0] sm:$0xff] }
 0x2b4   :  { %8729 = vmatprep.subr.bf16.mxu0 %v10879_v37  ;;  %v807_v23 = vld [vmem:[#allocation2 + $0x1780] sm:$0xff]  ;;  %v10975_v39 = vcombine.high %v679_v19, %v683_v20  ;;  %v10974_v32 = vcombine.low %v679_v19, %v683_v20 }
 0x2b5   :  { %8771 = vmatpush1.bf16.msra.mxu1 %v11014_v46  ;;  %v811_v24 = vld [vmem:[#allocation2 + $0x17a0] sm:$0xff] }
 0x2b6   :  { %8772 = vmatprep.subr.bf16.mxu1 %v11007_v11  ;;  %v11103_v27 = vcombine.high %v807_v23, %v811_v24  ;;  %v671_v60 = vld [vmem:[#allocation2 + $0x1340] sm:$0xff]  ;;  %v11102_v46 = vcombine.low %v807_v23, %v811_v24 }
 0x2b7   :  { %8730 = vmatpush1.bf16.msra.mxu0 %v10878_v43  ;;  %v675_v14 = vld [vmem:[#allocation2 + $0x1360] sm:$0xff] }
 0x2b8   :  { %8731 = vmatprep.subr.bf16.mxu0 %v10871_v47  ;;  %v799_v12 = vld [vmem:[#allocation2 + $0x1740] sm:$0xff]  ;;  %v10967_v37 = vcombine.high %v671_v60, %v675_v14  ;;  %v10966_v43 = vcombine.low %v671_v60, %v675_v14 }
 0x2b9   :  { %8773 = vmatpush1.bf16.msra.mxu1 %v11006_v44  ;;  %v803_v31 = vld [vmem:[#allocation2 + $0x1760] sm:$0xff] }
 0x2ba   :  { %8774 = vmatprep.subr.bf16.mxu1 %v10999_v52  ;;  %v11095_v11 = vcombine.high %v799_v12, %v803_v31  ;;  %v663_v41 = vld [vmem:[#allocation2 + $0x1300] sm:$0xff]  ;;  %v11094_v44 = vcombine.low %v799_v12, %v803_v31 }
 0x2bb   :  { %8732 = vmatpush1.bf16.msra.mxu0 %v10870_v61  ;;  %v667_v42 = vld [vmem:[#allocation2 + $0x1320] sm:$0xff] }
 0x2bc   :  { %8733 = vmatprep.subr.bf16.mxu0 %v10863_v3  ;;  %v791_v49 = vld [vmem:[#allocation2 + $0x1700] sm:$0xff]  ;;  %v10959_v47 = vcombine.high %v663_v41, %v667_v42  ;;  %v10958_v61 = vcombine.low %v663_v41, %v667_v42  ;;  %v112_v41 = vld [vmem:[#allocation2 + $0x1c8] sm:$0xff] }
 0x2bd   :  { %8775 = vmatpush1.bf16.msra.mxu1 %v10998_v62  ;;  %v795_v21 = vld [vmem:[#allocation2 + $0x1720] sm:$0xff]  ;;  %v116_v42 = vld [vmem:[#allocation2 + $0x1e8] sm:$0xff] }
 0x2be   :  { %8776 = vmatprep.subr.bf16.mxu1 %v10991_v4  ;;  %v11087_v52 = vcombine.high %v791_v49, %v795_v21  ;;  %v655_v54 = vld [vmem:[#allocation2 + $0x12c0] sm:$0xff]  ;;  %v11086_v62 = vcombine.low %v791_v49, %v795_v21  ;;  %v240_v49 = vld [vmem:[#allocation2 + $0x5c8] sm:$0xff] }
 0x2bf   :  { %8734 = vmatpush1.bf16.msra.mxu0 %v10862_v13  ;;  %v659_v55 = vld [vmem:[#allocation2 + $0x12e0] sm:$0xff]  ;;  %v244_v21 = vld [vmem:[#allocation2 + $0x5e8] sm:$0xff] }
 0x2c0   :  { %8735 = vmatprep.subr.bf16.mxu0 %v10983_v17  ;;  %v783_v56 = vld [vmem:[#allocation2 + $0x16c0] sm:$0xff]  ;;  %v10951_v3 = vcombine.high %v655_v54, %v659_v55  ;;  %v10950_v13 = vcombine.low %v655_v54, %v659_v55  ;;  %v104_v54 = vld [vmem:[#allocation2 + $0x188] sm:$0xff] }
 0x2c1   :  { %8777 = vmatpush1.bf16.msra.mxu1 %v10990_v16  ;;  %v787_v58 = vld [vmem:[#allocation2 + $0x16e0] sm:$0xff]  ;;  %v108_v55 = vld [vmem:[#allocation2 + $0x1a8] sm:$0xff] }
 0x2c2   :  { %8778 = vmatprep.subr.bf16.mxu1 %v11111_v45  ;;  %v11079_v4 = vcombine.high %v783_v56, %v787_v58  ;;  %v647_v5 = vld [vmem:[#allocation2 + $0x1280] sm:$0xff]  ;;  %v11078_v16 = vcombine.low %v783_v56, %v787_v58  ;;  %v232_v58 = vld [vmem:[#allocation2 + $0x588] sm:$0xff] }
 0x2c3   :  { %8736 = vmatpush2.bf16.msra.mxu0 %v10982_v26  ;;  %v651_v6 = vld [vmem:[#allocation2 + $0x12a0] sm:$0xff] }
 0x2c4   :  { %8737 = vmatprep.subr.bf16.mxu0 %v10975_v39  ;;  %v775_v7 = vld [vmem:[#allocation2 + $0x1680] sm:$0xff]  ;;  %v10943_v17 = vcombine.high %v647_v5, %v651_v6  ;;  %v10942_v26 = vcombine.low %v647_v5, %v651_v6  ;;  %v10401_v5 = vcombine.high %v104_v54, %v108_v55 }
 0x2c5   :  { %8779 = vmatpush2.bf16.msra.mxu1 %v11110_v2  ;;  %v779_v10 = vld [vmem:[#allocation2 + $0x16a0] sm:$0xff] }
 0x2c6   :  { %8780 = vmatprep.subr.bf16.mxu1 %v11103_v27  ;;  %v11071_v45 = vcombine.high %v775_v7, %v779_v10  ;;  %v639_v19 = vld [vmem:[#allocation2 + $0x1240] sm:$0xff]  ;;  %v11070_v2 = vcombine.low %v775_v7, %v779_v10  ;;  %v96_v7 = vld [vmem:[#allocation2 + $0x148] sm:$0xff] }
 0x2c7   :  { %8738 = vmatpush2.bf16.msra.mxu0 %v10974_v32  ;;  %v643_v20 = vld [vmem:[#allocation2 + $0x1260] sm:$0xff]  ;;  %v100_v10 = vld [vmem:[#allocation2 + $0x168] sm:$0xff] }
 0x2c8   :  { %8739 = vmatprep.subr.bf16.mxu0 %v10967_v37  ;;  %v767_v23 = vld [vmem:[#allocation2 + $0x1640] sm:$0xff]  ;;  %v10935_v39 = vcombine.high %v639_v19, %v643_v20  ;;  %v10934_v32 = vcombine.low %v639_v19, %v643_v20  ;;  %v10400_v20 = vcombine.low %v104_v54, %v108_v55  ;;  %v80_v54 = vld [vmem:[#allocation2 + $0xc8] sm:$0xff] }
 0x2c9   :  { %8781 = vmatpush2.bf16.msra.mxu1 %v11102_v46  ;;  %v771_v24 = vld [vmem:[#allocation2 + $0x1660] sm:$0xff]  ;;  %v84_v55 = vld [vmem:[#allocation2 + $0xe8] sm:$0xff] }
 0x2ca   :  { %8782 = vmatprep.subr.bf16.mxu1 %v11095_v11  ;;  %v11063_v27 = vcombine.high %v767_v23, %v771_v24  ;;  %v631_v60 = vld [vmem:[#allocation2 + $0x1200] sm:$0xff]  ;;  %v11062_v46 = vcombine.low %v767_v23, %v771_v24 }
 0x2cb   :  { %8740 = vmatpush2.bf16.msra.mxu0 %v10966_v43  ;;  %v635_v14 = vld [vmem:[#allocation2 + $0x1220] sm:$0xff] }
 0x2cc   :  { %8741 = vmatprep.subr.bf16.mxu0 %v10959_v47  ;;  %v759_v12 = vld [vmem:[#allocation2 + $0x1600] sm:$0xff]  ;;  %v10927_v37 = vcombine.high %v631_v60, %v635_v14  ;;  %v10926_v43 = vcombine.low %v631_v60, %v635_v14  ;;  %v10409_v47 = vcombine.high %v112_v41, %v116_v42  ;;  %v88_v14 = vld [vmem:[#allocation2 + $0x108] sm:$0xff] }
 0x2cd   :  { %8783 = vmatpush2.bf16.msra.mxu1 %v11094_v44  ;;  %v763_v31 = vld [vmem:[#allocation2 + $0x1620] sm:$0xff] }
 0x2ce   :  { %8784 = vmatprep.subr.bf16.mxu1 %v11087_v52  ;;  %v11055_v11 = vcombine.high %v759_v12, %v763_v31  ;;  %v11054_v44 = vcombine.low %v759_v12, %v763_v31  ;;  %v10537_v52 = vcombine.high %v240_v49, %v244_v21  ;;  %v11170_v56 = vld [vmem:[%s13412_s0 + $0x20] ss:$48 sps:$4 sm:$0x3f]   ;;  %v92_v12 = vld [vmem:[#allocation2 + $0x128] sm:$0xff] }
 0x2cf   :  { %8742 = vmatpush2.bf16.msra.mxu0 %v10958_v61  ;;  %v236_v61 = vld [vmem:[#allocation2 + $0x5a8] sm:$0xff] }
 0x2d0   :  { %8743 = vmatprep.subr.bf16.mxu0 %v10951_v3  ;;  %v10408_v3 = vcombine.low %v112_v41, %v116_v42  ;;  %v10529_v6 = vcombine.high %v232_v58, %v236_v61  ;;  %v10528_v24 = vcombine.low %v232_v58, %v236_v61  ;;  %v10392_v42 = vcombine.low %v96_v7, %v100_v10  ;;  %v208_v58 = vld [vmem:[#allocation2 + $0x4c8] sm:$0xff] }
 0x2d1   :  { %8785 = vmatpush2.bf16.msra.mxu1 %v11086_v62  ;;  %v11171_v62 = vld [vmem:[%s13412_s0 + $0x28] ss:$48 sps:$4 sm:$0x3f]  }
 0x2d2   :  { %8786 = vmatprep.subr.bf16.mxu1 %v11079_v4  ;;  %v10536_v4 = vcombine.low %v240_v49, %v244_v21  ;;  %v212_v61 = vld [vmem:[#allocation2 + $0x4e8] sm:$0xff] }
 0x2d3   :  { %8744 = vmatpush2.bf16.msra.mxu0 %v10950_v13 }
 0x2d4   :  { %8745 = vmatprep.subr.bf16.mxu0 %v10943_v17  ;;  %v228_v17 = vld [vmem:[#allocation2 + $0x568] sm:$0xff] }
 0x2d5   :  { %8787 = vmatpush2.bf16.msra.mxu1 %v11078_v16  ;;  %v224_v16 = vld [vmem:[#allocation2 + $0x548] sm:$0xff] }
 0x2d6   :  { %8788 = vmatprep.subr.bf16.mxu1 %v11071_v45  ;;  %v10521_v60 = vcombine.high %v224_v16, %v228_v17  ;;  %v10520_v21 = vcombine.low %v224_v16, %v228_v17  ;;  %v10504_v16 = vcombine.low %v208_v58, %v212_v61 }
 0x2d7   :  { %8746 = vmatpush2.bf16.msra.mxu0 %v10942_v26  ;;  %v10393_v26 = vcombine.high %v96_v7, %v100_v10  ;;  %v76_v7 = vld [vmem:[#allocation2 + $0xa8] sm:$0xff] }
 0x2d8   :  { %8747 = vmatprep.subr.bf16.mxu0 %v10935_v39  ;;  %v204_v10 = vld [vmem:[#allocation2 + $0x4a8] sm:$0xff] }
 0x2d9   :  { %8789 = vmatpush2.bf16.msra.mxu1 %v11070_v2 }
 0x2da   :  { %8790 = vmatprep.subr.bf16.mxu1 %v11063_v27 }
 0x2db   :  { %8748 = vmatpush2.bf16.msra.mxu0 %v10934_v32  ;;  %v216_v32 = vld [vmem:[#allocation2 + $0x508] sm:$0xff] }
 0x2dc   :  { %8749 = vmatprep.subr.bf16.mxu0 %v10927_v37  ;;  %v11245_v37 = vld [vmem:[%s13412_s0 + $0xc] ss:$48 sps:$4 sm:$0x3f]  }
 0x2dd   :  { %8791 = vmatpush2.bf16.msra.mxu1 %v11062_v46  ;;  %v220_v46 = vld [vmem:[#allocation2 + $0x528] sm:$0xff] }
 0x2de   :  { %8792 = vmatprep.subr.bf16.mxu1 %v11055_v11 }
 0x2df   :  { %8750 = vmatpush2.bf16.msra.mxu0 %v10926_v43  ;;  %v10385_v43 = vcombine.high %v88_v14, %v92_v12 }
 0x2e0   :  { %8805 = vmatprep.subr.bf16.mxu0 %v10409_v47 }
 0x2e1   :  { %8793 = vmatpush2.bf16.msra.mxu1 %v11054_v44 }
 0x2e2   :  { %8848 = vmatprep.subr.bf16.mxu1 %v10537_v52  ;;  %v4627_v13 = vpop.f32.mrf.mxu0  ;;  %8752 = vmatmul.mubr.bf16.vlgmr.msra.gmra.mxu0 %v11170_v56  ;;  %v10513_v52 = vcombine.high %v216_v32, %v220_v46 }
 0x2e3   :  { %v4628_v45 = vadd.f32 %v4627_v13, %v13063_v63  ;;  %8806 = vmatpush1.bf16.msra.mxu0 %v10408_v3  ;;  %v11244_v63 = vld [vmem:[%s13412_s0 + $0x4] ss:$48 sps:$4 sm:$0x3f]   ;;  %v10512_v3 = vcombine.low %v216_v32, %v220_v46  ;;  %v10376_v13 = vcombine.low %v80_v54, %v84_v55 }
 0x2e4   :  { %v4670_v19 = vpop.f32.mrf.mxu1  ;;  %8795 = vmatmul.mubr.bf16.vlgmr.msra.gmra.mxu1 %v11171_v62  ;;  %v4629_v23 = vpop.f32.mrf.mxu0  ;;  %8807 = vmatprep.subr.bf16.mxu0 %v10401_v5  ;;  %v10384_v62 = vcombine.low %v88_v14, %v92_v12  ;;  %v10505_v5 = vcombine.high %v208_v58, %v212_v61  ;;  %v56_v14 = vld [vmem:[#allocation2 + $0x8] sm:$0xff] }
 0x2e5   :  { %8849 = vmatpush1.bf16.msra.mxu1 %v10536_v4  ;;  %v13078_v2 = vadd.f32 %v4670_v19, %v4628_v45  ;;  %v4630_v39 = vadd.f32 %v4629_v23, %v13065_v0  ;;  %8837 = vmatprep.mubr.bf16.mxu0 %v11244_v63  ;;  %v10377_v4 = vcombine.high %v80_v54, %v84_v55  ;;  %v64_v19 = vld [vmem:[#allocation2 + $0x48] sm:$0xff] }
 0x2e6   :  { %v4672_v27 = vpop.f32.mrf.mxu1  ;;  %8850 = vmatprep.subr.bf16.mxu1 %v10529_v6  ;;  %v4631_v31 = vpop.f32.mrf.mxu0  ;;  %8880 = vmatprep.mubr.bf16.mxu1 %v11245_v37  ;;  %v72_v6 = vld [vmem:[#allocation2 + $0x88] sm:$0xff] }
 0x2e7   :  { %v13087_v11 = vadd.f32 %v4672_v27, %v4630_v39  ;;  %v4632_v0 = vadd.f32 %v4631_v31, %v13067_v8  ;;  %8808 = vmatpush1.bf16.msra.mxu0 %v10400_v20  ;;  %v10369_v17 = vcombine.high %v72_v6, %v76_v7  ;;  %v68_v20 = vld [vmem:[#allocation2 + $0x68] sm:$0xff] }
 0x2e8   :  { %v4674_v41 = vpop.f32.mrf.mxu1  ;;  %v4633_v49 = vpop.f32.mrf.mxu0  ;;  %8809 = vmatprep.subr.bf16.mxu0 %v10393_v26  ;;  %v192_v23 = vld [vmem:[#allocation2 + $0x448] sm:$0xff]  ;;  %v10368_v26 = vcombine.low %v72_v6, %v76_v7  ;;  %v10361_v27 = vcombine.high %v64_v19, %v68_v20  ;;  %v10360_v32 = vcombine.low %v64_v19, %v68_v20 }
 0x2e9   :  { %8851 = vmatpush1.bf16.msra.mxu1 %v10528_v24  ;;  %v13090_v44 = vadd.f32 %v4674_v41, %v4632_v0  ;;  %v4634_v47 = vadd.f32 %v4633_v49, %v13069_v34  ;;  %v200_v34 = vld [vmem:[#allocation2 + $0x488] sm:$0xff] }
 0x2ea   :  { %8852 = vmatprep.subr.bf16.mxu1 %v10521_v60  ;;  %v4676_v56 = vpop.f32.mrf.mxu1  ;;  %v10497_v45 = vcombine.high %v200_v34, %v204_v10  ;;  %v196_v24 = vld [vmem:[#allocation2 + $0x468] sm:$0xff]  ;;  %v10496_v39 = vcombine.low %v200_v34, %v204_v10 }
 0x2eb   :  { %v13093_v8 = vadd.f32 %v4676_v56, %v4634_v47  ;;  %8810 = vmatpush1.bf16.msra.mxu0 %v10392_v42  ;;  %v10489_v60 = vcombine.high %v192_v23, %v196_v24  ;;  %v60_v12 = vld [vmem:[#allocation2 + $0x28] sm:$0xff]  ;;  %v10488_v46 = vcombine.low %v192_v23, %v196_v24 }
 0x2ec   :  { %8811 = vmatprep.subr.bf16.mxu0 %v10385_v43  ;;  %v184_v63 = vld [vmem:[#allocation2 + $0x408] sm:$0xff]  ;;  %v10353_v37 = vcombine.high %v56_v14, %v60_v12  ;;  %v10352_v43 = vcombine.low %v56_v14, %v60_v12 }
 0x2ed   :  { %8853 = vmatpush1.bf16.msra.mxu1 %v10520_v21  ;;  %v188_v31 = vld [vmem:[#allocation2 + $0x428] sm:$0xff] }
 0x2ee   :  { %8854 = vmatprep.subr.bf16.mxu1 %v10513_v52  ;;  %v10481_v0 = vcombine.high %v184_v63, %v188_v31  ;;  %v176_v41 = vld [vmem:[#allocation2 + $0x3c8] sm:$0xff]  ;;  %v10480_v47 = vcombine.low %v184_v63, %v188_v31 }
 0x2ef   :  { %8812 = vmatpush1.bf16.msra.mxu0 %v10384_v62  ;;  %v180_v42 = vld [vmem:[#allocation2 + $0x3e8] sm:$0xff] }
 0x2f0   :  { %8813 = vmatprep.subr.bf16.mxu0 %v10377_v4  ;;  %v304_v49 = vld [vmem:[#allocation2 + $0x7c8] sm:$0xff]  ;;  %v10473_v52 = vcombine.high %v176_v41, %v180_v42  ;;  %v10472_v62 = vcombine.low %v176_v41, %v180_v42 }
 0x2f1   :  { %8855 = vmatpush1.bf16.msra.mxu1 %v10512_v3  ;;  %v308_v21 = vld [vmem:[#allocation2 + $0x7e8] sm:$0xff] }
 0x2f2   :  { %8856 = vmatprep.subr.bf16.mxu1 %v10505_v5  ;;  %v10601_v54 = vcombine.high %v304_v49, %v308_v21  ;;  %v168_v55 = vld [vmem:[#allocation2 + $0x388] sm:$0xff]  ;;  %v10600_v3 = vcombine.low %v304_v49, %v308_v21 }
 0x2f3   :  { %8814 = vmatpush1.bf16.msra.mxu0 %v10376_v13  ;;  %v172_v56 = vld [vmem:[#allocation2 + $0x3a8] sm:$0xff] }
 0x2f4   :  { %8815 = vmatprep.subr.bf16.mxu0 %v10369_v17  ;;  %v296_v58 = vld [vmem:[#allocation2 + $0x788] sm:$0xff]  ;;  %v10465_v4 = vcombine.high %v168_v55, %v172_v56  ;;  %v10464_v13 = vcombine.low %v168_v55, %v172_v56 }
 0x2f5   :  { %8857 = vmatpush1.bf16.msra.mxu1 %v10504_v16  ;;  %v300_v61 = vld [vmem:[#allocation2 + $0x7a8] sm:$0xff] }
 0x2f6   :  { %8858 = vmatprep.subr.bf16.mxu1 %v10497_v45  ;;  %v10593_v5 = vcombine.high %v296_v58, %v300_v61  ;;  %v160_v6 = vld [vmem:[#allocation2 + $0x348] sm:$0xff]  ;;  %v10592_v16 = vcombine.low %v296_v58, %v300_v61 }
 0x2f7   :  { %8816 = vmatpush1.bf16.msra.mxu0 %v10368_v26  ;;  %v164_v7 = vld [vmem:[#allocation2 + $0x368] sm:$0xff] }
 0x2f8   :  { %8817 = vmatprep.subr.bf16.mxu0 %v10361_v27  ;;  %v288_v34 = vld [vmem:[#allocation2 + $0x748] sm:$0xff]  ;;  %v10457_v17 = vcombine.high %v160_v6, %v164_v7  ;;  %v10456_v26 = vcombine.low %v160_v6, %v164_v7 }
 0x2f9   :  { %8859 = vmatpush1.bf16.msra.mxu1 %v10496_v39  ;;  %v292_v10 = vld [vmem:[#allocation2 + $0x768] sm:$0xff] }
 0x2fa   :  { %8860 = vmatprep.subr.bf16.mxu1 %v10489_v60  ;;  %v10585_v45 = vcombine.high %v288_v34, %v292_v10  ;;  %v152_v19 = vld [vmem:[#allocation2 + $0x308] sm:$0xff]  ;;  %v10584_v39 = vcombine.low %v288_v34, %v292_v10 }
 0x2fb   :  { %8818 = vmatpush1.bf16.msra.mxu0 %v10360_v32  ;;  %v156_v20 = vld [vmem:[#allocation2 + $0x328] sm:$0xff] }
 0x2fc   :  { %8819 = vmatprep.subr.bf16.mxu0 %v10353_v37  ;;  %v280_v23 = vld [vmem:[#allocation2 + $0x708] sm:$0xff]  ;;  %v10449_v27 = vcombine.high %v152_v19, %v156_v20  ;;  %v10448_v32 = vcombine.low %v152_v19, %v156_v20 }
 0x2fd   :  { %8861 = vmatpush1.bf16.msra.mxu1 %v10488_v46  ;;  %v284_v24 = vld [vmem:[#allocation2 + $0x728] sm:$0xff] }
 0x2fe   :  { %8862 = vmatprep.subr.bf16.mxu1 %v10481_v0  ;;  %v10577_v60 = vcombine.high %v280_v23, %v284_v24  ;;  %v144_v14 = vld [vmem:[#allocation2 + $0x2c8] sm:$0xff]  ;;  %v10576_v46 = vcombine.low %v280_v23, %v284_v24 }
 0x2ff   :  { %8820 = vmatpush1.bf16.msra.mxu0 %v10352_v43  ;;  %v148_v12 = vld [vmem:[#allocation2 + $0x2e8] sm:$0xff] }
 0x300   :  { %8821 = vmatprep.subr.bf16.mxu0 %v10473_v52  ;;  %v272_v63 = vld [vmem:[#allocation2 + $0x6c8] sm:$0xff]  ;;  %v10441_v37 = vcombine.high %v144_v14, %v148_v12  ;;  %v10440_v43 = vcombine.low %v144_v14, %v148_v12 }
 0x301   :  { %8863 = vmatpush1.bf16.msra.mxu1 %v10480_v47  ;;  %v276_v31 = vld [vmem:[#allocation2 + $0x6e8] sm:$0xff] }
 0x302   :  { %8864 = vmatprep.subr.bf16.mxu1 %v10601_v54  ;;  %v10569_v0 = vcombine.high %v272_v63, %v276_v31  ;;  %v136_v41 = vld [vmem:[#allocation2 + $0x288] sm:$0xff]  ;;  %v10568_v47 = vcombine.low %v272_v63, %v276_v31 }
 0x303   :  { %8822 = vmatpush2.bf16.msra.mxu0 %v10472_v62  ;;  %v140_v42 = vld [vmem:[#allocation2 + $0x2a8] sm:$0xff] }
 0x304   :  { %8823 = vmatprep.subr.bf16.mxu0 %v10465_v4  ;;  %v264_v49 = vld [vmem:[#allocation2 + $0x688] sm:$0xff]  ;;  %v10433_v52 = vcombine.high %v136_v41, %v140_v42  ;;  %v10432_v62 = vcombine.low %v136_v41, %v140_v42 }
 0x305   :  { %8865 = vmatpush2.bf16.msra.mxu1 %v10600_v3  ;;  %v268_v21 = vld [vmem:[#allocation2 + $0x6a8] sm:$0xff] }
 0x306   :  { %8866 = vmatprep.subr.bf16.mxu1 %v10593_v5  ;;  %v10561_v54 = vcombine.high %v264_v49, %v268_v21  ;;  %v128_v55 = vld [vmem:[#allocation2 + $0x248] sm:$0xff]  ;;  %v10560_v3 = vcombine.low %v264_v49, %v268_v21  ;;  %v11246_v49 = vld [vmem:[%s13412_s0] ss:$48 sps:$4 sm:$0x3f]  }
 0x307   :  { %8824 = vmatpush2.bf16.msra.mxu0 %v10464_v13  ;;  %v132_v56 = vld [vmem:[#allocation2 + $0x268] sm:$0xff] }
 0x308   :  { %8825 = vmatprep.subr.bf16.mxu0 %v10457_v17  ;;  %v256_v58 = vld [vmem:[#allocation2 + $0x648] sm:$0xff]  ;;  %v10425_v4 = vcombine.high %v128_v55, %v132_v56  ;;  %v10424_v13 = vcombine.low %v128_v55, %v132_v56 }
 0x309   :  { %8867 = vmatpush2.bf16.msra.mxu1 %v10592_v16  ;;  %v260_v61 = vld [vmem:[#allocation2 + $0x668] sm:$0xff] }
 0x30a   :  { %8868 = vmatprep.subr.bf16.mxu1 %v10585_v45  ;;  %v10553_v5 = vcombine.high %v256_v58, %v260_v61  ;;  %v120_v6 = vld [vmem:[#allocation2 + $0x208] sm:$0xff]  ;;  %v10552_v16 = vcombine.low %v256_v58, %v260_v61 }
 0x30b   :  { %8826 = vmatpush2.bf16.msra.mxu0 %v10456_v26  ;;  %v124_v7 = vld [vmem:[#allocation2 + $0x228] sm:$0xff] }
 0x30c   :  { %8827 = vmatprep.subr.bf16.mxu0 %v10449_v27  ;;  %v248_v34 = vld [vmem:[#allocation2 + $0x608] sm:$0xff]  ;;  %v10417_v17 = vcombine.high %v120_v6, %v124_v7  ;;  %v10416_v26 = vcombine.low %v120_v6, %v124_v7 }
 0x30d   :  { %8869 = vmatpush2.bf16.msra.mxu1 %v10584_v39  ;;  %v252_v10 = vld [vmem:[#allocation2 + $0x628] sm:$0xff] }
 0x30e   :  { %8870 = vmatprep.subr.bf16.mxu1 %v10577_v60  ;;  %v10545_v45 = vcombine.high %v248_v34, %v252_v10  ;;  %v368_v19 = vld [vmem:[#allocation2 + $0x9c8] sm:$0xff]  ;;  %v10544_v39 = vcombine.low %v248_v34, %v252_v10 }
 0x30f   :  { %8828 = vmatpush2.bf16.msra.mxu0 %v10448_v32  ;;  %v372_v20 = vld [vmem:[#allocation2 + $0x9e8] sm:$0xff] }
 0x310   :  { %8829 = vmatprep.subr.bf16.mxu0 %v10441_v37  ;;  %v496_v23 = vld [vmem:[#allocation2 + $0xdc8] sm:$0xff]  ;;  %v10665_v27 = vcombine.high %v368_v19, %v372_v20  ;;  %v10664_v32 = vcombine.low %v368_v19, %v372_v20 }
 0x311   :  { %8871 = vmatpush2.bf16.msra.mxu1 %v10576_v46  ;;  %v500_v24 = vld [vmem:[#allocation2 + $0xde8] sm:$0xff] }
 0x312   :  { %8872 = vmatprep.subr.bf16.mxu1 %v10569_v0  ;;  %v10793_v60 = vcombine.high %v496_v23, %v500_v24  ;;  %v360_v14 = vld [vmem:[#allocation2 + $0x988] sm:$0xff]  ;;  %v10792_v46 = vcombine.low %v496_v23, %v500_v24 }
 0x313   :  { %8830 = vmatpush2.bf16.msra.mxu0 %v10440_v43  ;;  %v364_v12 = vld [vmem:[#allocation2 + $0x9a8] sm:$0xff] }
 0x314   :  { %8831 = vmatprep.subr.bf16.mxu0 %v10433_v52  ;;  %v488_v63 = vld [vmem:[#allocation2 + $0xd88] sm:$0xff]  ;;  %v10657_v37 = vcombine.high %v360_v14, %v364_v12  ;;  %v10656_v52 = vcombine.low %v360_v14, %v364_v12 }
 0x315   :  { %8873 = vmatpush2.bf16.msra.mxu1 %v10568_v47  ;;  %v492_v31 = vld [vmem:[#allocation2 + $0xda8] sm:$0xff] }
 0x316   :  { %8874 = vmatprep.subr.bf16.mxu1 %v10561_v54  ;;  %v10785_v0 = vcombine.high %v488_v63, %v492_v31  ;;  %v352_v41 = vld [vmem:[#allocation2 + $0x948] sm:$0xff]  ;;  %v10784_v54 = vcombine.low %v488_v63, %v492_v31 }
 0x317   :  { %8832 = vmatpush2.bf16.msra.mxu0 %v10432_v62  ;;  %v356_v42 = vld [vmem:[#allocation2 + $0x968] sm:$0xff]  ;;  %v11248_v62 = vld [vmem:[%s13412_s0 + $0x14] ss:$48 sps:$4 sm:$0x3f]  }
 0x318   :  { %8833 = vmatprep.subr.bf16.mxu0 %v10425_v4  ;;  %v480_v21 = vld [vmem:[#allocation2 + $0xd48] sm:$0xff]  ;;  %v10649_v55 = vcombine.high %v352_v41, %v356_v42  ;;  %v10648_v6 = vcombine.low %v352_v41, %v356_v42 }
 0x319   :  { %8875 = vmatpush2.bf16.msra.mxu1 %v10560_v3  ;;  %v484_v43 = vld [vmem:[#allocation2 + $0xd68] sm:$0xff] }
 0x31a   :  { %8876 = vmatprep.subr.bf16.mxu1 %v10553_v5  ;;  %v11247_v47 = vld [vmem:[%s13412_s0 + $0x8] ss:$48 sps:$4 sm:$0x3f]   ;;  %v10777_v56 = vcombine.high %v480_v21, %v484_v43  ;;  %v11249_v5 = vld [vmem:[%s13412_s0 + $0x1c] ss:$48 sps:$4 sm:$0x3f]   ;;  %v10776_v7 = vcombine.low %v480_v21, %v484_v43 }
 0x31b   :  { %8834 = vmatpush2.bf16.msra.mxu0 %v10424_v13  ;;  %v344_v58 = vld [vmem:[#allocation2 + $0x908] sm:$0xff] }
 0x31c   :  { %8835 = vmatprep.subr.bf16.mxu0 %v10417_v17  ;;  %v348_v61 = vld [vmem:[#allocation2 + $0x928] sm:$0xff] }
 0x31d   :  { %8877 = vmatpush2.bf16.msra.mxu1 %v10552_v16  ;;  %v472_v3 = vld [vmem:[#allocation2 + $0xd08] sm:$0xff]  ;;  %v10641_v34 = vcombine.high %v344_v58, %v348_v61  ;;  %v10640_v19 = vcombine.low %v344_v58, %v348_v61 }
 0x31e   :  { %8878 = vmatprep.subr.bf16.mxu1 %v10545_v45  ;;  %v476_v4 = vld [vmem:[#allocation2 + $0xd28] sm:$0xff] }
 0x31f   :  { %8836 = vmatpush2.bf16.msra.mxu0 %v10416_v26  ;;  %v10769_v10 = vcombine.high %v472_v3, %v476_v4  ;;  %v336_v13 = vld [vmem:[#allocation2 + $0x8c8] sm:$0xff]  ;;  %v10768_v20 = vcombine.low %v472_v3, %v476_v4 }
 0x320   :  { %8891 = vmatprep.subr.bf16.mxu0 %v10665_v27  ;;  %v340_v16 = vld [vmem:[#allocation2 + $0x8e8] sm:$0xff] }
 0x321   :  { %8879 = vmatpush2.bf16.msra.mxu1 %v10544_v39  ;;  %v464_v17 = vld [vmem:[#allocation2 + $0xcc8] sm:$0xff]  ;;  %v10633_v23 = vcombine.high %v336_v13, %v340_v16  ;;  %v10632_v14 = vcombine.low %v336_v13, %v340_v16 }
 0x322   :  { %8934 = vmatprep.subr.bf16.mxu1 %v10793_v60  ;;  %8838 = vmatmul.mubr.bf16.vlgmr.msra.gmra.mxu0 %v11246_v49  ;;  %v468_v45 = vld [vmem:[#allocation2 + $0xce8] sm:$0xff] }
 0x323   :  { %8892 = vmatpush1.bf16.msra.mxu0 %v10664_v32  ;;  %8923 = vmatprep.mubr.bf16.mxu0 %v11248_v62  ;;  %v10761_v24 = vcombine.high %v464_v17, %v468_v45  ;;  %v328_v26 = vld [vmem:[#allocation2 + $0x888] sm:$0xff]  ;;  %v10760_v12 = vcombine.low %v464_v17, %v468_v45 }
 0x324   :  { %8881 = vmatmul.mubr.bf16.vlgmr.msra.gmra.mxu1 %v11247_v47  ;;  %8893 = vmatprep.subr.bf16.mxu0 %v10657_v37  ;;  %v332_v39 = vld [vmem:[#allocation2 + $0x8a8] sm:$0xff] }
 0x325   :  { %8935 = vmatpush1.bf16.msra.mxu1 %v10792_v46  ;;  %8966 = vmatprep.mubr.bf16.mxu1 %v11249_v5  ;;  %v456_v27 = vld [vmem:[#allocation2 + $0xc88] sm:$0xff]  ;;  %v10625_v63 = vcombine.high %v328_v26, %v332_v39  ;;  %v10624_v41 = vcombine.low %v328_v26, %v332_v39 }
 0x326   :  { %8936 = vmatprep.subr.bf16.mxu1 %v10785_v0  ;;  %v460_v60 = vld [vmem:[#allocation2 + $0xca8] sm:$0xff] }
 0x327   :  { %8894 = vmatpush1.bf16.msra.mxu0 %v10656_v52  ;;  %v10753_v31 = vcombine.high %v456_v27, %v460_v60  ;;  %v320_v32 = vld [vmem:[#allocation2 + $0x848] sm:$0xff]  ;;  %v10752_v42 = vcombine.low %v456_v27, %v460_v60 }
 0x328   :  { %8895 = vmatprep.subr.bf16.mxu0 %v10649_v55  ;;  %v324_v46 = vld [vmem:[#allocation2 + $0x868] sm:$0xff] }
 0x329   :  { %8937 = vmatpush1.bf16.msra.mxu1 %v10784_v54  ;;  %v448_v37 = vld [vmem:[#allocation2 + $0xc48] sm:$0xff]  ;;  %v10617_v49 = vcombine.high %v320_v32, %v324_v46  ;;  %v10616_v55 = vcombine.low %v320_v32, %v324_v46 }
 0x32a   :  { %8938 = vmatprep.subr.bf16.mxu1 %v10777_v56  ;;  %v452_v0 = vld [vmem:[#allocation2 + $0xc68] sm:$0xff] }
 0x32b   :  { %8896 = vmatpush1.bf16.msra.mxu0 %v10648_v6  ;;  %v10745_v21 = vcombine.high %v448_v37, %v452_v0  ;;  %v312_v43 = vld [vmem:[#allocation2 + $0x808] sm:$0xff]  ;;  %v10744_v56 = vcombine.low %v448_v37, %v452_v0 }
 0x32c   :  { %8897 = vmatprep.subr.bf16.mxu0 %v10641_v34  ;;  %v316_v47 = vld [vmem:[#allocation2 + $0x828] sm:$0xff] }
 0x32d   :  { %8939 = vmatpush1.bf16.msra.mxu1 %v10776_v7  ;;  %v440_v52 = vld [vmem:[#allocation2 + $0xc08] sm:$0xff]  ;;  %v10609_v58 = vcombine.high %v312_v43, %v316_v47  ;;  %v10608_v6 = vcombine.low %v312_v43, %v316_v47 }
 0x32e   :  { %8940 = vmatprep.subr.bf16.mxu1 %v10769_v10  ;;  %v444_v54 = vld [vmem:[#allocation2 + $0xc28] sm:$0xff] }
 0x32f   :  { %8898 = vmatpush1.bf16.msra.mxu0 %v10640_v19  ;;  %v10737_v61 = vcombine.high %v440_v52, %v444_v54  ;;  %v432_v62 = vld [vmem:[#allocation2 + $0xbc8] sm:$0xff]  ;;  %v10736_v7 = vcombine.low %v440_v52, %v444_v54 }
 0x330   :  { %8899 = vmatprep.subr.bf16.mxu0 %v10633_v23  ;;  %v436_v3 = vld [vmem:[#allocation2 + $0xbe8] sm:$0xff] }
 0x331   :  { %8941 = vmatpush1.bf16.msra.mxu1 %v10768_v20  ;;  %v560_v4 = vld [vmem:[#allocation2 + $0xfc8] sm:$0xff]  ;;  %v10729_v34 = vcombine.high %v432_v62, %v436_v3  ;;  %v10728_v19 = vcombine.low %v432_v62, %v436_v3 }
 0x332   :  { %8942 = vmatprep.subr.bf16.mxu1 %v10761_v24  ;;  %v564_v5 = vld [vmem:[#allocation2 + $0xfe8] sm:$0xff] }
 0x333   :  { %8900 = vmatpush1.bf16.msra.mxu0 %v10632_v14  ;;  %v10857_v10 = vcombine.high %v560_v4, %v564_v5  ;;  %v424_v13 = vld [vmem:[#allocation2 + $0xb88] sm:$0xff]  ;;  %v10856_v20 = vcombine.low %v560_v4, %v564_v5 }
 0x334   :  { %8901 = vmatprep.subr.bf16.mxu0 %v10625_v63  ;;  %v428_v16 = vld [vmem:[#allocation2 + $0xba8] sm:$0xff] }
 0x335   :  { %8943 = vmatpush1.bf16.msra.mxu1 %v10760_v12  ;;  %v552_v17 = vld [vmem:[#allocation2 + $0xf88] sm:$0xff]  ;;  %v10721_v23 = vcombine.high %v424_v13, %v428_v16  ;;  %v10720_v14 = vcombine.low %v424_v13, %v428_v16 }
 0x336   :  { %8944 = vmatprep.subr.bf16.mxu1 %v10753_v31  ;;  %v556_v45 = vld [vmem:[#allocation2 + $0xfa8] sm:$0xff] }
 0x337   :  { %8902 = vmatpush1.bf16.msra.mxu0 %v10624_v41  ;;  %v10849_v24 = vcombine.high %v552_v17, %v556_v45  ;;  %v416_v26 = vld [vmem:[#allocation2 + $0xb48] sm:$0xff]  ;;  %v10848_v12 = vcombine.low %v552_v17, %v556_v45 }
 0x338   :  { %8903 = vmatprep.subr.bf16.mxu0 %v10617_v49  ;;  %v420_v39 = vld [vmem:[#allocation2 + $0xb68] sm:$0xff] }
 0x339   :  { %8945 = vmatpush1.bf16.msra.mxu1 %v10752_v42  ;;  %v544_v27 = vld [vmem:[#allocation2 + $0xf48] sm:$0xff]  ;;  %v10713_v63 = vcombine.high %v416_v26, %v420_v39  ;;  %v10712_v41 = vcombine.low %v416_v26, %v420_v39 }
 0x33a   :  { %8946 = vmatprep.subr.bf16.mxu1 %v10745_v21  ;;  %v548_v60 = vld [vmem:[#allocation2 + $0xf68] sm:$0xff] }
 0x33b   :  { %8904 = vmatpush1.bf16.msra.mxu0 %v10616_v55  ;;  %v10841_v31 = vcombine.high %v544_v27, %v548_v60  ;;  %v408_v32 = vld [vmem:[#allocation2 + $0xb08] sm:$0xff]  ;;  %v10840_v42 = vcombine.low %v544_v27, %v548_v60 }
 0x33c   :  { %8905 = vmatprep.subr.bf16.mxu0 %v10609_v58  ;;  %v412_v46 = vld [vmem:[#allocation2 + $0xb28] sm:$0xff] }
 0x33d   :  { %8947 = vmatpush1.bf16.msra.mxu1 %v10744_v56  ;;  %v536_v37 = vld [vmem:[#allocation2 + $0xf08] sm:$0xff]  ;;  %v10705_v49 = vcombine.high %v408_v32, %v412_v46  ;;  %v10704_v55 = vcombine.low %v408_v32, %v412_v46 }
 0x33e   :  { %8948 = vmatprep.subr.bf16.mxu1 %v10737_v61  ;;  %v540_v0 = vld [vmem:[#allocation2 + $0xf28] sm:$0xff] }
 0x33f   :  { %8906 = vmatpush1.bf16.msra.mxu0 %v10608_v6  ;;  %v10833_v21 = vcombine.high %v536_v37, %v540_v0  ;;  %v400_v43 = vld [vmem:[#allocation2 + $0xac8] sm:$0xff]  ;;  %v10832_v56 = vcombine.low %v536_v37, %v540_v0 }
 0x340   :  { %8907 = vmatprep.subr.bf16.mxu0 %v10729_v34  ;;  %v404_v47 = vld [vmem:[#allocation2 + $0xae8] sm:$0xff] }
 0x341   :  { %8949 = vmatpush1.bf16.msra.mxu1 %v10736_v7  ;;  %v528_v52 = vld [vmem:[#allocation2 + $0xec8] sm:$0xff]  ;;  %v10697_v58 = vcombine.high %v400_v43, %v404_v47  ;;  %v10696_v6 = vcombine.low %v400_v43, %v404_v47 }
 0x342   :  { %8950 = vmatprep.subr.bf16.mxu1 %v10857_v10  ;;  %v532_v54 = vld [vmem:[#allocation2 + $0xee8] sm:$0xff] }
 0x343   :  { %8908 = vmatpush2.bf16.msra.mxu0 %v10728_v19  ;;  %v10825_v61 = vcombine.high %v528_v52, %v532_v54  ;;  %v392_v62 = vld [vmem:[#allocation2 + $0xa88] sm:$0xff]  ;;  %v10824_v7 = vcombine.low %v528_v52, %v532_v54 }
 0x344   :  { %8909 = vmatprep.subr.bf16.mxu0 %v10721_v23  ;;  %v396_v3 = vld [vmem:[#allocation2 + $0xaa8] sm:$0xff] }
 0x345   :  { %8951 = vmatpush2.bf16.msra.mxu1 %v10856_v20  ;;  %v520_v4 = vld [vmem:[#allocation2 + $0xe88] sm:$0xff]  ;;  %v10689_v34 = vcombine.high %v392_v62, %v396_v3  ;;  %v10688_v19 = vcombine.low %v392_v62, %v396_v3 }
 0x346   :  { %8952 = vmatprep.subr.bf16.mxu1 %v10849_v24  ;;  %v524_v5 = vld [vmem:[#allocation2 + $0xea8] sm:$0xff] }
 0x347   :  { %8910 = vmatpush2.bf16.msra.mxu0 %v10720_v14  ;;  %v10817_v10 = vcombine.high %v520_v4, %v524_v5  ;;  %v384_v13 = vld [vmem:[#allocation2 + $0xa48] sm:$0xff]  ;;  %v10816_v20 = vcombine.low %v520_v4, %v524_v5  ;;  %v11250_v4 = vld [vmem:[%s13412_s0 + $0x10] ss:$48 sps:$4 sm:$0x3f]  }
 0x348   :  { %8911 = vmatprep.subr.bf16.mxu0 %v10713_v63  ;;  %v388_v16 = vld [vmem:[#allocation2 + $0xa68] sm:$0xff] }
 0x349   :  { %8953 = vmatpush2.bf16.msra.mxu1 %v10848_v12  ;;  %v512_v17 = vld [vmem:[#allocation2 + $0xe48] sm:$0xff]  ;;  %v10681_v23 = vcombine.high %v384_v13, %v388_v16  ;;  %v10680_v14 = vcombine.low %v384_v13, %v388_v16 }
 0x34a   :  { %8954 = vmatprep.subr.bf16.mxu1 %v10841_v31  ;;  %v516_v45 = vld [vmem:[#allocation2 + $0xe68] sm:$0xff] }
 0x34b   :  { %8912 = vmatpush2.bf16.msra.mxu0 %v10712_v41  ;;  %v10809_v24 = vcombine.high %v512_v17, %v516_v45  ;;  %v376_v26 = vld [vmem:[#allocation2 + $0xa08] sm:$0xff]  ;;  %v10808_v12 = vcombine.low %v512_v17, %v516_v45 }
 0x34c   :  { %8913 = vmatprep.subr.bf16.mxu0 %v10705_v49  ;;  %v380_v39 = vld [vmem:[#allocation2 + $0xa28] sm:$0xff] }
 0x34d   :  { %8955 = vmatpush2.bf16.msra.mxu1 %v10840_v42  ;;  %v504_v27 = vld [vmem:[#allocation2 + $0xe08] sm:$0xff]  ;;  %v10673_v63 = vcombine.high %v376_v26, %v380_v39  ;;  %v10672_v41 = vcombine.low %v376_v26, %v380_v39 }
 0x34e   :  { %8956 = vmatprep.subr.bf16.mxu1 %v10833_v21  ;;  %v508_v60 = vld [vmem:[#allocation2 + $0xe28] sm:$0xff] }
 0x34f   :  { %8914 = vmatpush2.bf16.msra.mxu0 %v10704_v55  ;;  %v10801_v31 = vcombine.high %v504_v27, %v508_v60  ;;  %v624_v32 = vld [vmem:[#allocation2 + $0x11c8] sm:$0xff]  ;;  %v10800_v42 = vcombine.low %v504_v27, %v508_v60 }
 0x350   :  { %8915 = vmatprep.subr.bf16.mxu0 %v10697_v58  ;;  %v628_v46 = vld [vmem:[#allocation2 + $0x11e8] sm:$0xff] }
 0x351   :  { %8957 = vmatpush2.bf16.msra.mxu1 %v10832_v56  ;;  %v752_v37 = vld [vmem:[#allocation2 + $0x15c8] sm:$0xff]  ;;  %v10921_v49 = vcombine.high %v624_v32, %v628_v46  ;;  %v10920_v55 = vcombine.low %v624_v32, %v628_v46 }
 0x352   :  { %8958 = vmatprep.subr.bf16.mxu1 %v10825_v61  ;;  %v756_v0 = vld [vmem:[#allocation2 + $0x15e8] sm:$0xff] }
 0x353   :  { %8916 = vmatpush2.bf16.msra.mxu0 %v10696_v6  ;;  %v11049_v21 = vcombine.high %v752_v37, %v756_v0  ;;  %v616_v43 = vld [vmem:[#allocation2 + $0x1188] sm:$0xff]  ;;  %v11048_v56 = vcombine.low %v752_v37, %v756_v0 }
 0x354   :  { %8917 = vmatprep.subr.bf16.mxu0 %v10689_v34  ;;  %v620_v47 = vld [vmem:[#allocation2 + $0x11a8] sm:$0xff] }
 0x355   :  { %8959 = vmatpush2.bf16.msra.mxu1 %v10824_v7  ;;  %v744_v52 = vld [vmem:[#allocation2 + $0x1588] sm:$0xff]  ;;  %v10913_v58 = vcombine.high %v616_v43, %v620_v47  ;;  %v10912_v34 = vcombine.low %v616_v43, %v620_v47 }
 0x356   :  { %8960 = vmatprep.subr.bf16.mxu1 %v10817_v10  ;;  %v748_v54 = vld [vmem:[#allocation2 + $0x15a8] sm:$0xff] }
 0x357   :  { %8918 = vmatpush2.bf16.msra.mxu0 %v10688_v19  ;;  %v11041_v61 = vcombine.high %v744_v52, %v748_v54  ;;  %v608_v62 = vld [vmem:[#allocation2 + $0x1148] sm:$0xff]  ;;  %v11040_v10 = vcombine.low %v744_v52, %v748_v54  ;;  %v11252_v19 = vld [vmem:[%s13412_s0 + $0x24] ss:$48 sps:$4 sm:$0x3f]  }
 0x358   :  { %8919 = vmatprep.subr.bf16.mxu0 %v10681_v23  ;;  %v612_v3 = vld [vmem:[#allocation2 + $0x1168] sm:$0xff] }
 0x359   :  { %8961 = vmatpush2.bf16.msra.mxu1 %v10816_v20  ;;  %v736_v5 = vld [vmem:[#allocation2 + $0x1548] sm:$0xff]  ;;  %v10905_v13 = vcombine.high %v608_v62, %v612_v3  ;;  %v10904_v26 = vcombine.low %v608_v62, %v612_v3 }
 0x35a   :  { %8962 = vmatprep.subr.bf16.mxu1 %v10809_v24  ;;  %v740_v6 = vld [vmem:[#allocation2 + $0x1568] sm:$0xff] }
 0x35b   :  { %8920 = vmatpush2.bf16.msra.mxu0 %v10680_v14  ;;  %v11251_v7 = vld [vmem:[%s13412_s0 + $0x18] ss:$48 sps:$4 sm:$0x3f]   ;;  %v11033_v16 = vcombine.high %v736_v5, %v740_v6  ;;  %v11253_v24 = vld [vmem:[%s13412_s0 + $0x2c] ss:$48 sps:$4 sm:$0x3f]   ;;  %v11032_v39 = vcombine.low %v736_v5, %v740_v6 }
 0x35c   :  { %8921 = vmatprep.subr.bf16.mxu0 %v10673_v63  ;;  %v600_v17 = vld [vmem:[#allocation2 + $0x1108] sm:$0xff] }
 0x35d   :  { %8963 = vmatpush2.bf16.msra.mxu1 %v10808_v12  ;;  %v604_v45 = vld [vmem:[#allocation2 + $0x1128] sm:$0xff] }
 0x35e   :  { %8964 = vmatprep.subr.bf16.mxu1 %v10801_v31  ;;  %v728_v20 = vld [vmem:[#allocation2 + $0x1508] sm:$0xff]  ;;  %v10897_v27 = vcombine.high %v600_v17, %v604_v45  ;;  %v10896_v32 = vcombine.low %v600_v17, %v604_v45 }
 0x35f   :  { %8922 = vmatpush2.bf16.msra.mxu0 %v10672_v41  ;;  %v732_v23 = vld [vmem:[#allocation2 + $0x1528] sm:$0xff] }
 0x360   :  { %8977 = vmatprep.subr.bf16.mxu0 %v10921_v49  ;;  %v11025_v60 = vcombine.high %v728_v20, %v732_v23  ;;  %v592_v14 = vld [vmem:[#allocation2 + $0x10c8] sm:$0xff]  ;;  %v11024_v46 = vcombine.low %v728_v20, %v732_v23 }
 0x361   :  { %8965 = vmatpush2.bf16.msra.mxu1 %v10800_v42  ;;  %v596_v12 = vld [vmem:[#allocation2 + $0x10e8] sm:$0xff] }
 0x362   :  { %9020 = vmatprep.subr.bf16.mxu1 %v11049_v21  ;;  %8924 = vmatmul.mubr.bf16.vlgmr.msra.gmra.mxu0 %v11250_v4  ;;  %v720_v63 = vld [vmem:[#allocation2 + $0x14c8] sm:$0xff]  ;;  %v10889_v37 = vcombine.high %v592_v14, %v596_v12  ;;  %v10888_v43 = vcombine.low %v592_v14, %v596_v12 }
 0x363   :  { %8978 = vmatpush1.bf16.msra.mxu0 %v10920_v55  ;;  %9009 = vmatprep.mubr.bf16.mxu0 %v11252_v19  ;;  %v724_v31 = vld [vmem:[#allocation2 + $0x14e8] sm:$0xff] }
 0x364   :  { %8967 = vmatmul.mubr.bf16.vlgmr.msra.gmra.mxu1 %v11251_v7  ;;  %8979 = vmatprep.subr.bf16.mxu0 %v10913_v58  ;;  %v11017_v0 = vcombine.high %v720_v63, %v724_v31  ;;  %v584_v41 = vld [vmem:[#allocation2 + $0x1088] sm:$0xff]  ;;  %v11016_v47 = vcombine.low %v720_v63, %v724_v31 }
 0x365   :  { %9021 = vmatpush1.bf16.msra.mxu1 %v11048_v56  ;;  %9052 = vmatprep.mubr.bf16.mxu1 %v11253_v24  ;;  %v588_v42 = vld [vmem:[#allocation2 + $0x10a8] sm:$0xff] }
 0x366   :  { %9022 = vmatprep.subr.bf16.mxu1 %v11041_v61  ;;  %v712_v49 = vld [vmem:[#allocation2 + $0x1488] sm:$0xff]  ;;  %v10881_v52 = vcombine.high %v584_v41, %v588_v42  ;;  %v10880_v62 = vcombine.low %v584_v41, %v588_v42 }
 0x367   :  { %8980 = vmatpush1.bf16.msra.mxu0 %v10912_v34  ;;  %v716_v21 = vld [vmem:[#allocation2 + $0x14a8] sm:$0xff] }
 0x368   :  { %8981 = vmatprep.subr.bf16.mxu0 %v10905_v13  ;;  %v11009_v54 = vcombine.high %v712_v49, %v716_v21  ;;  %v576_v55 = vld [vmem:[#allocation2 + $0x1048] sm:$0xff]  ;;  %v11008_v3 = vcombine.low %v712_v49, %v716_v21 }
 0x369   :  { %9023 = vmatpush1.bf16.msra.mxu1 %v11040_v10  ;;  %v580_v56 = vld [vmem:[#allocation2 + $0x1068] sm:$0xff] }
 0x36a   :  { %9024 = vmatprep.subr.bf16.mxu1 %v11033_v16  ;;  %v704_v58 = vld [vmem:[#allocation2 + $0x1448] sm:$0xff]  ;;  %v10873_v4 = vcombine.high %v576_v55, %v580_v56  ;;  %v10872_v13 = vcombine.low %v576_v55, %v580_v56 }
 0x36b   :  { %8982 = vmatpush1.bf16.msra.mxu0 %v10904_v26  ;;  %v708_v61 = vld [vmem:[#allocation2 + $0x1468] sm:$0xff] }
 0x36c   :  { %8983 = vmatprep.subr.bf16.mxu0 %v10897_v27  ;;  %v11001_v5 = vcombine.high %v704_v58, %v708_v61  ;;  %v568_v6 = vld [vmem:[#allocation2 + $0x1008] sm:$0xff]  ;;  %v11000_v16 = vcombine.low %v704_v58, %v708_v61  ;;  %v13119_v58 = vpop.f32.mrf.mxu0 }
 0x36d   :  { %9025 = vmatpush1.bf16.msra.mxu1 %v11032_v39  ;;  %v572_v7 = vld [vmem:[#allocation2 + $0x1028] sm:$0xff] }
 0x36e   :  { %9026 = vmatprep.subr.bf16.mxu1 %v11025_v60  ;;  %v696_v34 = vld [vmem:[#allocation2 + $0x1408] sm:$0xff]  ;;  %v10865_v17 = vcombine.high %v568_v6, %v572_v7  ;;  %v10864_v26 = vcombine.low %v568_v6, %v572_v7 }
 0x36f   :  { %8984 = vmatpush1.bf16.msra.mxu0 %v10896_v32  ;;  %v700_v10 = vld [vmem:[#allocation2 + $0x1428] sm:$0xff] }
 0x370   :  { %8985 = vmatprep.subr.bf16.mxu0 %v10889_v37  ;;  %v10993_v45 = vcombine.high %v696_v34, %v700_v10  ;;  %v688_v19 = vld [vmem:[#allocation2 + $0x13c8] sm:$0xff]  ;;  %v10992_v39 = vcombine.low %v696_v34, %v700_v10 }
 0x371   :  { %9027 = vmatpush1.bf16.msra.mxu1 %v11024_v46  ;;  %v692_v20 = vld [vmem:[#allocation2 + $0x13e8] sm:$0xff] }
 0x372   :  { %9028 = vmatprep.subr.bf16.mxu1 %v11017_v0  ;;  %v816_v23 = vld [vmem:[#allocation2 + $0x17c8] sm:$0xff]  ;;  %v10985_v27 = vcombine.high %v688_v19, %v692_v20  ;;  %v10984_v32 = vcombine.low %v688_v19, %v692_v20 }
 0x373   :  { %8986 = vmatpush1.bf16.msra.mxu0 %v10888_v43  ;;  %v820_v24 = vld [vmem:[#allocation2 + $0x17e8] sm:$0xff] }
 0x374   :  { %8987 = vmatprep.subr.bf16.mxu0 %v10881_v52  ;;  %v11113_v60 = vcombine.high %v816_v23, %v820_v24  ;;  %v680_v14 = vld [vmem:[#allocation2 + $0x1388] sm:$0xff]  ;;  %v11112_v46 = vcombine.low %v816_v23, %v820_v24 }
 0x375   :  { %9029 = vmatpush1.bf16.msra.mxu1 %v11016_v47  ;;  %v684_v12 = vld [vmem:[#allocation2 + $0x13a8] sm:$0xff] }
 0x376   :  { %9030 = vmatprep.subr.bf16.mxu1 %v11009_v54  ;;  %v808_v63 = vld [vmem:[#allocation2 + $0x1788] sm:$0xff]  ;;  %v10977_v37 = vcombine.high %v680_v14, %v684_v12  ;;  %v10976_v43 = vcombine.low %v680_v14, %v684_v12 }
 0x377   :  { %8988 = vmatpush1.bf16.msra.mxu0 %v10880_v62  ;;  %v812_v31 = vld [vmem:[#allocation2 + $0x17a8] sm:$0xff] }
 0x378   :  { %8989 = vmatprep.subr.bf16.mxu0 %v10873_v4  ;;  %v11105_v0 = vcombine.high %v808_v63, %v812_v31  ;;  %v672_v41 = vld [vmem:[#allocation2 + $0x1348] sm:$0xff]  ;;  %v11104_v47 = vcombine.low %v808_v63, %v812_v31 }
 0x379   :  { %9031 = vmatpush1.bf16.msra.mxu1 %v11008_v3  ;;  %v676_v42 = vld [vmem:[#allocation2 + $0x1368] sm:$0xff]  ;;  %v13121_v3 = vpop.f32.mrf.mxu1 }
 0x37a   :  { %9032 = vmatprep.subr.bf16.mxu1 %v11001_v5  ;;  %v800_v49 = vld [vmem:[#allocation2 + $0x1748] sm:$0xff]  ;;  %v10969_v52 = vcombine.high %v672_v41, %v676_v42  ;;  %v10968_v4 = vcombine.low %v672_v41, %v676_v42 }
 0x37b   :  { %8990 = vmatpush1.bf16.msra.mxu0 %v10872_v13  ;;  %v804_v21 = vld [vmem:[#allocation2 + $0x1768] sm:$0xff]  ;;  %v8583_v13 = vpop.f32.mrf.mxu0 }
 0x37c   :  { %8991 = vmatprep.subr.bf16.mxu0 %v10865_v17  ;;  %v11097_v54 = vcombine.high %v800_v49, %v804_v21  ;;  %v664_v55 = vld [vmem:[#allocation2 + $0x1308] sm:$0xff]  ;;  %v11096_v5 = vcombine.low %v800_v49, %v804_v21 }
 0x37d   :  { %9033 = vmatpush1.bf16.msra.mxu1 %v11000_v16  ;;  %v668_v56 = vld [vmem:[#allocation2 + $0x1328] sm:$0xff] }
 0x37e   :  { %9034 = vmatprep.subr.bf16.mxu1 %v10993_v45  ;;  %v792_v61 = vld [vmem:[#allocation2 + $0x1708] sm:$0xff]  ;;  %v10961_v6 = vcombine.high %v664_v55, %v668_v56  ;;  %v13123_v45 = vpop.f32.mrf.mxu1  ;;  %v10960_v19 = vcombine.low %v664_v55, %v668_v56 }
 0x37f   :  { %8992 = vmatpush1.bf16.msra.mxu0 %v10864_v26  ;;  %v796_v62 = vld [vmem:[#allocation2 + $0x1728] sm:$0xff] }
 0x380   :  { %8993 = vmatprep.subr.bf16.mxu0 %v10985_v27  ;;  %v11089_v7 = vcombine.high %v792_v61, %v796_v62  ;;  %v656_v34 = vld [vmem:[#allocation2 + $0x12c8] sm:$0xff]  ;;  %v11088_v20 = vcombine.low %v792_v61, %v796_v62  ;;  %v8585_v27 = vpop.f32.mrf.mxu0  ;;  %v13125_v12 = vpop.f32.mrf.mxu1 }
 0x381   :  { %9035 = vmatpush1.bf16.msra.mxu1 %v10992_v39  ;;  %v660_v10 = vld [vmem:[#allocation2 + $0x12e8] sm:$0xff] }
 0x382   :  { %9036 = vmatprep.subr.bf16.mxu1 %v11113_v60  ;;  %v784_v16 = vld [vmem:[#allocation2 + $0x16c8] sm:$0xff]  ;;  %v10953_v23 = vcombine.high %v656_v34, %v660_v10  ;;  %v10952_v63 = vcombine.low %v656_v34, %v660_v10  ;;  %v8587_v42 = vpop.f32.mrf.mxu0  ;;  %v4118_v34 = vadd.f32 %v12619_v50, %v12247_v9  ;;  %v241_v9 = vld [vmem:[#allocation2 + $0x5d0] sm:$0xff] }
 0x383   :  { %8994 = vmatpush2.bf16.msra.mxu0 %v10984_v32  ;;  %v788_v17 = vld [vmem:[#allocation2 + $0x16e8] sm:$0xff]  ;;  %v245_v50 = vld [vmem:[#allocation2 + $0x5f0] sm:$0xff] }
 0x384   :  { %8995 = vmatprep.subr.bf16.mxu0 %v10977_v37  ;;  %v11081_v24 = vcombine.high %v784_v16, %v788_v17  ;;  %v648_v26 = vld [vmem:[#allocation2 + $0x1288] sm:$0xff]  ;;  %v11080_v31 = vcombine.low %v784_v16, %v788_v17 }
 0x385   :  { %9037 = vmatpush2.bf16.msra.mxu1 %v11112_v46  ;;  %v652_v39 = vld [vmem:[#allocation2 + $0x12a8] sm:$0xff]  ;;  %v4112_v46 = vadd.f32 %v12571_v15, %v12221_v48  ;;  %v4116_v15 = vadd.f32 %v12603_v36, %v12239_v1 }
 0x386   :  { %9038 = vmatprep.subr.bf16.mxu1 %v11105_v0  ;;  %v776_v60 = vld [vmem:[#allocation2 + $0x1688] sm:$0xff]  ;;  %v10945_v32 = vcombine.high %v648_v26, %v652_v39 }
 0x387   :  { %8996 = vmatpush2.bf16.msra.mxu0 %v10976_v43  ;;  %v780_v14 = vld [vmem:[#allocation2 + $0x16a8] sm:$0xff]  ;;  %v4114_v43 = vadd.f32 %v12587_v25, %v12230_v57  ;;  %v4155_v48 = vadd.f32 %v12573_v18, %v4112_v46  ;;  %v4159_v17 = vadd.f32 %v12605_v40, %v4116_v15 }
 0x388   :  { %8997 = vmatprep.subr.bf16.mxu0 %v10969_v52  ;;  %v11073_v37 = vcombine.high %v776_v60, %v780_v14  ;;  %v640_v0 = vld [vmem:[#allocation2 + $0x1248] sm:$0xff]  ;;  %v10944_v52 = vcombine.low %v648_v26, %v652_v39  ;;  %v11072_v55 = vcombine.low %v776_v60, %v780_v14 }
 0x389   :  { %9039 = vmatpush2.bf16.msra.mxu1 %v11104_v47  ;;  %v644_v41 = vld [vmem:[#allocation2 + $0x1268] sm:$0xff]  ;;  %v13131_v47 = vpop.f32.mrf.mxu1  ;;  %v8582_v10 = vadd.f32 %v13119_v58, %v4155_v48  ;;  %v4161_v58 = vadd.f32 %v12621_v53, %v4118_v34  ;;  %v8586_v60 = vadd.f32 %v8585_v27, %v4159_v17  ;;  %v13148_v53 = vld [vmem:[#allocation2 + $0x1b0] sm:$0xff] }
 0x38a   :  { %9040 = vmatprep.subr.bf16.mxu1 %v11097_v54  ;;  %v768_v49 = vld [vmem:[#allocation2 + $0x1648] sm:$0xff]  ;;  %v8667_v54 = vpop.f32.mrf.mxu0  ;;  %v10937_v56 = vcombine.high %v640_v0, %v644_v41  ;;  %v10936_v18 = vcombine.low %v640_v0, %v644_v41  ;;  %v10539_v0 = vcombine.high %v241_v9, %v245_v50  ;;  %v13146_v41 = vld [vmem:[#allocation2 + $0x190] sm:$0xff] }
 0x38b   :  { %8998 = vmatpush2.bf16.msra.mxu0 %v10968_v4  ;;  %v772_v21 = vld [vmem:[#allocation2 + $0x1668] sm:$0xff]  ;;  %v8710_v61 = vpop.f32.mrf.mxu1  ;;  %v8625_v39 = vadd.f32 %v13121_v3, %v8582_v10  ;;  %v13151_v27 = vld [vmem:[#allocation2 + $0x590] sm:$0xff] }
 0x38c   :  { %8999 = vmatprep.subr.bf16.mxu0 %v10961_v6  ;;  %v11065_v62 = vcombine.high %v768_v49, %v772_v21  ;;  %v632_v4 = vld [vmem:[#allocation2 + $0x1208] sm:$0xff]  ;;  %v9581_v6 = vlaneseq  ;;  %v8669_v16 = vpop.f32.mrf.mxu0  ;;  %v11064_v1 = vcombine.low %v768_v49, %v772_v21  ;;  %v237_v49 = vld [vmem:[#allocation2 + $0x5b0] sm:$0xff]  ;;  %v8629_v21 = vadd.f32 %v13125_v12, %v8586_v60 }
 0x38d   :  { %9041 = vmatpush2.bf16.msra.mxu1 %v11096_v5  ;;  %v636_v5 = vld [vmem:[#allocation2 + $0x1228] sm:$0xff]  ;;  %v8668_v46 = vadd.f32 %v8667_v54, %v8625_v39  ;;  %v10538_v54 = vcombine.low %v241_v9, %v245_v50  ;;  %v13157_v48 = vld [vmem:[#allocation2 + $0x150] sm:$0xff] }
 0x38e   :  { %9042 = vmatprep.subr.bf16.mxu1 %v11089_v7  ;;  %v760_v57 = vld [vmem:[#allocation2 + $0x1608] sm:$0xff]  ;;  %v4157_v7 = vadd.f32 %v12589_v28, %v4114_v43  ;;  %v10929_v36 = vcombine.high %v632_v4, %v636_v5  ;;  %v117_v28 = vld [vmem:[#allocation2 + $0x1f0] sm:$0xff]  ;;  %v13141_v26 = vshrl.u32 %v9581_v6, 7  ;;  %v10928_v14 = vcombine.low %v632_v4, %v636_v5 }
 0x38f   :  { %9000 = vmatpush2.bf16.msra.mxu0 %v10960_v19  ;;  %v764_v25 = vld [vmem:[#allocation2 + $0x1628] sm:$0xff]  ;;  %v10531_v5 = vcombine.high %v13151_v27, %v237_v49  ;;  %v13165_v6 = vld [vmem:[#allocation2 + $0x570] sm:$0xff] }
 0x390   :  { %9001 = vmatprep.subr.bf16.mxu0 %v10953_v23  ;;  %v8584_v19 = vadd.f32 %v8583_v13, %v4157_v7  ;;  %v11057_v23 = vcombine.high %v760_v57, %v764_v25  ;;  %v11056_v40 = vcombine.low %v760_v57, %v764_v25  ;;  %v9583_v3 = vsub.s32 0, %v13141_v26  ;;  %v13161_v57 = vld [vmem:[#allocation2 + $0x170] sm:$0xff]  ;;  %v11255_v17 = vld [vmem:[%s13412_s0 + $0x28] ss:$48 sps:$4 sm:$0x3f]  }
 0x391   :  { %9043 = vmatpush2.bf16.msra.mxu1 %v11088_v20  ;;  %v8712_v20 = vpop.f32.mrf.mxu1  ;;  %v13163_v25 = vld [vmem:[#allocation2 + $0x550] sm:$0xff] }
 0x392   :  { %9044 = vmatprep.subr.bf16.mxu1 %v11081_v24  ;;  %v113_v24 = vld [vmem:[#allocation2 + $0x1d0] sm:$0xff] }
 0x393   :  { %9002 = vmatpush2.bf16.msra.mxu0 %v10952_v63  ;;  %v8671_v63 = vpop.f32.mrf.mxu0  ;;  %v10411_v13 = vcombine.high %v113_v24, %v117_v28  ;;  %v11254_v10 = vld [vmem:[%s13412_s0 + $0x20] ss:$48 sps:$4 sm:$0x3f]  }
 0x394   :  { %9003 = vmatprep.subr.bf16.mxu0 %v10945_v32  ;;  %v8588_v32 = vadd.f32 %v8587_v42, %v4161_v58  ;;  %v8672_v4 = vadd.f32 %v8671_v63, %v8629_v21  ;;  %v93_v60 = vld [vmem:[#allocation2 + $0x130] sm:$0xff] }
 0x395   :  { %9045 = vmatpush2.bf16.msra.mxu1 %v11080_v31  ;;  %v8627_v31 = vadd.f32 %v13123_v45, %v8584_v19  ;;  %v10410_v45 = vcombine.low %v113_v24, %v117_v28  ;;  %v8673_v42 = vpop.f32.mrf.mxu0  ;;  %v10395_v24 = vcombine.high %v13157_v48, %v13161_v57  ;;  %v10523_v28 = vcombine.high %v13163_v25, %v13165_v6  ;;  %v221_v63 = vld [vmem:[#allocation2 + $0x530] sm:$0xff] }
 0x396   :  { %9046 = vmatprep.subr.bf16.mxu1 %v11073_v37  ;;  %v8714_v37 = vpop.f32.mrf.mxu1  ;;  %v8631_v15 = vadd.f32 %v13131_v47, %v8588_v32  ;;  %v10402_v47 = vcombine.low %v13146_v41, %v13148_v53  ;;  %v11257_v32 = vld [vmem:[%s13412_s0 + $0xc] ss:$48 sps:$4 sm:$0x3f]  }
 0x397   :  { %9004 = vmatpush2.bf16.msra.mxu0 %v10944_v52  ;;  %v8670_v43 = vadd.f32 %v8669_v16, %v8627_v31  ;;  %v9579_v52 = vld [vmem:[#allocation4] sm:$0xff]  ;;  %v8715_v9 = vadd.f32 %v8714_v37, %v8672_v4  ;;  %v10394_v31 = vcombine.low %v13157_v48, %v13161_v57 }
 0x398   :  { %9005 = vmatprep.subr.bf16.mxu0 %v10937_v56  ;;  %v10403_v56 = vcombine.high %v13146_v41, %v13148_v53  ;;  %v8716_v12 = vpop.f32.mrf.mxu1  ;;  %v9584_v34 = vrot.slane %v9579_v52, %v9583_v3  ;;  %v8674_v16 = vadd.f32 %v8673_v42, %v8631_v15  ;;  %v209_v15 = vld [vmem:[#allocation2 + $0x4d0] sm:$0xff] }
 0x399   :  { %9047 = vmatpush2.bf16.msra.mxu1 %v11072_v55  ;;  %v9587_v55 = vsub.s32 1, %v13141_v26 }
 0x39a   :  { %9048 = vmatprep.subr.bf16.mxu1 %v11065_v62  ;;  %v8711_v62 = vadd.f32 %v8710_v61, %v8668_v46  ;;  %v10530_v61 = vcombine.low %v13151_v27, %v237_v49  ;;  %v8717_v46 = vadd.f32 %v8716_v12, %v8674_v16  ;;  %v10522_v27 = vcombine.low %v13163_v25, %v13165_v6  ;;  %v205_v16 = vld [vmem:[#allocation2 + $0x4b0] sm:$0xff] }
 0x39b   :  { %9006 = vmatpush2.bf16.msra.mxu0 %v10936_v18  ;;  %v8713_v18 = vadd.f32 %v8712_v20, %v8670_v43  ;;  %v89_v20 = vld [vmem:[#allocation2 + $0x110] sm:$0xff] }
 0x39c   :  { %9007 = vmatprep.subr.bf16.mxu0 %v10929_v36  ;;  %v10387_v49 = vcombine.high %v89_v20, %v93_v60  ;;  %v10386_v48 = vcombine.low %v89_v20, %v93_v60  ;;  %v197_v20 = vld [vmem:[#allocation2 + $0x470] sm:$0xff] }
 0x39d   :  { %9049 = vmatpush2.bf16.msra.mxu1 %v11064_v1  ;;  %v57_v60 = vld [vmem:[#allocation2 + $0x10] sm:$0xff] }
 0x39e   :  { %9050 = vmatprep.subr.bf16.mxu1 %v11057_v23  ;;  %v9588_v23 = vrot.slane %v9579_v52, %v9587_v55  ;;  %v85_v55 = vld [vmem:[#allocation2 + $0xf0] sm:$0xff] }
 0x39f   :  { %9008 = vmatpush2.bf16.msra.mxu0 %v10928_v14  ;;  %v217_v14 = vld [vmem:[#allocation2 + $0x510] sm:$0xff] }
 0x3a0   :  { %9063 = vmatprep.subr.bf16.mxu0 %v10411_v13  ;;  %v10515_v21 = vcombine.high %v217_v14, %v221_v63  ;;  %v10514_v57 = vcombine.low %v217_v14, %v221_v63  ;;  %v61_v14 = vld [vmem:[#allocation2 + $0x30] sm:$0xff] }
 0x3a1   :  { %9051 = vmatpush2.bf16.msra.mxu1 %v11056_v40  ;;  %v11256_v40 = vld [vmem:[%s13412_s0 + $0x4] ss:$48 sps:$4 sm:$0x3f]  }
 0x3a2   :  { %9106 = vmatprep.subr.bf16.mxu1 %v10539_v0  ;;  %v8753_v7 = vpop.f32.mrf.mxu0  ;;  %9010 = vmatmul.mubr.bf16.vlgmr.msra.gmra.mxu0 %v11254_v10  ;;  %v185_v63 = vld [vmem:[#allocation2 + $0x410] sm:$0xff] }
 0x3a3   :  { %v8754_v1 = vadd.f32 %v8753_v7, %v8711_v62  ;;  %9064 = vmatpush1.bf16.msra.mxu0 %v10410_v45  ;;  %9095 = vmatprep.mubr.bf16.mxu0 %v11256_v40  ;;  %v213_v62 = vld [vmem:[#allocation2 + $0x4f0] sm:$0xff] }
 0x3a4   :  { %v8796_v36 = vpop.f32.mrf.mxu1  ;;  %9053 = vmatmul.mubr.bf16.vlgmr.msra.gmra.mxu1 %v11255_v17  ;;  %v8755_v19 = vpop.f32.mrf.mxu0  ;;  %9065 = vmatprep.subr.bf16.mxu0 %v10403_v56  ;;  %v10507_v10 = vcombine.high %v209_v15, %v213_v62  ;;  %v189_v40 = vld [vmem:[#allocation2 + $0x430] sm:$0xff] }
 0x3a5   :  { %9107 = vmatpush1.bf16.msra.mxu1 %v10538_v54  ;;  %v8797_v50 = vadd.f32 %v8796_v36, %v8754_v1  ;;  %v8756_v58 = vadd.f32 %v8755_v19, %v8713_v18  ;;  %9138 = vmatprep.mubr.bf16.mxu1 %v11257_v32  ;;  %v81_v54 = vld [vmem:[#allocation2 + $0xd0] sm:$0xff]  ;;  %v10506_v36 = vcombine.low %v209_v15, %v213_v62 }
 0x3a6   :  { %v8798_v39 = vpop.f32.mrf.mxu1  ;;  %9108 = vmatprep.subr.bf16.mxu1 %v10531_v5  ;;  %v8757_v13 = vpop.f32.mrf.mxu0  ;;  %v10379_v25 = vcombine.high %v81_v54, %v85_v55  ;;  %v201_v18 = vld [vmem:[#allocation2 + $0x490] sm:$0xff]  ;;  %v10378_v1 = vcombine.low %v81_v54, %v85_v55  ;;  %v10482_v54 = vcombine.low %v185_v63, %v189_v40 }
 0x3a7   :  { %v13188_v37 = vadd.f32 %v9584_v34, %v8797_v50  ;;  %v8799_v0 = vadd.f32 %v8798_v39, %v8756_v58  ;;  %v8758_v41 = vadd.f32 %v8757_v13, %v8715_v9  ;;  %9066 = vmatpush1.bf16.msra.mxu0 %v10402_v47  ;;  %v73_v47 = vld [vmem:[#allocation2 + $0x90] sm:$0xff]  ;;  %v10499_v19 = vcombine.high %v201_v18, %v205_v16 }
 0x3a8   :  { %v8800_v53 = vpop.f32.mrf.mxu1  ;;  %v8759_v3 = vpop.f32.mrf.mxu0  ;;  %9067 = vmatprep.subr.bf16.mxu0 %v10395_v24  ;;  %v69_v24 = vld [vmem:[#allocation2 + $0x70] sm:$0xff]  ;;  %v10498_v50 = vcombine.low %v201_v18, %v205_v16 }
 0x3a9   :  { %9109 = vmatpush1.bf16.msra.mxu1 %v10530_v61  ;;  %v11118_v43 = vmul.f32 -1.442695, %v13188_v37  ;;  %v13193_v52 = vadd.f32 %v9588_v23, %v8799_v0  ;;  %v8801_v45 = vadd.f32 %v8800_v53, %v8758_v41  ;;  %v8760_v42 = vadd.f32 %v8759_v3, %v8717_v46  ;;  %v77_v61 = vld [vmem:[#allocation2 + $0xb0] sm:$0xff] }
 0x3aa   :  { %9110 = vmatprep.subr.bf16.mxu1 %v10523_v28  ;;  %v8802_v56 = vpop.f32.mrf.mxu1  ;;  %v10371_v17 = vcombine.high %v73_v47, %v77_v61  ;;  %v193_v28 = vld [vmem:[#allocation2 + $0x450] sm:$0xff]  ;;  %v10370_v9 = vcombine.low %v73_v47, %v77_v61  ;;  %v10355_v46 = vcombine.high %v57_v60, %v61_v14  ;;  %v10483_v41 = vcombine.high %v185_v63, %v189_v40 }
 0x3ab   :  { %11172 = vpow2.f32 %v11118_v43  ;;  %v11119_v4 = vmul.f32 -1.442695, %v13193_v52  ;;  %v13196_v12 = vadd.f32 %v9584_v34, %v8801_v45  ;;  %v8803_v5 = vadd.f32 %v8802_v56, %v8760_v42  ;;  %9068 = vmatpush1.bf16.msra.mxu0 %v10394_v31  ;;  %v177_v53 = vld [vmem:[#allocation2 + $0x3d0] sm:$0xff] }
 0x3ac   :  { %9069 = vmatprep.subr.bf16.mxu0 %v10387_v49  ;;  %v10491_v39 = vcombine.high %v193_v28, %v197_v20  ;;  %v10490_v32 = vcombine.low %v193_v28, %v197_v20  ;;  %v181_v3 = vld [vmem:[#allocation2 + $0x3f0] sm:$0xff]  ;;  %v10354_v45 = vcombine.low %v57_v60, %v61_v14 }
 0x3ad   :  { %9111 = vmatpush1.bf16.msra.mxu1 %v10522_v27  ;;  %11174 = vpow2.f32 %v11119_v4  ;;  %v11126_v6 = vmul.f32 -1.442695, %v13196_v12  ;;  %v13199_v7 = vadd.f32 %v9588_v23, %v8803_v5  ;;  %v65_v23 = vld [vmem:[#allocation2 + $0x50] sm:$0xff]  ;;  %v10475_v55 = vcombine.high %v177_v53, %v181_v3 }
 0x3ae   :  { %9112 = vmatprep.subr.bf16.mxu1 %v10515_v21  ;;  %v10363_v58 = vcombine.high %v65_v23, %v69_v24  ;;  %v10362_v13 = vcombine.low %v65_v23, %v69_v24  ;;  %v305_v49 = vld [vmem:[#allocation2 + $0x7d0] sm:$0xff] }
 0x3af   :  { %11176 = vpow2.f32 %v11126_v6  ;;  %v11127_v34 = vmul.f32 -1.442695, %v13199_v7  ;;  %9070 = vmatpush1.bf16.msra.mxu0 %v10386_v48  ;;  %v309_v21 = vld [vmem:[#allocation2 + $0x7f0] sm:$0xff]  ;;  %v10474_v6 = vcombine.low %v177_v53, %v181_v3 }
 0x3b0   :  { %9071 = vmatprep.subr.bf16.mxu0 %v10379_v25  ;;  %v10603_v48 = vcombine.high %v305_v49, %v309_v21  ;;  %v169_v15 = vld [vmem:[#allocation2 + $0x390] sm:$0xff] }
 0x3b1   :  { %9113 = vmatpush1.bf16.msra.mxu1 %v10514_v57  ;;  %11178 = vpow2.f32 %v11127_v34  ;;  %v173_v62 = vld [vmem:[#allocation2 + $0x3b0] sm:$0xff] }
 0x3b2   :  { %9114 = vmatprep.subr.bf16.mxu1 %v10507_v10  ;;  %v297_v5 = vld [vmem:[#allocation2 + $0x790] sm:$0xff]  ;;  %v10602_v10 = vcombine.low %v305_v49, %v309_v21  ;;  %v10467_v47 = vcombine.high %v169_v15, %v173_v62 }
 0x3b3   :  { %9072 = vmatpush1.bf16.msra.mxu0 %v10378_v1  ;;  %v301_v57 = vld [vmem:[#allocation2 + $0x7b0] sm:$0xff] }
 0x3b4   :  { %9073 = vmatprep.subr.bf16.mxu0 %v10371_v17  ;;  %v10595_v61 = vcombine.high %v297_v5, %v301_v57  ;;  %v161_v18 = vld [vmem:[#allocation2 + $0x350] sm:$0xff]  ;;  %v10594_v17 = vcombine.low %v297_v5, %v301_v57 }
 0x3b5   :  { %9115 = vmatpush1.bf16.msra.mxu1 %v10506_v36  ;;  %v165_v16 = vld [vmem:[#allocation2 + $0x370] sm:$0xff]  ;;  %v10466_v36 = vcombine.low %v169_v15, %v173_v62  ;;  %v9808_v62 = vld [vmem:[%s13416_s4 + $0x20] sm:$0x33] }
 0x3b6   :  { %9116 = vmatprep.subr.bf16.mxu1 %v10499_v19  ;;  %v289_v34 = vld [vmem:[#allocation2 + $0x750] sm:$0xff]  ;;  %v10459_v19 = vcombine.high %v161_v18, %v165_v16 }
 0x3b7   :  { %9074 = vmatpush1.bf16.msra.mxu0 %v10370_v9  ;;  %v293_v1 = vld [vmem:[#allocation2 + $0x770] sm:$0xff] }
 0x3b8   :  { %v11173_v31 = vpop.eup %11172  ;;  %9075 = vmatprep.subr.bf16.mxu0 %v10363_v58  ;;  %v10587_v23 = vcombine.high %v289_v34, %v293_v1  ;;  %v153_v24 = vld [vmem:[#allocation2 + $0x310] sm:$0xff] }
 0x3b9   :  { %9117 = vmatpush1.bf16.msra.mxu1 %v10498_v50  ;;  %v9685_v0 = vadd.f32 1.0, %v11173_v31  ;;  %v157_v28 = vld [vmem:[#allocation2 + $0x330] sm:$0xff]  ;;  %v10458_v50 = vcombine.low %v161_v18, %v165_v16 }
 0x3ba   :  { %9118 = vmatprep.subr.bf16.mxu1 %v10491_v39  ;;  %v11175_v27 = vpop.eup %11174  ;;  %v281_v20 = vld [vmem:[#allocation2 + $0x710] sm:$0xff]  ;;  %v10586_v39 = vcombine.low %v289_v34, %v293_v1  ;;  %v10451_v60 = vcombine.high %v153_v24, %v157_v28 }
 0x3bb   :  { %11180 = vrcp.f32 %v9685_v0  ;;  %v9686_v43 = vadd.f32 1.0, %v11175_v27  ;;  %9076 = vmatpush1.bf16.msra.mxu0 %v10362_v13  ;;  %v285_v9 = vld [vmem:[#allocation2 + $0x730] sm:$0xff] }
 0x3bc   :  { %v11177_v42 = vpop.eup %11176  ;;  %9077 = vmatprep.subr.bf16.mxu0 %v10355_v46  ;;  %v10579_v14 = vcombine.high %v281_v20, %v285_v9  ;;  %v145_v63 = vld [vmem:[#allocation2 + $0x2d0] sm:$0xff]  ;;  %v10578_v27 = vcombine.low %v281_v20, %v285_v9 }
 0x3bd   :  { %9119 = vmatpush1.bf16.msra.mxu1 %v10490_v32  ;;  %11182 = vrcp.f32 %v9686_v43  ;;  %v9693_v56 = vadd.f32 1.0, %v11177_v42  ;;  %v149_v40 = vld [vmem:[#allocation2 + $0x2f0] sm:$0xff] }
 0x3be   :  { %9120 = vmatprep.subr.bf16.mxu1 %v10483_v41  ;;  %v11179_v4 = vpop.eup %11178  ;;  %v273_v31 = vld [vmem:[#allocation2 + $0x6d0] sm:$0xff]  ;;  %v10450_v41 = vcombine.low %v153_v24, %v157_v28  ;;  %v10443_v49 = vcombine.high %v145_v63, %v149_v40 }
 0x3bf   :  { %11184 = vrcp.f32 %v9693_v56  ;;  %v9694_v25 = vadd.f32 1.0, %v11179_v4  ;;  %9078 = vmatpush1.bf16.msra.mxu0 %v10354_v45  ;;  %v277_v32 = vld [vmem:[#allocation2 + $0x6f0] sm:$0xff] }
 0x3c0   :  { %9079 = vmatprep.subr.bf16.mxu0 %v10475_v55  ;;  %v137_v43 = vld [vmem:[#allocation2 + $0x290] sm:$0xff]  ;;  %v10570_v4 = vcombine.low %v273_v31, %v277_v32 }
 0x3c1   :  { %9121 = vmatpush1.bf16.msra.mxu1 %v10482_v54  ;;  %11186 = vrcp.f32 %v9694_v25  ;;  %v265_v42 = vld [vmem:[#allocation2 + $0x690] sm:$0xff] }
 0x3c2   :  { %9122 = vmatprep.subr.bf16.mxu1 %v10603_v48  ;;  %v269_v54 = vld [vmem:[#allocation2 + $0x6b0] sm:$0xff]  ;;  %v10442_v48 = vcombine.low %v145_v63, %v149_v40 }
 0x3c3   :  { %9080 = vmatpush2.bf16.msra.mxu0 %v10474_v6  ;;  %v133_v25 = vld [vmem:[#allocation2 + $0x270] sm:$0xff]  ;;  %v10562_v18 = vcombine.low %v265_v42, %v269_v54 }
 0x3c4   :  { %9081 = vmatprep.subr.bf16.mxu0 %v10467_v47  ;;  %v257_v6 = vld [vmem:[#allocation2 + $0x650] sm:$0xff] }
 0x3c5   :  { %9123 = vmatpush2.bf16.msra.mxu1 %v10602_v10  ;;  %v261_v10 = vld [vmem:[#allocation2 + $0x670] sm:$0xff] }
 0x3c6   :  { %9124 = vmatprep.subr.bf16.mxu1 %v10595_v61  ;;  %v10555_v34 = vcombine.high %v257_v6, %v261_v10  ;;  %v121_v1 = vld [vmem:[#allocation2 + $0x210] sm:$0xff]  ;;  %v10554_v24 = vcombine.low %v257_v6, %v261_v10 }
 0x3c7   :  { %9082 = vmatpush2.bf16.msra.mxu0 %v10466_v36  ;;  %v125_v36 = vld [vmem:[#allocation2 + $0x230] sm:$0xff] }
 0x3c8   :  { %v11181_v58 = vpop.eup %11180  ;;  %9083 = vmatprep.subr.bf16.mxu0 %v10459_v19  ;;  %v253_v19 = vld [vmem:[#allocation2 + $0x630] sm:$0xff]  ;;  %v10419_v28 = vcombine.high %v121_v1, %v125_v36 }
 0x3c9   :  { %9125 = vmatpush2.bf16.msra.mxu1 %v10594_v17  ;;  %v9733_v46 = vmul.f32 %v11181_v58, %v13188_v37  ;;  %v10571_v37 = vcombine.high %v273_v31, %v277_v32  ;;  %v249_v17 = vld [vmem:[#allocation2 + $0x610] sm:$0xff] }
 0x3ca   :  { %9126 = vmatprep.subr.bf16.mxu1 %v10587_v23  ;;  %v11183_v13 = vpop.eup %11182  ;;  %v10547_v20 = vcombine.high %v249_v17, %v253_v19  ;;  %v369_v9 = vld [vmem:[#allocation2 + $0x9d0] sm:$0xff] }
 0x3cb   :  { %v9734_v0 = vmul.f32 %v11183_v13, %v13193_v52  ;;  %9084 = vmatpush2.bf16.msra.mxu0 %v10458_v50  ;;  %v141_v52 = vld [vmem:[#allocation2 + $0x2b0] sm:$0xff] }
 0x3cc   :  { %v11185_v53 = vpop.eup %11184  ;;  %9085 = vmatprep.subr.bf16.mxu0 %v10451_v60  ;;  %v10435_v5 = vcombine.high %v137_v43, %v141_v52  ;;  %v10434_v61 = vcombine.low %v137_v43, %v141_v52  ;;  %v373_v50 = vld [vmem:[#allocation2 + $0x9f0] sm:$0xff]  ;;  %v10418_v60 = vcombine.low %v121_v1, %v125_v36  ;;  %v11259_v52 = vld [vmem:[%s13412_s0 + $0x8] ss:$48 sps:$4 sm:$0x3f]  }
 0x3cd   :  { %9127 = vmatpush2.bf16.msra.mxu1 %v10586_v39  ;;  %v11142_v21 = vpack.c.bf16 %v9734_v0, %v9733_v46  ;;  %v9741_v55 = vmul.f32 %v11185_v53, %v13196_v12  ;;  %v10563_v12 = vcombine.high %v265_v42, %v269_v54  ;;  %v497_v58 = vld [vmem:[#allocation2 + $0xdd0] sm:$0xff]  ;;  %v10667_v63 = vcombine.high %v369_v9, %v373_v50 }
 0x3ce   :  { %9128 = vmatprep.subr.bf16.mxu1 %v10579_v14  ;;  %v11187_v45 = vpop.eup %11186  ;;  %v501_v39 = vld [vmem:[#allocation2 + $0xdf0] sm:$0xff]  ;;  %v10546_v14 = vcombine.low %v249_v17, %v253_v19  ;;  %v10666_v0 = vcombine.low %v369_v9, %v373_v50 }
 0x3cf   :  { %9797 = vst [vmem:[%s13416_s4] sm:$0xff] %v11142_v21  ;;  %v9742_v56 = vmul.f32 %v11187_v45, %v13199_v7  ;;  %9086 = vmatpush2.bf16.msra.mxu0 %v10450_v41  ;;  %v129_v7 = vld [vmem:[#allocation2 + $0x250] sm:$0xff]  ;;  %v10795_v40 = vcombine.high %v497_v58, %v501_v39  ;;  %v10794_v41 = vcombine.low %v497_v58, %v501_v39 }
 0x3d0   :  { %9087 = vmatprep.subr.bf16.mxu0 %v10443_v49  ;;  %v10427_v16 = vcombine.high %v129_v7, %v133_v25  ;;  %v10426_v23 = vcombine.low %v129_v7, %v133_v25  ;;  %v361_v13 = vld [vmem:[#allocation2 + $0x990] sm:$0xff] }
 0x3d1   :  { %9129 = vmatpush2.bf16.msra.mxu1 %v10578_v27  ;;  %v11146_v57 = vpack.c.bf16 %v9742_v56, %v9741_v55  ;;  %v365_v31 = vld [vmem:[#allocation2 + $0x9b0] sm:$0xff] }
 0x3d2   :  { %9130 = vmatprep.subr.bf16.mxu1 %v10571_v37  ;;  %v489_v32 = vld [vmem:[#allocation2 + $0xd90] sm:$0xff]  ;;  %v10659_v53 = vcombine.high %v361_v13, %v365_v31  ;;  %v10658_v45 = vcombine.low %v361_v13, %v365_v31 }
 0x3d3   :  { %v9809_v47 = vsel %vm13218_vm6, %v11146_v57, %v9808_v62  ;;  %9088 = vmatpush2.bf16.msra.mxu0 %v10442_v48  ;;  %v493_v46 = vld [vmem:[#allocation2 + $0xdb0] sm:$0xff]  ;;  %v11261_v57 = vld [vmem:[%s13412_s0 + $0x1c] ss:$48 sps:$4 sm:$0x3f]  }
 0x3d4   :  { %9810 = vst [vmem:[%s13416_s4 + $0x20] sm:$0x33] %v9809_v47  ;;  %9089 = vmatprep.subr.bf16.mxu0 %v10435_v5  ;;  %v10787_v3 = vcombine.high %v489_v32, %v493_v46  ;;  %v353_v27 = vld [vmem:[#allocation2 + $0x950] sm:$0xff]  ;;  %v10786_v42 = vcombine.low %v489_v32, %v493_v46 }
 0x3d5   :  { %9131 = vmatpush2.bf16.msra.mxu1 %v10570_v4  ;;  %v357_v49 = vld [vmem:[#allocation2 + $0x970] sm:$0xff] }
 0x3d6   :  { %9132 = vmatprep.subr.bf16.mxu1 %v10563_v12  ;;  %v11258_v21 = vld [vmem:[%s13412_s0] ss:$48 sps:$4 sm:$0x3f]   ;;  %v10651_v54 = vcombine.high %v353_v27, %v357_v49  ;;  %v11260_v62 = vld [vmem:[%s13412_s0 + $0x14] ss:$48 sps:$4 sm:$0x3f]   ;;  %v10650_v12 = vcombine.low %v353_v27, %v357_v49 }
 0x3d7   :  { %9090 = vmatpush2.bf16.msra.mxu0 %v10434_v61  ;;  %v481_v37 = vld [vmem:[#allocation2 + $0xd50] sm:$0xff] }
 0x3d8   :  { %9091 = vmatprep.subr.bf16.mxu0 %v10427_v16  ;;  %v485_v43 = vld [vmem:[#allocation2 + $0xd70] sm:$0xff] }
 0x3d9   :  { %9133 = vmatpush2.bf16.msra.mxu1 %v10562_v18  ;;  %v10779_v55 = vcombine.high %v481_v37, %v485_v43  ;;  %v345_v56 = vld [vmem:[#allocation2 + $0x910] sm:$0xff]  ;;  %v10778_v7 = vcombine.low %v481_v37, %v485_v43 }
 0x3da   :  { %9134 = vmatprep.subr.bf16.mxu1 %v10555_v34  ;;  %v349_v48 = vld [vmem:[#allocation2 + $0x930] sm:$0xff] }
 0x3db   :  { %9092 = vmatpush2.bf16.msra.mxu0 %v10426_v23  ;;  %v473_v4 = vld [vmem:[#allocation2 + $0xd10] sm:$0xff]  ;;  %v10643_v25 = vcombine.high %v345_v56, %v349_v48  ;;  %v10642_v16 = vcombine.low %v345_v56, %v349_v48 }
 0x3dc   :  { %9093 = vmatprep.subr.bf16.mxu0 %v10419_v28  ;;  %v477_v5 = vld [vmem:[#allocation2 + $0xd30] sm:$0xff] }
 0x3dd   :  { %9135 = vmatpush2.bf16.msra.mxu1 %v10554_v24  ;;  %v10771_v6 = vcombine.high %v473_v4, %v477_v5  ;;  %v337_v10 = vld [vmem:[#allocation2 + $0x8d0] sm:$0xff]  ;;  %v10770_v34 = vcombine.low %v473_v4, %v477_v5 }
 0x3de   :  { %9136 = vmatprep.subr.bf16.mxu1 %v10547_v20  ;;  %v341_v47 = vld [vmem:[#allocation2 + $0x8f0] sm:$0xff] }
 0x3df   :  { %9094 = vmatpush2.bf16.msra.mxu0 %v10418_v60  ;;  %v465_v61 = vld [vmem:[#allocation2 + $0xcd0] sm:$0xff]  ;;  %v10635_v1 = vcombine.high %v337_v10, %v341_v47  ;;  %v10634_v28 = vcombine.low %v337_v10, %v341_v47 }
 0x3e0   :  { %9149 = vmatprep.subr.bf16.mxu0 %v10667_v63  ;;  %v469_v18 = vld [vmem:[#allocation2 + $0xcf0] sm:$0xff] }
 0x3e1   :  { %9137 = vmatpush2.bf16.msra.mxu1 %v10546_v14  ;;  %v10763_v36 = vcombine.high %v465_v61, %v469_v18  ;;  %v329_v17 = vld [vmem:[#allocation2 + $0x890] sm:$0xff]  ;;  %v10762_v20 = vcombine.low %v465_v61, %v469_v18 }
 0x3e2   :  { %9192 = vmatprep.subr.bf16.mxu1 %v10795_v40  ;;  %9096 = vmatmul.mubr.bf16.vlgmr.msra.gmra.mxu0 %v11258_v21  ;;  %v333_v19 = vld [vmem:[#allocation2 + $0x8b0] sm:$0xff] }
 0x3e3   :  { %9150 = vmatpush1.bf16.msra.mxu0 %v10666_v0  ;;  %9181 = vmatprep.mubr.bf16.mxu0 %v11260_v62  ;;  %v457_v23 = vld [vmem:[#allocation2 + $0xc90] sm:$0xff]  ;;  %v10627_v9 = vcombine.high %v329_v17, %v333_v19  ;;  %v10626_v63 = vcombine.low %v329_v17, %v333_v19 }
 0x3e4   :  { %9139 = vmatmul.mubr.bf16.vlgmr.msra.gmra.mxu1 %v11259_v52  ;;  %9151 = vmatprep.subr.bf16.mxu0 %v10659_v53  ;;  %v461_v24 = vld [vmem:[#allocation2 + $0xcb0] sm:$0xff] }
 0x3e5   :  { %9193 = vmatpush1.bf16.msra.mxu1 %v10794_v41  ;;  %9224 = vmatprep.mubr.bf16.mxu1 %v11261_v57  ;;  %v10755_v50 = vcombine.high %v457_v23, %v461_v24  ;;  %v321_v58 = vld [vmem:[#allocation2 + $0x850] sm:$0xff]  ;;  %v10754_v40 = vcombine.low %v457_v23, %v461_v24 }
 0x3e6   :  { %9194 = vmatprep.subr.bf16.mxu1 %v10787_v3  ;;  %v325_v39 = vld [vmem:[#allocation2 + $0x870] sm:$0xff] }
 0x3e7   :  { %9152 = vmatpush1.bf16.msra.mxu0 %v10658_v45  ;;  %v449_v60 = vld [vmem:[#allocation2 + $0xc50] sm:$0xff]  ;;  %v10619_v13 = vcombine.high %v321_v58, %v325_v39  ;;  %v10618_v53 = vcombine.low %v321_v58, %v325_v39 }
 0x3e8   :  { %9153 = vmatprep.subr.bf16.mxu0 %v10651_v54  ;;  %v453_v14 = vld [vmem:[#allocation2 + $0xc70] sm:$0xff] }
 0x3e9   :  { %9195 = vmatpush1.bf16.msra.mxu1 %v10786_v42  ;;  %v10747_v31 = vcombine.high %v449_v60, %v453_v14  ;;  %v313_v32 = vld [vmem:[#allocation2 + $0x810] sm:$0xff]  ;;  %v10746_v3 = vcombine.low %v449_v60, %v453_v14 }
 0x3ea   :  { %9196 = vmatprep.subr.bf16.mxu1 %v10779_v55  ;;  %v317_v46 = vld [vmem:[#allocation2 + $0x830] sm:$0xff] }
 0x3eb   :  { %9154 = vmatpush1.bf16.msra.mxu0 %v10650_v12  ;;  %v441_v0 = vld [vmem:[#allocation2 + $0xc10] sm:$0xff]  ;;  %v10611_v27 = vcombine.high %v313_v32, %v317_v46  ;;  %v10610_v45 = vcombine.low %v313_v32, %v317_v46 }
 0x3ec   :  { %9155 = vmatprep.subr.bf16.mxu0 %v10643_v25  ;;  %v445_v41 = vld [vmem:[#allocation2 + $0xc30] sm:$0xff] }
 0x3ed   :  { %9197 = vmatpush1.bf16.msra.mxu1 %v10778_v7  ;;  %v10739_v49 = vcombine.high %v441_v0, %v445_v41  ;;  %v433_v21 = vld [vmem:[#allocation2 + $0xbd0] sm:$0xff]  ;;  %v10738_v42 = vcombine.low %v441_v0, %v445_v41 }
 0x3ee   :  { %9198 = vmatprep.subr.bf16.mxu1 %v10771_v6  ;;  %v437_v37 = vld [vmem:[#allocation2 + $0xbf0] sm:$0xff] }
 0x3ef   :  { %9156 = vmatpush1.bf16.msra.mxu0 %v10642_v16  ;;  %v561_v43 = vld [vmem:[#allocation2 + $0xfd0] sm:$0xff]  ;;  %v10731_v54 = vcombine.high %v433_v21, %v437_v37  ;;  %v10730_v5 = vcombine.low %v433_v21, %v437_v37 }
 0x3f0   :  { %9157 = vmatprep.subr.bf16.mxu0 %v10635_v1  ;;  %v565_v52 = vld [vmem:[#allocation2 + $0xff0] sm:$0xff] }
 0x3f1   :  { %9199 = vmatpush1.bf16.msra.mxu1 %v10770_v34  ;;  %v10859_v55 = vcombine.high %v561_v43, %v565_v52  ;;  %v425_v56 = vld [vmem:[#allocation2 + $0xb90] sm:$0xff]  ;;  %v10858_v57 = vcombine.low %v561_v43, %v565_v52 }
 0x3f2   :  { %9200 = vmatprep.subr.bf16.mxu1 %v10763_v36  ;;  %v429_v48 = vld [vmem:[#allocation2 + $0xbb0] sm:$0xff] }
 0x3f3   :  { %9158 = vmatpush1.bf16.msra.mxu0 %v10634_v28  ;;  %v553_v62 = vld [vmem:[#allocation2 + $0xf90] sm:$0xff]  ;;  %v10723_v12 = vcombine.high %v425_v56, %v429_v48  ;;  %v10722_v61 = vcombine.low %v425_v56, %v429_v48 }
 0x3f4   :  { %9159 = vmatprep.subr.bf16.mxu0 %v10627_v9  ;;  %v557_v4 = vld [vmem:[#allocation2 + $0xfb0] sm:$0xff] }
 0x3f5   :  { %9201 = vmatpush1.bf16.msra.mxu1 %v10762_v20  ;;  %v10851_v7 = vcombine.high %v553_v62, %v557_v4  ;;  %v417_v25 = vld [vmem:[#allocation2 + $0xb50] sm:$0xff]  ;;  %v10850_v18 = vcombine.low %v553_v62, %v557_v4 }
 0x3f6   :  { %9202 = vmatprep.subr.bf16.mxu1 %v10755_v50  ;;  %v421_v6 = vld [vmem:[#allocation2 + $0xb70] sm:$0xff] }
 0x3f7   :  { %9160 = vmatpush1.bf16.msra.mxu0 %v10626_v63  ;;  %v545_v10 = vld [vmem:[#allocation2 + $0xf50] sm:$0xff]  ;;  %v10715_v16 = vcombine.high %v417_v25, %v421_v6  ;;  %v10714_v23 = vcombine.low %v417_v25, %v421_v6 }
 0x3f8   :  { %9161 = vmatprep.subr.bf16.mxu0 %v10619_v13  ;;  %v549_v47 = vld [vmem:[#allocation2 + $0xf70] sm:$0xff] }
 0x3f9   :  { %9203 = vmatpush1.bf16.msra.mxu1 %v10754_v40  ;;  %v10843_v34 = vcombine.high %v545_v10, %v549_v47  ;;  %v409_v1 = vld [vmem:[#allocation2 + $0xb10] sm:$0xff]  ;;  %v10842_v24 = vcombine.low %v545_v10, %v549_v47 }
 0x3fa   :  { %9204 = vmatprep.subr.bf16.mxu1 %v10747_v31  ;;  %v413_v36 = vld [vmem:[#allocation2 + $0xb30] sm:$0xff] }
 0x3fb   :  { %9162 = vmatpush1.bf16.msra.mxu0 %v10618_v53  ;;  %v537_v17 = vld [vmem:[#allocation2 + $0xf10] sm:$0xff]  ;;  %v10707_v28 = vcombine.high %v409_v1, %v413_v36  ;;  %v10706_v60 = vcombine.low %v409_v1, %v413_v36 }
 0x3fc   :  { %9163 = vmatprep.subr.bf16.mxu0 %v10611_v27  ;;  %v541_v19 = vld [vmem:[#allocation2 + $0xf30] sm:$0xff] }
 0x3fd   :  { %9205 = vmatpush1.bf16.msra.mxu1 %v10746_v3  ;;  %v10835_v20 = vcombine.high %v537_v17, %v541_v19  ;;  %v401_v9 = vld [vmem:[#allocation2 + $0xad0] sm:$0xff]  ;;  %v10834_v14 = vcombine.low %v537_v17, %v541_v19 }
 0x3fe   :  { %9206 = vmatprep.subr.bf16.mxu1 %v10739_v49  ;;  %v405_v50 = vld [vmem:[#allocation2 + $0xaf0] sm:$0xff] }
 0x3ff   :  { %9164 = vmatpush1.bf16.msra.mxu0 %v10610_v45  ;;  %v529_v58 = vld [vmem:[#allocation2 + $0xed0] sm:$0xff]  ;;  %v10699_v63 = vcombine.high %v401_v9, %v405_v50  ;;  %v10698_v0 = vcombine.low %v401_v9, %v405_v50 }
 0x400   :  { %9165 = vmatprep.subr.bf16.mxu0 %v10731_v54  ;;  %v533_v39 = vld [vmem:[#allocation2 + $0xef0] sm:$0xff] }
 0x401   :  { %9207 = vmatpush1.bf16.msra.mxu1 %v10738_v42  ;;  %v10827_v40 = vcombine.high %v529_v58, %v533_v39  ;;  %v393_v13 = vld [vmem:[#allocation2 + $0xa90] sm:$0xff]  ;;  %v10826_v41 = vcombine.low %v529_v58, %v533_v39  ;;  %v11263_v39 = vld [vmem:[%s13412_s0 + $0x18] ss:$48 sps:$4 sm:$0x3f]  }
 0x402   :  { %9208 = vmatprep.subr.bf16.mxu1 %v10859_v55  ;;  %v397_v31 = vld [vmem:[#allocation2 + $0xab0] sm:$0xff] }
 0x403   :  { %9166 = vmatpush2.bf16.msra.mxu0 %v10730_v5  ;;  %v521_v32 = vld [vmem:[#allocation2 + $0xe90] sm:$0xff]  ;;  %v10691_v53 = vcombine.high %v393_v13, %v397_v31  ;;  %v10690_v43 = vcombine.low %v393_v13, %v397_v31 }
 0x404   :  { %9167 = vmatprep.subr.bf16.mxu0 %v10723_v12  ;;  %v525_v46 = vld [vmem:[#allocation2 + $0xeb0] sm:$0xff] }
 0x405   :  { %9209 = vmatpush2.bf16.msra.mxu1 %v10858_v57  ;;  %v10819_v3 = vcombine.high %v521_v32, %v525_v46  ;;  %v385_v27 = vld [vmem:[#allocation2 + $0xa50] sm:$0xff]  ;;  %v10818_v52 = vcombine.low %v521_v32, %v525_v46 }
 0x406   :  { %9210 = vmatprep.subr.bf16.mxu1 %v10851_v7  ;;  %v389_v49 = vld [vmem:[#allocation2 + $0xa70] sm:$0xff] }
 0x407   :  { %9168 = vmatpush2.bf16.msra.mxu0 %v10722_v61  ;;  %v513_v21 = vld [vmem:[#allocation2 + $0xe50] sm:$0xff]  ;;  %v10683_v45 = vcombine.high %v385_v27, %v389_v49  ;;  %v10682_v62 = vcombine.low %v385_v27, %v389_v49 }
 0x408   :  { %9169 = vmatprep.subr.bf16.mxu0 %v10715_v16  ;;  %v517_v37 = vld [vmem:[#allocation2 + $0xe70] sm:$0xff] }
 0x409   :  { %9211 = vmatpush2.bf16.msra.mxu1 %v10850_v18  ;;  %v10811_v42 = vcombine.high %v513_v21, %v517_v37  ;;  %v377_v54 = vld [vmem:[#allocation2 + $0xa10] sm:$0xff]  ;;  %v10810_v4 = vcombine.low %v513_v21, %v517_v37 }
 0x40a   :  { %9212 = vmatprep.subr.bf16.mxu1 %v10843_v34  ;;  %v381_v55 = vld [vmem:[#allocation2 + $0xa30] sm:$0xff] }
 0x40b   :  { %9170 = vmatpush2.bf16.msra.mxu0 %v10714_v23  ;;  %v505_v56 = vld [vmem:[#allocation2 + $0xe10] sm:$0xff]  ;;  %v10675_v5 = vcombine.high %v377_v54, %v381_v55  ;;  %v10674_v10 = vcombine.low %v377_v54, %v381_v55 }
 0x40c   :  { %9171 = vmatprep.subr.bf16.mxu0 %v10707_v28  ;;  %v509_v48 = vld [vmem:[#allocation2 + $0xe30] sm:$0xff] }
 0x40d   :  { %9213 = vmatpush2.bf16.msra.mxu1 %v10842_v24  ;;  %v10803_v57 = vcombine.high %v505_v56, %v509_v48  ;;  %v625_v12 = vld [vmem:[#allocation2 + $0x11d0] sm:$0xff]  ;;  %v10802_v47 = vcombine.low %v505_v56, %v509_v48 }
 0x40e   :  { %9214 = vmatprep.subr.bf16.mxu1 %v10835_v20  ;;  %v629_v7 = vld [vmem:[#allocation2 + $0x11f0] sm:$0xff] }
 0x40f   :  { %9172 = vmatpush2.bf16.msra.mxu0 %v10706_v60  ;;  %v753_v25 = vld [vmem:[#allocation2 + $0x15d0] sm:$0xff]  ;;  %v10923_v61 = vcombine.high %v625_v12, %v629_v7  ;;  %v10922_v17 = vcombine.low %v625_v12, %v629_v7 }
 0x410   :  { %9173 = vmatprep.subr.bf16.mxu0 %v10699_v63  ;;  %v757_v6 = vld [vmem:[#allocation2 + $0x15f0] sm:$0xff] }
 0x411   :  { %9215 = vmatpush2.bf16.msra.mxu1 %v10834_v14  ;;  %v11051_v18 = vcombine.high %v753_v25, %v757_v6  ;;  %v617_v16 = vld [vmem:[#allocation2 + $0x1190] sm:$0xff]  ;;  %v11050_v19 = vcombine.low %v753_v25, %v757_v6 }
 0x412   :  { %9216 = vmatprep.subr.bf16.mxu1 %v10827_v40  ;;  %v621_v34 = vld [vmem:[#allocation2 + $0x11b0] sm:$0xff] }
 0x413   :  { %9174 = vmatpush2.bf16.msra.mxu0 %v10698_v0  ;;  %v745_v1 = vld [vmem:[#allocation2 + $0x1590] sm:$0xff]  ;;  %v10915_v23 = vcombine.high %v617_v16, %v621_v34  ;;  %v10914_v60 = vcombine.low %v617_v16, %v621_v34 }
 0x414   :  { %9175 = vmatprep.subr.bf16.mxu0 %v10691_v53  ;;  %v749_v36 = vld [vmem:[#allocation2 + $0x15b0] sm:$0xff] }
 0x415   :  { %9217 = vmatpush2.bf16.msra.mxu1 %v10826_v41  ;;  %v11043_v24 = vcombine.high %v745_v1, %v749_v36  ;;  %v609_v28 = vld [vmem:[#allocation2 + $0x1150] sm:$0xff]  ;;  %v11042_v14 = vcombine.low %v745_v1, %v749_v36  ;;  %v11265_v41 = vld [vmem:[%s13412_s0 + $0x2c] ss:$48 sps:$4 sm:$0x3f]  }
 0x416   :  { %9218 = vmatprep.subr.bf16.mxu1 %v10819_v3  ;;  %v613_v20 = vld [vmem:[#allocation2 + $0x1170] sm:$0xff] }
 0x417   :  { %9176 = vmatpush2.bf16.msra.mxu0 %v10690_v43  ;;  %v11262_v9 = vld [vmem:[%s13412_s0 + $0x10] ss:$48 sps:$4 sm:$0x3f]   ;;  %v10907_v63 = vcombine.high %v609_v28, %v613_v20  ;;  %v11264_v32 = vld [vmem:[%s13412_s0 + $0x24] ss:$48 sps:$4 sm:$0x3f]   ;;  %v10906_v53 = vcombine.low %v609_v28, %v613_v20 }
 0x418   :  { %9177 = vmatprep.subr.bf16.mxu0 %v10683_v45  ;;  %v737_v50 = vld [vmem:[#allocation2 + $0x1550] sm:$0xff] }
 0x419   :  { %9219 = vmatpush2.bf16.msra.mxu1 %v10818_v52  ;;  %v741_v58 = vld [vmem:[#allocation2 + $0x1570] sm:$0xff] }
 0x41a   :  { %9220 = vmatprep.subr.bf16.mxu1 %v10811_v42  ;;  %v11035_v40 = vcombine.high %v737_v50, %v741_v58  ;;  %v601_v13 = vld [vmem:[#allocation2 + $0x1110] sm:$0xff]  ;;  %v11034_v3 = vcombine.low %v737_v50, %v741_v58 }
 0x41b   :  { %9178 = vmatpush2.bf16.msra.mxu0 %v10682_v62  ;;  %v605_v31 = vld [vmem:[#allocation2 + $0x1130] sm:$0xff] }
 0x41c   :  { %9179 = vmatprep.subr.bf16.mxu0 %v10675_v5  ;;  %v729_v46 = vld [vmem:[#allocation2 + $0x1510] sm:$0xff]  ;;  %v10899_v27 = vcombine.high %v601_v13, %v605_v31  ;;  %v10898_v45 = vcombine.low %v601_v13, %v605_v31 }
 0x41d   :  { %9221 = vmatpush2.bf16.msra.mxu1 %v10810_v4  ;;  %v733_v0 = vld [vmem:[#allocation2 + $0x1530] sm:$0xff] }
 0x41e   :  { %9222 = vmatprep.subr.bf16.mxu1 %v10803_v57  ;;  %v11027_v49 = vcombine.high %v729_v46, %v733_v0  ;;  %v593_v21 = vld [vmem:[#allocation2 + $0x10d0] sm:$0xff]  ;;  %v11026_v42 = vcombine.low %v729_v46, %v733_v0 }
 0x41f   :  { %9180 = vmatpush2.bf16.msra.mxu0 %v10674_v10  ;;  %v597_v37 = vld [vmem:[#allocation2 + $0x10f0] sm:$0xff] }
 0x420   :  { %9235 = vmatprep.subr.bf16.mxu0 %v10923_v61  ;;  %v721_v43 = vld [vmem:[#allocation2 + $0x14d0] sm:$0xff]  ;;  %v10891_v54 = vcombine.high %v593_v21, %v597_v37  ;;  %v10890_v5 = vcombine.low %v593_v21, %v597_v37 }
 0x421   :  { %9223 = vmatpush2.bf16.msra.mxu1 %v10802_v47  ;;  %v725_v52 = vld [vmem:[#allocation2 + $0x14f0] sm:$0xff] }
 0x422   :  { %9278 = vmatprep.subr.bf16.mxu1 %v11051_v18  ;;  %9182 = vmatmul.mubr.bf16.vlgmr.msra.gmra.mxu0 %v11262_v9  ;;  %v11019_v55 = vcombine.high %v721_v43, %v725_v52  ;;  %v585_v56 = vld [vmem:[#allocation2 + $0x1090] sm:$0xff]  ;;  %v11018_v57 = vcombine.low %v721_v43, %v725_v52 }
 0x423   :  { %9236 = vmatpush1.bf16.msra.mxu0 %v10922_v17  ;;  %9267 = vmatprep.mubr.bf16.mxu0 %v11264_v32  ;;  %v589_v48 = vld [vmem:[#allocation2 + $0x10b0] sm:$0xff] }
 0x424   :  { %9225 = vmatmul.mubr.bf16.vlgmr.msra.gmra.mxu1 %v11263_v39  ;;  %9237 = vmatprep.subr.bf16.mxu0 %v10915_v23  ;;  %v713_v62 = vld [vmem:[#allocation2 + $0x1490] sm:$0xff]  ;;  %v10883_v12 = vcombine.high %v585_v56, %v589_v48  ;;  %v10882_v61 = vcombine.low %v585_v56, %v589_v48  ;;  %v8839_v56 = vpop.f32.mrf.mxu0 }
 0x425   :  { %9279 = vmatpush1.bf16.msra.mxu1 %v11050_v19  ;;  %9310 = vmatprep.mubr.bf16.mxu1 %v11265_v41  ;;  %v717_v4 = vld [vmem:[#allocation2 + $0x14b0] sm:$0xff] }
 0x426   :  { %9280 = vmatprep.subr.bf16.mxu1 %v11043_v24  ;;  %v11011_v7 = vcombine.high %v713_v62, %v717_v4  ;;  %v577_v25 = vld [vmem:[#allocation2 + $0x1050] sm:$0xff]  ;;  %v11010_v18 = vcombine.low %v713_v62, %v717_v4  ;;  %v13254_v4 = vpop.f32.mrf.mxu1 }
 0x427   :  { %9238 = vmatpush1.bf16.msra.mxu0 %v10914_v60  ;;  %v581_v6 = vld [vmem:[#allocation2 + $0x1070] sm:$0xff] }
 0x428   :  { %9239 = vmatprep.subr.bf16.mxu0 %v10907_v63  ;;  %v705_v10 = vld [vmem:[#allocation2 + $0x1450] sm:$0xff]  ;;  %v10875_v16 = vcombine.high %v577_v25, %v581_v6  ;;  %v10874_v23 = vcombine.low %v577_v25, %v581_v6 }
 0x429   :  { %9281 = vmatpush1.bf16.msra.mxu1 %v11042_v14  ;;  %v709_v47 = vld [vmem:[#allocation2 + $0x1470] sm:$0xff] }
 0x42a   :  { %9282 = vmatprep.subr.bf16.mxu1 %v11035_v40  ;;  %v11003_v34 = vcombine.high %v705_v10, %v709_v47  ;;  %v569_v1 = vld [vmem:[#allocation2 + $0x1010] sm:$0xff]  ;;  %v11002_v24 = vcombine.low %v705_v10, %v709_v47  ;;  %v8841_v10 = vpop.f32.mrf.mxu0 }
 0x42b   :  { %9240 = vmatpush1.bf16.msra.mxu0 %v10906_v53  ;;  %v573_v36 = vld [vmem:[#allocation2 + $0x1030] sm:$0xff] }
 0x42c   :  { %9241 = vmatprep.subr.bf16.mxu0 %v10899_v27  ;;  %v697_v17 = vld [vmem:[#allocation2 + $0x1410] sm:$0xff]  ;;  %v10867_v28 = vcombine.high %v569_v1, %v573_v36  ;;  %v10866_v60 = vcombine.low %v569_v1, %v573_v36 }
 0x42d   :  { %9283 = vmatpush1.bf16.msra.mxu1 %v11034_v3  ;;  %v701_v19 = vld [vmem:[#allocation2 + $0x1430] sm:$0xff] }
 0x42e   :  { %9284 = vmatprep.subr.bf16.mxu1 %v11027_v49  ;;  %v10995_v20 = vcombine.high %v697_v17, %v701_v19  ;;  %v689_v9 = vld [vmem:[#allocation2 + $0x13d0] sm:$0xff]  ;;  %v10994_v14 = vcombine.low %v697_v17, %v701_v19 }
 0x42f   :  { %9242 = vmatpush1.bf16.msra.mxu0 %v10898_v45  ;;  %v693_v50 = vld [vmem:[#allocation2 + $0x13f0] sm:$0xff] }
 0x430   :  { %9243 = vmatprep.subr.bf16.mxu0 %v10891_v54  ;;  %v817_v58 = vld [vmem:[#allocation2 + $0x17d0] sm:$0xff]  ;;  %v10987_v63 = vcombine.high %v689_v9, %v693_v50  ;;  %v10986_v0 = vcombine.low %v689_v9, %v693_v50 }
 0x431   :  { %9285 = vmatpush1.bf16.msra.mxu1 %v11026_v42  ;;  %v821_v39 = vld [vmem:[#allocation2 + $0x17f0] sm:$0xff] }
 0x432   :  { %9286 = vmatprep.subr.bf16.mxu1 %v11019_v55  ;;  %v11115_v40 = vcombine.high %v817_v58, %v821_v39  ;;  %v681_v13 = vld [vmem:[#allocation2 + $0x1390] sm:$0xff]  ;;  %v11114_v41 = vcombine.low %v817_v58, %v821_v39 }
 0x433   :  { %9244 = vmatpush1.bf16.msra.mxu0 %v10890_v5  ;;  %v685_v31 = vld [vmem:[#allocation2 + $0x13b0] sm:$0xff] }
 0x434   :  { %9245 = vmatprep.subr.bf16.mxu0 %v10883_v12  ;;  %v809_v32 = vld [vmem:[#allocation2 + $0x1790] sm:$0xff]  ;;  %v10979_v53 = vcombine.high %v681_v13, %v685_v31  ;;  %v10978_v43 = vcombine.low %v681_v13, %v685_v31 }
 0x435   :  { %9287 = vmatpush1.bf16.msra.mxu1 %v11018_v57  ;;  %v813_v46 = vld [vmem:[#allocation2 + $0x17b0] sm:$0xff] }
 0x436   :  { %9288 = vmatprep.subr.bf16.mxu1 %v11011_v7  ;;  %v11107_v3 = vcombine.high %v809_v32, %v813_v46  ;;  %v673_v27 = vld [vmem:[#allocation2 + $0x1350] sm:$0xff]  ;;  %v11106_v52 = vcombine.low %v809_v32, %v813_v46 }
 0x437   :  { %9246 = vmatpush1.bf16.msra.mxu0 %v10882_v61  ;;  %v677_v49 = vld [vmem:[#allocation2 + $0x1370] sm:$0xff] }
 0x438   :  { %9247 = vmatprep.subr.bf16.mxu0 %v10875_v16  ;;  %v801_v21 = vld [vmem:[#allocation2 + $0x1750] sm:$0xff]  ;;  %v10971_v45 = vcombine.high %v673_v27, %v677_v49  ;;  %v10970_v5 = vcombine.low %v673_v27, %v677_v49 }
 0x439   :  { %9289 = vmatpush1.bf16.msra.mxu1 %v11010_v18  ;;  %v805_v37 = vld [vmem:[#allocation2 + $0x1770] sm:$0xff]  ;;  %v13256_v18 = vpop.f32.mrf.mxu1 }
 0x43a   :  { %9290 = vmatprep.subr.bf16.mxu1 %v11003_v34  ;;  %v11099_v42 = vcombine.high %v801_v21, %v805_v37  ;;  %v665_v54 = vld [vmem:[#allocation2 + $0x1310] sm:$0xff]  ;;  %v11098_v57 = vcombine.low %v801_v21, %v805_v37 }
 0x43b   :  { %9248 = vmatpush1.bf16.msra.mxu0 %v10874_v23  ;;  %v669_v55 = vld [vmem:[#allocation2 + $0x1330] sm:$0xff]  ;;  %v8843_v23 = vpop.f32.mrf.mxu0 }
 0x43c   :  { %9249 = vmatprep.subr.bf16.mxu0 %v10867_v28  ;;  %v793_v48 = vld [vmem:[#allocation2 + $0x1710] sm:$0xff]  ;;  %v10963_v12 = vcombine.high %v665_v54, %v669_v55  ;;  %v10962_v16 = vcombine.low %v665_v54, %v669_v55  ;;  %v8842_v55 = vadd.f32 %v8841_v10, %v12859_v30 }
 0x43d   :  { %9291 = vmatpush1.bf16.msra.mxu1 %v11002_v24  ;;  %v797_v62 = vld [vmem:[#allocation2 + $0x1730] sm:$0xff] }
 0x43e   :  { %9292 = vmatprep.subr.bf16.mxu1 %v10995_v20  ;;  %v11091_v7 = vcombine.high %v793_v48, %v797_v62  ;;  %v657_v25 = vld [vmem:[#allocation2 + $0x12d0] sm:$0xff]  ;;  %v11090_v34 = vcombine.low %v793_v48, %v797_v62  ;;  %v13258_v20 = vpop.f32.mrf.mxu1  ;;  %v8885_v30 = vadd.f32 %v13256_v18, %v8842_v55  ;;  %v90_v55 = vld [vmem:[#allocation2 + $0x118] sm:$0xff] }
 0x43f   :  { %9250 = vmatpush1.bf16.msra.mxu0 %v10866_v60  ;;  %v661_v6 = vld [vmem:[#allocation2 + $0x12f0] sm:$0xff] }
 0x440   :  { %9251 = vmatprep.subr.bf16.mxu0 %v10987_v63  ;;  %v785_v47 = vld [vmem:[#allocation2 + $0x16d0] sm:$0xff]  ;;  %v10955_v1 = vcombine.high %v657_v25, %v661_v6  ;;  %v10954_v9 = vcombine.low %v657_v25, %v661_v6  ;;  %v8845_v63 = vpop.f32.mrf.mxu0  ;;  %v8888_v31 = vpop.f32.mrf.mxu1 }
 0x441   :  { %9293 = vmatpush1.bf16.msra.mxu1 %v10994_v14  ;;  %v789_v61 = vld [vmem:[#allocation2 + $0x16f0] sm:$0xff]  ;;  %v8846_v10 = vadd.f32 %v8845_v63, %v12877_v29 }
 0x442   :  { %9294 = vmatprep.subr.bf16.mxu1 %v11115_v40  ;;  %v11083_v36 = vcombine.high %v785_v47, %v789_v61  ;;  %v649_v17 = vld [vmem:[#allocation2 + $0x1290] sm:$0xff]  ;;  %v11082_v50 = vcombine.low %v785_v47, %v789_v61  ;;  %v8925_v46 = vpop.f32.mrf.mxu0 }
 0x443   :  { %9252 = vmatpush2.bf16.msra.mxu0 %v10986_v0  ;;  %v653_v19 = vld [vmem:[#allocation2 + $0x12b0] sm:$0xff] }
 0x444   :  { %9253 = vmatprep.subr.bf16.mxu0 %v10979_v53  ;;  %v777_v24 = vld [vmem:[#allocation2 + $0x1690] sm:$0xff]  ;;  %v10947_v58 = vcombine.high %v649_v17, %v653_v19  ;;  %v10946_v32 = vcombine.low %v649_v17, %v653_v19  ;;  %v8968_v53 = vpop.f32.mrf.mxu1  ;;  %v13271_v17 = vld [vmem:[#allocation2 + $0x598] sm:$0xff] }
 0x445   :  { %9295 = vmatpush2.bf16.msra.mxu1 %v11114_v41  ;;  %v781_v28 = vld [vmem:[#allocation2 + $0x16b0] sm:$0xff]  ;;  %v238_v19 = vld [vmem:[#allocation2 + $0x5b8] sm:$0xff] }
 0x446   :  { %9296 = vmatprep.subr.bf16.mxu1 %v11107_v3  ;;  %v11075_v39 = vcombine.high %v777_v24, %v781_v28  ;;  %v641_v60 = vld [vmem:[#allocation2 + $0x1250] sm:$0xff]  ;;  %v11074_v0 = vcombine.low %v777_v24, %v781_v28  ;;  %v8970_v48 = vpop.f32.mrf.mxu1 }
 0x447   :  { %9254 = vmatpush2.bf16.msra.mxu0 %v10978_v43  ;;  %v645_v14 = vld [vmem:[#allocation2 + $0x1270] sm:$0xff]  ;;  %v8840_v43 = vadd.f32 %v8839_v56, %v12842_v22  ;;  %v8844_v22 = vadd.f32 %v8843_v23, %v12862_v38  ;;  %v9591_v38 = vsub.s32 2, %v13141_v26 }
 0x448   :  { %9255 = vmatprep.subr.bf16.mxu0 %v10971_v45  ;;  %v769_v40 = vld [vmem:[#allocation2 + $0x1650] sm:$0xff]  ;;  %v10939_v41 = vcombine.high %v641_v60, %v645_v14  ;;  %v8927_v45 = vpop.f32.mrf.mxu0 }
 0x449   :  { %9297 = vmatpush2.bf16.msra.mxu1 %v11106_v52  ;;  %v773_v13 = vld [vmem:[#allocation2 + $0x1670] sm:$0xff]  ;;  %v10938_v52 = vcombine.low %v641_v60, %v645_v14  ;;  %v8883_v25 = vadd.f32 %v13254_v4, %v8840_v43  ;;  %v13268_v4 = vld [vmem:[#allocation2 + $0x1b8] sm:$0xff]  ;;  %v8887_v23 = vadd.f32 %v13258_v20, %v8844_v22  ;;  %v8928_v24 = vadd.f32 %v8927_v45, %v8885_v30 }
 0x44a   :  { %9298 = vmatprep.subr.bf16.mxu1 %v11099_v42  ;;  %v11067_v3 = vcombine.high %v769_v40, %v773_v13  ;;  %v633_v27 = vld [vmem:[#allocation2 + $0x1210] sm:$0xff]  ;;  %v11066_v42 = vcombine.low %v769_v40, %v773_v13  ;;  %v8929_v6 = vpop.f32.mrf.mxu0  ;;  %v10533_v20 = vcombine.high %v13271_v17, %v238_v19  ;;  %v13280_v40 = vld [vmem:[#allocation2 + $0x178] sm:$0xff] }
 0x44b   :  { %9256 = vmatpush2.bf16.msra.mxu0 %v10970_v5  ;;  %v637_v49 = vld [vmem:[#allocation2 + $0x1230] sm:$0xff]  ;;  %v114_v5 = vld [vmem:[#allocation2 + $0x1d8] sm:$0xff]  ;;  %v8930_v14 = vadd.f32 %v8929_v6, %v8887_v23 }
 0x44c   :  { %9257 = vmatprep.subr.bf16.mxu0 %v10963_v12  ;;  %v761_v21 = vld [vmem:[#allocation2 + $0x1610] sm:$0xff]  ;;  %v10931_v54 = vcombine.high %v633_v27, %v637_v49  ;;  %v242_v12 = vld [vmem:[#allocation2 + $0x5d8] sm:$0xff]  ;;  %v10930_v56 = vcombine.low %v633_v27, %v637_v49  ;;  %v8931_v28 = vpop.f32.mrf.mxu0  ;;  %v8971_v27 = vadd.f32 %v8970_v48, %v8928_v24 }
 0x44d   :  { %9299 = vmatpush2.bf16.msra.mxu1 %v11098_v57  ;;  %v765_v37 = vld [vmem:[#allocation2 + $0x1630] sm:$0xff]  ;;  %v118_v57 = vld [vmem:[#allocation2 + $0x1f8] sm:$0xff] }
 0x44e   :  { %9300 = vmatprep.subr.bf16.mxu1 %v11091_v7  ;;  %v11059_v62 = vcombine.high %v761_v21, %v765_v37  ;;  %v246_v7 = vld [vmem:[#allocation2 + $0x5f8] sm:$0xff]  ;;  %v11058_v47 = vcombine.low %v761_v21, %v765_v37  ;;  %v10413_v61 = vcombine.high %v114_v5, %v118_v57  ;;  %v10412_v18 = vcombine.low %v114_v5, %v118_v57  ;;  %v11269_v22 = vld [vmem:[%s13412_s0 + $0x4] ss:$48 sps:$4 sm:$0x3f]  }
 0x44f   :  { %9258 = vmatpush2.bf16.msra.mxu0 %v10962_v16  ;;  %v8926_v16 = vadd.f32 %v8925_v46, %v8883_v25  ;;  %v10540_v29 = vcombine.low %v242_v12, %v246_v7  ;;  %v13282_v13 = vld [vmem:[#allocation2 + $0x558] sm:$0xff] }
 0x450   :  { %9259 = vmatprep.subr.bf16.mxu0 %v10955_v1  ;;  %v10541_v1 = vcombine.high %v242_v12, %v246_v7  ;;  %v11268_v43 = vld [vmem:[%s13412_s0 + $0x28] ss:$48 sps:$4 sm:$0x3f]  }
 0x451   :  { %9301 = vmatpush2.bf16.msra.mxu1 %v11090_v34  ;;  %v8972_v34 = vpop.f32.mrf.mxu1  ;;  %v8969_v60 = vadd.f32 %v8968_v53, %v8926_v16  ;;  %v10532_v53 = vcombine.low %v13271_v17, %v238_v19  ;;  %v94_v12 = vld [vmem:[#allocation2 + $0x138] sm:$0xff] }
 0x452   :  { %9302 = vmatprep.subr.bf16.mxu1 %v11083_v36  ;;  %v13266_v36 = vld [vmem:[#allocation2 + $0x198] sm:$0xff]  ;;  %v8973_v48 = vadd.f32 %v8972_v34, %v8930_v14 }
 0x453   :  { %9260 = vmatpush2.bf16.msra.mxu0 %v10954_v9  ;;  %v9595_v9 = vsub.s32 3, %v13141_v26  ;;  %v8974_v63 = vpop.f32.mrf.mxu1  ;;  %v218_v7 = vld [vmem:[#allocation2 + $0x518] sm:$0xff] }
 0x454   :  { %9261 = vmatprep.subr.bf16.mxu0 %v10947_v58  ;;  %v13277_v58 = vld [vmem:[#allocation2 + $0x158] sm:$0xff] }
 0x455   :  { %9303 = vmatpush2.bf16.msra.mxu1 %v11082_v50  ;;  %v10405_v50 = vcombine.high %v13266_v36, %v13268_v4  ;;  %v222_v25 = vld [vmem:[#allocation2 + $0x538] sm:$0xff]  ;;  %v10396_v6 = vcombine.low %v13277_v58, %v13280_v40 }
 0x456   :  { %9304 = vmatprep.subr.bf16.mxu1 %v11075_v39  ;;  %v8889_v39 = vadd.f32 %v8888_v31, %v8846_v10  ;;  %v10404_v31 = vcombine.low %v13266_v36, %v13268_v4  ;;  %v10389_v4 = vcombine.high %v90_v55, %v94_v12 }
 0x457   :  { %9262 = vmatpush2.bf16.msra.mxu0 %v10946_v32  ;;  %v13284_v32 = vld [vmem:[#allocation2 + $0x578] sm:$0xff] }
 0x458   :  { %9263 = vmatprep.subr.bf16.mxu0 %v10939_v41  ;;  %v8932_v49 = vadd.f32 %v8931_v28, %v8889_v39  ;;  %v10524_v36 = vcombine.low %v13282_v13, %v13284_v32  ;;  %v86_v28 = vld [vmem:[#allocation2 + $0xf8] sm:$0xff] }
 0x459   :  { %9305 = vmatpush2.bf16.msra.mxu1 %v11074_v0  ;;  %v11266_v0 = vld [vmem:[#allocation4] sm:$0xff] }
 0x45a   :  { %9306 = vmatprep.subr.bf16.mxu1 %v11067_v3  ;;  %v9592_v41 = vrot.slane %v11266_v0, %v9591_v38  ;;  %v11267_v3 = vld [vmem:[%s13412_s0 + $0x20] ss:$48 sps:$4 sm:$0x3f]   ;;  %v9596_v45 = vrot.slane %v11266_v0, %v9595_v9  ;;  %v10517_v38 = vcombine.high %v218_v7, %v222_v25  ;;  %v10388_v9 = vcombine.low %v90_v55, %v94_v12  ;;  %v78_v0 = vld [vmem:[#allocation2 + $0xb8] sm:$0xff] }
 0x45b   :  { %9264 = vmatpush2.bf16.msra.mxu0 %v10938_v52  ;;  %v190_v12 = vld [vmem:[#allocation2 + $0x438] sm:$0xff] }
 0x45c   :  { %9265 = vmatprep.subr.bf16.mxu0 %v10931_v54  ;;  %v10525_v54 = vcombine.high %v13282_v13, %v13284_v32 }
 0x45d   :  { %9307 = vmatpush2.bf16.msra.mxu1 %v11066_v42  ;;  %v10397_v42 = vcombine.high %v13277_v58, %v13280_v40  ;;  %v214_v58 = vld [vmem:[#allocation2 + $0x4f8] sm:$0xff] }
 0x45e   :  { %9308 = vmatprep.subr.bf16.mxu1 %v11059_v62 }
 0x45f   :  { %9266 = vmatpush2.bf16.msra.mxu0 %v10930_v56 }
 0x460   :  { %9321 = vmatprep.subr.bf16.mxu0 %v10413_v61  ;;  %v8975_v61 = vadd.f32 %v8974_v63, %v8932_v49  ;;  %v10516_v63 = vcombine.low %v218_v7, %v222_v25 }
 0x461   :  { %9309 = vmatpush2.bf16.msra.mxu1 %v11058_v47  ;;  %v11270_v47 = vld [vmem:[%s13412_s0 + $0xc] ss:$48 sps:$4 sm:$0x3f]  }
 0x462   :  { %9364 = vmatprep.subr.bf16.mxu1 %v10541_v1  ;;  %v9011_v46 = vpop.f32.mrf.mxu0  ;;  %9268 = vmatmul.mubr.bf16.vlgmr.msra.gmra.mxu0 %v11267_v3  ;;  %v202_v3 = vld [vmem:[#allocation2 + $0x498] sm:$0xff] }
 0x463   :  { %v9012_v21 = vadd.f32 %v9011_v46, %v8969_v60  ;;  %9322 = vmatpush1.bf16.msra.mxu0 %v10412_v18  ;;  %9353 = vmatprep.mubr.bf16.mxu0 %v11269_v22  ;;  %v82_v18 = vld [vmem:[#allocation2 + $0xd8] sm:$0xff] }
 0x464   :  { %v9054_v37 = vpop.f32.mrf.mxu1  ;;  %9311 = vmatmul.mubr.bf16.vlgmr.msra.gmra.mxu1 %v11268_v43  ;;  %v9013_v52 = vpop.f32.mrf.mxu0  ;;  %9323 = vmatprep.subr.bf16.mxu0 %v10405_v50  ;;  %v210_v50 = vld [vmem:[#allocation2 + $0x4d8] sm:$0xff] }
 0x465   :  { %9365 = vmatpush1.bf16.msra.mxu1 %v10540_v29  ;;  %v9055_v62 = vadd.f32 %v9054_v37, %v9012_v21  ;;  %v9014_v5 = vadd.f32 %v9013_v52, %v8971_v27  ;;  %9396 = vmatprep.mubr.bf16.mxu1 %v11270_v47  ;;  %v10509_v32 = vcombine.high %v210_v50, %v214_v58  ;;  %v74_v46 = vld [vmem:[#allocation2 + $0x98] sm:$0xff] }
 0x466   :  { %v9056_v57 = vpop.f32.mrf.mxu1  ;;  %9366 = vmatprep.subr.bf16.mxu1 %v10533_v20  ;;  %v9015_v56 = vpop.f32.mrf.mxu0  ;;  %v10381_v20 = vcombine.high %v82_v18, %v86_v28  ;;  %v10508_v27 = vcombine.low %v210_v50, %v214_v58  ;;  %v10373_v49 = vcombine.high %v74_v46, %v78_v0  ;;  %v66_v37 = vld [vmem:[#allocation2 + $0x58] sm:$0xff] }
 0x467   :  { %v13307_v30 = vadd.f32 %v9592_v41, %v9055_v62  ;;  %v9057_v10 = vadd.f32 %v9056_v57, %v9014_v5  ;;  %v9016_v16 = vadd.f32 %v9015_v56, %v8973_v48  ;;  %9324 = vmatpush1.bf16.msra.mxu0 %v10404_v31  ;;  %v206_v31 = vld [vmem:[#allocation2 + $0x4b8] sm:$0xff] }
 0x468   :  { %v9058_v34 = vpop.f32.mrf.mxu1  ;;  %v9017_v1 = vpop.f32.mrf.mxu0  ;;  %9325 = vmatprep.subr.bf16.mxu0 %v10397_v42  ;;  %v10501_v21 = vcombine.high %v202_v3, %v206_v31  ;;  %v70_v43 = vld [vmem:[#allocation2 + $0x78] sm:$0xff]  ;;  %v10372_v42 = vcombine.low %v74_v46, %v78_v0 }
 0x469   :  { %9367 = vmatpush1.bf16.msra.mxu1 %v10532_v53  ;;  %v11120_v17 = vmul.f32 -1.442695, %v13307_v30  ;;  %v13312_v19 = vadd.f32 %v9596_v45, %v9057_v10  ;;  %v9059_v23 = vadd.f32 %v9058_v34, %v9016_v16  ;;  %v9018_v24 = vadd.f32 %v9017_v1, %v8975_v61  ;;  %v194_v52 = vld [vmem:[#allocation2 + $0x458] sm:$0xff] }
 0x46a   :  { %9368 = vmatprep.subr.bf16.mxu1 %v10525_v54  ;;  %v9060_v29 = vpop.f32.mrf.mxu1  ;;  %v10380_v53 = vcombine.low %v82_v18, %v86_v28  ;;  %v10500_v54 = vcombine.low %v202_v3, %v206_v31  ;;  %v10365_v55 = vcombine.high %v66_v37, %v70_v43  ;;  %v58_v62 = vld [vmem:[#allocation2 + $0x18] sm:$0xff]  ;;  %v10364_v7 = vcombine.low %v66_v37, %v70_v43 }
 0x46b   :  { %11188 = vpow2.f32 %v11120_v17  ;;  %v11121_v39 = vmul.f32 -1.442695, %v13312_v19  ;;  %v13315_v60 = vadd.f32 %v9592_v41, %v9059_v23  ;;  %v9061_v14 = vadd.f32 %v9060_v29, %v9018_v24  ;;  %9326 = vmatpush1.bf16.msra.mxu0 %v10396_v6  ;;  %v62_v5 = vld [vmem:[#allocation2 + $0x38] sm:$0xff] }
 0x46c   :  { %9327 = vmatprep.subr.bf16.mxu0 %v10389_v4  ;;  %v186_v57 = vld [vmem:[#allocation2 + $0x418] sm:$0xff]  ;;  %v10357_v56 = vcombine.high %v58_v62, %v62_v5  ;;  %v10356_v4 = vcombine.low %v58_v62, %v62_v5 }
 0x46d   :  { %9369 = vmatpush1.bf16.msra.mxu1 %v10524_v36  ;;  %11190 = vpow2.f32 %v11121_v39  ;;  %v11128_v40 = vmul.f32 -1.442695, %v13315_v60  ;;  %v13318_v13 = vadd.f32 %v9596_v45, %v9061_v14  ;;  %v198_v45 = vld [vmem:[#allocation2 + $0x478] sm:$0xff]  ;;  %v10485_v47 = vcombine.high %v186_v57, %v190_v12 }
 0x46e   :  { %9370 = vmatprep.subr.bf16.mxu1 %v10517_v38  ;;  %v10493_v48 = vcombine.high %v194_v52, %v198_v45  ;;  %v10492_v22 = vcombine.low %v194_v52, %v198_v45  ;;  %v178_v61 = vld [vmem:[#allocation2 + $0x3d8] sm:$0xff]  ;;  %v10484_v17 = vcombine.low %v186_v57, %v190_v12 }
 0x46f   :  { %11192 = vpow2.f32 %v11128_v40  ;;  %v11129_v41 = vmul.f32 -1.442695, %v13318_v13  ;;  %9328 = vmatpush1.bf16.msra.mxu0 %v10388_v9  ;;  %v182_v10 = vld [vmem:[#allocation2 + $0x3f8] sm:$0xff] }
 0x470   :  { %9329 = vmatprep.subr.bf16.mxu0 %v10381_v20  ;;  %v306_v34 = vld [vmem:[#allocation2 + $0x7d8] sm:$0xff]  ;;  %v10477_v23 = vcombine.high %v178_v61, %v182_v10  ;;  %v10476_v14 = vcombine.low %v178_v61, %v182_v10 }
 0x471   :  { %9371 = vmatpush1.bf16.msra.mxu1 %v10516_v63  ;;  %11194 = vpow2.f32 %v11129_v41  ;;  %v310_v1 = vld [vmem:[#allocation2 + $0x7f8] sm:$0xff] }
 0x472   :  { %9372 = vmatprep.subr.bf16.mxu1 %v10509_v32  ;;  %v10605_v18 = vcombine.high %v306_v34, %v310_v1  ;;  %v170_v28 = vld [vmem:[#allocation2 + $0x398] sm:$0xff]  ;;  %v10604_v63 = vcombine.low %v306_v34, %v310_v1 }
 0x473   :  { %9330 = vmatpush1.bf16.msra.mxu0 %v10380_v53  ;;  %v174_v29 = vld [vmem:[#allocation2 + $0x3b8] sm:$0xff] }
 0x474   :  { %9331 = vmatprep.subr.bf16.mxu0 %v10373_v49  ;;  %v298_v50 = vld [vmem:[#allocation2 + $0x798] sm:$0xff]  ;;  %v10469_v20 = vcombine.high %v170_v28, %v174_v29  ;;  %v10468_v31 = vcombine.low %v170_v28, %v174_v29 }
 0x475   :  { %9373 = vmatpush1.bf16.msra.mxu1 %v10508_v27  ;;  %v302_v58 = vld [vmem:[#allocation2 + $0x7b8] sm:$0xff] }
 0x476   :  { %9374 = vmatprep.subr.bf16.mxu1 %v10501_v21  ;;  %v10597_v40 = vcombine.high %v298_v50, %v302_v58  ;;  %v162_v32 = vld [vmem:[#allocation2 + $0x358] sm:$0xff]  ;;  %v10596_v41 = vcombine.low %v298_v50, %v302_v58 }
 0x477   :  { %9332 = vmatpush1.bf16.msra.mxu0 %v10372_v42  ;;  %v166_v46 = vld [vmem:[#allocation2 + $0x378] sm:$0xff] }
 0x478   :  { %v11189_v25 = vpop.eup %11188  ;;  %9333 = vmatprep.subr.bf16.mxu0 %v10365_v55  ;;  %v290_v0 = vld [vmem:[#allocation2 + $0x758] sm:$0xff]  ;;  %v10461_v53 = vcombine.high %v162_v32, %v166_v46  ;;  %v10460_v52 = vcombine.low %v162_v32, %v166_v46 }
 0x479   :  { %9375 = vmatpush1.bf16.msra.mxu1 %v10500_v54  ;;  %v9687_v6 = vadd.f32 1.0, %v11189_v25  ;;  %v294_v3 = vld [vmem:[#allocation2 + $0x778] sm:$0xff] }
 0x47a   :  { %9376 = vmatprep.subr.bf16.mxu1 %v10493_v48  ;;  %v11191_v16 = vpop.eup %11190  ;;  %v10589_v27 = vcombine.high %v290_v0, %v294_v3  ;;  %v154_v49 = vld [vmem:[#allocation2 + $0x318] sm:$0xff]  ;;  %v10588_v42 = vcombine.low %v290_v0, %v294_v3 }
 0x47b   :  { %11196 = vrcp.f32 %v9687_v6  ;;  %v9688_v36 = vadd.f32 1.0, %v11191_v16  ;;  %9334 = vmatpush1.bf16.msra.mxu0 %v10364_v7  ;;  %v158_v21 = vld [vmem:[#allocation2 + $0x338] sm:$0xff] }
 0x47c   :  { %v11193_v38 = vpop.eup %11192  ;;  %9335 = vmatprep.subr.bf16.mxu0 %v10357_v56  ;;  %v282_v37 = vld [vmem:[#allocation2 + $0x718] sm:$0xff]  ;;  %v10453_v54 = vcombine.high %v154_v49, %v158_v21 }
 0x47d   :  { %9377 = vmatpush1.bf16.msra.mxu1 %v10492_v22  ;;  %11198 = vrcp.f32 %v9688_v36  ;;  %v9695_v24 = vadd.f32 1.0, %v11193_v38  ;;  %v286_v43 = vld [vmem:[#allocation2 + $0x738] sm:$0xff]  ;;  %v10452_v22 = vcombine.low %v154_v49, %v158_v21 }
 0x47e   :  { %9378 = vmatprep.subr.bf16.mxu1 %v10485_v47  ;;  %v11195_v9 = vpop.eup %11194  ;;  %v10581_v55 = vcombine.high %v282_v37, %v286_v43  ;;  %v146_v48 = vld [vmem:[#allocation2 + $0x2d8] sm:$0xff]  ;;  %v10580_v6 = vcombine.low %v282_v37, %v286_v43 }
 0x47f   :  { %11200 = vrcp.f32 %v9695_v24  ;;  %v9696_v39 = vadd.f32 1.0, %v11195_v9  ;;  %9336 = vmatpush1.bf16.msra.mxu0 %v10356_v4  ;;  %v150_v62 = vld [vmem:[#allocation2 + $0x2f8] sm:$0xff] }
 0x480   :  { %9337 = vmatprep.subr.bf16.mxu0 %v10477_v23  ;;  %v274_v57 = vld [vmem:[#allocation2 + $0x6d8] sm:$0xff]  ;;  %v10445_v47 = vcombine.high %v146_v48, %v150_v62  ;;  %v10444_v38 = vcombine.low %v146_v48, %v150_v62 }
 0x481   :  { %9379 = vmatpush1.bf16.msra.mxu1 %v10484_v17  ;;  %11202 = vrcp.f32 %v9696_v39  ;;  %v278_v12 = vld [vmem:[#allocation2 + $0x6f8] sm:$0xff]  ;;  %v9811_v17 = vld [vmem:[%s13416_s4 + $0x28] sm:$0x33] }
 0x482   :  { %9380 = vmatprep.subr.bf16.mxu1 %v10605_v18  ;;  %v10573_v10 = vcombine.high %v274_v57, %v278_v12  ;;  %v138_v16 = vld [vmem:[#allocation2 + $0x298] sm:$0xff]  ;;  %v10572_v23 = vcombine.low %v274_v57, %v278_v12 }
 0x483   :  { %9338 = vmatpush2.bf16.msra.mxu0 %v10476_v14  ;;  %v142_v34 = vld [vmem:[#allocation2 + $0x2b8] sm:$0xff] }
 0x484   :  { %9339 = vmatprep.subr.bf16.mxu0 %v10469_v20  ;;  %v266_v36 = vld [vmem:[#allocation2 + $0x698] sm:$0xff]  ;;  %v10437_v24 = vcombine.high %v138_v16, %v142_v34 }
 0x485   :  { %9381 = vmatpush2.bf16.msra.mxu1 %v10604_v63  ;;  %v270_v4 = vld [vmem:[#allocation2 + $0x6b8] sm:$0xff] }
 0x486   :  { %9382 = vmatprep.subr.bf16.mxu1 %v10597_v40  ;;  %v10565_v28 = vcombine.high %v266_v36, %v270_v4  ;;  %v130_v29 = vld [vmem:[#allocation2 + $0x258] sm:$0xff]  ;;  %v10564_v39 = vcombine.low %v266_v36, %v270_v4  ;;  %v11273_v4 = vld [vmem:[%s13412_s0 + $0x14] ss:$48 sps:$4 sm:$0x3f]  }
 0x487   :  { %9340 = vmatpush2.bf16.msra.mxu0 %v10468_v31  ;;  %v134_v9 = vld [vmem:[#allocation2 + $0x278] sm:$0xff] }
 0x488   :  { %v11197_v45 = vpop.eup %11196  ;;  %9341 = vmatprep.subr.bf16.mxu0 %v10461_v53  ;;  %v258_v50 = vld [vmem:[#allocation2 + $0x658] sm:$0xff]  ;;  %v10429_v14 = vcombine.high %v130_v29, %v134_v9  ;;  %v10428_v0 = vcombine.low %v130_v29, %v134_v9 }
 0x489   :  { %9383 = vmatpush2.bf16.msra.mxu1 %v10596_v41  ;;  %v9735_v7 = vmul.f32 %v11197_v45, %v13307_v30  ;;  %v262_v58 = vld [vmem:[#allocation2 + $0x678] sm:$0xff] }
 0x48a   :  { %9384 = vmatprep.subr.bf16.mxu1 %v10589_v27  ;;  %v11199_v5 = vpop.eup %11198  ;;  %v10557_v63 = vcombine.high %v258_v50, %v262_v58  ;;  %v122_v20 = vld [vmem:[#allocation2 + $0x218] sm:$0xff]  ;;  %v10556_v3 = vcombine.low %v258_v50, %v262_v58 }
 0x48b   :  { %v9736_v25 = vmul.f32 %v11199_v5, %v13312_v19  ;;  %9342 = vmatpush2.bf16.msra.mxu0 %v10460_v52  ;;  %v126_v40 = vld [vmem:[#allocation2 + $0x238] sm:$0xff] }
 0x48c   :  { %v11201_v56 = vpop.eup %11200  ;;  %9343 = vmatprep.subr.bf16.mxu0 %v10453_v54  ;;  %v250_v32 = vld [vmem:[#allocation2 + $0x618] sm:$0xff]  ;;  %v10421_v31 = vcombine.high %v122_v20, %v126_v40  ;;  %v10420_v37 = vcombine.low %v122_v20, %v126_v40 }
 0x48d   :  { %9385 = vmatpush2.bf16.msra.mxu1 %v10588_v42  ;;  %v11143_v61 = vpack.c.bf16 %v9736_v25, %v9735_v7  ;;  %v9743_v30 = vmul.f32 %v11201_v56, %v13315_v60  ;;  %v254_v46 = vld [vmem:[#allocation2 + $0x638] sm:$0xff] }
 0x48e   :  { %9386 = vmatprep.subr.bf16.mxu1 %v10581_v55  ;;  %v11203_v1 = vpop.eup %11202  ;;  %v10549_v41 = vcombine.high %v250_v32, %v254_v46  ;;  %v370_v53 = vld [vmem:[#allocation2 + $0x9d8] sm:$0xff]  ;;  %v10548_v43 = vcombine.low %v250_v32, %v254_v46 }
 0x48f   :  { %9798 = vst [vmem:[%s13416_s4 + $0x8] sm:$0xff] %v11143_v61  ;;  %v9744_v19 = vmul.f32 %v11203_v1, %v13318_v13  ;;  %9344 = vmatpush2.bf16.msra.mxu0 %v10452_v22  ;;  %v10436_v13 = vcombine.low %v138_v16, %v142_v34  ;;  %v374_v27 = vld [vmem:[#allocation2 + $0x9f8] sm:$0xff]  ;;  %v11271_v22 = vld [vmem:[%s13412_s0] ss:$48 sps:$4 sm:$0x3f]  }
 0x490   :  { %9345 = vmatprep.subr.bf16.mxu0 %v10445_v47  ;;  %v498_v49 = vld [vmem:[#allocation2 + $0xdd8] sm:$0xff]  ;;  %v10669_v52 = vcombine.high %v370_v53, %v374_v27  ;;  %v10668_v62 = vcombine.low %v370_v53, %v374_v27 }
 0x491   :  { %9387 = vmatpush2.bf16.msra.mxu1 %v10580_v6  ;;  %v11147_v18 = vpack.c.bf16 %v9744_v19, %v9743_v30  ;;  %v502_v21 = vld [vmem:[#allocation2 + $0xdf8] sm:$0xff] }
 0x492   :  { %9388 = vmatprep.subr.bf16.mxu1 %v10573_v10  ;;  %v10797_v45 = vcombine.high %v498_v49, %v502_v21  ;;  %v362_v42 = vld [vmem:[#allocation2 + $0x998] sm:$0xff]  ;;  %v10796_v5 = vcombine.low %v498_v49, %v502_v21 }
 0x493   :  { %v9812_v60 = vsel %vm13218_vm6, %v11147_v18, %v9811_v17  ;;  %9346 = vmatpush2.bf16.msra.mxu0 %v10444_v38  ;;  %v366_v54 = vld [vmem:[#allocation2 + $0x9b8] sm:$0xff] }
 0x494   :  { %9813 = vst [vmem:[%s13416_s4 + $0x28] sm:$0x33] %v9812_v60  ;;  %9347 = vmatprep.subr.bf16.mxu0 %v10437_v24  ;;  %v490_v55 = vld [vmem:[#allocation2 + $0xd98] sm:$0xff]  ;;  %v10661_v57 = vcombine.high %v362_v42, %v366_v54  ;;  %v10660_v61 = vcombine.low %v362_v42, %v366_v54 }
 0x495   :  { %9389 = vmatpush2.bf16.msra.mxu1 %v10572_v23  ;;  %v494_v48 = vld [vmem:[#allocation2 + $0xdb8] sm:$0xff] }
 0x496   :  { %9390 = vmatprep.subr.bf16.mxu1 %v10565_v28  ;;  %v10789_v12 = vcombine.high %v490_v55, %v494_v48  ;;  %v354_v7 = vld [vmem:[#allocation2 + $0x958] sm:$0xff]  ;;  %v10788_v10 = vcombine.low %v490_v55, %v494_v48 }
 0x497   :  { %9348 = vmatpush2.bf16.msra.mxu0 %v10436_v13  ;;  %v358_v25 = vld [vmem:[#allocation2 + $0x978] sm:$0xff] }
 0x498   :  { %9349 = vmatprep.subr.bf16.mxu0 %v10429_v14  ;;  %v482_v56 = vld [vmem:[#allocation2 + $0xd58] sm:$0xff]  ;;  %v10653_v16 = vcombine.high %v354_v7, %v358_v25  ;;  %v10652_v17 = vcombine.low %v354_v7, %v358_v25 }
 0x499   :  { %9391 = vmatpush2.bf16.msra.mxu1 %v10564_v39  ;;  %v486_v6 = vld [vmem:[#allocation2 + $0xd78] sm:$0xff] }
 0x49a   :  { %9392 = vmatprep.subr.bf16.mxu1 %v10557_v63  ;;  %v11272_v47 = vld [vmem:[%s13412_s0 + $0x8] ss:$48 sps:$4 sm:$0x3f]   ;;  %v10781_v34 = vcombine.high %v482_v56, %v486_v6  ;;  %v11274_v38 = vld [vmem:[%s13412_s0 + $0x1c] ss:$48 sps:$4 sm:$0x3f]   ;;  %v10780_v23 = vcombine.low %v482_v56, %v486_v6 }
 0x49b   :  { %9350 = vmatpush2.bf16.msra.mxu0 %v10428_v0  ;;  %v346_v1 = vld [vmem:[#allocation2 + $0x918] sm:$0xff] }
 0x49c   :  { %9351 = vmatprep.subr.bf16.mxu0 %v10421_v31  ;;  %v350_v36 = vld [vmem:[#allocation2 + $0x938] sm:$0xff] }
 0x49d   :  { %9393 = vmatpush2.bf16.msra.mxu1 %v10556_v3  ;;  %v474_v30 = vld [vmem:[#allocation2 + $0xd18] sm:$0xff]  ;;  %v10645_v24 = vcombine.high %v346_v1, %v350_v36  ;;  %v10644_v58 = vcombine.low %v346_v1, %v350_v36 }
 0x49e   :  { %9394 = vmatprep.subr.bf16.mxu1 %v10549_v41  ;;  %v478_v19 = vld [vmem:[#allocation2 + $0xd38] sm:$0xff] }
 0x49f   :  { %9352 = vmatpush2.bf16.msra.mxu0 %v10420_v37  ;;  %v10773_v18 = vcombine.high %v474_v30, %v478_v19  ;;  %v338_v28 = vld [vmem:[#allocation2 + $0x8d8] sm:$0xff]  ;;  %v10772_v60 = vcombine.low %v474_v30, %v478_v19 }
 0x4a0   :  { %9407 = vmatprep.subr.bf16.mxu0 %v10669_v52  ;;  %v342_v29 = vld [vmem:[#allocation2 + $0x8f8] sm:$0xff] }
 0x4a1   :  { %9395 = vmatpush2.bf16.msra.mxu1 %v10548_v43  ;;  %v466_v9 = vld [vmem:[#allocation2 + $0xcd8] sm:$0xff]  ;;  %v10637_v13 = vcombine.high %v338_v28, %v342_v29  ;;  %v10636_v32 = vcombine.low %v338_v28, %v342_v29 }
 0x4a2   :  { %9450 = vmatprep.subr.bf16.mxu1 %v10797_v45  ;;  %9354 = vmatmul.mubr.bf16.vlgmr.msra.gmra.mxu0 %v11271_v22  ;;  %v470_v50 = vld [vmem:[#allocation2 + $0xcf8] sm:$0xff] }
 0x4a3   :  { %9408 = vmatpush1.bf16.msra.mxu0 %v10668_v62  ;;  %9439 = vmatprep.mubr.bf16.mxu0 %v11273_v4  ;;  %v10765_v39 = vcombine.high %v466_v9, %v470_v50  ;;  %v330_v14 = vld [vmem:[#allocation2 + $0x898] sm:$0xff]  ;;  %v10764_v46 = vcombine.low %v466_v9, %v470_v50 }
 0x4a4   :  { %9397 = vmatmul.mubr.bf16.vlgmr.msra.gmra.mxu1 %v11272_v47  ;;  %9409 = vmatprep.subr.bf16.mxu0 %v10661_v57  ;;  %v334_v63 = vld [vmem:[#allocation2 + $0x8b8] sm:$0xff] }
 0x4a5   :  { %9451 = vmatpush1.bf16.msra.mxu1 %v10796_v5  ;;  %9482 = vmatprep.mubr.bf16.mxu1 %v11274_v38  ;;  %v458_v20 = vld [vmem:[#allocation2 + $0xc98] sm:$0xff]  ;;  %v10629_v0 = vcombine.high %v330_v14, %v334_v63  ;;  %v10628_v49 = vcombine.low %v330_v14, %v334_v63 }
 0x4a6   :  { %9452 = vmatprep.subr.bf16.mxu1 %v10789_v12  ;;  %v462_v40 = vld [vmem:[#allocation2 + $0xcb8] sm:$0xff] }
 0x4a7   :  { %9410 = vmatpush1.bf16.msra.mxu0 %v10660_v61  ;;  %v10757_v3 = vcombine.high %v458_v20, %v462_v40  ;;  %v322_v31 = vld [vmem:[#allocation2 + $0x858] sm:$0xff]  ;;  %v10756_v21 = vcombine.low %v458_v20, %v462_v40 }
 0x4a8   :  { %9411 = vmatprep.subr.bf16.mxu0 %v10653_v16  ;;  %v326_v41 = vld [vmem:[#allocation2 + $0x878] sm:$0xff] }
 0x4a9   :  { %9453 = vmatpush1.bf16.msra.mxu1 %v10788_v10  ;;  %v450_v53 = vld [vmem:[#allocation2 + $0xc58] sm:$0xff]  ;;  %v10621_v37 = vcombine.high %v322_v31, %v326_v41  ;;  %v10620_v55 = vcombine.low %v322_v31, %v326_v41 }
 0x4aa   :  { %9454 = vmatprep.subr.bf16.mxu1 %v10781_v34  ;;  %v454_v27 = vld [vmem:[#allocation2 + $0xc78] sm:$0xff] }
 0x4ab   :  { %9412 = vmatpush1.bf16.msra.mxu0 %v10652_v17  ;;  %v10749_v43 = vcombine.high %v450_v53, %v454_v27  ;;  %v314_v52 = vld [vmem:[#allocation2 + $0x818] sm:$0xff]  ;;  %v10748_v48 = vcombine.low %v450_v53, %v454_v27 }
 0x4ac   :  { %9413 = vmatprep.subr.bf16.mxu0 %v10645_v24  ;;  %v318_v45 = vld [vmem:[#allocation2 + $0x838] sm:$0xff] }
 0x4ad   :  { %9455 = vmatpush1.bf16.msra.mxu1 %v10780_v23  ;;  %v442_v42 = vld [vmem:[#allocation2 + $0xc18] sm:$0xff]  ;;  %v10613_v62 = vcombine.high %v314_v52, %v318_v45  ;;  %v10612_v22 = vcombine.low %v314_v52, %v318_v45 }
 0x4ae   :  { %9456 = vmatprep.subr.bf16.mxu1 %v10773_v18  ;;  %v446_v54 = vld [vmem:[#allocation2 + $0xc38] sm:$0xff] }
 0x4af   :  { %9414 = vmatpush1.bf16.msra.mxu0 %v10644_v58  ;;  %v10741_v5 = vcombine.high %v442_v42, %v446_v54  ;;  %v434_v57 = vld [vmem:[#allocation2 + $0xbd8] sm:$0xff]  ;;  %v10740_v56 = vcombine.low %v442_v42, %v446_v54 }
 0x4b0   :  { %9415 = vmatprep.subr.bf16.mxu0 %v10637_v13  ;;  %v438_v12 = vld [vmem:[#allocation2 + $0xbf8] sm:$0xff] }
 0x4b1   :  { %9457 = vmatpush1.bf16.msra.mxu1 %v10772_v60  ;;  %v562_v7 = vld [vmem:[#allocation2 + $0xfd8] sm:$0xff]  ;;  %v10733_v6 = vcombine.high %v434_v57, %v438_v12  ;;  %v10732_v1 = vcombine.low %v434_v57, %v438_v12 }
 0x4b2   :  { %9458 = vmatprep.subr.bf16.mxu1 %v10765_v39  ;;  %v566_v25 = vld [vmem:[#allocation2 + $0xff8] sm:$0xff] }
 0x4b3   :  { %9416 = vmatpush1.bf16.msra.mxu0 %v10636_v32  ;;  %v10861_v47 = vcombine.high %v562_v7, %v566_v25  ;;  %v426_v61 = vld [vmem:[#allocation2 + $0xb98] sm:$0xff]  ;;  %v10860_v36 = vcombine.low %v562_v7, %v566_v25 }
 0x4b4   :  { %9417 = vmatprep.subr.bf16.mxu0 %v10629_v0  ;;  %v430_v10 = vld [vmem:[#allocation2 + $0xbb8] sm:$0xff] }
 0x4b5   :  { %9459 = vmatpush1.bf16.msra.mxu1 %v10764_v46  ;;  %v554_v16 = vld [vmem:[#allocation2 + $0xf98] sm:$0xff]  ;;  %v10725_v4 = vcombine.high %v426_v61, %v430_v10  ;;  %v10724_v24 = vcombine.low %v426_v61, %v430_v10 }
 0x4b6   :  { %9460 = vmatprep.subr.bf16.mxu1 %v10757_v3  ;;  %v558_v34 = vld [vmem:[#allocation2 + $0xfb8] sm:$0xff] }
 0x4b7   :  { %9418 = vmatpush1.bf16.msra.mxu0 %v10628_v49  ;;  %v10853_v30 = vcombine.high %v554_v16, %v558_v34  ;;  %v418_v19 = vld [vmem:[#allocation2 + $0xb58] sm:$0xff]  ;;  %v10852_v18 = vcombine.low %v554_v16, %v558_v34 }
 0x4b8   :  { %9419 = vmatprep.subr.bf16.mxu0 %v10621_v37  ;;  %v422_v38 = vld [vmem:[#allocation2 + $0xb78] sm:$0xff] }
 0x4b9   :  { %9461 = vmatpush1.bf16.msra.mxu1 %v10756_v21  ;;  %v546_v17 = vld [vmem:[#allocation2 + $0xf58] sm:$0xff]  ;;  %v10717_v28 = vcombine.high %v418_v19, %v422_v38  ;;  %v10716_v13 = vcombine.low %v418_v19, %v422_v38 }
 0x4ba   :  { %9462 = vmatprep.subr.bf16.mxu1 %v10749_v43  ;;  %v550_v23 = vld [vmem:[#allocation2 + $0xf78] sm:$0xff] }
 0x4bb   :  { %9420 = vmatpush1.bf16.msra.mxu0 %v10620_v55  ;;  %v10845_v29 = vcombine.high %v546_v17, %v550_v23  ;;  %v410_v9 = vld [vmem:[#allocation2 + $0xb18] sm:$0xff]  ;;  %v10844_v39 = vcombine.low %v546_v17, %v550_v23 }
 0x4bc   :  { %9421 = vmatprep.subr.bf16.mxu0 %v10613_v62  ;;  %v414_v50 = vld [vmem:[#allocation2 + $0xb38] sm:$0xff] }
 0x4bd   :  { %9463 = vmatpush1.bf16.msra.mxu1 %v10748_v48  ;;  %v538_v58 = vld [vmem:[#allocation2 + $0xf18] sm:$0xff]  ;;  %v10709_v14 = vcombine.high %v410_v9, %v414_v50  ;;  %v10708_v0 = vcombine.low %v410_v9, %v414_v50 }
 0x4be   :  { %9464 = vmatprep.subr.bf16.mxu1 %v10741_v5  ;;  %v542_v60 = vld [vmem:[#allocation2 + $0xf38] sm:$0xff] }
 0x4bf   :  { %9422 = vmatpush1.bf16.msra.mxu0 %v10612_v22  ;;  %v10837_v63 = vcombine.high %v538_v58, %v542_v60  ;;  %v402_v20 = vld [vmem:[#allocation2 + $0xad8] sm:$0xff]  ;;  %v10836_v3 = vcombine.low %v538_v58, %v542_v60 }
 0x4c0   :  { %9423 = vmatprep.subr.bf16.mxu0 %v10733_v6  ;;  %v406_v40 = vld [vmem:[#allocation2 + $0xaf8] sm:$0xff] }
 0x4c1   :  { %9465 = vmatpush1.bf16.msra.mxu1 %v10740_v56  ;;  %v530_v32 = vld [vmem:[#allocation2 + $0xed8] sm:$0xff]  ;;  %v10701_v31 = vcombine.high %v402_v20, %v406_v40  ;;  %v10700_v37 = vcombine.low %v402_v20, %v406_v40 }
 0x4c2   :  { %9466 = vmatprep.subr.bf16.mxu1 %v10861_v47  ;;  %v534_v46 = vld [vmem:[#allocation2 + $0xef8] sm:$0xff] }
 0x4c3   :  { %9424 = vmatpush2.bf16.msra.mxu0 %v10732_v1  ;;  %v10829_v41 = vcombine.high %v530_v32, %v534_v46  ;;  %v394_v53 = vld [vmem:[#allocation2 + $0xa98] sm:$0xff]  ;;  %v10828_v43 = vcombine.low %v530_v32, %v534_v46 }
 0x4c4   :  { %9425 = vmatprep.subr.bf16.mxu0 %v10725_v4  ;;  %v398_v27 = vld [vmem:[#allocation2 + $0xab8] sm:$0xff] }
 0x4c5   :  { %9467 = vmatpush2.bf16.msra.mxu1 %v10860_v36  ;;  %v522_v49 = vld [vmem:[#allocation2 + $0xe98] sm:$0xff]  ;;  %v10693_v52 = vcombine.high %v394_v53, %v398_v27  ;;  %v10692_v62 = vcombine.low %v394_v53, %v398_v27 }
 0x4c6   :  { %9468 = vmatprep.subr.bf16.mxu1 %v10853_v30  ;;  %v526_v21 = vld [vmem:[#allocation2 + $0xeb8] sm:$0xff] }
 0x4c7   :  { %9426 = vmatpush2.bf16.msra.mxu0 %v10724_v24  ;;  %v10821_v45 = vcombine.high %v522_v49, %v526_v21  ;;  %v386_v42 = vld [vmem:[#allocation2 + $0xa58] sm:$0xff]  ;;  %v10820_v5 = vcombine.low %v522_v49, %v526_v21 }
 0x4c8   :  { %9427 = vmatprep.subr.bf16.mxu0 %v10717_v28  ;;  %v390_v54 = vld [vmem:[#allocation2 + $0xa78] sm:$0xff] }
 0x4c9   :  { %9469 = vmatpush2.bf16.msra.mxu1 %v10852_v18  ;;  %v514_v55 = vld [vmem:[#allocation2 + $0xe58] sm:$0xff]  ;;  %v10685_v57 = vcombine.high %v386_v42, %v390_v54  ;;  %v10684_v6 = vcombine.low %v386_v42, %v390_v54 }
 0x4ca   :  { %9470 = vmatprep.subr.bf16.mxu1 %v10845_v29  ;;  %v518_v48 = vld [vmem:[#allocation2 + $0xe78] sm:$0xff] }
 0x4cb   :  { %9428 = vmatpush2.bf16.msra.mxu0 %v10716_v13  ;;  %v10813_v12 = vcombine.high %v514_v55, %v518_v48  ;;  %v378_v7 = vld [vmem:[#allocation2 + $0xa18] sm:$0xff]  ;;  %v10812_v47 = vcombine.low %v514_v55, %v518_v48  ;;  %v11275_v13 = vld [vmem:[%s13412_s0 + $0x10] ss:$48 sps:$4 sm:$0x3f]  }
 0x4cc   :  { %9429 = vmatprep.subr.bf16.mxu0 %v10709_v14  ;;  %v382_v25 = vld [vmem:[#allocation2 + $0xa38] sm:$0xff] }
 0x4cd   :  { %9471 = vmatpush2.bf16.msra.mxu1 %v10844_v39  ;;  %v506_v22 = vld [vmem:[#allocation2 + $0xe18] sm:$0xff]  ;;  %v10677_v61 = vcombine.high %v378_v7, %v382_v25  ;;  %v10676_v4 = vcombine.low %v378_v7, %v382_v25 }
 0x4ce   :  { %9472 = vmatprep.subr.bf16.mxu1 %v10837_v63  ;;  %v510_v56 = vld [vmem:[#allocation2 + $0xe38] sm:$0xff] }
 0x4cf   :  { %9430 = vmatpush2.bf16.msra.mxu0 %v10708_v0  ;;  %v10805_v10 = vcombine.high %v506_v22, %v510_v56  ;;  %v626_v16 = vld [vmem:[#allocation2 + $0x11d8] sm:$0xff]  ;;  %v10804_v30 = vcombine.low %v506_v22, %v510_v56 }
 0x4d0   :  { %9431 = vmatprep.subr.bf16.mxu0 %v10701_v31  ;;  %v630_v34 = vld [vmem:[#allocation2 + $0x11f8] sm:$0xff]  ;;  %v11277_v31 = vld [vmem:[%s13412_s0 + $0x24] ss:$48 sps:$4 sm:$0x3f]  }
 0x4d1   :  { %9473 = vmatpush2.bf16.msra.mxu1 %v10836_v3  ;;  %v754_v1 = vld [vmem:[#allocation2 + $0x15d8] sm:$0xff]  ;;  %v10925_v19 = vcombine.high %v626_v16, %v630_v34  ;;  %v10924_v28 = vcombine.low %v626_v16, %v630_v34 }
 0x4d2   :  { %9474 = vmatprep.subr.bf16.mxu1 %v10829_v41  ;;  %v758_v36 = vld [vmem:[#allocation2 + $0x15f8] sm:$0xff] }
 0x4d3   :  { %9432 = vmatpush2.bf16.msra.mxu0 %v10700_v37  ;;  %v11053_v38 = vcombine.high %v754_v1, %v758_v36  ;;  %v618_v17 = vld [vmem:[#allocation2 + $0x1198] sm:$0xff]  ;;  %v11052_v29 = vcombine.low %v754_v1, %v758_v36 }
 0x4d4   :  { %9433 = vmatprep.subr.bf16.mxu0 %v10693_v52  ;;  %v622_v23 = vld [vmem:[#allocation2 + $0x11b8] sm:$0xff] }
 0x4d5   :  { %9475 = vmatpush2.bf16.msra.mxu1 %v10828_v43  ;;  %v746_v24 = vld [vmem:[#allocation2 + $0x1598] sm:$0xff]  ;;  %v10917_v9 = vcombine.high %v618_v17, %v622_v23  ;;  %v10916_v20 = vcombine.low %v618_v17, %v622_v23 }
 0x4d6   :  { %9476 = vmatprep.subr.bf16.mxu1 %v10821_v45  ;;  %v750_v18 = vld [vmem:[#allocation2 + $0x15b8] sm:$0xff] }
 0x4d7   :  { %9434 = vmatpush2.bf16.msra.mxu0 %v10692_v62  ;;  %v11045_v50 = vcombine.high %v746_v24, %v750_v18  ;;  %v610_v58 = vld [vmem:[#allocation2 + $0x1158] sm:$0xff]  ;;  %v11044_v40 = vcombine.low %v746_v24, %v750_v18 }
 0x4d8   :  { %9435 = vmatprep.subr.bf16.mxu0 %v10685_v57  ;;  %v614_v60 = vld [vmem:[#allocation2 + $0x1178] sm:$0xff] }
 0x4d9   :  { %9477 = vmatpush2.bf16.msra.mxu1 %v10820_v5  ;;  %v738_v39 = vld [vmem:[#allocation2 + $0x1558] sm:$0xff]  ;;  %v10909_v32 = vcombine.high %v610_v58, %v614_v60  ;;  %v10908_v49 = vcombine.low %v610_v58, %v614_v60 }
 0x4da   :  { %9478 = vmatprep.subr.bf16.mxu1 %v10813_v12  ;;  %v742_v14 = vld [vmem:[#allocation2 + $0x1578] sm:$0xff] }
 0x4db   :  { %9436 = vmatpush2.bf16.msra.mxu0 %v10684_v6  ;;  %v11276_v63 = vld [vmem:[%s13412_s0 + $0x18] ss:$48 sps:$4 sm:$0x3f]   ;;  %v11037_v46 = vcombine.high %v738_v39, %v742_v14  ;;  %v11278_v27 = vld [vmem:[%s13412_s0 + $0x2c] ss:$48 sps:$4 sm:$0x3f]   ;;  %v11036_v21 = vcombine.low %v738_v39, %v742_v14 }
 0x4dc   :  { %9437 = vmatprep.subr.bf16.mxu0 %v10677_v61  ;;  %v602_v0 = vld [vmem:[#allocation2 + $0x1118] sm:$0xff] }
 0x4dd   :  { %9479 = vmatpush2.bf16.msra.mxu1 %v10812_v47  ;;  %v606_v3 = vld [vmem:[#allocation2 + $0x1138] sm:$0xff] }
 0x4de   :  { %9480 = vmatprep.subr.bf16.mxu1 %v10805_v10  ;;  %v730_v41 = vld [vmem:[#allocation2 + $0x1518] sm:$0xff]  ;;  %v10901_v37 = vcombine.high %v602_v0, %v606_v3  ;;  %v10900_v55 = vcombine.low %v602_v0, %v606_v3 }
 0x4df   :  { %9438 = vmatpush2.bf16.msra.mxu0 %v10676_v4  ;;  %v734_v53 = vld [vmem:[#allocation2 + $0x1538] sm:$0xff] }
 0x4e0   :  { %9493 = vmatprep.subr.bf16.mxu0 %v10925_v19  ;;  %v11029_v43 = vcombine.high %v730_v41, %v734_v53  ;;  %v594_v52 = vld [vmem:[#allocation2 + $0x10d8] sm:$0xff]  ;;  %v11028_v48 = vcombine.low %v730_v41, %v734_v53 }
 0x4e1   :  { %9481 = vmatpush2.bf16.msra.mxu1 %v10804_v30  ;;  %v598_v45 = vld [vmem:[#allocation2 + $0x10f8] sm:$0xff] }
 0x4e2   :  { %9536 = vmatprep.subr.bf16.mxu1 %v11053_v38  ;;  %9440 = vmatmul.mubr.bf16.vlgmr.msra.gmra.mxu0 %v11275_v13  ;;  %v722_v42 = vld [vmem:[#allocation2 + $0x14d8] sm:$0xff]  ;;  %v10893_v62 = vcombine.high %v594_v52, %v598_v45  ;;  %v10892_v22 = vcombine.low %v594_v52, %v598_v45 }
 0x4e3   :  { %9494 = vmatpush1.bf16.msra.mxu0 %v10924_v28  ;;  %9525 = vmatprep.mubr.bf16.mxu0 %v11277_v31  ;;  %v726_v54 = vld [vmem:[#allocation2 + $0x14f8] sm:$0xff] }
 0x4e4   :  { %9483 = vmatmul.mubr.bf16.vlgmr.msra.gmra.mxu1 %v11276_v63  ;;  %9495 = vmatprep.subr.bf16.mxu0 %v10917_v9  ;;  %v11021_v5 = vcombine.high %v722_v42, %v726_v54  ;;  %v586_v57 = vld [vmem:[#allocation2 + $0x1098] sm:$0xff]  ;;  %v11020_v56 = vcombine.low %v722_v42, %v726_v54 }
 0x4e5   :  { %9537 = vmatpush1.bf16.msra.mxu1 %v11052_v29  ;;  %9568 = vmatprep.mubr.bf16.mxu1 %v11278_v27  ;;  %v590_v12 = vld [vmem:[#allocation2 + $0x10b8] sm:$0xff] }
 0x4e6   :  { %9538 = vmatprep.subr.bf16.mxu1 %v11045_v50  ;;  %v714_v7 = vld [vmem:[#allocation2 + $0x1498] sm:$0xff]  ;;  %v10885_v6 = vcombine.high %v586_v57, %v590_v12  ;;  %v10884_v1 = vcombine.low %v586_v57, %v590_v12 }
 0x4e7   :  { %9496 = vmatpush1.bf16.msra.mxu0 %v10916_v20  ;;  %v718_v25 = vld [vmem:[#allocation2 + $0x14b8] sm:$0xff] }
 0x4e8   :  { %9497 = vmatprep.subr.bf16.mxu0 %v10909_v32  ;;  %v11013_v47 = vcombine.high %v714_v7, %v718_v25  ;;  %v578_v61 = vld [vmem:[#allocation2 + $0x1058] sm:$0xff]  ;;  %v11012_v36 = vcombine.low %v714_v7, %v718_v25 }
 0x4e9   :  { %9539 = vmatpush1.bf16.msra.mxu1 %v11044_v40  ;;  %v582_v10 = vld [vmem:[#allocation2 + $0x1078] sm:$0xff] }
 0x4ea   :  { %9540 = vmatprep.subr.bf16.mxu1 %v11037_v46  ;;  %v706_v16 = vld [vmem:[#allocation2 + $0x1458] sm:$0xff]  ;;  %v10877_v4 = vcombine.high %v578_v61, %v582_v10  ;;  %v10876_v24 = vcombine.low %v578_v61, %v582_v10 }
 0x4eb   :  { %9498 = vmatpush1.bf16.msra.mxu0 %v10908_v49  ;;  %v710_v34 = vld [vmem:[#allocation2 + $0x1478] sm:$0xff] }
 0x4ec   :  { %9499 = vmatprep.subr.bf16.mxu0 %v10901_v37  ;;  %v11005_v30 = vcombine.high %v706_v16, %v710_v34  ;;  %v570_v19 = vld [vmem:[#allocation2 + $0x1018] sm:$0xff]  ;;  %v11004_v18 = vcombine.low %v706_v16, %v710_v34 }
 0x4ed   :  { %9541 = vmatpush1.bf16.msra.mxu1 %v11036_v21  ;;  %v574_v38 = vld [vmem:[#allocation2 + $0x1038] sm:$0xff] }
 0x4ee   :  { %9542 = vmatprep.subr.bf16.mxu1 %v11029_v43  ;;  %v698_v17 = vld [vmem:[#allocation2 + $0x1418] sm:$0xff]  ;;  %v10869_v28 = vcombine.high %v570_v19, %v574_v38  ;;  %v10868_v13 = vcombine.low %v570_v19, %v574_v38 }
 0x4ef   :  { %9500 = vmatpush1.bf16.msra.mxu0 %v10900_v55  ;;  %v702_v23 = vld [vmem:[#allocation2 + $0x1438] sm:$0xff]  ;;  %v9097_v55 = vpop.f32.mrf.mxu0 }
 0x4f0   :  { %9501 = vmatprep.subr.bf16.mxu0 %v10893_v62  ;;  %v10997_v29 = vcombine.high %v698_v17, %v702_v23  ;;  %v690_v9 = vld [vmem:[#allocation2 + $0x13d8] sm:$0xff]  ;;  %v10996_v39 = vcombine.low %v698_v17, %v702_v23 }
 0x4f1   :  { %9543 = vmatpush1.bf16.msra.mxu1 %v11028_v48  ;;  %v694_v50 = vld [vmem:[#allocation2 + $0x13f8] sm:$0xff] }
 0x4f2   :  { %9544 = vmatprep.subr.bf16.mxu1 %v11021_v5  ;;  %v818_v58 = vld [vmem:[#allocation2 + $0x17d8] sm:$0xff]  ;;  %v10989_v14 = vcombine.high %v690_v9, %v694_v50  ;;  %v10988_v0 = vcombine.low %v690_v9, %v694_v50  ;;  %v13360_v5 = vpop.f32.mrf.mxu1 }
 0x4f3   :  { %9502 = vmatpush1.bf16.msra.mxu0 %v10892_v22  ;;  %v822_v60 = vld [vmem:[#allocation2 + $0x17f8] sm:$0xff] }
 0x4f4   :  { %9503 = vmatprep.subr.bf16.mxu0 %v10885_v6  ;;  %v11117_v63 = vcombine.high %v818_v58, %v822_v60  ;;  %v682_v20 = vld [vmem:[#allocation2 + $0x1398] sm:$0xff]  ;;  %v11116_v3 = vcombine.low %v818_v58, %v822_v60  ;;  %v9099_v6 = vpop.f32.mrf.mxu0  ;;  %v13362_v10 = vpop.f32.mrf.mxu1 }
 0x4f5   :  { %9545 = vmatpush1.bf16.msra.mxu1 %v11020_v56  ;;  %v686_v40 = vld [vmem:[#allocation2 + $0x13b8] sm:$0xff] }
 0x4f6   :  { %9546 = vmatprep.subr.bf16.mxu1 %v11013_v47  ;;  %v810_v32 = vld [vmem:[#allocation2 + $0x1798] sm:$0xff]  ;;  %v10981_v31 = vcombine.high %v682_v20, %v686_v40  ;;  %v10980_v37 = vcombine.low %v682_v20, %v686_v40  ;;  %v9101_v19 = vpop.f32.mrf.mxu0  ;;  %v9144_v23 = vpop.f32.mrf.mxu1 }
 0x4f7   :  { %9504 = vmatpush1.bf16.msra.mxu0 %v10884_v1  ;;  %v814_v46 = vld [vmem:[#allocation2 + $0x17b8] sm:$0xff] }
 0x4f8   :  { %9505 = vmatprep.subr.bf16.mxu0 %v10877_v4  ;;  %v11109_v41 = vcombine.high %v810_v32, %v814_v46  ;;  %v674_v53 = vld [vmem:[#allocation2 + $0x1358] sm:$0xff]  ;;  %v11108_v43 = vcombine.low %v810_v32, %v814_v46  ;;  %v9103_v58 = vpop.f32.mrf.mxu0 }
 0x4f9   :  { %9547 = vmatpush1.bf16.msra.mxu1 %v11012_v36  ;;  %v678_v27 = vld [vmem:[#allocation2 + $0x1378] sm:$0xff] }
 0x4fa   :  { %9548 = vmatprep.subr.bf16.mxu1 %v11005_v30  ;;  %v802_v49 = vld [vmem:[#allocation2 + $0x1758] sm:$0xff]  ;;  %v10973_v52 = vcombine.high %v674_v53, %v678_v27  ;;  %v10972_v57 = vcombine.low %v674_v53, %v678_v27  ;;  %v9098_v53 = vadd.f32 %v9097_v55, %v13034_v33 }
 0x4fb   :  { %9506 = vmatpush1.bf16.msra.mxu0 %v10876_v24  ;;  %v806_v21 = vld [vmem:[#allocation2 + $0x1778] sm:$0xff] }
 0x4fc   :  { %9507 = vmatprep.subr.bf16.mxu0 %v10869_v28  ;;  %v11101_v45 = vcombine.high %v802_v49, %v806_v21  ;;  %v666_v42 = vld [vmem:[#allocation2 + $0x1318] sm:$0xff]  ;;  %v11100_v12 = vcombine.low %v802_v49, %v806_v21 }
 0x4fd   :  { %9549 = vmatpush1.bf16.msra.mxu1 %v11004_v18  ;;  %v670_v54 = vld [vmem:[#allocation2 + $0x1338] sm:$0xff] }
 0x4fe   :  { %9550 = vmatprep.subr.bf16.mxu1 %v10997_v29  ;;  %v794_v48 = vld [vmem:[#allocation2 + $0x1718] sm:$0xff]  ;;  %v10965_v7 = vcombine.high %v666_v42, %v670_v54  ;;  %v10964_v16 = vcombine.low %v666_v42, %v670_v54  ;;  %v9141_v42 = vadd.f32 %v13360_v5, %v9098_v53  ;;  %v9102_v54 = vadd.f32 %v9101_v19, %v13046_v59 }
 0x4ff   :  { %9508 = vmatpush1.bf16.msra.mxu0 %v10868_v13  ;;  %v798_v62 = vld [vmem:[#allocation2 + $0x1738] sm:$0xff]  ;;  %v9599_v5 = vsub.s32 4, %v13141_v26 }
 0x500   :  { %9509 = vmatprep.subr.bf16.mxu0 %v10989_v14  ;;  %v11093_v25 = vcombine.high %v794_v48, %v798_v62  ;;  %v658_v22 = vld [vmem:[#allocation2 + $0x12d8] sm:$0xff]  ;;  %v11092_v34 = vcombine.low %v794_v48, %v798_v62 }
 0x501   :  { %9551 = vmatpush1.bf16.msra.mxu1 %v10996_v39  ;;  %v662_v56 = vld [vmem:[#allocation2 + $0x12f8] sm:$0xff]  ;;  %v9146_v39 = vpop.f32.mrf.mxu1 }
 0x502   :  { %9552 = vmatprep.subr.bf16.mxu1 %v11117_v63  ;;  %v786_v47 = vld [vmem:[#allocation2 + $0x16d8] sm:$0xff]  ;;  %v10957_v1 = vcombine.high %v658_v22, %v662_v56  ;;  %v10956_v24 = vcombine.low %v658_v22, %v662_v56  ;;  %v9183_v63 = vpop.f32.mrf.mxu0 }
 0x503   :  { %9510 = vmatpush2.bf16.msra.mxu0 %v10988_v0  ;;  %v790_v61 = vld [vmem:[#allocation2 + $0x16f8] sm:$0xff]  ;;  %v9226_v32 = vpop.f32.mrf.mxu1 }
 0x504   :  { %9511 = vmatprep.subr.bf16.mxu0 %v10981_v31  ;;  %v11085_v36 = vcombine.high %v786_v47, %v790_v61  ;;  %v650_v4 = vld [vmem:[#allocation2 + $0x1298] sm:$0xff]  ;;  %v11084_v18 = vcombine.low %v786_v47, %v790_v61  ;;  %v9185_v49 = vpop.f32.mrf.mxu0  ;;  %v9603_v61 = vsub.s32 5, %v13141_v26 }
 0x505   :  { %9553 = vmatpush2.bf16.msra.mxu1 %v11116_v3  ;;  %v654_v30 = vld [vmem:[#allocation2 + $0x12b8] sm:$0xff] }
 0x506   :  { %9554 = vmatprep.subr.bf16.mxu1 %v11109_v41  ;;  %v778_v38 = vld [vmem:[#allocation2 + $0x1698] sm:$0xff]  ;;  %v10949_v28 = vcombine.high %v650_v4, %v654_v30  ;;  %v10948_v14 = vcombine.low %v650_v4, %v654_v30  ;;  %v9187_v62 = vpop.f32.mrf.mxu0  ;;  %v13375_v4 = vld [vmem:[#allocation4] sm:$0xff] }
 0x507   :  { %9512 = vmatpush2.bf16.msra.mxu0 %v10980_v37  ;;  %v782_v17 = vld [vmem:[#allocation2 + $0x16b8] sm:$0xff]  ;;  %v9600_v30 = vrot.slane %v13375_v4, %v9599_v5 }
 0x508   :  { %9513 = vmatprep.subr.bf16.mxu0 %v10973_v52  ;;  %v11077_v29 = vcombine.high %v778_v38, %v782_v17  ;;  %v642_v9 = vld [vmem:[#allocation2 + $0x1258] sm:$0xff]  ;;  %v11076_v20 = vcombine.low %v778_v38, %v782_v17  ;;  %v9228_v52 = vpop.f32.mrf.mxu1  ;;  %v9189_v22 = vpop.f32.mrf.mxu0 }
 0x509   :  { %9555 = vmatpush2.bf16.msra.mxu1 %v11108_v43  ;;  %v646_v50 = vld [vmem:[#allocation2 + $0x1278] sm:$0xff]  ;;  %v9100_v43 = vadd.f32 %v9099_v6, %v13043_v51  ;;  %v9145_v51 = vadd.f32 %v9144_v23, %v9102_v54 }
 0x50a   :  { %9556 = vmatprep.subr.bf16.mxu1 %v11101_v45  ;;  %v770_v60 = vld [vmem:[#allocation2 + $0x1658] sm:$0xff]  ;;  %v10941_v40 = vcombine.high %v642_v9, %v646_v50  ;;  %v10940_v27 = vcombine.low %v642_v9, %v646_v50 }
 0x50b   :  { %9514 = vmatpush2.bf16.msra.mxu0 %v10972_v57  ;;  %v774_v13 = vld [vmem:[#allocation2 + $0x1678] sm:$0xff]  ;;  %v9143_v55 = vadd.f32 %v13362_v10, %v9100_v43  ;;  %v9104_v57 = vadd.f32 %v9103_v58, %v13049_v35  ;;  %v9188_v6 = vadd.f32 %v9187_v62, %v9145_v51  ;;  %v11279_v35 = vld [vmem:[%s13412_s0 + $0x20] ss:$48 sps:$4 sm:$0x3f]  }
 0x50c   :  { %9515 = vmatprep.subr.bf16.mxu0 %v10965_v7  ;;  %v11069_v46 = vcombine.high %v770_v60, %v774_v13  ;;  %v634_v0 = vld [vmem:[#allocation2 + $0x1218] sm:$0xff]  ;;  %v11068_v21 = vcombine.low %v770_v60, %v774_v13  ;;  %v9230_v7 = vpop.f32.mrf.mxu1 }
 0x50d   :  { %9557 = vmatpush2.bf16.msra.mxu1 %v11100_v12  ;;  %v638_v3 = vld [vmem:[#allocation2 + $0x1238] sm:$0xff]  ;;  %v9184_v12 = vadd.f32 %v9183_v63, %v9141_v42  ;;  %v9147_v59 = vadd.f32 %v9146_v39, %v9104_v57  ;;  %v9231_v17 = vadd.f32 %v9230_v7, %v9188_v6 }
 0x50e   :  { %9558 = vmatprep.subr.bf16.mxu1 %v11093_v25  ;;  %v762_v31 = vld [vmem:[#allocation2 + $0x1618] sm:$0xff]  ;;  %v10933_v37 = vcombine.high %v634_v0, %v638_v3  ;;  %v10932_v48 = vcombine.low %v634_v0, %v638_v3  ;;  %v9186_v25 = vadd.f32 %v9185_v49, %v9143_v55  ;;  %v9232_v47 = vpop.f32.mrf.mxu1 }
 0x50f   :  { %9516 = vmatpush2.bf16.msra.mxu0 %v10964_v16  ;;  %v766_v41 = vld [vmem:[#allocation2 + $0x1638] sm:$0xff]  ;;  %v9227_v56 = vadd.f32 %v9226_v32, %v9184_v12 }
 0x510   :  { %9517 = vmatprep.subr.bf16.mxu0 %v10957_v1  ;;  %v11061_v45 = vcombine.high %v762_v31, %v766_v41  ;;  %v11060_v33 = vcombine.low %v762_v31, %v766_v41  ;;  %v9229_v10 = vadd.f32 %v9228_v52, %v9186_v25  ;;  %v11281_v19 = vld [vmem:[%s13412_s0 + $0x28] ss:$48 sps:$4 sm:$0x3f]   ;;  %v9814_v25 = vld [vmem:[%s13416_s4 + $0x30] sm:$0x33] }
 0x511   :  { %9559 = vmatpush2.bf16.msra.mxu1 %v11092_v34  ;;  %v9190_v34 = vadd.f32 %v9189_v22, %v9147_v59 }
 0x512   :  { %9560 = vmatprep.subr.bf16.mxu1 %v11085_v36 }
 0x513   :  { %9518 = vmatpush2.bf16.msra.mxu0 %v10956_v24  ;;  %v9233_v9 = vadd.f32 %v9232_v47, %v9190_v34 }
 0x514   :  { %9519 = vmatprep.subr.bf16.mxu0 %v10949_v28  ;;  %v9604_v28 = vrot.slane %v13375_v4, %v9603_v61 }
 0x515   :  { %9561 = vmatpush2.bf16.msra.mxu1 %v11084_v18 }
 0x516   :  { %9562 = vmatprep.subr.bf16.mxu1 %v11077_v29 }
 0x517   :  { %9520 = vmatpush2.bf16.msra.mxu0 %v10948_v14 }
 0x518   :  { %9521 = vmatprep.subr.bf16.mxu0 %v10941_v40 }
 0x519   :  { %9563 = vmatpush2.bf16.msra.mxu1 %v11076_v20 }
 0x51a   :  { %9564 = vmatprep.subr.bf16.mxu1 %v11069_v46 }
 0x51b   :  { %9522 = vmatpush2.bf16.msra.mxu0 %v10940_v27 }
 0x51c   :  { %9523 = vmatprep.subr.bf16.mxu0 %v10933_v37 }
 0x51d   :  { %9565 = vmatpush2.bf16.msra.mxu1 %v11068_v21 }
 0x51e   :  { %9566 = vmatprep.subr.bf16.mxu1 %v11061_v45 }
 0x51f   :  { %9524 = vmatpush2.bf16.msra.mxu0 %v10932_v48 }
 0x521   :  { %9567 = vmatpush2.bf16.msra.mxu1 %v11060_v33 }
 0x522   :  { %v9269_v16 = vpop.f32.mrf.mxu0  ;;  %9526 = vmatmul.mubr.bf16.vlgmr.msra.gmra.mxu0 %v11279_v35 }
 0x523   :  { %v9270_v1 = vadd.f32 %v9269_v16, %v9227_v56 }
 0x524   :  { %v9312_v36 = vpop.f32.mrf.mxu1  ;;  %9569 = vmatmul.mubr.bf16.vlgmr.msra.gmra.mxu1 %v11281_v19  ;;  %v9271_v38 = vpop.f32.mrf.mxu0 }
 0x525   :  { %v9313_v23 = vadd.f32 %v9312_v36, %v9270_v1  ;;  %v9272_v24 = vadd.f32 %v9271_v38, %v9229_v10 }
 0x526   :  { %v9314_v18 = vpop.f32.mrf.mxu1  ;;  %v9273_v29 = vpop.f32.mrf.mxu0 }
 0x527   :  { %v9625_v50 = vadd.f32 %v9600_v30, %v9313_v23  ;;  %v9315_v58 = vadd.f32 %v9314_v18, %v9272_v24  ;;  %v9274_v60 = vadd.f32 %v9273_v29, %v9231_v17 }
 0x528   :  { %v9316_v13 = vpop.f32.mrf.mxu1  ;;  %v9275_v39 = vpop.f32.mrf.mxu0 }
 0x529   :  { %v11122_v14 = vmul.f32 -1.442695, %v9625_v50  ;;  %v9626_v63 = vadd.f32 %v9604_v28, %v9315_v58  ;;  %v9317_v20 = vadd.f32 %v9316_v13, %v9274_v60  ;;  %v9276_v40 = vadd.f32 %v9275_v39, %v9233_v9 }
 0x52a   :  { %v9318_v32 = vpop.f32.mrf.mxu1  ;;  %v9607_v60 = vsub.s32 6, %v13141_v26 }
 0x52b   :  { %11204 = vpow2.f32 %v11122_v14  ;;  %v11123_v46 = vmul.f32 -1.442695, %v9626_v63  ;;  %v9633_v0 = vadd.f32 %v9600_v30, %v9317_v20  ;;  %v9319_v3 = vadd.f32 %v9318_v32, %v9276_v40 }
 0x52d   :  { %11206 = vpow2.f32 %v11123_v46  ;;  %v11130_v31 = vmul.f32 -1.442695, %v9633_v0  ;;  %v9634_v41 = vadd.f32 %v9604_v28, %v9319_v3 }
 0x52f   :  { %11208 = vpow2.f32 %v11130_v31  ;;  %v11131_v53 = vmul.f32 -1.442695, %v9634_v41 }
 0x531   :  { %11210 = vpow2.f32 %v11131_v53 }
 0x538   :  { %v11205_v27 = vpop.eup %11204 }
 0x539   :  { %v9689_v49 = vadd.f32 1.0, %v11205_v27 }
 0x53a   :  { %v11207_v21 = vpop.eup %11206 }
 0x53b   :  { %11212 = vrcp.f32 %v9689_v49  ;;  %v9690_v37 = vadd.f32 1.0, %v11207_v21 }
 0x53c   :  { %v11209_v43 = vpop.eup %11208 }
 0x53d   :  { %11214 = vrcp.f32 %v9690_v37  ;;  %v9697_v52 = vadd.f32 1.0, %v11209_v43 }
 0x53e   :  { %v11211_v45 = vpop.eup %11210 }
 0x53f   :  { %11216 = vrcp.f32 %v9697_v52  ;;  %v9698_v42 = vadd.f32 1.0, %v11211_v45 }
 0x541   :  { %11218 = vrcp.f32 %v9698_v42 }
 0x548   :  { %v11213_v54 = vpop.eup %11212 }
 0x549   :  { %v9737_v62 = vmul.f32 %v11213_v54, %v9625_v50 }
 0x54a   :  { %v11215_v48 = vpop.eup %11214 }
 0x54b   :  { %v9738_v33 = vmul.f32 %v11215_v48, %v9626_v63 }
 0x54c   :  { %v11217_v55 = vpop.eup %11216 }
 0x54d   :  { %v11144_v57 = vpack.c.bf16 %v9738_v33, %v9737_v62  ;;  %v9745_v7 = vmul.f32 %v11217_v55, %v9633_v0 }
 0x54e   :  { %v11219_v12 = vpop.eup %11218 }
 0x54f   :  { %9799 = vst [vmem:[%s13416_s4 + $0x10] sm:$0xff] %v11144_v57  ;;  %v9746_v51 = vmul.f32 %v11219_v12, %v9634_v41 }
 0x551   :  { %v11148_v5 = vpack.c.bf16 %v9746_v51, %v9745_v7 }
 0x553   :  { %v9815_v22 = vsel %vm13218_vm6, %v11148_v5, %v9814_v25 }
 0x554   :  { %9816 = vst [vmem:[%s13416_s4 + $0x30] sm:$0x33] %v9815_v22 }
 0x562   :  { %v9355_v59 = vpop.f32.mrf.mxu0 }
 0x563   :  { %v9356_v36 = vadd.f32 %v9355_v59, %v13078_v2 }
 0x564   :  { %v9398_v56 = vpop.f32.mrf.mxu1  ;;  %v9357_v6 = vpop.f32.mrf.mxu0 }
 0x565   :  { %v9358_v19 = vadd.f32 %v9357_v6, %v13087_v11  ;;  %v9399_v17 = vadd.f32 %v9398_v56, %v9356_v36  ;;  %v9611_v11 = vsub.s32 7, %v13141_v26 }
 0x566   :  { %v9400_v47 = vpop.f32.mrf.mxu1  ;;  %v9359_v61 = vpop.f32.mrf.mxu0 }
 0x567   :  { %v9360_v23 = vadd.f32 %v9359_v61, %v13090_v44  ;;  %v9401_v18 = vadd.f32 %v9400_v47, %v9358_v19  ;;  %v9612_v27 = vrot.slane %v13375_v4, %v9611_v11 }
 0x568   :  { %v9402_v16 = vpop.f32.mrf.mxu1  ;;  %v9361_v35 = vpop.f32.mrf.mxu0 }
 0x569   :  { %v9362_v28 = vadd.f32 %v9361_v35, %v13093_v8  ;;  %v9403_v50 = vadd.f32 %v9402_v16, %v9360_v23  ;;  %v9608_v8 = vrot.slane %v13375_v4, %v9607_v60 }
 0x56a   :  { %v9404_v10 = vpop.f32.mrf.mxu1 }
 0x56b   :  { %v9405_v39 = vadd.f32 %v9404_v10, %v9362_v28 }
 0x5a2   :  { %v9441_v34 = vpop.f32.mrf.mxu0 }
 0x5a3   :  { %v9442_v29 = vadd.f32 %v9441_v34, %v9399_v17  ;;  %v9817_v17 = vld [vmem:[%s13416_s4 + $0x38] sm:$0x33] }
 0x5a4   :  { %v9484_v1 = vpop.f32.mrf.mxu1  ;;  %v9443_v30 = vpop.f32.mrf.mxu0 }
 0x5a5   :  { %v9444_v58 = vadd.f32 %v9443_v30, %v9401_v18  ;;  %v9485_v2 = vadd.f32 %v9484_v1, %v9442_v29 }
 0x5a6   :  { %v9486_v38 = vpop.f32.mrf.mxu1  ;;  %v9445_v24 = vpop.f32.mrf.mxu0 }
 0x5a7   :  { %v9446_v14 = vadd.f32 %v9445_v24, %v9403_v50  ;;  %v9487_v40 = vadd.f32 %v9486_v38, %v9444_v58 }
 0x5a8   :  { %v9488_v9 = vpop.f32.mrf.mxu1  ;;  %v9447_v13 = vpop.f32.mrf.mxu0 }
 0x5a9   :  { %v9448_v44 = vadd.f32 %v9447_v13, %v9405_v39  ;;  %v9489_v3 = vadd.f32 %v9488_v9, %v9446_v14 }
 0x5aa   :  { %v9490_v63 = vpop.f32.mrf.mxu1 }
 0x5ab   :  { %v9491_v21 = vadd.f32 %v9490_v63, %v9448_v44 }
 0x5e2   :  { %v9527_v20 = vpop.f32.mrf.mxu0 }
 0x5e3   :  { %v9528_v32 = vadd.f32 %v9527_v20, %v9485_v2 }
 0x5e4   :  { %v9570_v46 = vpop.f32.mrf.mxu1  ;;  %v9529_v0 = vpop.f32.mrf.mxu0 }
 0x5e5   :  { %v9571_v31 = vadd.f32 %v9570_v46, %v9528_v32  ;;  %v9530_v41 = vadd.f32 %v9529_v0, %v9487_v40 }
 0x5e6   :  { %v9572_v53 = vpop.f32.mrf.mxu1  ;;  %v9531_v49 = vpop.f32.mrf.mxu0 }
 0x5e7   :  { %v9627_v37 = vadd.f32 %v9608_v8, %v9571_v31  ;;  %v9573_v43 = vadd.f32 %v9572_v53, %v9530_v41  ;;  %v9532_v52 = vadd.f32 %v9531_v49, %v9489_v3 }
 0x5e8   :  { %v9574_v26 = vpop.f32.mrf.mxu1  ;;  %v9533_v45 = vpop.f32.mrf.mxu0 }
 0x5e9   :  { %v11124_v42 = vmul.f32 -1.442695, %v9627_v37  ;;  %v9628_v54 = vadd.f32 %v9612_v27, %v9573_v43  ;;  %v9575_v48 = vadd.f32 %v9574_v26, %v9532_v52  ;;  %v9534_v62 = vadd.f32 %v9533_v45, %v9491_v21 }
 0x5ea   :  { %v9576_v33 = vpop.f32.mrf.mxu1 }
 0x5eb   :  { %11220 = vpow2.f32 %v11124_v42  ;;  %v11125_v55 = vmul.f32 -1.442695, %v9628_v54  ;;  %v9635_v57 = vadd.f32 %v9608_v8, %v9575_v48  ;;  %v9577_v12 = vadd.f32 %v9576_v33, %v9534_v62 }
 0x5ed   :  { %11222 = vpow2.f32 %v11125_v55  ;;  %v11132_v7 = vmul.f32 -1.442695, %v9635_v57  ;;  %v9636_v51 = vadd.f32 %v9612_v27, %v9577_v12 }
 0x5ef   :  { %11224 = vpow2.f32 %v11132_v7  ;;  %v11133_v4 = vmul.f32 -1.442695, %v9636_v51 }
 0x5f1   :  { %11226 = vpow2.f32 %v11133_v4 }
 0x5f8   :  { %v11221_v25 = vpop.eup %11220 }
 0x5f9   :  { %v9691_v5 = vadd.f32 1.0, %v11221_v25 }
 0x5fa   :  { %v11223_v22 = vpop.eup %11222 }
 0x5fb   :  { %11228 = vrcp.f32 %v9691_v5  ;;  %v9692_v59 = vadd.f32 1.0, %v11223_v22 }
 0x5fc   :  { %v11225_v56 = vpop.eup %11224 }
 0x5fd   :  { %11230 = vrcp.f32 %v9692_v59  ;;  %v9699_v6 = vadd.f32 1.0, %v11225_v56 }
 0x5fe   :  { %v11227_v47 = vpop.eup %11226 }
 0x5ff   :  { %11232 = vrcp.f32 %v9699_v6  ;;  %v9700_v61 = vadd.f32 1.0, %v11227_v47 }
 0x601   :  { %11234 = vrcp.f32 %v9700_v61 }
 0x608   :  { %v11229_v16 = vpop.eup %11228 }
 0x609   :  { %v9739_v10 = vmul.f32 %v11229_v16, %v9627_v37 }
 0x60a   :  { %v11231_v35 = vpop.eup %11230 }
 0x60b   :  { %v9740_v34 = vmul.f32 %v11231_v35, %v9628_v54 }
 0x60c   :  { %v11233_v1 = vpop.eup %11232 }
 0x60d   :  { %v11145_v36 = vpack.c.bf16 %v9740_v34, %v9739_v10  ;;  %v9747_v19 = vmul.f32 %v11233_v1, %v9635_v57 }
 0x60e   :  { %v11235_v30 = vpop.eup %11234 }
 0x60f   :  { %9800 = vst [vmem:[%s13416_s4 + $0x18] sm:$0xff] %v11145_v36  ;;  %v9748_v38 = vmul.f32 %v11235_v30, %v9636_v51 }
 0x611   :  { %v11149_v23 = vpack.c.bf16 %v9748_v38, %v9747_v19 }
 0x613   :  { %v9818_v24 = vsel %vm13218_vm6, %v11149_v23, %v9817_v17 }
 0x614   :  { %9819 = vst [vmem:[%s13416_s4 + $0x38] sm:$0x33] %v9818_v24 }
 0x615   :  { %9824 = vsyncpa [#allocation3], 1 }
 0x616   :  { %9825 = vsyncpa [#allocation5], 1 }

</bundles_post_ra>
